<compile_context>
chip_gen: v7x
topology: tpu7x:2x2x1
jax: 0.10.0
libtpu: 0.0.40
codegen_flags: <defaults>
</compile_context>

<pallas_src>
import functools

import jax
import jax.numpy as jnp
from jax.experimental import pallas as pl
from jax.experimental.pallas import tpu as pltpu


CPAD = 32  # uniform channel padding for all VMEM-resident activations (max channels)


# ------------------------------ Pallas kernel -------------------------------


def _dcgan_disc_kernel(x_ref,
                       w1_ref, w2_ref, w3_ref, w4_ref,
                       b1_ref, b2_ref, b3_ref, b4_ref,
                       wl_ref, bl_ref,
                       o_ref, *, n, negative_slope):
    """Entire discriminator forward; every intermediate stays in VMEM / vregs.

    x_ref  : (19, 19, n, CPAD) f32  raw image, HWNC, 1 top/left + 2 bottom/right zero
                                    border, channels zero-padded to CPAD
    wK_ref : (16*CPAD, CPAD)  bf16  conv weight, rows = (tap, ci), BN scale folded in
    bK_ref : (1, CPAD)        f32   BN shift (beta - mean*scale), channel padded
    wl_ref : (1, CPAD) f32, bl_ref : (1, 1) f32   final Linear
    o_ref  : (n, 1) f32             logits
    """

    def leaky(v):
        return jnp.where(v >= 0.0, v, negative_slope * v)

    def conv_block(ypad, w_ref, b_ref, s_in):
        """One Conv(k=4,s=2,p=1) -> (BN shift) -> LeakyReLU block.

        ypad: (s_in+3, s_in+3, n, CPAD) f32, zero border already in place.
        Returns (s_out*s_out*n, CPAD) f32, rows ordered (row, col, batch).
        """
        s_out = s_in // 2
        taps = []
        for kh in range(4):          # static unroll: pure slicing, no dots, no chain
            for kw in range(4):
                # padded source coords for output (r, c) and tap (kh, kw) are
                # (2r + kh, 2c + kw): slice + split-leading-dim + pick even index.
                g = ypad[kh:kh + s_in]                                    # rows
                g = g.reshape(s_out, 2, s_in + 3, n, CPAD)[:, 0]
                g = g[:, kw:kw + s_in]                                    # cols
                g = g.reshape(s_out, s_out, 2, n, CPAD)[:, :, 0]
                taps.append(g)                                            # (so, so, n, C)
        # One lane-dense patch matrix per layer: K = 16*CPAD = 512 (multiple of 128).
        patch = jnp.concatenate(taps, axis=-1)                            # (so, so, n, 512)
        patch = patch.reshape(s_out * s_out * n, 16 * CPAD)               # (M, 512)
        # Single MXU push per layer, bf16 operands, f32 accumulation.
        y = jnp.dot(patch.astype(jnp.bfloat16), w_ref[...],
                    preferred_element_type=jnp.float32)                   # (M, CPAD)
        return leaky(y + b_ref[...])                                      # f32 epilogue

    def spatial_pad(y_flat, s):
        """(s*s*n, CPAD) f32 -> (s+3, s+3, n, CPAD) with 1 top/left, 2 bottom/right
        zero border (the extra trailing row/col keeps every tap slice in bounds)."""
        y = y_flat.reshape(s, s, n, CPAD)
        zc1 = jnp.zeros((s, 1, n, CPAD), jnp.float32)
        zc2 = jnp.zeros((s, 2, n, CPAD), jnp.float32)
        y = jnp.concatenate([zc1, y, zc2], axis=1)
        zr1 = jnp.zeros((1, s + 3, n, CPAD), jnp.float32)
        zr2 = jnp.zeros((2, s + 3, n, CPAD), jnp.float32)
        return jnp.concatenate([zr1, y, zr2], axis=0)

    y = conv_block(x_ref[...], w1_ref, b1_ref, 16)          # (8*8*n, CPAD)
    y = conv_block(spatial_pad(y, 8), w2_ref, b2_ref, 8)    # (4*4*n, CPAD)
    y = conv_block(spatial_pad(y, 4), w3_ref, b3_ref, 4)    # (2*2*n, CPAD)
    y = conv_block(spatial_pad(y, 2), w4_ref, b4_ref, 2)    # (n, CPAD)

    # Final Linear fused in (in_features == CPAD at init_size == 1); implemented as a
    # broadcast-multiply + lane reduction (avoids an N=1 matmul).  f32 throughout.
    logit = jnp.sum(y * wl_ref[...], axis=-1, keepdims=True) + bl_ref[...]
    o_ref[...] = logit.astype(o_ref.dtype)


# ------------------------------ JAX-side glue --------------------------------


@functools.partial(jax.jit, static_argnums=(2,))
def discriminator_forward(x_nchw, kparams, negative_slope):
    """Fused DCGAN-discriminator forward.  x_nchw: (N, C, 16, 16) float32."""
    n, c_in, hgt, wid = x_nchw.shape
    assert (hgt, wid) == (16, 16), "config assumes init_size == 1 (16 -> 8 -> 4 -> 2 -> 1)"

    # Sublane-align the batch/M axis (exact 8-row groups for all in-kernel reshapes,
    # and the largest possible M per dot).  Padded rows are zeros and are sliced off.
    npad = ((n + 7) // 8) * 8

    # Minimal XLA-side prep (no im2col): NCHW -> (H, W, N, C), spatial zero border
    # (1 top/left, 2 bottom/right), channels zero-padded to CPAD.
    x_hwnc = jnp.transpose(x_nchw, (2, 3, 0, 1))
    x_pad = jnp.zeros((hgt + 3, wid + 3, npad, CPAD), jnp.float32)
    x_pad = x_pad.at[1:hgt + 1, 1:wid + 1, :n, :c_in].set(x_hwnc)

    kernel = functools.partial(_dcgan_disc_kernel, n=npad,
                               negative_slope=negative_slope)
    vmem = pl.BlockSpec(memory_space=pltpu.MemorySpace.VMEM)
    args = (x_pad,
            kparams["w"][0], kparams["w"][1], kparams["w"][2], kparams["w"][3],
            kparams["shift"][0], kparams["shift"][1],
            kparams["shift"][2], kparams["shift"][3],
            kparams["lin_w"], kparams["lin_b"])
    out = pl.pallas_call(
        kernel,
        out_shape=jax.ShapeDtypeStruct((npad, 1), jnp.float32),
        in_specs=[vmem] * len(args),
        out_specs=vmem,
        compiler_params=pltpu.CompilerParams(vmem_limit_bytes=64 * 1024 * 1024),
        # NOTE: gridless single invocation -- the whole working set (< 10 MiB) is VMEM
        # resident.  At realistic batch/resolution: tile the output-pixel (M) axis over
        # a "parallel" grid axis (v7x megacore) and re-budget tiles per generation
        # (64 MiB VMEM on v7x vs 128 MiB on v5e/v6e).
    )(*args)
    return out[:n]


def reference_forward(x_nchw, rparams, negative_slope):
    """Pure-JAX reference (lax.conv, eval-mode BN).  Matmul operands are rounded to
    bf16 exactly like the kernel; accumulation / epilogue stay f32."""
    def rb(a):
        return a.astype(jnp.bfloat16).astype(jnp.float32)

    y = x_nchw
    for layer in rparams["convs"]:
        w_folded = layer["w"] * layer["scale"][:, None, None, None]
        y = jax.lax.conv_general_dilated(
            rb(y), rb(w_folded), window_strides=(2, 2), padding=((1, 1), (1, 1)),
            dimension_numbers=("NCHW", "OIHW", "NCHW"),
            precision=jax.lax.Precision.HIGHEST)
        y = y + layer["shift"][None, :, None, None]
        y = jnp.where(y >= 0, y, negative_slope * y)
    flat = y.reshape(y.shape[0], -1)
    return flat @ rparams["lin_w"].T + rparams["lin_b"][None, :]


# --------------------------- parameter builders ------------------------------


def make_params(key, n_channels, init_hidden_dim, init_size):
    """Deterministic synthetic weights matching the PyTorch module's shapes, plus the
    kernel-side layouts (BN scale folded into W, channels zero-padded to CPAD, weights
    stored bf16 as MXU operands)."""
    eps = 1e-5
    assert init_size == 1
    chans = [n_channels, init_hidden_dim // 8, init_hidden_dim // 4,
             init_hidden_dim // 2, init_hidden_dim]
    assert max(chans) <= CPAD

    convs, w_list, shift_list = [], [], []
    for li in range(4):
        cin, cout = chans[li], chans[li + 1]
        key, kw, kg, kb, km, kv = jax.random.split(key, 6)
        w = 0.05 * jax.random.normal(kw, (cout, cin, 4, 4), dtype=jnp.float32)
        if li == 0:
            scale = jnp.ones((cout,), jnp.float32)   # first block has no BatchNorm
            shift = jnp.zeros((cout,), jnp.float32)
        else:
            gamma = 1.0 + 0.1 * jax.random.normal(kg, (cout,), dtype=jnp.float32)
            beta = 0.1 * jax.random.normal(kb, (cout,), dtype=jnp.float32)
            rmean = 0.1 * jax.random.normal(km, (cout,), dtype=jnp.float32)
            rvar = jnp.abs(jax.random.normal(kv, (cout,), dtype=jnp.float32)) + 0.5
            scale = gamma / jnp.sqrt(rvar + eps)      # eval-mode BN: y = x*scale + shift
            shift = beta - rmean * scale
        convs.append({"w": w, "scale": scale, "shift": shift})

        # Kernel layout: rows = (tap t = kh*4+kw, ci padded to CPAD), cols = co padded;
        # BN scale folded in; stored bf16 (f32 accumulation happens on the MXU).
        wt = jnp.transpose(w, (2, 3, 1, 0)) * scale[None, None, None, :]  # (kh,kw,ci,co)
        wmat = (jnp.zeros((16, CPAD, CPAD), jnp.float32)
                .at[:, :cin, :cout].set(wt.reshape(16, cin, cout)))
        w_list.append(wmat.reshape(16 * CPAD, CPAD).astype(jnp.bfloat16))
        shift_list.append(jnp.zeros((1, CPAD), jnp.float32).at[0, :cout].set(shift))

    in_features = init_hidden_dim * init_size ** 2
    assert in_features <= CPAD
    key, kwl, kbl = jax.random.split(key, 3)
    lin_w = 0.05 * jax.random.normal(kwl, (1, in_features), dtype=jnp.float32)
    lin_b = 0.05 * jax.random.normal(kbl, (1,), dtype=jnp.float32)

    kparams = {
        "w": w_list,
        "shift": shift_list,
        "lin_w": jnp.zeros((1, CPAD), jnp.float32).at[0, :in_features].set(lin_w[0]),
        "lin_b": lin_b.reshape(1, 1),
    }
    rparams = {"convs": convs, "lin_w": lin_w, "lin_b": lin_b}
    return {"kernel": kparams, "ref": rparams}


# ---------------------------------- main --------------------------------------


if __name__ == "__main__":
    # config: n_channels=4, init_hidden_dim=32, init_size=1 (16 -> 8 -> 4 -> 2 -> 1),
    # negative_slope=0.2, dropout (eval-mode identity).
    n_channels = 4
    init_hidden_dim = 32
    init_size = 1
    negative_slope = 0.2

    key = jax.random.PRNGKey(0)
    key, kx = jax.random.split(key)
    x = jax.random.normal(kx, (2, n_channels, 16, 16), dtype=jnp.float32)  # NCHW

    params = make_params(key, n_channels, init_hidden_dim, init_size)

    out = discriminator_forward(x, params["kernel"], negative_slope)
    out = jax.block_until_ready(out)

    ref = reference_forward(x, params["ref"], negative_slope)
    assert out.shape == (2, 1), out.shape
    assert jnp.allclose(out, ref, rtol=1e-3, atol=1e-3), (out, ref)

    print("KERNEL_OK")
</pallas_src>

<mosaic_0001>
module attributes {stable_mosaic.version = 11 : i64} {
  func.func @_dcgan_disc_kernel(%arg0: memref<19x19x8x32xf32, #tpu.memory_space<vmem>>, %arg1: memref<512x32xbf16, #tpu.memory_space<vmem>>, %arg2: memref<512x32xbf16, #tpu.memory_space<vmem>>, %arg3: memref<512x32xbf16, #tpu.memory_space<vmem>>, %arg4: memref<512x32xbf16, #tpu.memory_space<vmem>>, %arg5: memref<1x32xf32, #tpu.memory_space<vmem>>, %arg6: memref<1x32xf32, #tpu.memory_space<vmem>>, %arg7: memref<1x32xf32, #tpu.memory_space<vmem>>, %arg8: memref<1x32xf32, #tpu.memory_space<vmem>>, %arg9: memref<1x32xf32, #tpu.memory_space<vmem>>, %arg10: memref<1x1xf32, #tpu.memory_space<vmem>>, %arg11: memref<8x1xf32, #tpu.memory_space<vmem>>) attributes {dimension_semantics = [], scalar_prefetch = 0 : i64, scratch_operands = 0 : i64, tpu.core_type = #tpu.core_type<tc>} {
    %c0 = arith.constant 0 : index
    %c0_0 = arith.constant 0 : index
    %c0_1 = arith.constant 0 : index
    %c0_2 = arith.constant 0 : index
    %0 = vector.load %arg0[%c0, %c0_0, %c0_1, %c0_2] : memref<19x19x8x32xf32, #tpu.memory_space<vmem>>, vector<19x19x8x32xf32>
    %1 = vector.extract_strided_slice %0 {offsets = [0, 0, 0, 0], sizes = [16, 19, 8, 32], strides = [1, 1, 1, 1]} : vector<19x19x8x32xf32> to vector<16x19x8x32xf32>
    %2 = vector.shape_cast %1 : vector<16x19x8x32xf32> to vector<8x2x19x8x32xf32>
    %3 = vector.extract_strided_slice %2 {offsets = [0, 0, 0, 0, 0], sizes = [8, 1, 19, 8, 32], strides = [1, 1, 1, 1, 1]} : vector<8x2x19x8x32xf32> to vector<8x1x19x8x32xf32>
    %4 = vector.shape_cast %3 : vector<8x1x19x8x32xf32> to vector<8x19x8x32xf32>
    %5 = vector.extract_strided_slice %4 {offsets = [0, 0, 0, 0], sizes = [8, 16, 8, 32], strides = [1, 1, 1, 1]} : vector<8x19x8x32xf32> to vector<8x16x8x32xf32>
    %6 = vector.shape_cast %5 : vector<8x16x8x32xf32> to vector<8x8x2x8x32xf32>
    %7 = vector.extract_strided_slice %6 {offsets = [0, 0, 0, 0, 0], sizes = [8, 8, 1, 8, 32], strides = [1, 1, 1, 1, 1]} : vector<8x8x2x8x32xf32> to vector<8x8x1x8x32xf32>
    %8 = vector.shape_cast %7 : vector<8x8x1x8x32xf32> to vector<8x8x8x32xf32>
    %9 = vector.extract_strided_slice %0 {offsets = [0, 0, 0, 0], sizes = [16, 19, 8, 32], strides = [1, 1, 1, 1]} : vector<19x19x8x32xf32> to vector<16x19x8x32xf32>
    %10 = vector.shape_cast %9 : vector<16x19x8x32xf32> to vector<8x2x19x8x32xf32>
    %11 = vector.extract_strided_slice %10 {offsets = [0, 0, 0, 0, 0], sizes = [8, 1, 19, 8, 32], strides = [1, 1, 1, 1, 1]} : vector<8x2x19x8x32xf32> to vector<8x1x19x8x32xf32>
    %12 = vector.shape_cast %11 : vector<8x1x19x8x32xf32> to vector<8x19x8x32xf32>
    %13 = vector.extract_strided_slice %12 {offsets = [0, 1, 0, 0], sizes = [8, 16, 8, 32], strides = [1, 1, 1, 1]} : vector<8x19x8x32xf32> to vector<8x16x8x32xf32>
    %14 = vector.shape_cast %13 : vector<8x16x8x32xf32> to vector<8x8x2x8x32xf32>
    %15 = vector.extract_strided_slice %14 {offsets = [0, 0, 0, 0, 0], sizes = [8, 8, 1, 8, 32], strides = [1, 1, 1, 1, 1]} : vector<8x8x2x8x32xf32> to vector<8x8x1x8x32xf32>
    %16 = vector.shape_cast %15 : vector<8x8x1x8x32xf32> to vector<8x8x8x32xf32>
    %17 = vector.extract_strided_slice %0 {offsets = [0, 0, 0, 0], sizes = [16, 19, 8, 32], strides = [1, 1, 1, 1]} : vector<19x19x8x32xf32> to vector<16x19x8x32xf32>
    %18 = vector.shape_cast %17 : vector<16x19x8x32xf32> to vector<8x2x19x8x32xf32>
    %19 = vector.extract_strided_slice %18 {offsets = [0, 0, 0, 0, 0], sizes = [8, 1, 19, 8, 32], strides = [1, 1, 1, 1, 1]} : vector<8x2x19x8x32xf32> to vector<8x1x19x8x32xf32>
    %20 = vector.shape_cast %19 : vector<8x1x19x8x32xf32> to vector<8x19x8x32xf32>
    %21 = vector.extract_strided_slice %20 {offsets = [0, 2, 0, 0], sizes = [8, 16, 8, 32], strides = [1, 1, 1, 1]} : vector<8x19x8x32xf32> to vector<8x16x8x32xf32>
    %22 = vector.shape_cast %21 : vector<8x16x8x32xf32> to vector<8x8x2x8x32xf32>
    %23 = vector.extract_strided_slice %22 {offsets = [0, 0, 0, 0, 0], sizes = [8, 8, 1, 8, 32], strides = [1, 1, 1, 1, 1]} : vector<8x8x2x8x32xf32> to vector<8x8x1x8x32xf32>
    %24 = vector.shape_cast %23 : vector<8x8x1x8x32xf32> to vector<8x8x8x32xf32>
    %25 = vector.extract_strided_slice %0 {offsets = [0, 0, 0, 0], sizes = [16, 19, 8, 32], strides = [1, 1, 1, 1]} : vector<19x19x8x32xf32> to vector<16x19x8x32xf32>
    %26 = vector.shape_cast %25 : vector<16x19x8x32xf32> to vector<8x2x19x8x32xf32>
    %27 = vector.extract_strided_slice %26 {offsets = [0, 0, 0, 0, 0], sizes = [8, 1, 19, 8, 32], strides = [1, 1, 1, 1, 1]} : vector<8x2x19x8x32xf32> to vector<8x1x19x8x32xf32>
    %28 = vector.shape_cast %27 : vector<8x1x19x8x32xf32> to vector<8x19x8x32xf32>
    %29 = vector.extract_strided_slice %28 {offsets = [0, 3, 0, 0], sizes = [8, 16, 8, 32], strides = [1, 1, 1, 1]} : vector<8x19x8x32xf32> to vector<8x16x8x32xf32>
    %30 = vector.shape_cast %29 : vector<8x16x8x32xf32> to vector<8x8x2x8x32xf32>
    %31 = vector.extract_strided_slice %30 {offsets = [0, 0, 0, 0, 0], sizes = [8, 8, 1, 8, 32], strides = [1, 1, 1, 1, 1]} : vector<8x8x2x8x32xf32> to vector<8x8x1x8x32xf32>
    %32 = vector.shape_cast %31 : vector<8x8x1x8x32xf32> to vector<8x8x8x32xf32>
    %33 = vector.extract_strided_slice %0 {offsets = [1, 0, 0, 0], sizes = [16, 19, 8, 32], strides = [1, 1, 1, 1]} : vector<19x19x8x32xf32> to vector<16x19x8x32xf32>
    %34 = vector.shape_cast %33 : vector<16x19x8x32xf32> to vector<8x2x19x8x32xf32>
    %35 = vector.extract_strided_slice %34 {offsets = [0, 0, 0, 0, 0], sizes = [8, 1, 19, 8, 32], strides = [1, 1, 1, 1, 1]} : vector<8x2x19x8x32xf32> to vector<8x1x19x8x32xf32>
    %36 = vector.shape_cast %35 : vector<8x1x19x8x32xf32> to vector<8x19x8x32xf32>
    %37 = vector.extract_strided_slice %36 {offsets = [0, 0, 0, 0], sizes = [8, 16, 8, 32], strides = [1, 1, 1, 1]} : vector<8x19x8x32xf32> to vector<8x16x8x32xf32>
    %38 = vector.shape_cast %37 : vector<8x16x8x32xf32> to vector<8x8x2x8x32xf32>
    %39 = vector.extract_strided_slice %38 {offsets = [0, 0, 0, 0, 0], sizes = [8, 8, 1, 8, 32], strides = [1, 1, 1, 1, 1]} : vector<8x8x2x8x32xf32> to vector<8x8x1x8x32xf32>
    %40 = vector.shape_cast %39 : vector<8x8x1x8x32xf32> to vector<8x8x8x32xf32>
    %41 = vector.extract_strided_slice %0 {offsets = [1, 0, 0, 0], sizes = [16, 19, 8, 32], strides = [1, 1, 1, 1]} : vector<19x19x8x32xf32> to vector<16x19x8x32xf32>
    %42 = vector.shape_cast %41 : vector<16x19x8x32xf32> to vector<8x2x19x8x32xf32>
    %43 = vector.extract_strided_slice %42 {offsets = [0, 0, 0, 0, 0], sizes = [8, 1, 19, 8, 32], strides = [1, 1, 1, 1, 1]} : vector<8x2x19x8x32xf32> to vector<8x1x19x8x32xf32>
    %44 = vector.shape_cast %43 : vector<8x1x19x8x32xf32> to vector<8x19x8x32xf32>
    %45 = vector.extract_strided_slice %44 {offsets = [0, 1, 0, 0], sizes = [8, 16, 8, 32], strides = [1, 1, 1, 1]} : vector<8x19x8x32xf32> to vector<8x16x8x32xf32>
    %46 = vector.shape_cast %45 : vector<8x16x8x32xf32> to vector<8x8x2x8x32xf32>
    %47 = vector.extract_strided_slice %46 {offsets = [0, 0, 0, 0, 0], sizes = [8, 8, 1, 8, 32], strides = [1, 1, 1, 1, 1]} : vector<8x8x2x8x32xf32> to vector<8x8x1x8x32xf32>
    %48 = vector.shape_cast %47 : vector<8x8x1x8x32xf32> to vector<8x8x8x32xf32>
    %49 = vector.extract_strided_slice %0 {offsets = [1, 0, 0, 0], sizes = [16, 19, 8, 32], strides = [1, 1, 1, 1]} : vector<19x19x8x32xf32> to vector<16x19x8x32xf32>
    %50 = vector.shape_cast %49 : vector<16x19x8x32xf32> to vector<8x2x19x8x32xf32>
    %51 = vector.extract_strided_slice %50 {offsets = [0, 0, 0, 0, 0], sizes = [8, 1, 19, 8, 32], strides = [1, 1, 1, 1, 1]} : vector<8x2x19x8x32xf32> to vector<8x1x19x8x32xf32>
    %52 = vector.shape_cast %51 : vector<8x1x19x8x32xf32> to vector<8x19x8x32xf32>
    %53 = vector.extract_strided_slice %52 {offsets = [0, 2, 0, 0], sizes = [8, 16, 8, 32], strides = [1, 1, 1, 1]} : vector<8x19x8x32xf32> to vector<8x16x8x32xf32>
    %54 = vector.shape_cast %53 : vector<8x16x8x32xf32> to vector<8x8x2x8x32xf32>
    %55 = vector.extract_strided_slice %54 {offsets = [0, 0, 0, 0, 0], sizes = [8, 8, 1, 8, 32], strides = [1, 1, 1, 1, 1]} : vector<8x8x2x8x32xf32> to vector<8x8x1x8x32xf32>
    %56 = vector.shape_cast %55 : vector<8x8x1x8x32xf32> to vector<8x8x8x32xf32>
    %57 = vector.extract_strided_slice %0 {offsets = [1, 0, 0, 0], sizes = [16, 19, 8, 32], strides = [1, 1, 1, 1]} : vector<19x19x8x32xf32> to vector<16x19x8x32xf32>
    %58 = vector.shape_cast %57 : vector<16x19x8x32xf32> to vector<8x2x19x8x32xf32>
    %59 = vector.extract_strided_slice %58 {offsets = [0, 0, 0, 0, 0], sizes = [8, 1, 19, 8, 32], strides = [1, 1, 1, 1, 1]} : vector<8x2x19x8x32xf32> to vector<8x1x19x8x32xf32>
    %60 = vector.shape_cast %59 : vector<8x1x19x8x32xf32> to vector<8x19x8x32xf32>
    %61 = vector.extract_strided_slice %60 {offsets = [0, 3, 0, 0], sizes = [8, 16, 8, 32], strides = [1, 1, 1, 1]} : vector<8x19x8x32xf32> to vector<8x16x8x32xf32>
    %62 = vector.shape_cast %61 : vector<8x16x8x32xf32> to vector<8x8x2x8x32xf32>
    %63 = vector.extract_strided_slice %62 {offsets = [0, 0, 0, 0, 0], sizes = [8, 8, 1, 8, 32], strides = [1, 1, 1, 1, 1]} : vector<8x8x2x8x32xf32> to vector<8x8x1x8x32xf32>
    %64 = vector.shape_cast %63 : vector<8x8x1x8x32xf32> to vector<8x8x8x32xf32>
    %65 = vector.extract_strided_slice %0 {offsets = [2, 0, 0, 0], sizes = [16, 19, 8, 32], strides = [1, 1, 1, 1]} : vector<19x19x8x32xf32> to vector<16x19x8x32xf32>
    %66 = vector.shape_cast %65 : vector<16x19x8x32xf32> to vector<8x2x19x8x32xf32>
    %67 = vector.extract_strided_slice %66 {offsets = [0, 0, 0, 0, 0], sizes = [8, 1, 19, 8, 32], strides = [1, 1, 1, 1, 1]} : vector<8x2x19x8x32xf32> to vector<8x1x19x8x32xf32>
    %68 = vector.shape_cast %67 : vector<8x1x19x8x32xf32> to vector<8x19x8x32xf32>
    %69 = vector.extract_strided_slice %68 {offsets = [0, 0, 0, 0], sizes = [8, 16, 8, 32], strides = [1, 1, 1, 1]} : vector<8x19x8x32xf32> to vector<8x16x8x32xf32>
    %70 = vector.shape_cast %69 : vector<8x16x8x32xf32> to vector<8x8x2x8x32xf32>
    %71 = vector.extract_strided_slice %70 {offsets = [0, 0, 0, 0, 0], sizes = [8, 8, 1, 8, 32], strides = [1, 1, 1, 1, 1]} : vector<8x8x2x8x32xf32> to vector<8x8x1x8x32xf32>
    %72 = vector.shape_cast %71 : vector<8x8x1x8x32xf32> to vector<8x8x8x32xf32>
    %73 = vector.extract_strided_slice %0 {offsets = [2, 0, 0, 0], sizes = [16, 19, 8, 32], strides = [1, 1, 1, 1]} : vector<19x19x8x32xf32> to vector<16x19x8x32xf32>
    %74 = vector.shape_cast %73 : vector<16x19x8x32xf32> to vector<8x2x19x8x32xf32>
    %75 = vector.extract_strided_slice %74 {offsets = [0, 0, 0, 0, 0], sizes = [8, 1, 19, 8, 32], strides = [1, 1, 1, 1, 1]} : vector<8x2x19x8x32xf32> to vector<8x1x19x8x32xf32>
    %76 = vector.shape_cast %75 : vector<8x1x19x8x32xf32> to vector<8x19x8x32xf32>
    %77 = vector.extract_strided_slice %76 {offsets = [0, 1, 0, 0], sizes = [8, 16, 8, 32], strides = [1, 1, 1, 1]} : vector<8x19x8x32xf32> to vector<8x16x8x32xf32>
    %78 = vector.shape_cast %77 : vector<8x16x8x32xf32> to vector<8x8x2x8x32xf32>
    %79 = vector.extract_strided_slice %78 {offsets = [0, 0, 0, 0, 0], sizes = [8, 8, 1, 8, 32], strides = [1, 1, 1, 1, 1]} : vector<8x8x2x8x32xf32> to vector<8x8x1x8x32xf32>
    %80 = vector.shape_cast %79 : vector<8x8x1x8x32xf32> to vector<8x8x8x32xf32>
    %81 = vector.extract_strided_slice %0 {offsets = [2, 0, 0, 0], sizes = [16, 19, 8, 32], strides = [1, 1, 1, 1]} : vector<19x19x8x32xf32> to vector<16x19x8x32xf32>
    %82 = vector.shape_cast %81 : vector<16x19x8x32xf32> to vector<8x2x19x8x32xf32>
    %83 = vector.extract_strided_slice %82 {offsets = [0, 0, 0, 0, 0], sizes = [8, 1, 19, 8, 32], strides = [1, 1, 1, 1, 1]} : vector<8x2x19x8x32xf32> to vector<8x1x19x8x32xf32>
    %84 = vector.shape_cast %83 : vector<8x1x19x8x32xf32> to vector<8x19x8x32xf32>
    %85 = vector.extract_strided_slice %84 {offsets = [0, 2, 0, 0], sizes = [8, 16, 8, 32], strides = [1, 1, 1, 1]} : vector<8x19x8x32xf32> to vector<8x16x8x32xf32>
    %86 = vector.shape_cast %85 : vector<8x16x8x32xf32> to vector<8x8x2x8x32xf32>
    %87 = vector.extract_strided_slice %86 {offsets = [0, 0, 0, 0, 0], sizes = [8, 8, 1, 8, 32], strides = [1, 1, 1, 1, 1]} : vector<8x8x2x8x32xf32> to vector<8x8x1x8x32xf32>
    %88 = vector.shape_cast %87 : vector<8x8x1x8x32xf32> to vector<8x8x8x32xf32>
    %89 = vector.extract_strided_slice %0 {offsets = [2, 0, 0, 0], sizes = [16, 19, 8, 32], strides = [1, 1, 1, 1]} : vector<19x19x8x32xf32> to vector<16x19x8x32xf32>
    %90 = vector.shape_cast %89 : vector<16x19x8x32xf32> to vector<8x2x19x8x32xf32>
    %91 = vector.extract_strided_slice %90 {offsets = [0, 0, 0, 0, 0], sizes = [8, 1, 19, 8, 32], strides = [1, 1, 1, 1, 1]} : vector<8x2x19x8x32xf32> to vector<8x1x19x8x32xf32>
    %92 = vector.shape_cast %91 : vector<8x1x19x8x32xf32> to vector<8x19x8x32xf32>
    %93 = vector.extract_strided_slice %92 {offsets = [0, 3, 0, 0], sizes = [8, 16, 8, 32], strides = [1, 1, 1, 1]} : vector<8x19x8x32xf32> to vector<8x16x8x32xf32>
    %94 = vector.shape_cast %93 : vector<8x16x8x32xf32> to vector<8x8x2x8x32xf32>
    %95 = vector.extract_strided_slice %94 {offsets = [0, 0, 0, 0, 0], sizes = [8, 8, 1, 8, 32], strides = [1, 1, 1, 1, 1]} : vector<8x8x2x8x32xf32> to vector<8x8x1x8x32xf32>
    %96 = vector.shape_cast %95 : vector<8x8x1x8x32xf32> to vector<8x8x8x32xf32>
    %97 = vector.extract_strided_slice %0 {offsets = [3, 0, 0, 0], sizes = [16, 19, 8, 32], strides = [1, 1, 1, 1]} : vector<19x19x8x32xf32> to vector<16x19x8x32xf32>
    %98 = vector.shape_cast %97 : vector<16x19x8x32xf32> to vector<8x2x19x8x32xf32>
    %99 = vector.extract_strided_slice %98 {offsets = [0, 0, 0, 0, 0], sizes = [8, 1, 19, 8, 32], strides = [1, 1, 1, 1, 1]} : vector<8x2x19x8x32xf32> to vector<8x1x19x8x32xf32>
    %100 = vector.shape_cast %99 : vector<8x1x19x8x32xf32> to vector<8x19x8x32xf32>
    %101 = vector.extract_strided_slice %100 {offsets = [0, 0, 0, 0], sizes = [8, 16, 8, 32], strides = [1, 1, 1, 1]} : vector<8x19x8x32xf32> to vector<8x16x8x32xf32>
    %102 = vector.shape_cast %101 : vector<8x16x8x32xf32> to vector<8x8x2x8x32xf32>
    %103 = vector.extract_strided_slice %102 {offsets = [0, 0, 0, 0, 0], sizes = [8, 8, 1, 8, 32], strides = [1, 1, 1, 1, 1]} : vector<8x8x2x8x32xf32> to vector<8x8x1x8x32xf32>
    %104 = vector.shape_cast %103 : vector<8x8x1x8x32xf32> to vector<8x8x8x32xf32>
    %105 = vector.extract_strided_slice %0 {offsets = [3, 0, 0, 0], sizes = [16, 19, 8, 32], strides = [1, 1, 1, 1]} : vector<19x19x8x32xf32> to vector<16x19x8x32xf32>
    %106 = vector.shape_cast %105 : vector<16x19x8x32xf32> to vector<8x2x19x8x32xf32>
    %107 = vector.extract_strided_slice %106 {offsets = [0, 0, 0, 0, 0], sizes = [8, 1, 19, 8, 32], strides = [1, 1, 1, 1, 1]} : vector<8x2x19x8x32xf32> to vector<8x1x19x8x32xf32>
    %108 = vector.shape_cast %107 : vector<8x1x19x8x32xf32> to vector<8x19x8x32xf32>
    %109 = vector.extract_strided_slice %108 {offsets = [0, 1, 0, 0], sizes = [8, 16, 8, 32], strides = [1, 1, 1, 1]} : vector<8x19x8x32xf32> to vector<8x16x8x32xf32>
    %110 = vector.shape_cast %109 : vector<8x16x8x32xf32> to vector<8x8x2x8x32xf32>
    %111 = vector.extract_strided_slice %110 {offsets = [0, 0, 0, 0, 0], sizes = [8, 8, 1, 8, 32], strides = [1, 1, 1, 1, 1]} : vector<8x8x2x8x32xf32> to vector<8x8x1x8x32xf32>
    %112 = vector.shape_cast %111 : vector<8x8x1x8x32xf32> to vector<8x8x8x32xf32>
    %113 = vector.extract_strided_slice %0 {offsets = [3, 0, 0, 0], sizes = [16, 19, 8, 32], strides = [1, 1, 1, 1]} : vector<19x19x8x32xf32> to vector<16x19x8x32xf32>
    %114 = vector.shape_cast %113 : vector<16x19x8x32xf32> to vector<8x2x19x8x32xf32>
    %115 = vector.extract_strided_slice %114 {offsets = [0, 0, 0, 0, 0], sizes = [8, 1, 19, 8, 32], strides = [1, 1, 1, 1, 1]} : vector<8x2x19x8x32xf32> to vector<8x1x19x8x32xf32>
    %116 = vector.shape_cast %115 : vector<8x1x19x8x32xf32> to vector<8x19x8x32xf32>
    %117 = vector.extract_strided_slice %116 {offsets = [0, 2, 0, 0], sizes = [8, 16, 8, 32], strides = [1, 1, 1, 1]} : vector<8x19x8x32xf32> to vector<8x16x8x32xf32>
    %118 = vector.shape_cast %117 : vector<8x16x8x32xf32> to vector<8x8x2x8x32xf32>
    %119 = vector.extract_strided_slice %118 {offsets = [0, 0, 0, 0, 0], sizes = [8, 8, 1, 8, 32], strides = [1, 1, 1, 1, 1]} : vector<8x8x2x8x32xf32> to vector<8x8x1x8x32xf32>
    %120 = vector.shape_cast %119 : vector<8x8x1x8x32xf32> to vector<8x8x8x32xf32>
    %121 = vector.extract_strided_slice %0 {offsets = [3, 0, 0, 0], sizes = [16, 19, 8, 32], strides = [1, 1, 1, 1]} : vector<19x19x8x32xf32> to vector<16x19x8x32xf32>
    %122 = vector.shape_cast %121 : vector<16x19x8x32xf32> to vector<8x2x19x8x32xf32>
    %123 = vector.extract_strided_slice %122 {offsets = [0, 0, 0, 0, 0], sizes = [8, 1, 19, 8, 32], strides = [1, 1, 1, 1, 1]} : vector<8x2x19x8x32xf32> to vector<8x1x19x8x32xf32>
    %124 = vector.shape_cast %123 : vector<8x1x19x8x32xf32> to vector<8x19x8x32xf32>
    %125 = vector.extract_strided_slice %124 {offsets = [0, 3, 0, 0], sizes = [8, 16, 8, 32], strides = [1, 1, 1, 1]} : vector<8x19x8x32xf32> to vector<8x16x8x32xf32>
    %126 = vector.shape_cast %125 : vector<8x16x8x32xf32> to vector<8x8x2x8x32xf32>
    %127 = vector.extract_strided_slice %126 {offsets = [0, 0, 0, 0, 0], sizes = [8, 8, 1, 8, 32], strides = [1, 1, 1, 1, 1]} : vector<8x8x2x8x32xf32> to vector<8x8x1x8x32xf32>
    %128 = vector.shape_cast %127 : vector<8x8x1x8x32xf32> to vector<8x8x8x32xf32>
    %129 = tpu.concatenate %8, %16, %24, %32, %40, %48, %56, %64, %72, %80, %88, %96, %104, %112, %120, %128 in 3 : vector<8x8x8x32xf32>, vector<8x8x8x32xf32>, vector<8x8x8x32xf32>, vector<8x8x8x32xf32>, vector<8x8x8x32xf32>, vector<8x8x8x32xf32>, vector<8x8x8x32xf32>, vector<8x8x8x32xf32>, vector<8x8x8x32xf32>, vector<8x8x8x32xf32>, vector<8x8x8x32xf32>, vector<8x8x8x32xf32>, vector<8x8x8x32xf32>, vector<8x8x8x32xf32>, vector<8x8x8x32xf32>, vector<8x8x8x32xf32> -> vector<8x8x8x512xf32>
    %130 = vector.shape_cast %129 : vector<8x8x8x512xf32> to vector<512x512xf32>
    %131 = arith.truncf %130 : vector<512x512xf32> to vector<512x512xbf16>
    %c0_3 = arith.constant 0 : index
    %c0_4 = arith.constant 0 : index
    %132 = vector.load %arg1[%c0_3, %c0_4] : memref<512x32xbf16, #tpu.memory_space<vmem>>, vector<512x32xbf16>
    %cst = arith.constant dense<0.000000e+00> : vector<512x32xf32>
    %133 = tpu.matmul %131, %132, %cst {dimension_numbers = #tpu.dot_dimension_numbers<[1], [0], [0], [1], [0, 0, 1, 1], [], []>} : vector<512x512xbf16>, vector<512x32xbf16>, vector<512x32xf32> -> vector<512x32xf32>
    %c0_5 = arith.constant 0 : index
    %c0_6 = arith.constant 0 : index
    %134 = vector.load %arg5[%c0_5, %c0_6] : memref<1x32xf32, #tpu.memory_space<vmem>>, vector<1x32xf32>
    %135 = vector.broadcast %134 : vector<1x32xf32> to vector<512x32xf32>
    %136 = arith.addf %133, %135 : vector<512x32xf32>
    %cst_7 = arith.constant 0.000000e+00 : f32
    %137 = vector.broadcast %cst_7 : f32 to vector<512x32xf32>
    %138 = arith.cmpf oge, %136, %137 : vector<512x32xf32>
    %cst_8 = arith.constant 2.000000e-01 : f32
    %139 = vector.broadcast %cst_8 : f32 to vector<512x32xf32>
    %140 = arith.mulf %139, %136 : vector<512x32xf32>
    %141 = arith.select %138, %136, %140 : vector<512x32xi1>, vector<512x32xf32>
    %142 = vector.shape_cast %141 : vector<512x32xf32> to vector<8x8x8x32xf32>
    %cst_9 = arith.constant 0.000000e+00 : f32
    %143 = vector.broadcast %cst_9 : f32 to vector<8x1x8x32xf32>
    %cst_10 = arith.constant 0.000000e+00 : f32
    %144 = vector.broadcast %cst_10 : f32 to vector<8x2x8x32xf32>
    %145 = tpu.concatenate %143, %142, %144 in 1 : vector<8x1x8x32xf32>, vector<8x8x8x32xf32>, vector<8x2x8x32xf32> -> vector<8x11x8x32xf32>
    %cst_11 = arith.constant 0.000000e+00 : f32
    %146 = vector.broadcast %cst_11 : f32 to vector<1x11x8x32xf32>
    %cst_12 = arith.constant 0.000000e+00 : f32
    %147 = vector.broadcast %cst_12 : f32 to vector<2x11x8x32xf32>
    %148 = tpu.concatenate %146, %145, %147 in 0 : vector<1x11x8x32xf32>, vector<8x11x8x32xf32>, vector<2x11x8x32xf32> -> vector<11x11x8x32xf32>
    %149 = vector.extract_strided_slice %148 {offsets = [0, 0, 0, 0], sizes = [8, 11, 8, 32], strides = [1, 1, 1, 1]} : vector<11x11x8x32xf32> to vector<8x11x8x32xf32>
    %150 = vector.shape_cast %149 : vector<8x11x8x32xf32> to vector<4x2x11x8x32xf32>
    %151 = vector.extract_strided_slice %150 {offsets = [0, 0, 0, 0, 0], sizes = [4, 1, 11, 8, 32], strides = [1, 1, 1, 1, 1]} : vector<4x2x11x8x32xf32> to vector<4x1x11x8x32xf32>
    %152 = vector.shape_cast %151 : vector<4x1x11x8x32xf32> to vector<4x11x8x32xf32>
    %153 = vector.extract_strided_slice %152 {offsets = [0, 0, 0, 0], sizes = [4, 8, 8, 32], strides = [1, 1, 1, 1]} : vector<4x11x8x32xf32> to vector<4x8x8x32xf32>
    %154 = vector.shape_cast %153 : vector<4x8x8x32xf32> to vector<4x4x2x8x32xf32>
    %155 = vector.extract_strided_slice %154 {offsets = [0, 0, 0, 0, 0], sizes = [4, 4, 1, 8, 32], strides = [1, 1, 1, 1, 1]} : vector<4x4x2x8x32xf32> to vector<4x4x1x8x32xf32>
    %156 = vector.shape_cast %155 : vector<4x4x1x8x32xf32> to vector<4x4x8x32xf32>
    %157 = vector.extract_strided_slice %148 {offsets = [0, 0, 0, 0], sizes = [8, 11, 8, 32], strides = [1, 1, 1, 1]} : vector<11x11x8x32xf32> to vector<8x11x8x32xf32>
    %158 = vector.shape_cast %157 : vector<8x11x8x32xf32> to vector<4x2x11x8x32xf32>
    %159 = vector.extract_strided_slice %158 {offsets = [0, 0, 0, 0, 0], sizes = [4, 1, 11, 8, 32], strides = [1, 1, 1, 1, 1]} : vector<4x2x11x8x32xf32> to vector<4x1x11x8x32xf32>
    %160 = vector.shape_cast %159 : vector<4x1x11x8x32xf32> to vector<4x11x8x32xf32>
    %161 = vector.extract_strided_slice %160 {offsets = [0, 1, 0, 0], sizes = [4, 8, 8, 32], strides = [1, 1, 1, 1]} : vector<4x11x8x32xf32> to vector<4x8x8x32xf32>
    %162 = vector.shape_cast %161 : vector<4x8x8x32xf32> to vector<4x4x2x8x32xf32>
    %163 = vector.extract_strided_slice %162 {offsets = [0, 0, 0, 0, 0], sizes = [4, 4, 1, 8, 32], strides = [1, 1, 1, 1, 1]} : vector<4x4x2x8x32xf32> to vector<4x4x1x8x32xf32>
    %164 = vector.shape_cast %163 : vector<4x4x1x8x32xf32> to vector<4x4x8x32xf32>
    %165 = vector.extract_strided_slice %148 {offsets = [0, 0, 0, 0], sizes = [8, 11, 8, 32], strides = [1, 1, 1, 1]} : vector<11x11x8x32xf32> to vector<8x11x8x32xf32>
    %166 = vector.shape_cast %165 : vector<8x11x8x32xf32> to vector<4x2x11x8x32xf32>
    %167 = vector.extract_strided_slice %166 {offsets = [0, 0, 0, 0, 0], sizes = [4, 1, 11, 8, 32], strides = [1, 1, 1, 1, 1]} : vector<4x2x11x8x32xf32> to vector<4x1x11x8x32xf32>
    %168 = vector.shape_cast %167 : vector<4x1x11x8x32xf32> to vector<4x11x8x32xf32>
    %169 = vector.extract_strided_slice %168 {offsets = [0, 2, 0, 0], sizes = [4, 8, 8, 32], strides = [1, 1, 1, 1]} : vector<4x11x8x32xf32> to vector<4x8x8x32xf32>
    %170 = vector.shape_cast %169 : vector<4x8x8x32xf32> to vector<4x4x2x8x32xf32>
    %171 = vector.extract_strided_slice %170 {offsets = [0, 0, 0, 0, 0], sizes = [4, 4, 1, 8, 32], strides = [1, 1, 1, 1, 1]} : vector<4x4x2x8x32xf32> to vector<4x4x1x8x32xf32>
    %172 = vector.shape_cast %171 : vector<4x4x1x8x32xf32> to vector<4x4x8x32xf32>
    %173 = vector.extract_strided_slice %148 {offsets = [0, 0, 0, 0], sizes = [8, 11, 8, 32], strides = [1, 1, 1, 1]} : vector<11x11x8x32xf32> to vector<8x11x8x32xf32>
    %174 = vector.shape_cast %173 : vector<8x11x8x32xf32> to vector<4x2x11x8x32xf32>
    %175 = vector.extract_strided_slice %174 {offsets = [0, 0, 0, 0, 0], sizes = [4, 1, 11, 8, 32], strides = [1, 1, 1, 1, 1]} : vector<4x2x11x8x32xf32> to vector<4x1x11x8x32xf32>
    %176 = vector.shape_cast %175 : vector<4x1x11x8x32xf32> to vector<4x11x8x32xf32>
    %177 = vector.extract_strided_slice %176 {offsets = [0, 3, 0, 0], sizes = [4, 8, 8, 32], strides = [1, 1, 1, 1]} : vector<4x11x8x32xf32> to vector<4x8x8x32xf32>
    %178 = vector.shape_cast %177 : vector<4x8x8x32xf32> to vector<4x4x2x8x32xf32>
    %179 = vector.extract_strided_slice %178 {offsets = [0, 0, 0, 0, 0], sizes = [4, 4, 1, 8, 32], strides = [1, 1, 1, 1, 1]} : vector<4x4x2x8x32xf32> to vector<4x4x1x8x32xf32>
    %180 = vector.shape_cast %179 : vector<4x4x1x8x32xf32> to vector<4x4x8x32xf32>
    %181 = vector.extract_strided_slice %148 {offsets = [1, 0, 0, 0], sizes = [8, 11, 8, 32], strides = [1, 1, 1, 1]} : vector<11x11x8x32xf32> to vector<8x11x8x32xf32>
    %182 = vector.shape_cast %181 : vector<8x11x8x32xf32> to vector<4x2x11x8x32xf32>
    %183 = vector.extract_strided_slice %182 {offsets = [0, 0, 0, 0, 0], sizes = [4, 1, 11, 8, 32], strides = [1, 1, 1, 1, 1]} : vector<4x2x11x8x32xf32> to vector<4x1x11x8x32xf32>
    %184 = vector.shape_cast %183 : vector<4x1x11x8x32xf32> to vector<4x11x8x32xf32>
    %185 = vector.extract_strided_slice %184 {offsets = [0, 0, 0, 0], sizes = [4, 8, 8, 32], strides = [1, 1, 1, 1]} : vector<4x11x8x32xf32> to vector<4x8x8x32xf32>
    %186 = vector.shape_cast %185 : vector<4x8x8x32xf32> to vector<4x4x2x8x32xf32>
    %187 = vector.extract_strided_slice %186 {offsets = [0, 0, 0, 0, 0], sizes = [4, 4, 1, 8, 32], strides = [1, 1, 1, 1, 1]} : vector<4x4x2x8x32xf32> to vector<4x4x1x8x32xf32>
    %188 = vector.shape_cast %187 : vector<4x4x1x8x32xf32> to vector<4x4x8x32xf32>
    %189 = vector.extract_strided_slice %148 {offsets = [1, 0, 0, 0], sizes = [8, 11, 8, 32], strides = [1, 1, 1, 1]} : vector<11x11x8x32xf32> to vector<8x11x8x32xf32>
    %190 = vector.shape_cast %189 : vector<8x11x8x32xf32> to vector<4x2x11x8x32xf32>
    %191 = vector.extract_strided_slice %190 {offsets = [0, 0, 0, 0, 0], sizes = [4, 1, 11, 8, 32], strides = [1, 1, 1, 1, 1]} : vector<4x2x11x8x32xf32> to vector<4x1x11x8x32xf32>
    %192 = vector.shape_cast %191 : vector<4x1x11x8x32xf32> to vector<4x11x8x32xf32>
    %193 = vector.extract_strided_slice %192 {offsets = [0, 1, 0, 0], sizes = [4, 8, 8, 32], strides = [1, 1, 1, 1]} : vector<4x11x8x32xf32> to vector<4x8x8x32xf32>
    %194 = vector.shape_cast %193 : vector<4x8x8x32xf32> to vector<4x4x2x8x32xf32>
    %195 = vector.extract_strided_slice %194 {offsets = [0, 0, 0, 0, 0], sizes = [4, 4, 1, 8, 32], strides = [1, 1, 1, 1, 1]} : vector<4x4x2x8x32xf32> to vector<4x4x1x8x32xf32>
    %196 = vector.shape_cast %195 : vector<4x4x1x8x32xf32> to vector<4x4x8x32xf32>
    %197 = vector.extract_strided_slice %148 {offsets = [1, 0, 0, 0], sizes = [8, 11, 8, 32], strides = [1, 1, 1, 1]} : vector<11x11x8x32xf32> to vector<8x11x8x32xf32>
    %198 = vector.shape_cast %197 : vector<8x11x8x32xf32> to vector<4x2x11x8x32xf32>
    %199 = vector.extract_strided_slice %198 {offsets = [0, 0, 0, 0, 0], sizes = [4, 1, 11, 8, 32], strides = [1, 1, 1, 1, 1]} : vector<4x2x11x8x32xf32> to vector<4x1x11x8x32xf32>
    %200 = vector.shape_cast %199 : vector<4x1x11x8x32xf32> to vector<4x11x8x32xf32>
    %201 = vector.extract_strided_slice %200 {offsets = [0, 2, 0, 0], sizes = [4, 8, 8, 32], strides = [1, 1, 1, 1]} : vector<4x11x8x32xf32> to vector<4x8x8x32xf32>
    %202 = vector.shape_cast %201 : vector<4x8x8x32xf32> to vector<4x4x2x8x32xf32>
    %203 = vector.extract_strided_slice %202 {offsets = [0, 0, 0, 0, 0], sizes = [4, 4, 1, 8, 32], strides = [1, 1, 1, 1, 1]} : vector<4x4x2x8x32xf32> to vector<4x4x1x8x32xf32>
    %204 = vector.shape_cast %203 : vector<4x4x1x8x32xf32> to vector<4x4x8x32xf32>
    %205 = vector.extract_strided_slice %148 {offsets = [1, 0, 0, 0], sizes = [8, 11, 8, 32], strides = [1, 1, 1, 1]} : vector<11x11x8x32xf32> to vector<8x11x8x32xf32>
    %206 = vector.shape_cast %205 : vector<8x11x8x32xf32> to vector<4x2x11x8x32xf32>
    %207 = vector.extract_strided_slice %206 {offsets = [0, 0, 0, 0, 0], sizes = [4, 1, 11, 8, 32], strides = [1, 1, 1, 1, 1]} : vector<4x2x11x8x32xf32> to vector<4x1x11x8x32xf32>
    %208 = vector.shape_cast %207 : vector<4x1x11x8x32xf32> to vector<4x11x8x32xf32>
    %209 = vector.extract_strided_slice %208 {offsets = [0, 3, 0, 0], sizes = [4, 8, 8, 32], strides = [1, 1, 1, 1]} : vector<4x11x8x32xf32> to vector<4x8x8x32xf32>
    %210 = vector.shape_cast %209 : vector<4x8x8x32xf32> to vector<4x4x2x8x32xf32>
    %211 = vector.extract_strided_slice %210 {offsets = [0, 0, 0, 0, 0], sizes = [4, 4, 1, 8, 32], strides = [1, 1, 1, 1, 1]} : vector<4x4x2x8x32xf32> to vector<4x4x1x8x32xf32>
    %212 = vector.shape_cast %211 : vector<4x4x1x8x32xf32> to vector<4x4x8x32xf32>
    %213 = vector.extract_strided_slice %148 {offsets = [2, 0, 0, 0], sizes = [8, 11, 8, 32], strides = [1, 1, 1, 1]} : vector<11x11x8x32xf32> to vector<8x11x8x32xf32>
    %214 = vector.shape_cast %213 : vector<8x11x8x32xf32> to vector<4x2x11x8x32xf32>
    %215 = vector.extract_strided_slice %214 {offsets = [0, 0, 0, 0, 0], sizes = [4, 1, 11, 8, 32], strides = [1, 1, 1, 1, 1]} : vector<4x2x11x8x32xf32> to vector<4x1x11x8x32xf32>
    %216 = vector.shape_cast %215 : vector<4x1x11x8x32xf32> to vector<4x11x8x32xf32>
    %217 = vector.extract_strided_slice %216 {offsets = [0, 0, 0, 0], sizes = [4, 8, 8, 32], strides = [1, 1, 1, 1]} : vector<4x11x8x32xf32> to vector<4x8x8x32xf32>
    %218 = vector.shape_cast %217 : vector<4x8x8x32xf32> to vector<4x4x2x8x32xf32>
    %219 = vector.extract_strided_slice %218 {offsets = [0, 0, 0, 0, 0], sizes = [4, 4, 1, 8, 32], strides = [1, 1, 1, 1, 1]} : vector<4x4x2x8x32xf32> to vector<4x4x1x8x32xf32>
    %220 = vector.shape_cast %219 : vector<4x4x1x8x32xf32> to vector<4x4x8x32xf32>
    %221 = vector.extract_strided_slice %148 {offsets = [2, 0, 0, 0], sizes = [8, 11, 8, 32], strides = [1, 1, 1, 1]} : vector<11x11x8x32xf32> to vector<8x11x8x32xf32>
    %222 = vector.shape_cast %221 : vector<8x11x8x32xf32> to vector<4x2x11x8x32xf32>
    %223 = vector.extract_strided_slice %222 {offsets = [0, 0, 0, 0, 0], sizes = [4, 1, 11, 8, 32], strides = [1, 1, 1, 1, 1]} : vector<4x2x11x8x32xf32> to vector<4x1x11x8x32xf32>
    %224 = vector.shape_cast %223 : vector<4x1x11x8x32xf32> to vector<4x11x8x32xf32>
    %225 = vector.extract_strided_slice %224 {offsets = [0, 1, 0, 0], sizes = [4, 8, 8, 32], strides = [1, 1, 1, 1]} : vector<4x11x8x32xf32> to vector<4x8x8x32xf32>
    %226 = vector.shape_cast %225 : vector<4x8x8x32xf32> to vector<4x4x2x8x32xf32>
    %227 = vector.extract_strided_slice %226 {offsets = [0, 0, 0, 0, 0], sizes = [4, 4, 1, 8, 32], strides = [1, 1, 1, 1, 1]} : vector<4x4x2x8x32xf32> to vector<4x4x1x8x32xf32>
    %228 = vector.shape_cast %227 : vector<4x4x1x8x32xf32> to vector<4x4x8x32xf32>
    %229 = vector.extract_strided_slice %148 {offsets = [2, 0, 0, 0], sizes = [8, 11, 8, 32], strides = [1, 1, 1, 1]} : vector<11x11x8x32xf32> to vector<8x11x8x32xf32>
    %230 = vector.shape_cast %229 : vector<8x11x8x32xf32> to vector<4x2x11x8x32xf32>
    %231 = vector.extract_strided_slice %230 {offsets = [0, 0, 0, 0, 0], sizes = [4, 1, 11, 8, 32], strides = [1, 1, 1, 1, 1]} : vector<4x2x11x8x32xf32> to vector<4x1x11x8x32xf32>
    %232 = vector.shape_cast %231 : vector<4x1x11x8x32xf32> to vector<4x11x8x32xf32>
    %233 = vector.extract_strided_slice %232 {offsets = [0, 2, 0, 0], sizes = [4, 8, 8, 32], strides = [1, 1, 1, 1]} : vector<4x11x8x32xf32> to vector<4x8x8x32xf32>
    %234 = vector.shape_cast %233 : vector<4x8x8x32xf32> to vector<4x4x2x8x32xf32>
    %235 = vector.extract_strided_slice %234 {offsets = [0, 0, 0, 0, 0], sizes = [4, 4, 1, 8, 32], strides = [1, 1, 1, 1, 1]} : vector<4x4x2x8x32xf32> to vector<4x4x1x8x32xf32>
    %236 = vector.shape_cast %235 : vector<4x4x1x8x32xf32> to vector<4x4x8x32xf32>
    %237 = vector.extract_strided_slice %148 {offsets = [2, 0, 0, 0], sizes = [8, 11, 8, 32], strides = [1, 1, 1, 1]} : vector<11x11x8x32xf32> to vector<8x11x8x32xf32>
    %238 = vector.shape_cast %237 : vector<8x11x8x32xf32> to vector<4x2x11x8x32xf32>
    %239 = vector.extract_strided_slice %238 {offsets = [0, 0, 0, 0, 0], sizes = [4, 1, 11, 8, 32], strides = [1, 1, 1, 1, 1]} : vector<4x2x11x8x32xf32> to vector<4x1x11x8x32xf32>
    %240 = vector.shape_cast %239 : vector<4x1x11x8x32xf32> to vector<4x11x8x32xf32>
    %241 = vector.extract_strided_slice %240 {offsets = [0, 3, 0, 0], sizes = [4, 8, 8, 32], strides = [1, 1, 1, 1]} : vector<4x11x8x32xf32> to vector<4x8x8x32xf32>
    %242 = vector.shape_cast %241 : vector<4x8x8x32xf32> to vector<4x4x2x8x32xf32>
    %243 = vector.extract_strided_slice %242 {offsets = [0, 0, 0, 0, 0], sizes = [4, 4, 1, 8, 32], strides = [1, 1, 1, 1, 1]} : vector<4x4x2x8x32xf32> to vector<4x4x1x8x32xf32>
    %244 = vector.shape_cast %243 : vector<4x4x1x8x32xf32> to vector<4x4x8x32xf32>
    %245 = vector.extract_strided_slice %148 {offsets = [3, 0, 0, 0], sizes = [8, 11, 8, 32], strides = [1, 1, 1, 1]} : vector<11x11x8x32xf32> to vector<8x11x8x32xf32>
    %246 = vector.shape_cast %245 : vector<8x11x8x32xf32> to vector<4x2x11x8x32xf32>
    %247 = vector.extract_strided_slice %246 {offsets = [0, 0, 0, 0, 0], sizes = [4, 1, 11, 8, 32], strides = [1, 1, 1, 1, 1]} : vector<4x2x11x8x32xf32> to vector<4x1x11x8x32xf32>
    %248 = vector.shape_cast %247 : vector<4x1x11x8x32xf32> to vector<4x11x8x32xf32>
    %249 = vector.extract_strided_slice %248 {offsets = [0, 0, 0, 0], sizes = [4, 8, 8, 32], strides = [1, 1, 1, 1]} : vector<4x11x8x32xf32> to vector<4x8x8x32xf32>
    %250 = vector.shape_cast %249 : vector<4x8x8x32xf32> to vector<4x4x2x8x32xf32>
    %251 = vector.extract_strided_slice %250 {offsets = [0, 0, 0, 0, 0], sizes = [4, 4, 1, 8, 32], strides = [1, 1, 1, 1, 1]} : vector<4x4x2x8x32xf32> to vector<4x4x1x8x32xf32>
    %252 = vector.shape_cast %251 : vector<4x4x1x8x32xf32> to vector<4x4x8x32xf32>
    %253 = vector.extract_strided_slice %148 {offsets = [3, 0, 0, 0], sizes = [8, 11, 8, 32], strides = [1, 1, 1, 1]} : vector<11x11x8x32xf32> to vector<8x11x8x32xf32>
    %254 = vector.shape_cast %253 : vector<8x11x8x32xf32> to vector<4x2x11x8x32xf32>
    %255 = vector.extract_strided_slice %254 {offsets = [0, 0, 0, 0, 0], sizes = [4, 1, 11, 8, 32], strides = [1, 1, 1, 1, 1]} : vector<4x2x11x8x32xf32> to vector<4x1x11x8x32xf32>
    %256 = vector.shape_cast %255 : vector<4x1x11x8x32xf32> to vector<4x11x8x32xf32>
    %257 = vector.extract_strided_slice %256 {offsets = [0, 1, 0, 0], sizes = [4, 8, 8, 32], strides = [1, 1, 1, 1]} : vector<4x11x8x32xf32> to vector<4x8x8x32xf32>
    %258 = vector.shape_cast %257 : vector<4x8x8x32xf32> to vector<4x4x2x8x32xf32>
    %259 = vector.extract_strided_slice %258 {offsets = [0, 0, 0, 0, 0], sizes = [4, 4, 1, 8, 32], strides = [1, 1, 1, 1, 1]} : vector<4x4x2x8x32xf32> to vector<4x4x1x8x32xf32>
    %260 = vector.shape_cast %259 : vector<4x4x1x8x32xf32> to vector<4x4x8x32xf32>
    %261 = vector.extract_strided_slice %148 {offsets = [3, 0, 0, 0], sizes = [8, 11, 8, 32], strides = [1, 1, 1, 1]} : vector<11x11x8x32xf32> to vector<8x11x8x32xf32>
    %262 = vector.shape_cast %261 : vector<8x11x8x32xf32> to vector<4x2x11x8x32xf32>
    %263 = vector.extract_strided_slice %262 {offsets = [0, 0, 0, 0, 0], sizes = [4, 1, 11, 8, 32], strides = [1, 1, 1, 1, 1]} : vector<4x2x11x8x32xf32> to vector<4x1x11x8x32xf32>
    %264 = vector.shape_cast %263 : vector<4x1x11x8x32xf32> to vector<4x11x8x32xf32>
    %265 = vector.extract_strided_slice %264 {offsets = [0, 2, 0, 0], sizes = [4, 8, 8, 32], strides = [1, 1, 1, 1]} : vector<4x11x8x32xf32> to vector<4x8x8x32xf32>
    %266 = vector.shape_cast %265 : vector<4x8x8x32xf32> to vector<4x4x2x8x32xf32>
    %267 = vector.extract_strided_slice %266 {offsets = [0, 0, 0, 0, 0], sizes = [4, 4, 1, 8, 32], strides = [1, 1, 1, 1, 1]} : vector<4x4x2x8x32xf32> to vector<4x4x1x8x32xf32>
    %268 = vector.shape_cast %267 : vector<4x4x1x8x32xf32> to vector<4x4x8x32xf32>
    %269 = vector.extract_strided_slice %148 {offsets = [3, 0, 0, 0], sizes = [8, 11, 8, 32], strides = [1, 1, 1, 1]} : vector<11x11x8x32xf32> to vector<8x11x8x32xf32>
    %270 = vector.shape_cast %269 : vector<8x11x8x32xf32> to vector<4x2x11x8x32xf32>
    %271 = vector.extract_strided_slice %270 {offsets = [0, 0, 0, 0, 0], sizes = [4, 1, 11, 8, 32], strides = [1, 1, 1, 1, 1]} : vector<4x2x11x8x32xf32> to vector<4x1x11x8x32xf32>
    %272 = vector.shape_cast %271 : vector<4x1x11x8x32xf32> to vector<4x11x8x32xf32>
    %273 = vector.extract_strided_slice %272 {offsets = [0, 3, 0, 0], sizes = [4, 8, 8, 32], strides = [1, 1, 1, 1]} : vector<4x11x8x32xf32> to vector<4x8x8x32xf32>
    %274 = vector.shape_cast %273 : vector<4x8x8x32xf32> to vector<4x4x2x8x32xf32>
    %275 = vector.extract_strided_slice %274 {offsets = [0, 0, 0, 0, 0], sizes = [4, 4, 1, 8, 32], strides = [1, 1, 1, 1, 1]} : vector<4x4x2x8x32xf32> to vector<4x4x1x8x32xf32>
    %276 = vector.shape_cast %275 : vector<4x4x1x8x32xf32> to vector<4x4x8x32xf32>
    %277 = tpu.concatenate %156, %164, %172, %180, %188, %196, %204, %212, %220, %228, %236, %244, %252, %260, %268, %276 in 3 : vector<4x4x8x32xf32>, vector<4x4x8x32xf32>, vector<4x4x8x32xf32>, vector<4x4x8x32xf32>, vector<4x4x8x32xf32>, vector<4x4x8x32xf32>, vector<4x4x8x32xf32>, vector<4x4x8x32xf32>, vector<4x4x8x32xf32>, vector<4x4x8x32xf32>, vector<4x4x8x32xf32>, vector<4x4x8x32xf32>, vector<4x4x8x32xf32>, vector<4x4x8x32xf32>, vector<4x4x8x32xf32>, vector<4x4x8x32xf32> -> vector<4x4x8x512xf32>
    %278 = vector.shape_cast %277 : vector<4x4x8x512xf32> to vector<128x512xf32>
    %279 = arith.truncf %278 : vector<128x512xf32> to vector<128x512xbf16>
    %c0_13 = arith.constant 0 : index
    %c0_14 = arith.constant 0 : index
    %280 = vector.load %arg2[%c0_13, %c0_14] : memref<512x32xbf16, #tpu.memory_space<vmem>>, vector<512x32xbf16>
    %cst_15 = arith.constant dense<0.000000e+00> : vector<128x32xf32>
    %281 = tpu.matmul %279, %280, %cst_15 {dimension_numbers = #tpu.dot_dimension_numbers<[1], [0], [0], [1], [0, 0, 1, 1], [], []>} : vector<128x512xbf16>, vector<512x32xbf16>, vector<128x32xf32> -> vector<128x32xf32>
    %c0_16 = arith.constant 0 : index
    %c0_17 = arith.constant 0 : index
    %282 = vector.load %arg6[%c0_16, %c0_17] : memref<1x32xf32, #tpu.memory_space<vmem>>, vector<1x32xf32>
    %283 = vector.broadcast %282 : vector<1x32xf32> to vector<128x32xf32>
    %284 = arith.addf %281, %283 : vector<128x32xf32>
    %cst_18 = arith.constant 0.000000e+00 : f32
    %285 = vector.broadcast %cst_18 : f32 to vector<128x32xf32>
    %286 = arith.cmpf oge, %284, %285 : vector<128x32xf32>
    %cst_19 = arith.constant 2.000000e-01 : f32
    %287 = vector.broadcast %cst_19 : f32 to vector<128x32xf32>
    %288 = arith.mulf %287, %284 : vector<128x32xf32>
    %289 = arith.select %286, %284, %288 : vector<128x32xi1>, vector<128x32xf32>
    %290 = vector.shape_cast %289 : vector<128x32xf32> to vector<4x4x8x32xf32>
    %cst_20 = arith.constant 0.000000e+00 : f32
    %291 = vector.broadcast %cst_20 : f32 to vector<4x1x8x32xf32>
    %cst_21 = arith.constant 0.000000e+00 : f32
    %292 = vector.broadcast %cst_21 : f32 to vector<4x2x8x32xf32>
    %293 = tpu.concatenate %291, %290, %292 in 1 : vector<4x1x8x32xf32>, vector<4x4x8x32xf32>, vector<4x2x8x32xf32> -> vector<4x7x8x32xf32>
    %cst_22 = arith.constant 0.000000e+00 : f32
    %294 = vector.broadcast %cst_22 : f32 to vector<1x7x8x32xf32>
    %cst_23 = arith.constant 0.000000e+00 : f32
    %295 = vector.broadcast %cst_23 : f32 to vector<2x7x8x32xf32>
    %296 = tpu.concatenate %294, %293, %295 in 0 : vector<1x7x8x32xf32>, vector<4x7x8x32xf32>, vector<2x7x8x32xf32> -> vector<7x7x8x32xf32>
    %297 = vector.extract_strided_slice %296 {offsets = [0, 0, 0, 0], sizes = [4, 7, 8, 32], strides = [1, 1, 1, 1]} : vector<7x7x8x32xf32> to vector<4x7x8x32xf32>
    %298 = vector.shape_cast %297 : vector<4x7x8x32xf32> to vector<2x2x7x8x32xf32>
    %299 = vector.extract_strided_slice %298 {offsets = [0, 0, 0, 0, 0], sizes = [2, 1, 7, 8, 32], strides = [1, 1, 1, 1, 1]} : vector<2x2x7x8x32xf32> to vector<2x1x7x8x32xf32>
    %300 = vector.shape_cast %299 : vector<2x1x7x8x32xf32> to vector<2x7x8x32xf32>
    %301 = vector.extract_strided_slice %300 {offsets = [0, 0, 0, 0], sizes = [2, 4, 8, 32], strides = [1, 1, 1, 1]} : vector<2x7x8x32xf32> to vector<2x4x8x32xf32>
    %302 = vector.shape_cast %301 : vector<2x4x8x32xf32> to vector<2x2x2x8x32xf32>
    %303 = vector.extract_strided_slice %302 {offsets = [0, 0, 0, 0, 0], sizes = [2, 2, 1, 8, 32], strides = [1, 1, 1, 1, 1]} : vector<2x2x2x8x32xf32> to vector<2x2x1x8x32xf32>
    %304 = vector.shape_cast %303 : vector<2x2x1x8x32xf32> to vector<2x2x8x32xf32>
    %305 = vector.extract_strided_slice %296 {offsets = [0, 0, 0, 0], sizes = [4, 7, 8, 32], strides = [1, 1, 1, 1]} : vector<7x7x8x32xf32> to vector<4x7x8x32xf32>
    %306 = vector.shape_cast %305 : vector<4x7x8x32xf32> to vector<2x2x7x8x32xf32>
    %307 = vector.extract_strided_slice %306 {offsets = [0, 0, 0, 0, 0], sizes = [2, 1, 7, 8, 32], strides = [1, 1, 1, 1, 1]} : vector<2x2x7x8x32xf32> to vector<2x1x7x8x32xf32>
    %308 = vector.shape_cast %307 : vector<2x1x7x8x32xf32> to vector<2x7x8x32xf32>
    %309 = vector.extract_strided_slice %308 {offsets = [0, 1, 0, 0], sizes = [2, 4, 8, 32], strides = [1, 1, 1, 1]} : vector<2x7x8x32xf32> to vector<2x4x8x32xf32>
    %310 = vector.shape_cast %309 : vector<2x4x8x32xf32> to vector<2x2x2x8x32xf32>
    %311 = vector.extract_strided_slice %310 {offsets = [0, 0, 0, 0, 0], sizes = [2, 2, 1, 8, 32], strides = [1, 1, 1, 1, 1]} : vector<2x2x2x8x32xf32> to vector<2x2x1x8x32xf32>
    %312 = vector.shape_cast %311 : vector<2x2x1x8x32xf32> to vector<2x2x8x32xf32>
    %313 = vector.extract_strided_slice %296 {offsets = [0, 0, 0, 0], sizes = [4, 7, 8, 32], strides = [1, 1, 1, 1]} : vector<7x7x8x32xf32> to vector<4x7x8x32xf32>
    %314 = vector.shape_cast %313 : vector<4x7x8x32xf32> to vector<2x2x7x8x32xf32>
    %315 = vector.extract_strided_slice %314 {offsets = [0, 0, 0, 0, 0], sizes = [2, 1, 7, 8, 32], strides = [1, 1, 1, 1, 1]} : vector<2x2x7x8x32xf32> to vector<2x1x7x8x32xf32>
    %316 = vector.shape_cast %315 : vector<2x1x7x8x32xf32> to vector<2x7x8x32xf32>
    %317 = vector.extract_strided_slice %316 {offsets = [0, 2, 0, 0], sizes = [2, 4, 8, 32], strides = [1, 1, 1, 1]} : vector<2x7x8x32xf32> to vector<2x4x8x32xf32>
    %318 = vector.shape_cast %317 : vector<2x4x8x32xf32> to vector<2x2x2x8x32xf32>
    %319 = vector.extract_strided_slice %318 {offsets = [0, 0, 0, 0, 0], sizes = [2, 2, 1, 8, 32], strides = [1, 1, 1, 1, 1]} : vector<2x2x2x8x32xf32> to vector<2x2x1x8x32xf32>
    %320 = vector.shape_cast %319 : vector<2x2x1x8x32xf32> to vector<2x2x8x32xf32>
    %321 = vector.extract_strided_slice %296 {offsets = [0, 0, 0, 0], sizes = [4, 7, 8, 32], strides = [1, 1, 1, 1]} : vector<7x7x8x32xf32> to vector<4x7x8x32xf32>
    %322 = vector.shape_cast %321 : vector<4x7x8x32xf32> to vector<2x2x7x8x32xf32>
    %323 = vector.extract_strided_slice %322 {offsets = [0, 0, 0, 0, 0], sizes = [2, 1, 7, 8, 32], strides = [1, 1, 1, 1, 1]} : vector<2x2x7x8x32xf32> to vector<2x1x7x8x32xf32>
    %324 = vector.shape_cast %323 : vector<2x1x7x8x32xf32> to vector<2x7x8x32xf32>
    %325 = vector.extract_strided_slice %324 {offsets = [0, 3, 0, 0], sizes = [2, 4, 8, 32], strides = [1, 1, 1, 1]} : vector<2x7x8x32xf32> to vector<2x4x8x32xf32>
    %326 = vector.shape_cast %325 : vector<2x4x8x32xf32> to vector<2x2x2x8x32xf32>
    %327 = vector.extract_strided_slice %326 {offsets = [0, 0, 0, 0, 0], sizes = [2, 2, 1, 8, 32], strides = [1, 1, 1, 1, 1]} : vector<2x2x2x8x32xf32> to vector<2x2x1x8x32xf32>
    %328 = vector.shape_cast %327 : vector<2x2x1x8x32xf32> to vector<2x2x8x32xf32>
    %329 = vector.extract_strided_slice %296 {offsets = [1, 0, 0, 0], sizes = [4, 7, 8, 32], strides = [1, 1, 1, 1]} : vector<7x7x8x32xf32> to vector<4x7x8x32xf32>
    %330 = vector.shape_cast %329 : vector<4x7x8x32xf32> to vector<2x2x7x8x32xf32>
    %331 = vector.extract_strided_slice %330 {offsets = [0, 0, 0, 0, 0], sizes = [2, 1, 7, 8, 32], strides = [1, 1, 1, 1, 1]} : vector<2x2x7x8x32xf32> to vector<2x1x7x8x32xf32>
    %332 = vector.shape_cast %331 : vector<2x1x7x8x32xf32> to vector<2x7x8x32xf32>
    %333 = vector.extract_strided_slice %332 {offsets = [0, 0, 0, 0], sizes = [2, 4, 8, 32], strides = [1, 1, 1, 1]} : vector<2x7x8x32xf32> to vector<2x4x8x32xf32>
    %334 = vector.shape_cast %333 : vector<2x4x8x32xf32> to vector<2x2x2x8x32xf32>
    %335 = vector.extract_strided_slice %334 {offsets = [0, 0, 0, 0, 0], sizes = [2, 2, 1, 8, 32], strides = [1, 1, 1, 1, 1]} : vector<2x2x2x8x32xf32> to vector<2x2x1x8x32xf32>
    %336 = vector.shape_cast %335 : vector<2x2x1x8x32xf32> to vector<2x2x8x32xf32>
    %337 = vector.extract_strided_slice %296 {offsets = [1, 0, 0, 0], sizes = [4, 7, 8, 32], strides = [1, 1, 1, 1]} : vector<7x7x8x32xf32> to vector<4x7x8x32xf32>
    %338 = vector.shape_cast %337 : vector<4x7x8x32xf32> to vector<2x2x7x8x32xf32>
    %339 = vector.extract_strided_slice %338 {offsets = [0, 0, 0, 0, 0], sizes = [2, 1, 7, 8, 32], strides = [1, 1, 1, 1, 1]} : vector<2x2x7x8x32xf32> to vector<2x1x7x8x32xf32>
    %340 = vector.shape_cast %339 : vector<2x1x7x8x32xf32> to vector<2x7x8x32xf32>
    %341 = vector.extract_strided_slice %340 {offsets = [0, 1, 0, 0], sizes = [2, 4, 8, 32], strides = [1, 1, 1, 1]} : vector<2x7x8x32xf32> to vector<2x4x8x32xf32>
    %342 = vector.shape_cast %341 : vector<2x4x8x32xf32> to vector<2x2x2x8x32xf32>
    %343 = vector.extract_strided_slice %342 {offsets = [0, 0, 0, 0, 0], sizes = [2, 2, 1, 8, 32], strides = [1, 1, 1, 1, 1]} : vector<2x2x2x8x32xf32> to vector<2x2x1x8x32xf32>
    %344 = vector.shape_cast %343 : vector<2x2x1x8x32xf32> to vector<2x2x8x32xf32>
    %345 = vector.extract_strided_slice %296 {offsets = [1, 0, 0, 0], sizes = [4, 7, 8, 32], strides = [1, 1, 1, 1]} : vector<7x7x8x32xf32> to vector<4x7x8x32xf32>
    %346 = vector.shape_cast %345 : vector<4x7x8x32xf32> to vector<2x2x7x8x32xf32>
    %347 = vector.extract_strided_slice %346 {offsets = [0, 0, 0, 0, 0], sizes = [2, 1, 7, 8, 32], strides = [1, 1, 1, 1, 1]} : vector<2x2x7x8x32xf32> to vector<2x1x7x8x32xf32>
    %348 = vector.shape_cast %347 : vector<2x1x7x8x32xf32> to vector<2x7x8x32xf32>
    %349 = vector.extract_strided_slice %348 {offsets = [0, 2, 0, 0], sizes = [2, 4, 8, 32], strides = [1, 1, 1, 1]} : vector<2x7x8x32xf32> to vector<2x4x8x32xf32>
    %350 = vector.shape_cast %349 : vector<2x4x8x32xf32> to vector<2x2x2x8x32xf32>
    %351 = vector.extract_strided_slice %350 {offsets = [0, 0, 0, 0, 0], sizes = [2, 2, 1, 8, 32], strides = [1, 1, 1, 1, 1]} : vector<2x2x2x8x32xf32> to vector<2x2x1x8x32xf32>
    %352 = vector.shape_cast %351 : vector<2x2x1x8x32xf32> to vector<2x2x8x32xf32>
    %353 = vector.extract_strided_slice %296 {offsets = [1, 0, 0, 0], sizes = [4, 7, 8, 32], strides = [1, 1, 1, 1]} : vector<7x7x8x32xf32> to vector<4x7x8x32xf32>
    %354 = vector.shape_cast %353 : vector<4x7x8x32xf32> to vector<2x2x7x8x32xf32>
    %355 = vector.extract_strided_slice %354 {offsets = [0, 0, 0, 0, 0], sizes = [2, 1, 7, 8, 32], strides = [1, 1, 1, 1, 1]} : vector<2x2x7x8x32xf32> to vector<2x1x7x8x32xf32>
    %356 = vector.shape_cast %355 : vector<2x1x7x8x32xf32> to vector<2x7x8x32xf32>
    %357 = vector.extract_strided_slice %356 {offsets = [0, 3, 0, 0], sizes = [2, 4, 8, 32], strides = [1, 1, 1, 1]} : vector<2x7x8x32xf32> to vector<2x4x8x32xf32>
    %358 = vector.shape_cast %357 : vector<2x4x8x32xf32> to vector<2x2x2x8x32xf32>
    %359 = vector.extract_strided_slice %358 {offsets = [0, 0, 0, 0, 0], sizes = [2, 2, 1, 8, 32], strides = [1, 1, 1, 1, 1]} : vector<2x2x2x8x32xf32> to vector<2x2x1x8x32xf32>
    %360 = vector.shape_cast %359 : vector<2x2x1x8x32xf32> to vector<2x2x8x32xf32>
    %361 = vector.extract_strided_slice %296 {offsets = [2, 0, 0, 0], sizes = [4, 7, 8, 32], strides = [1, 1, 1, 1]} : vector<7x7x8x32xf32> to vector<4x7x8x32xf32>
    %362 = vector.shape_cast %361 : vector<4x7x8x32xf32> to vector<2x2x7x8x32xf32>
    %363 = vector.extract_strided_slice %362 {offsets = [0, 0, 0, 0, 0], sizes = [2, 1, 7, 8, 32], strides = [1, 1, 1, 1, 1]} : vector<2x2x7x8x32xf32> to vector<2x1x7x8x32xf32>
    %364 = vector.shape_cast %363 : vector<2x1x7x8x32xf32> to vector<2x7x8x32xf32>
    %365 = vector.extract_strided_slice %364 {offsets = [0, 0, 0, 0], sizes = [2, 4, 8, 32], strides = [1, 1, 1, 1]} : vector<2x7x8x32xf32> to vector<2x4x8x32xf32>
    %366 = vector.shape_cast %365 : vector<2x4x8x32xf32> to vector<2x2x2x8x32xf32>
    %367 = vector.extract_strided_slice %366 {offsets = [0, 0, 0, 0, 0], sizes = [2, 2, 1, 8, 32], strides = [1, 1, 1, 1, 1]} : vector<2x2x2x8x32xf32> to vector<2x2x1x8x32xf32>
    %368 = vector.shape_cast %367 : vector<2x2x1x8x32xf32> to vector<2x2x8x32xf32>
    %369 = vector.extract_strided_slice %296 {offsets = [2, 0, 0, 0], sizes = [4, 7, 8, 32], strides = [1, 1, 1, 1]} : vector<7x7x8x32xf32> to vector<4x7x8x32xf32>
    %370 = vector.shape_cast %369 : vector<4x7x8x32xf32> to vector<2x2x7x8x32xf32>
    %371 = vector.extract_strided_slice %370 {offsets = [0, 0, 0, 0, 0], sizes = [2, 1, 7, 8, 32], strides = [1, 1, 1, 1, 1]} : vector<2x2x7x8x32xf32> to vector<2x1x7x8x32xf32>
    %372 = vector.shape_cast %371 : vector<2x1x7x8x32xf32> to vector<2x7x8x32xf32>
    %373 = vector.extract_strided_slice %372 {offsets = [0, 1, 0, 0], sizes = [2, 4, 8, 32], strides = [1, 1, 1, 1]} : vector<2x7x8x32xf32> to vector<2x4x8x32xf32>
    %374 = vector.shape_cast %373 : vector<2x4x8x32xf32> to vector<2x2x2x8x32xf32>
    %375 = vector.extract_strided_slice %374 {offsets = [0, 0, 0, 0, 0], sizes = [2, 2, 1, 8, 32], strides = [1, 1, 1, 1, 1]} : vector<2x2x2x8x32xf32> to vector<2x2x1x8x32xf32>
    %376 = vector.shape_cast %375 : vector<2x2x1x8x32xf32> to vector<2x2x8x32xf32>
    %377 = vector.extract_strided_slice %296 {offsets = [2, 0, 0, 0], sizes = [4, 7, 8, 32], strides = [1, 1, 1, 1]} : vector<7x7x8x32xf32> to vector<4x7x8x32xf32>
    %378 = vector.shape_cast %377 : vector<4x7x8x32xf32> to vector<2x2x7x8x32xf32>
    %379 = vector.extract_strided_slice %378 {offsets = [0, 0, 0, 0, 0], sizes = [2, 1, 7, 8, 32], strides = [1, 1, 1, 1, 1]} : vector<2x2x7x8x32xf32> to vector<2x1x7x8x32xf32>
    %380 = vector.shape_cast %379 : vector<2x1x7x8x32xf32> to vector<2x7x8x32xf32>
    %381 = vector.extract_strided_slice %380 {offsets = [0, 2, 0, 0], sizes = [2, 4, 8, 32], strides = [1, 1, 1, 1]} : vector<2x7x8x32xf32> to vector<2x4x8x32xf32>
    %382 = vector.shape_cast %381 : vector<2x4x8x32xf32> to vector<2x2x2x8x32xf32>
    %383 = vector.extract_strided_slice %382 {offsets = [0, 0, 0, 0, 0], sizes = [2, 2, 1, 8, 32], strides = [1, 1, 1, 1, 1]} : vector<2x2x2x8x32xf32> to vector<2x2x1x8x32xf32>
    %384 = vector.shape_cast %383 : vector<2x2x1x8x32xf32> to vector<2x2x8x32xf32>
    %385 = vector.extract_strided_slice %296 {offsets = [2, 0, 0, 0], sizes = [4, 7, 8, 32], strides = [1, 1, 1, 1]} : vector<7x7x8x32xf32> to vector<4x7x8x32xf32>
    %386 = vector.shape_cast %385 : vector<4x7x8x32xf32> to vector<2x2x7x8x32xf32>
    %387 = vector.extract_strided_slice %386 {offsets = [0, 0, 0, 0, 0], sizes = [2, 1, 7, 8, 32], strides = [1, 1, 1, 1, 1]} : vector<2x2x7x8x32xf32> to vector<2x1x7x8x32xf32>
    %388 = vector.shape_cast %387 : vector<2x1x7x8x32xf32> to vector<2x7x8x32xf32>
    %389 = vector.extract_strided_slice %388 {offsets = [0, 3, 0, 0], sizes = [2, 4, 8, 32], strides = [1, 1, 1, 1]} : vector<2x7x8x32xf32> to vector<2x4x8x32xf32>
    %390 = vector.shape_cast %389 : vector<2x4x8x32xf32> to vector<2x2x2x8x32xf32>
    %391 = vector.extract_strided_slice %390 {offsets = [0, 0, 0, 0, 0], sizes = [2, 2, 1, 8, 32], strides = [1, 1, 1, 1, 1]} : vector<2x2x2x8x32xf32> to vector<2x2x1x8x32xf32>
    %392 = vector.shape_cast %391 : vector<2x2x1x8x32xf32> to vector<2x2x8x32xf32>
    %393 = vector.extract_strided_slice %296 {offsets = [3, 0, 0, 0], sizes = [4, 7, 8, 32], strides = [1, 1, 1, 1]} : vector<7x7x8x32xf32> to vector<4x7x8x32xf32>
    %394 = vector.shape_cast %393 : vector<4x7x8x32xf32> to vector<2x2x7x8x32xf32>
    %395 = vector.extract_strided_slice %394 {offsets = [0, 0, 0, 0, 0], sizes = [2, 1, 7, 8, 32], strides = [1, 1, 1, 1, 1]} : vector<2x2x7x8x32xf32> to vector<2x1x7x8x32xf32>
    %396 = vector.shape_cast %395 : vector<2x1x7x8x32xf32> to vector<2x7x8x32xf32>
    %397 = vector.extract_strided_slice %396 {offsets = [0, 0, 0, 0], sizes = [2, 4, 8, 32], strides = [1, 1, 1, 1]} : vector<2x7x8x32xf32> to vector<2x4x8x32xf32>
    %398 = vector.shape_cast %397 : vector<2x4x8x32xf32> to vector<2x2x2x8x32xf32>
    %399 = vector.extract_strided_slice %398 {offsets = [0, 0, 0, 0, 0], sizes = [2, 2, 1, 8, 32], strides = [1, 1, 1, 1, 1]} : vector<2x2x2x8x32xf32> to vector<2x2x1x8x32xf32>
    %400 = vector.shape_cast %399 : vector<2x2x1x8x32xf32> to vector<2x2x8x32xf32>
    %401 = vector.extract_strided_slice %296 {offsets = [3, 0, 0, 0], sizes = [4, 7, 8, 32], strides = [1, 1, 1, 1]} : vector<7x7x8x32xf32> to vector<4x7x8x32xf32>
    %402 = vector.shape_cast %401 : vector<4x7x8x32xf32> to vector<2x2x7x8x32xf32>
    %403 = vector.extract_strided_slice %402 {offsets = [0, 0, 0, 0, 0], sizes = [2, 1, 7, 8, 32], strides = [1, 1, 1, 1, 1]} : vector<2x2x7x8x32xf32> to vector<2x1x7x8x32xf32>
    %404 = vector.shape_cast %403 : vector<2x1x7x8x32xf32> to vector<2x7x8x32xf32>
    %405 = vector.extract_strided_slice %404 {offsets = [0, 1, 0, 0], sizes = [2, 4, 8, 32], strides = [1, 1, 1, 1]} : vector<2x7x8x32xf32> to vector<2x4x8x32xf32>
    %406 = vector.shape_cast %405 : vector<2x4x8x32xf32> to vector<2x2x2x8x32xf32>
    %407 = vector.extract_strided_slice %406 {offsets = [0, 0, 0, 0, 0], sizes = [2, 2, 1, 8, 32], strides = [1, 1, 1, 1, 1]} : vector<2x2x2x8x32xf32> to vector<2x2x1x8x32xf32>
    %408 = vector.shape_cast %407 : vector<2x2x1x8x32xf32> to vector<2x2x8x32xf32>
    %409 = vector.extract_strided_slice %296 {offsets = [3, 0, 0, 0], sizes = [4, 7, 8, 32], strides = [1, 1, 1, 1]} : vector<7x7x8x32xf32> to vector<4x7x8x32xf32>
    %410 = vector.shape_cast %409 : vector<4x7x8x32xf32> to vector<2x2x7x8x32xf32>
    %411 = vector.extract_strided_slice %410 {offsets = [0, 0, 0, 0, 0], sizes = [2, 1, 7, 8, 32], strides = [1, 1, 1, 1, 1]} : vector<2x2x7x8x32xf32> to vector<2x1x7x8x32xf32>
    %412 = vector.shape_cast %411 : vector<2x1x7x8x32xf32> to vector<2x7x8x32xf32>
    %413 = vector.extract_strided_slice %412 {offsets = [0, 2, 0, 0], sizes = [2, 4, 8, 32], strides = [1, 1, 1, 1]} : vector<2x7x8x32xf32> to vector<2x4x8x32xf32>
    %414 = vector.shape_cast %413 : vector<2x4x8x32xf32> to vector<2x2x2x8x32xf32>
    %415 = vector.extract_strided_slice %414 {offsets = [0, 0, 0, 0, 0], sizes = [2, 2, 1, 8, 32], strides = [1, 1, 1, 1, 1]} : vector<2x2x2x8x32xf32> to vector<2x2x1x8x32xf32>
    %416 = vector.shape_cast %415 : vector<2x2x1x8x32xf32> to vector<2x2x8x32xf32>
    %417 = vector.extract_strided_slice %296 {offsets = [3, 0, 0, 0], sizes = [4, 7, 8, 32], strides = [1, 1, 1, 1]} : vector<7x7x8x32xf32> to vector<4x7x8x32xf32>
    %418 = vector.shape_cast %417 : vector<4x7x8x32xf32> to vector<2x2x7x8x32xf32>
    %419 = vector.extract_strided_slice %418 {offsets = [0, 0, 0, 0, 0], sizes = [2, 1, 7, 8, 32], strides = [1, 1, 1, 1, 1]} : vector<2x2x7x8x32xf32> to vector<2x1x7x8x32xf32>
    %420 = vector.shape_cast %419 : vector<2x1x7x8x32xf32> to vector<2x7x8x32xf32>
    %421 = vector.extract_strided_slice %420 {offsets = [0, 3, 0, 0], sizes = [2, 4, 8, 32], strides = [1, 1, 1, 1]} : vector<2x7x8x32xf32> to vector<2x4x8x32xf32>
    %422 = vector.shape_cast %421 : vector<2x4x8x32xf32> to vector<2x2x2x8x32xf32>
    %423 = vector.extract_strided_slice %422 {offsets = [0, 0, 0, 0, 0], sizes = [2, 2, 1, 8, 32], strides = [1, 1, 1, 1, 1]} : vector<2x2x2x8x32xf32> to vector<2x2x1x8x32xf32>
    %424 = vector.shape_cast %423 : vector<2x2x1x8x32xf32> to vector<2x2x8x32xf32>
    %425 = tpu.concatenate %304, %312, %320, %328, %336, %344, %352, %360, %368, %376, %384, %392, %400, %408, %416, %424 in 3 : vector<2x2x8x32xf32>, vector<2x2x8x32xf32>, vector<2x2x8x32xf32>, vector<2x2x8x32xf32>, vector<2x2x8x32xf32>, vector<2x2x8x32xf32>, vector<2x2x8x32xf32>, vector<2x2x8x32xf32>, vector<2x2x8x32xf32>, vector<2x2x8x32xf32>, vector<2x2x8x32xf32>, vector<2x2x8x32xf32>, vector<2x2x8x32xf32>, vector<2x2x8x32xf32>, vector<2x2x8x32xf32>, vector<2x2x8x32xf32> -> vector<2x2x8x512xf32>
    %426 = vector.shape_cast %425 : vector<2x2x8x512xf32> to vector<32x512xf32>
    %427 = arith.truncf %426 : vector<32x512xf32> to vector<32x512xbf16>
    %c0_24 = arith.constant 0 : index
    %c0_25 = arith.constant 0 : index
    %428 = vector.load %arg3[%c0_24, %c0_25] : memref<512x32xbf16, #tpu.memory_space<vmem>>, vector<512x32xbf16>
    %cst_26 = arith.constant dense<0.000000e+00> : vector<32x32xf32>
    %429 = tpu.matmul %427, %428, %cst_26 {dimension_numbers = #tpu.dot_dimension_numbers<[1], [0], [0], [1], [0, 0, 1, 1], [], []>} : vector<32x512xbf16>, vector<512x32xbf16>, vector<32x32xf32> -> vector<32x32xf32>
    %c0_27 = arith.constant 0 : index
    %c0_28 = arith.constant 0 : index
    %430 = vector.load %arg7[%c0_27, %c0_28] : memref<1x32xf32, #tpu.memory_space<vmem>>, vector<1x32xf32>
    %431 = vector.broadcast %430 : vector<1x32xf32> to vector<32x32xf32>
    %432 = arith.addf %429, %431 : vector<32x32xf32>
    %cst_29 = arith.constant 0.000000e+00 : f32
    %433 = vector.broadcast %cst_29 : f32 to vector<32x32xf32>
    %434 = arith.cmpf oge, %432, %433 : vector<32x32xf32>
    %cst_30 = arith.constant 2.000000e-01 : f32
    %435 = vector.broadcast %cst_30 : f32 to vector<32x32xf32>
    %436 = arith.mulf %435, %432 : vector<32x32xf32>
    %437 = arith.select %434, %432, %436 : vector<32x32xi1>, vector<32x32xf32>
    %438 = vector.shape_cast %437 : vector<32x32xf32> to vector<2x2x8x32xf32>
    %cst_31 = arith.constant 0.000000e+00 : f32
    %439 = vector.broadcast %cst_31 : f32 to vector<2x1x8x32xf32>
    %cst_32 = arith.constant 0.000000e+00 : f32
    %440 = vector.broadcast %cst_32 : f32 to vector<2x2x8x32xf32>
    %441 = tpu.concatenate %439, %438, %440 in 1 : vector<2x1x8x32xf32>, vector<2x2x8x32xf32>, vector<2x2x8x32xf32> -> vector<2x5x8x32xf32>
    %cst_33 = arith.constant 0.000000e+00 : f32
    %442 = vector.broadcast %cst_33 : f32 to vector<1x5x8x32xf32>
    %cst_34 = arith.constant 0.000000e+00 : f32
    %443 = vector.broadcast %cst_34 : f32 to vector<2x5x8x32xf32>
    %444 = tpu.concatenate %442, %441, %443 in 0 : vector<1x5x8x32xf32>, vector<2x5x8x32xf32>, vector<2x5x8x32xf32> -> vector<5x5x8x32xf32>
    %445 = vector.extract_strided_slice %444 {offsets = [0, 0, 0, 0], sizes = [2, 5, 8, 32], strides = [1, 1, 1, 1]} : vector<5x5x8x32xf32> to vector<2x5x8x32xf32>
    %446 = vector.shape_cast %445 : vector<2x5x8x32xf32> to vector<1x2x5x8x32xf32>
    %447 = vector.extract_strided_slice %446 {offsets = [0, 0, 0, 0, 0], sizes = [1, 1, 5, 8, 32], strides = [1, 1, 1, 1, 1]} : vector<1x2x5x8x32xf32> to vector<1x1x5x8x32xf32>
    %448 = vector.shape_cast %447 : vector<1x1x5x8x32xf32> to vector<1x5x8x32xf32>
    %449 = vector.extract_strided_slice %448 {offsets = [0, 0, 0, 0], sizes = [1, 2, 8, 32], strides = [1, 1, 1, 1]} : vector<1x5x8x32xf32> to vector<1x2x8x32xf32>
    %450 = vector.shape_cast %449 : vector<1x2x8x32xf32> to vector<1x1x2x8x32xf32>
    %451 = vector.extract_strided_slice %450 {offsets = [0, 0, 0, 0, 0], sizes = [1, 1, 1, 8, 32], strides = [1, 1, 1, 1, 1]} : vector<1x1x2x8x32xf32> to vector<1x1x1x8x32xf32>
    %452 = vector.shape_cast %451 : vector<1x1x1x8x32xf32> to vector<1x1x8x32xf32>
    %453 = vector.extract_strided_slice %444 {offsets = [0, 0, 0, 0], sizes = [2, 5, 8, 32], strides = [1, 1, 1, 1]} : vector<5x5x8x32xf32> to vector<2x5x8x32xf32>
    %454 = vector.shape_cast %453 : vector<2x5x8x32xf32> to vector<1x2x5x8x32xf32>
    %455 = vector.extract_strided_slice %454 {offsets = [0, 0, 0, 0, 0], sizes = [1, 1, 5, 8, 32], strides = [1, 1, 1, 1, 1]} : vector<1x2x5x8x32xf32> to vector<1x1x5x8x32xf32>
    %456 = vector.shape_cast %455 : vector<1x1x5x8x32xf32> to vector<1x5x8x32xf32>
    %457 = vector.extract_strided_slice %456 {offsets = [0, 1, 0, 0], sizes = [1, 2, 8, 32], strides = [1, 1, 1, 1]} : vector<1x5x8x32xf32> to vector<1x2x8x32xf32>
    %458 = vector.shape_cast %457 : vector<1x2x8x32xf32> to vector<1x1x2x8x32xf32>
    %459 = vector.extract_strided_slice %458 {offsets = [0, 0, 0, 0, 0], sizes = [1, 1, 1, 8, 32], strides = [1, 1, 1, 1, 1]} : vector<1x1x2x8x32xf32> to vector<1x1x1x8x32xf32>
    %460 = vector.shape_cast %459 : vector<1x1x1x8x32xf32> to vector<1x1x8x32xf32>
    %461 = vector.extract_strided_slice %444 {offsets = [0, 0, 0, 0], sizes = [2, 5, 8, 32], strides = [1, 1, 1, 1]} : vector<5x5x8x32xf32> to vector<2x5x8x32xf32>
    %462 = vector.shape_cast %461 : vector<2x5x8x32xf32> to vector<1x2x5x8x32xf32>
    %463 = vector.extract_strided_slice %462 {offsets = [0, 0, 0, 0, 0], sizes = [1, 1, 5, 8, 32], strides = [1, 1, 1, 1, 1]} : vector<1x2x5x8x32xf32> to vector<1x1x5x8x32xf32>
    %464 = vector.shape_cast %463 : vector<1x1x5x8x32xf32> to vector<1x5x8x32xf32>
    %465 = vector.extract_strided_slice %464 {offsets = [0, 2, 0, 0], sizes = [1, 2, 8, 32], strides = [1, 1, 1, 1]} : vector<1x5x8x32xf32> to vector<1x2x8x32xf32>
    %466 = vector.shape_cast %465 : vector<1x2x8x32xf32> to vector<1x1x2x8x32xf32>
    %467 = vector.extract_strided_slice %466 {offsets = [0, 0, 0, 0, 0], sizes = [1, 1, 1, 8, 32], strides = [1, 1, 1, 1, 1]} : vector<1x1x2x8x32xf32> to vector<1x1x1x8x32xf32>
    %468 = vector.shape_cast %467 : vector<1x1x1x8x32xf32> to vector<1x1x8x32xf32>
    %469 = vector.extract_strided_slice %444 {offsets = [0, 0, 0, 0], sizes = [2, 5, 8, 32], strides = [1, 1, 1, 1]} : vector<5x5x8x32xf32> to vector<2x5x8x32xf32>
    %470 = vector.shape_cast %469 : vector<2x5x8x32xf32> to vector<1x2x5x8x32xf32>
    %471 = vector.extract_strided_slice %470 {offsets = [0, 0, 0, 0, 0], sizes = [1, 1, 5, 8, 32], strides = [1, 1, 1, 1, 1]} : vector<1x2x5x8x32xf32> to vector<1x1x5x8x32xf32>
    %472 = vector.shape_cast %471 : vector<1x1x5x8x32xf32> to vector<1x5x8x32xf32>
    %473 = vector.extract_strided_slice %472 {offsets = [0, 3, 0, 0], sizes = [1, 2, 8, 32], strides = [1, 1, 1, 1]} : vector<1x5x8x32xf32> to vector<1x2x8x32xf32>
    %474 = vector.shape_cast %473 : vector<1x2x8x32xf32> to vector<1x1x2x8x32xf32>
    %475 = vector.extract_strided_slice %474 {offsets = [0, 0, 0, 0, 0], sizes = [1, 1, 1, 8, 32], strides = [1, 1, 1, 1, 1]} : vector<1x1x2x8x32xf32> to vector<1x1x1x8x32xf32>
    %476 = vector.shape_cast %475 : vector<1x1x1x8x32xf32> to vector<1x1x8x32xf32>
    %477 = vector.extract_strided_slice %444 {offsets = [1, 0, 0, 0], sizes = [2, 5, 8, 32], strides = [1, 1, 1, 1]} : vector<5x5x8x32xf32> to vector<2x5x8x32xf32>
    %478 = vector.shape_cast %477 : vector<2x5x8x32xf32> to vector<1x2x5x8x32xf32>
    %479 = vector.extract_strided_slice %478 {offsets = [0, 0, 0, 0, 0], sizes = [1, 1, 5, 8, 32], strides = [1, 1, 1, 1, 1]} : vector<1x2x5x8x32xf32> to vector<1x1x5x8x32xf32>
    %480 = vector.shape_cast %479 : vector<1x1x5x8x32xf32> to vector<1x5x8x32xf32>
    %481 = vector.extract_strided_slice %480 {offsets = [0, 0, 0, 0], sizes = [1, 2, 8, 32], strides = [1, 1, 1, 1]} : vector<1x5x8x32xf32> to vector<1x2x8x32xf32>
    %482 = vector.shape_cast %481 : vector<1x2x8x32xf32> to vector<1x1x2x8x32xf32>
    %483 = vector.extract_strided_slice %482 {offsets = [0, 0, 0, 0, 0], sizes = [1, 1, 1, 8, 32], strides = [1, 1, 1, 1, 1]} : vector<1x1x2x8x32xf32> to vector<1x1x1x8x32xf32>
    %484 = vector.shape_cast %483 : vector<1x1x1x8x32xf32> to vector<1x1x8x32xf32>
    %485 = vector.extract_strided_slice %444 {offsets = [1, 0, 0, 0], sizes = [2, 5, 8, 32], strides = [1, 1, 1, 1]} : vector<5x5x8x32xf32> to vector<2x5x8x32xf32>
    %486 = vector.shape_cast %485 : vector<2x5x8x32xf32> to vector<1x2x5x8x32xf32>
    %487 = vector.extract_strided_slice %486 {offsets = [0, 0, 0, 0, 0], sizes = [1, 1, 5, 8, 32], strides = [1, 1, 1, 1, 1]} : vector<1x2x5x8x32xf32> to vector<1x1x5x8x32xf32>
    %488 = vector.shape_cast %487 : vector<1x1x5x8x32xf32> to vector<1x5x8x32xf32>
    %489 = vector.extract_strided_slice %488 {offsets = [0, 1, 0, 0], sizes = [1, 2, 8, 32], strides = [1, 1, 1, 1]} : vector<1x5x8x32xf32> to vector<1x2x8x32xf32>
    %490 = vector.shape_cast %489 : vector<1x2x8x32xf32> to vector<1x1x2x8x32xf32>
    %491 = vector.extract_strided_slice %490 {offsets = [0, 0, 0, 0, 0], sizes = [1, 1, 1, 8, 32], strides = [1, 1, 1, 1, 1]} : vector<1x1x2x8x32xf32> to vector<1x1x1x8x32xf32>
    %492 = vector.shape_cast %491 : vector<1x1x1x8x32xf32> to vector<1x1x8x32xf32>
    %493 = vector.extract_strided_slice %444 {offsets = [1, 0, 0, 0], sizes = [2, 5, 8, 32], strides = [1, 1, 1, 1]} : vector<5x5x8x32xf32> to vector<2x5x8x32xf32>
    %494 = vector.shape_cast %493 : vector<2x5x8x32xf32> to vector<1x2x5x8x32xf32>
    %495 = vector.extract_strided_slice %494 {offsets = [0, 0, 0, 0, 0], sizes = [1, 1, 5, 8, 32], strides = [1, 1, 1, 1, 1]} : vector<1x2x5x8x32xf32> to vector<1x1x5x8x32xf32>
    %496 = vector.shape_cast %495 : vector<1x1x5x8x32xf32> to vector<1x5x8x32xf32>
    %497 = vector.extract_strided_slice %496 {offsets = [0, 2, 0, 0], sizes = [1, 2, 8, 32], strides = [1, 1, 1, 1]} : vector<1x5x8x32xf32> to vector<1x2x8x32xf32>
    %498 = vector.shape_cast %497 : vector<1x2x8x32xf32> to vector<1x1x2x8x32xf32>
    %499 = vector.extract_strided_slice %498 {offsets = [0, 0, 0, 0, 0], sizes = [1, 1, 1, 8, 32], strides = [1, 1, 1, 1, 1]} : vector<1x1x2x8x32xf32> to vector<1x1x1x8x32xf32>
    %500 = vector.shape_cast %499 : vector<1x1x1x8x32xf32> to vector<1x1x8x32xf32>
    %501 = vector.extract_strided_slice %444 {offsets = [1, 0, 0, 0], sizes = [2, 5, 8, 32], strides = [1, 1, 1, 1]} : vector<5x5x8x32xf32> to vector<2x5x8x32xf32>
    %502 = vector.shape_cast %501 : vector<2x5x8x32xf32> to vector<1x2x5x8x32xf32>
    %503 = vector.extract_strided_slice %502 {offsets = [0, 0, 0, 0, 0], sizes = [1, 1, 5, 8, 32], strides = [1, 1, 1, 1, 1]} : vector<1x2x5x8x32xf32> to vector<1x1x5x8x32xf32>
    %504 = vector.shape_cast %503 : vector<1x1x5x8x32xf32> to vector<1x5x8x32xf32>
    %505 = vector.extract_strided_slice %504 {offsets = [0, 3, 0, 0], sizes = [1, 2, 8, 32], strides = [1, 1, 1, 1]} : vector<1x5x8x32xf32> to vector<1x2x8x32xf32>
    %506 = vector.shape_cast %505 : vector<1x2x8x32xf32> to vector<1x1x2x8x32xf32>
    %507 = vector.extract_strided_slice %506 {offsets = [0, 0, 0, 0, 0], sizes = [1, 1, 1, 8, 32], strides = [1, 1, 1, 1, 1]} : vector<1x1x2x8x32xf32> to vector<1x1x1x8x32xf32>
    %508 = vector.shape_cast %507 : vector<1x1x1x8x32xf32> to vector<1x1x8x32xf32>
    %509 = vector.extract_strided_slice %444 {offsets = [2, 0, 0, 0], sizes = [2, 5, 8, 32], strides = [1, 1, 1, 1]} : vector<5x5x8x32xf32> to vector<2x5x8x32xf32>
    %510 = vector.shape_cast %509 : vector<2x5x8x32xf32> to vector<1x2x5x8x32xf32>
    %511 = vector.extract_strided_slice %510 {offsets = [0, 0, 0, 0, 0], sizes = [1, 1, 5, 8, 32], strides = [1, 1, 1, 1, 1]} : vector<1x2x5x8x32xf32> to vector<1x1x5x8x32xf32>
    %512 = vector.shape_cast %511 : vector<1x1x5x8x32xf32> to vector<1x5x8x32xf32>
    %513 = vector.extract_strided_slice %512 {offsets = [0, 0, 0, 0], sizes = [1, 2, 8, 32], strides = [1, 1, 1, 1]} : vector<1x5x8x32xf32> to vector<1x2x8x32xf32>
    %514 = vector.shape_cast %513 : vector<1x2x8x32xf32> to vector<1x1x2x8x32xf32>
    %515 = vector.extract_strided_slice %514 {offsets = [0, 0, 0, 0, 0], sizes = [1, 1, 1, 8, 32], strides = [1, 1, 1, 1, 1]} : vector<1x1x2x8x32xf32> to vector<1x1x1x8x32xf32>
    %516 = vector.shape_cast %515 : vector<1x1x1x8x32xf32> to vector<1x1x8x32xf32>
    %517 = vector.extract_strided_slice %444 {offsets = [2, 0, 0, 0], sizes = [2, 5, 8, 32], strides = [1, 1, 1, 1]} : vector<5x5x8x32xf32> to vector<2x5x8x32xf32>
    %518 = vector.shape_cast %517 : vector<2x5x8x32xf32> to vector<1x2x5x8x32xf32>
    %519 = vector.extract_strided_slice %518 {offsets = [0, 0, 0, 0, 0], sizes = [1, 1, 5, 8, 32], strides = [1, 1, 1, 1, 1]} : vector<1x2x5x8x32xf32> to vector<1x1x5x8x32xf32>
    %520 = vector.shape_cast %519 : vector<1x1x5x8x32xf32> to vector<1x5x8x32xf32>
    %521 = vector.extract_strided_slice %520 {offsets = [0, 1, 0, 0], sizes = [1, 2, 8, 32], strides = [1, 1, 1, 1]} : vector<1x5x8x32xf32> to vector<1x2x8x32xf32>
    %522 = vector.shape_cast %521 : vector<1x2x8x32xf32> to vector<1x1x2x8x32xf32>
    %523 = vector.extract_strided_slice %522 {offsets = [0, 0, 0, 0, 0], sizes = [1, 1, 1, 8, 32], strides = [1, 1, 1, 1, 1]} : vector<1x1x2x8x32xf32> to vector<1x1x1x8x32xf32>
    %524 = vector.shape_cast %523 : vector<1x1x1x8x32xf32> to vector<1x1x8x32xf32>
    %525 = vector.extract_strided_slice %444 {offsets = [2, 0, 0, 0], sizes = [2, 5, 8, 32], strides = [1, 1, 1, 1]} : vector<5x5x8x32xf32> to vector<2x5x8x32xf32>
    %526 = vector.shape_cast %525 : vector<2x5x8x32xf32> to vector<1x2x5x8x32xf32>
    %527 = vector.extract_strided_slice %526 {offsets = [0, 0, 0, 0, 0], sizes = [1, 1, 5, 8, 32], strides = [1, 1, 1, 1, 1]} : vector<1x2x5x8x32xf32> to vector<1x1x5x8x32xf32>
    %528 = vector.shape_cast %527 : vector<1x1x5x8x32xf32> to vector<1x5x8x32xf32>
    %529 = vector.extract_strided_slice %528 {offsets = [0, 2, 0, 0], sizes = [1, 2, 8, 32], strides = [1, 1, 1, 1]} : vector<1x5x8x32xf32> to vector<1x2x8x32xf32>
    %530 = vector.shape_cast %529 : vector<1x2x8x32xf32> to vector<1x1x2x8x32xf32>
    %531 = vector.extract_strided_slice %530 {offsets = [0, 0, 0, 0, 0], sizes = [1, 1, 1, 8, 32], strides = [1, 1, 1, 1, 1]} : vector<1x1x2x8x32xf32> to vector<1x1x1x8x32xf32>
    %532 = vector.shape_cast %531 : vector<1x1x1x8x32xf32> to vector<1x1x8x32xf32>
    %533 = vector.extract_strided_slice %444 {offsets = [2, 0, 0, 0], sizes = [2, 5, 8, 32], strides = [1, 1, 1, 1]} : vector<5x5x8x32xf32> to vector<2x5x8x32xf32>
    %534 = vector.shape_cast %533 : vector<2x5x8x32xf32> to vector<1x2x5x8x32xf32>
    %535 = vector.extract_strided_slice %534 {offsets = [0, 0, 0, 0, 0], sizes = [1, 1, 5, 8, 32], strides = [1, 1, 1, 1, 1]} : vector<1x2x5x8x32xf32> to vector<1x1x5x8x32xf32>
    %536 = vector.shape_cast %535 : vector<1x1x5x8x32xf32> to vector<1x5x8x32xf32>
    %537 = vector.extract_strided_slice %536 {offsets = [0, 3, 0, 0], sizes = [1, 2, 8, 32], strides = [1, 1, 1, 1]} : vector<1x5x8x32xf32> to vector<1x2x8x32xf32>
    %538 = vector.shape_cast %537 : vector<1x2x8x32xf32> to vector<1x1x2x8x32xf32>
    %539 = vector.extract_strided_slice %538 {offsets = [0, 0, 0, 0, 0], sizes = [1, 1, 1, 8, 32], strides = [1, 1, 1, 1, 1]} : vector<1x1x2x8x32xf32> to vector<1x1x1x8x32xf32>
    %540 = vector.shape_cast %539 : vector<1x1x1x8x32xf32> to vector<1x1x8x32xf32>
    %541 = vector.extract_strided_slice %444 {offsets = [3, 0, 0, 0], sizes = [2, 5, 8, 32], strides = [1, 1, 1, 1]} : vector<5x5x8x32xf32> to vector<2x5x8x32xf32>
    %542 = vector.shape_cast %541 : vector<2x5x8x32xf32> to vector<1x2x5x8x32xf32>
    %543 = vector.extract_strided_slice %542 {offsets = [0, 0, 0, 0, 0], sizes = [1, 1, 5, 8, 32], strides = [1, 1, 1, 1, 1]} : vector<1x2x5x8x32xf32> to vector<1x1x5x8x32xf32>
    %544 = vector.shape_cast %543 : vector<1x1x5x8x32xf32> to vector<1x5x8x32xf32>
    %545 = vector.extract_strided_slice %544 {offsets = [0, 0, 0, 0], sizes = [1, 2, 8, 32], strides = [1, 1, 1, 1]} : vector<1x5x8x32xf32> to vector<1x2x8x32xf32>
    %546 = vector.shape_cast %545 : vector<1x2x8x32xf32> to vector<1x1x2x8x32xf32>
    %547 = vector.extract_strided_slice %546 {offsets = [0, 0, 0, 0, 0], sizes = [1, 1, 1, 8, 32], strides = [1, 1, 1, 1, 1]} : vector<1x1x2x8x32xf32> to vector<1x1x1x8x32xf32>
    %548 = vector.shape_cast %547 : vector<1x1x1x8x32xf32> to vector<1x1x8x32xf32>
    %549 = vector.extract_strided_slice %444 {offsets = [3, 0, 0, 0], sizes = [2, 5, 8, 32], strides = [1, 1, 1, 1]} : vector<5x5x8x32xf32> to vector<2x5x8x32xf32>
    %550 = vector.shape_cast %549 : vector<2x5x8x32xf32> to vector<1x2x5x8x32xf32>
    %551 = vector.extract_strided_slice %550 {offsets = [0, 0, 0, 0, 0], sizes = [1, 1, 5, 8, 32], strides = [1, 1, 1, 1, 1]} : vector<1x2x5x8x32xf32> to vector<1x1x5x8x32xf32>
    %552 = vector.shape_cast %551 : vector<1x1x5x8x32xf32> to vector<1x5x8x32xf32>
    %553 = vector.extract_strided_slice %552 {offsets = [0, 1, 0, 0], sizes = [1, 2, 8, 32], strides = [1, 1, 1, 1]} : vector<1x5x8x32xf32> to vector<1x2x8x32xf32>
    %554 = vector.shape_cast %553 : vector<1x2x8x32xf32> to vector<1x1x2x8x32xf32>
    %555 = vector.extract_strided_slice %554 {offsets = [0, 0, 0, 0, 0], sizes = [1, 1, 1, 8, 32], strides = [1, 1, 1, 1, 1]} : vector<1x1x2x8x32xf32> to vector<1x1x1x8x32xf32>
    %556 = vector.shape_cast %555 : vector<1x1x1x8x32xf32> to vector<1x1x8x32xf32>
    %557 = vector.extract_strided_slice %444 {offsets = [3, 0, 0, 0], sizes = [2, 5, 8, 32], strides = [1, 1, 1, 1]} : vector<5x5x8x32xf32> to vector<2x5x8x32xf32>
    %558 = vector.shape_cast %557 : vector<2x5x8x32xf32> to vector<1x2x5x8x32xf32>
    %559 = vector.extract_strided_slice %558 {offsets = [0, 0, 0, 0, 0], sizes = [1, 1, 5, 8, 32], strides = [1, 1, 1, 1, 1]} : vector<1x2x5x8x32xf32> to vector<1x1x5x8x32xf32>
    %560 = vector.shape_cast %559 : vector<1x1x5x8x32xf32> to vector<1x5x8x32xf32>
    %561 = vector.extract_strided_slice %560 {offsets = [0, 2, 0, 0], sizes = [1, 2, 8, 32], strides = [1, 1, 1, 1]} : vector<1x5x8x32xf32> to vector<1x2x8x32xf32>
    %562 = vector.shape_cast %561 : vector<1x2x8x32xf32> to vector<1x1x2x8x32xf32>
    %563 = vector.extract_strided_slice %562 {offsets = [0, 0, 0, 0, 0], sizes = [1, 1, 1, 8, 32], strides = [1, 1, 1, 1, 1]} : vector<1x1x2x8x32xf32> to vector<1x1x1x8x32xf32>
    %564 = vector.shape_cast %563 : vector<1x1x1x8x32xf32> to vector<1x1x8x32xf32>
    %565 = vector.extract_strided_slice %444 {offsets = [3, 0, 0, 0], sizes = [2, 5, 8, 32], strides = [1, 1, 1, 1]} : vector<5x5x8x32xf32> to vector<2x5x8x32xf32>
    %566 = vector.shape_cast %565 : vector<2x5x8x32xf32> to vector<1x2x5x8x32xf32>
    %567 = vector.extract_strided_slice %566 {offsets = [0, 0, 0, 0, 0], sizes = [1, 1, 5, 8, 32], strides = [1, 1, 1, 1, 1]} : vector<1x2x5x8x32xf32> to vector<1x1x5x8x32xf32>
    %568 = vector.shape_cast %567 : vector<1x1x5x8x32xf32> to vector<1x5x8x32xf32>
    %569 = vector.extract_strided_slice %568 {offsets = [0, 3, 0, 0], sizes = [1, 2, 8, 32], strides = [1, 1, 1, 1]} : vector<1x5x8x32xf32> to vector<1x2x8x32xf32>
    %570 = vector.shape_cast %569 : vector<1x2x8x32xf32> to vector<1x1x2x8x32xf32>
    %571 = vector.extract_strided_slice %570 {offsets = [0, 0, 0, 0, 0], sizes = [1, 1, 1, 8, 32], strides = [1, 1, 1, 1, 1]} : vector<1x1x2x8x32xf32> to vector<1x1x1x8x32xf32>
    %572 = vector.shape_cast %571 : vector<1x1x1x8x32xf32> to vector<1x1x8x32xf32>
    %573 = tpu.concatenate %452, %460, %468, %476, %484, %492, %500, %508, %516, %524, %532, %540, %548, %556, %564, %572 in 3 : vector<1x1x8x32xf32>, vector<1x1x8x32xf32>, vector<1x1x8x32xf32>, vector<1x1x8x32xf32>, vector<1x1x8x32xf32>, vector<1x1x8x32xf32>, vector<1x1x8x32xf32>, vector<1x1x8x32xf32>, vector<1x1x8x32xf32>, vector<1x1x8x32xf32>, vector<1x1x8x32xf32>, vector<1x1x8x32xf32>, vector<1x1x8x32xf32>, vector<1x1x8x32xf32>, vector<1x1x8x32xf32>, vector<1x1x8x32xf32> -> vector<1x1x8x512xf32>
    %574 = vector.shape_cast %573 : vector<1x1x8x512xf32> to vector<8x512xf32>
    %575 = arith.truncf %574 : vector<8x512xf32> to vector<8x512xbf16>
    %c0_35 = arith.constant 0 : index
    %c0_36 = arith.constant 0 : index
    %576 = vector.load %arg4[%c0_35, %c0_36] : memref<512x32xbf16, #tpu.memory_space<vmem>>, vector<512x32xbf16>
    %cst_37 = arith.constant dense<0.000000e+00> : vector<8x32xf32>
    %577 = tpu.matmul %575, %576, %cst_37 {dimension_numbers = #tpu.dot_dimension_numbers<[1], [0], [0], [1], [0, 0, 1, 1], [], []>} : vector<8x512xbf16>, vector<512x32xbf16>, vector<8x32xf32> -> vector<8x32xf32>
    %c0_38 = arith.constant 0 : index
    %c0_39 = arith.constant 0 : index
    %578 = vector.load %arg8[%c0_38, %c0_39] : memref<1x32xf32, #tpu.memory_space<vmem>>, vector<1x32xf32>
    %579 = vector.broadcast %578 : vector<1x32xf32> to vector<8x32xf32>
    %580 = arith.addf %577, %579 : vector<8x32xf32>
    %cst_40 = arith.constant 0.000000e+00 : f32
    %581 = vector.broadcast %cst_40 : f32 to vector<8x32xf32>
    %582 = arith.cmpf oge, %580, %581 : vector<8x32xf32>
    %cst_41 = arith.constant 2.000000e-01 : f32
    %583 = vector.broadcast %cst_41 : f32 to vector<8x32xf32>
    %584 = arith.mulf %583, %580 : vector<8x32xf32>
    %585 = arith.select %582, %580, %584 : vector<8x32xi1>, vector<8x32xf32>
    %c0_42 = arith.constant 0 : index
    %c0_43 = arith.constant 0 : index
    %586 = vector.load %arg9[%c0_42, %c0_43] : memref<1x32xf32, #tpu.memory_space<vmem>>, vector<1x32xf32>
    %587 = vector.broadcast %586 : vector<1x32xf32> to vector<8x32xf32>
    %588 = arith.mulf %585, %587 : vector<8x32xf32>
    %cst_44 = arith.constant dense<0.000000e+00> : vector<8xf32>
    %589 = vector.multi_reduction <add>, %588, %cst_44 [1] : vector<8x32xf32> to vector<8xf32>
    %590 = vector.shape_cast %589 : vector<8xf32> to vector<8x1xf32>
    %c0_45 = arith.constant 0 : index
    %c0_46 = arith.constant 0 : index
    %591 = vector.load %arg10[%c0_45, %c0_46] : memref<1x1xf32, #tpu.memory_space<vmem>>, vector<1x1xf32>
    %592 = vector.broadcast %591 : vector<1x1xf32> to vector<8x1xf32>
    %593 = arith.addf %590, %592 : vector<8x1xf32>
    %c0_47 = arith.constant 0 : index
    %c0_48 = arith.constant 0 : index
    %594 = vector.load %arg11[%c0_47, %c0_48] : memref<8x1xf32, #tpu.memory_space<vmem>>, vector<8x1xf32>
    tpu.vector_store %arg11[%c0_47, %c0_48], %593 {strides = array<i32>} : memref<8x1xf32, #tpu.memory_space<vmem>>, vector<8x1xf32>,
    return
  }
}

</mosaic_0001>

<bundles_post_ra>
// kernel: discriminator_forward.1
= control target key start
LH: loop header
LB: loop body
LE: loop exit
PB: predicated region body
PF: predicated region fallthrough
CT: control target
= control target key end

     0   :  { %s10161_s0 = inlined_call_operand.hbm [shape: f32[19,19,8,32], index: 0, kind: input, shape index: {}]   ;;  %s10162_s1 = inlined_call_operand.hbm [shape: bf16[512,32], index: 1, kind: input, shape index: {}]   ;;  %s10163_s2 = inlined_call_operand.hbm [shape: bf16[512,32], index: 2, kind: input, shape index: {}]   ;;  %s10164_s3 = inlined_call_operand.hbm [shape: bf16[512,32], index: 3, kind: input, shape index: {}]   ;;  %s10165_s4 = inlined_call_operand.hbm [shape: bf16[512,32], index: 4, kind: input, shape index: {}]   ;;  %s10166_s5 = inlined_call_operand.hbm [shape: f32[1,32], index: 5, kind: input, shape index: {}]   ;;  %s10167_s6 = inlined_call_operand.hbm [shape: f32[1,32], index: 6, kind: input, shape index: {}]   ;;  %s10168_s7 = inlined_call_operand.hbm [shape: f32[1,32], index: 7, kind: input, shape index: {}]   ;;  %s10169_s8 = inlined_call_operand.hbm [shape: f32[1,32], index: 8, kind: input, shape index: {}]   ;;  %s10170_s9 = inlined_call_operand.hbm [shape: f32[1,32], index: 9, kind: input, shape index: {}]   ;;  %s10171_s10 = inlined_call_operand.<no memory space> [shape: f32[1,1], index: 10, kind: input, shape index: {}]   ;;  %s10172_s11 = inlined_call_operand.hbm [shape: f32[8,1], index: 11, kind: output, shape index: {}]  }
   0x1   :  { %v16_v0 = vstv %s10171_s10 }
   0x2   :  { %17 = vst [vmem:[#allocation2] sm:$0x1] %v16_v0 }
   0x3   :  { %18 = vsyncpa [#allocation4], 0 }
   0x4   :  { %19 = vsyncpa [#allocation7], 0 }
   0x5   :  { %20 = vsyncpa [#allocation10], 0 }
   0x6   :  { %21 = vsyncpa [#allocation13], 0 }
   0x7   :  { %22 = vsyncpa [#allocation16], 0 }
   0x8   :  { %23 = vsyncpa [#allocation19], 0 }
   0x9   :  { %24 = vsyncpa [#allocation5], 0  ;;  %s7892_s19 = smov [#allocation6]   ;;  %s7636_s23 = scalar_lea.hbm %s10162_s1, 4096 }
   0xa   :  { %s42_s20 = sshll.u32 %s7892_s19, 4  ;;  %p7637_p0 = scmp.ne.s32.totalorder %s10162_s1, %s7636_s23  ;;  %s43_s20 = int_to_ptr.vmem [resolvable:$true] %s42_s20 }
   0xb   :  { %p7640_p1 = scmp.lt.u32.totalorder %s7636_s23, %s10162_s1 }
   0xd   :  { %p7642_p2 = pnand %p7640_p1, %p7637_p0 }
   0xf   :  { %7645 = shalt.err (!%p7642_p2)
}
  0x10   :  { %s7646_s27 = scalar_lea.vmem %s43_s20, 4096  ;;  %p7651_p4 = scmp.lt.s32.totalorder %s43_s20, %s43_s20 }
  0x11   :  { %p7647_p3 = scmp.ne.s32.totalorder %s43_s20, %s7646_s27  ;;  %p7652_p5 = scmp.lt.s32.totalorder %s7646_s27, %s7646_s27 }
  0x13   :  { %p7653_p6 = por %p7652_p5, %p7651_p4 }
  0x15   :  { %p7654_p7 = pnand %p7653_p6, %p7647_p3 }
  0x17   :  { %7657 = shalt.err (!%p7654_p7)
}
  0x18   :  { %s7893_s28 = smov 64   ;;  %s7894_s29 = smov 4  }
  0x19   :  { %48 = dma.hbm_to_vmem [thread:$0]  %s10162_s1, 4096, %s43_s20, [#allocation7], %s7893_s28, %s7893_s28, %s7894_s29  }
  0x1a   :  { %s7895_s13 = smov [#allocation9]   ;;  %s7896_s15 = smov [#allocation12]  }
  0x1b   :  { %s66_s14 = sshll.u32 %s7895_s13, 4  ;;  %s91_s16 = sshll.u32 %s7896_s15, 4  ;;  %s67_s14 = int_to_ptr.vmem [resolvable:$true] %s66_s14  ;;  %s92_s16 = int_to_ptr.vmem [resolvable:$true] %s91_s16 }
  0x1c   :  { %s7658_s19 = scalar_lea.hbm %s10164_s3, 4096 }
  0x1d   :  { %p7659_p8 = scmp.ne.s32.totalorder %s10164_s3, %s7658_s19  ;;  %p7662_p9 = scmp.lt.u32.totalorder %s7658_s19, %s10164_s3 }
  0x1f   :  { %p7664_p10 = pnand %p7662_p9, %p7659_p8 }
  0x21   :  { %7667 = shalt.err (!%p7664_p10)
}
  0x22   :  { %s7668_s1 = scalar_lea.vmem %s67_s14, 4096  ;;  %p7673_p12 = scmp.lt.s32.totalorder %s67_s14, %s67_s14 }
  0x23   :  { %p7669_p11 = scmp.ne.s32.totalorder %s67_s14, %s7668_s1  ;;  %p7674_p13 = scmp.lt.s32.totalorder %s7668_s1, %s7668_s1 }
  0x25   :  { %p7675_p0 = por %p7674_p13, %p7673_p12 }
  0x27   :  { %p7676_p1 = pnand %p7675_p0, %p7669_p11 }
  0x29   :  { %7679 = shalt.err (!%p7676_p1)
}
  0x2a   :  { %72 = dma.hbm_to_vmem [thread:$0]  %s10164_s3, 4096, %s67_s14, [#allocation10], %s7893_s28, %s7893_s28, %s7894_s29  }
  0x2b   :  { %s7680_s27 = scalar_lea.hbm %s10166_s5, 16 }
  0x2c   :  { %p7681_p2 = scmp.ne.s32.totalorder %s10166_s5, %s7680_s27  ;;  %p7684_p3 = scmp.lt.u32.totalorder %s7680_s27, %s10166_s5 }
  0x2e   :  { %p7686_p4 = pnand %p7684_p3, %p7681_p2 }
  0x30   :  { %7689 = shalt.err (!%p7686_p4)
}
  0x31   :  { %s7690_s17 = scalar_lea.vmem %s92_s16, 16  ;;  %s7694_s18 = scalar_lea.vmem %s92_s16, 32 }
  0x32   :  { %p7691_p5 = scmp.ne.s32.totalorder %s92_s16, %s7690_s17  ;;  %p7695_p6 = scmp.lt.s32.totalorder %s92_s16, %s92_s16 }
  0x33   :  { %p7696_p7 = scmp.lt.s32.totalorder %s7694_s18, %s7690_s17 }
  0x35   :  { %p7697_p8 = por %p7696_p7, %p7695_p6 }
  0x37   :  { %p7698_p9 = pnand %p7697_p8, %p7691_p5 }
  0x39   :  { %7701 = shalt.err (!%p7698_p9)
}
  0x3a   :  { %94 = dma.hbm_to_vmem [thread:$0]  %s10166_s5, 16, %s92_s16, [#allocation13]  }
  0x3b   :  { %s7897_s19 = smov [#allocation15]   ;;  %s7898_s22 = smov [#allocation3]  }
  0x3c   :  { %s111_s21 = sshll.u32 %s7897_s19, 4  ;;  %s30_s23 = sshll.u32 %s7898_s22, 4  ;;  %s112_s21 = int_to_ptr.vmem [resolvable:$true] %s111_s21  ;;  %s31_s23 = int_to_ptr.vmem [resolvable:$true] %s30_s23 }
  0x3d   :  { %s7702_s20 = scalar_lea.hbm %s10168_s7, 16 }
  0x3e   :  { %p7703_p10 = scmp.ne.s32.totalorder %s10168_s7, %s7702_s20  ;;  %p7706_p11 = scmp.lt.u32.totalorder %s7702_s20, %s10168_s7 }
  0x40   :  { %p7708_p12 = pnand %p7706_p11, %p7703_p10 }
  0x42   :  { %7711 = shalt.err (!%p7708_p12)
}
  0x43   :  { %s7712_s5 = scalar_lea.vmem %s112_s21, 16  ;;  %s7716_s16 = scalar_lea.vmem %s112_s21, 32 }
  0x44   :  { %p7713_p13 = scmp.ne.s32.totalorder %s112_s21, %s7712_s5  ;;  %p7717_p0 = scmp.lt.s32.totalorder %s112_s21, %s112_s21 }
  0x45   :  { %p7718_p1 = scmp.lt.s32.totalorder %s7716_s16, %s7712_s5 }
  0x47   :  { %p7719_p2 = por %p7718_p1, %p7717_p0 }
  0x49   :  { %p7720_p3 = pnand %p7719_p2, %p7713_p13 }
  0x4b   :  { %7723 = shalt.err (!%p7720_p3)
}
  0x4c   :  { %114 = dma.hbm_to_vmem [thread:$0]  %s10168_s7, 16, %s112_s21, [#allocation16]  }
  0x4d   :  { %s7724_s17 = scalar_lea.hbm %s10161_s0, 46208 }
  0x4e   :  { %p7725_p4 = scmp.ne.s32.totalorder %s10161_s0, %s7724_s17  ;;  %p7728_p5 = scmp.lt.u32.totalorder %s7724_s17, %s10161_s0 }
  0x50   :  { %p7730_p6 = pnand %p7728_p5, %p7725_p4 }
  0x52   :  { %7733 = shalt.err (!%p7730_p6)
}
  0x53   :  { %s7734_s22 = scalar_lea.vmem %s31_s23, 46208  ;;  %p7739_p8 = scmp.lt.s32.totalorder %s31_s23, %s31_s23 }
  0x54   :  { %p7735_p7 = scmp.ne.s32.totalorder %s31_s23, %s7734_s22  ;;  %p7740_p9 = scmp.lt.s32.totalorder %s7734_s22, %s7734_s22 }
  0x56   :  { %p7741_p10 = por %p7740_p9, %p7739_p8 }
  0x58   :  { %p7742_p11 = pnand %p7741_p10, %p7735_p7 }
  0x5a   :  { %7745 = shalt.err (!%p7742_p11)
}
  0x5b   :  { %s7899_s7 = smov 128   ;;  %s7900_s21 = smov 8  }
  0x5c   :  { %36 = dma.hbm_to_vmem [thread:$0]  %s10161_s0, 46208, %s31_s23, [#allocation4], %s7899_s7, %s7899_s7, %s7900_s21  }
  0x5d   :  { %s7901_s20 = smov [#allocation8]   ;;  %s7902_s10 = smov [#allocation11]  }
  0x5e   :  { %s54_s25 = sshll.u32 %s7901_s20, 4  ;;  %s78_s26 = sshll.u32 %s7902_s10, 4  ;;  %s55_s25 = int_to_ptr.vmem [resolvable:$true] %s54_s25  ;;  %s79_s26 = int_to_ptr.vmem [resolvable:$true] %s78_s26 }
  0x5f   :  { %s7746_s16 = scalar_lea.hbm %s10163_s2, 4096 }
  0x60   :  { %p7747_p12 = scmp.ne.s32.totalorder %s10163_s2, %s7746_s16  ;;  %p7750_p13 = scmp.lt.u32.totalorder %s7746_s16, %s10163_s2 }
  0x62   :  { %p7752_p0 = pnand %p7750_p13, %p7747_p12 }
  0x64   :  { %7755 = shalt.err (!%p7752_p0)
}
  0x65   :  { %s7756_s0 = scalar_lea.vmem %s55_s25, 4096  ;;  %p7761_p2 = scmp.lt.s32.totalorder %s55_s25, %s55_s25 }
  0x66   :  { %p7757_p1 = scmp.ne.s32.totalorder %s55_s25, %s7756_s0  ;;  %p7762_p3 = scmp.lt.s32.totalorder %s7756_s0, %s7756_s0 }
  0x68   :  { %p7763_p4 = por %p7762_p3, %p7761_p2 }
  0x6a   :  { %p7764_p5 = pnand %p7763_p4, %p7757_p1 }
  0x6c   :  { %7767 = shalt.err (!%p7764_p5)
}
  0x6d   :  { %60 = dma.hbm_to_vmem [thread:$0]  %s10163_s2, 4096, %s55_s25, [#allocation7], %s7893_s28, %s7893_s28, %s7894_s29  }
  0x6e   :  { %s7768_s14 = scalar_lea.hbm %s10165_s4, 4096 }
  0x6f   :  { %p7769_p6 = scmp.ne.s32.totalorder %s10165_s4, %s7768_s14  ;;  %p7772_p7 = scmp.lt.u32.totalorder %s7768_s14, %s10165_s4 }
  0x71   :  { %p7774_p8 = pnand %p7772_p7, %p7769_p6 }
  0x73   :  { %7777 = shalt.err (!%p7774_p8)
}
  0x74   :  { %s7778_s24 = scalar_lea.vmem %s79_s26, 4096  ;;  %p7783_p10 = scmp.lt.s32.totalorder %s79_s26, %s79_s26 }
  0x75   :  { %p7779_p9 = scmp.ne.s32.totalorder %s79_s26, %s7778_s24  ;;  %p7784_p11 = scmp.lt.s32.totalorder %s7778_s24, %s7778_s24 }
  0x77   :  { %p7785_p12 = por %p7784_p11, %p7783_p10 }
  0x79   :  { %p7786_p13 = pnand %p7785_p12, %p7779_p9 }
  0x7b   :  { %7789 = shalt.err (!%p7786_p13)
}
  0x7c   :  { %84 = dma.hbm_to_vmem [thread:$0]  %s10165_s4, 4096, %s79_s26, [#allocation10], %s7893_s28, %s7893_s28, %s7894_s29  }
  0x7d   :  { %s7903_s20 = smov [#allocation14]   ;;  %s7904_s10 = smov [#allocation17]  }
  0x7e   :  { %s101_s25 = sshll.u32 %s7903_s20, 4  ;;  %s121_s27 = sshll.u32 %s7904_s10, 4  ;;  %s102_s25 = int_to_ptr.vmem [resolvable:$true] %s101_s25  ;;  %s122_s27 = int_to_ptr.vmem [resolvable:$true] %s121_s27 }
  0x7f   :  { %s7790_s30 = scalar_lea.hbm %s10167_s6, 16 }
  0x80   :  { %p7791_p0 = scmp.ne.s32.totalorder %s10167_s6, %s7790_s30  ;;  %p7794_p1 = scmp.lt.u32.totalorder %s7790_s30, %s10167_s6 }
  0x82   :  { %p7796_p2 = pnand %p7794_p1, %p7791_p0 }
  0x84   :  { %7799 = shalt.err (!%p7796_p2)
}
  0x85   :  { %s7800_s4 = scalar_lea.vmem %s102_s25, 16  ;;  %s7804_s29 = scalar_lea.vmem %s102_s25, 32 }
  0x86   :  { %p7801_p3 = scmp.ne.s32.totalorder %s102_s25, %s7800_s4  ;;  %p7805_p4 = scmp.lt.s32.totalorder %s102_s25, %s102_s25 }
  0x87   :  { %p7806_p5 = scmp.lt.s32.totalorder %s7804_s29, %s7800_s4 }
  0x89   :  { %p7807_p6 = por %p7806_p5, %p7805_p4 }
  0x8b   :  { %p7808_p7 = pnand %p7807_p6, %p7801_p3 }
  0x8d   :  { %7811 = shalt.err (!%p7808_p7)
}
  0x8e   :  { %104 = dma.hbm_to_vmem [thread:$0]  %s10167_s6, 16, %s102_s25, [#allocation13]  }
  0x8f   :  { %s7812_s3 = scalar_lea.hbm %s10169_s8, 16 }
  0x90   :  { %p7813_p8 = scmp.ne.s32.totalorder %s10169_s8, %s7812_s3  ;;  %p7816_p9 = scmp.lt.u32.totalorder %s7812_s3, %s10169_s8 }
  0x92   :  { %p7818_p10 = pnand %p7816_p9, %p7813_p8 }
  0x94   :  { %7821 = shalt.err (!%p7818_p10)
}
  0x95   :  { %s7822_s21 = scalar_lea.vmem %s122_s27, 16  ;;  %s7826_s24 = scalar_lea.vmem %s122_s27, 32 }
  0x96   :  { %p7823_p11 = scmp.ne.s32.totalorder %s122_s27, %s7822_s21  ;;  %p7827_p12 = scmp.lt.s32.totalorder %s122_s27, %s122_s27 }
  0x97   :  { %p7828_p13 = scmp.lt.s32.totalorder %s7826_s24, %s7822_s21 }
  0x99   :  { %p7829_p0 = por %p7828_p13, %p7827_p12 }
  0x9b   :  { %p7830_p1 = pnand %p7829_p0, %p7823_p11 }
  0x9d   :  { %7833 = shalt.err (!%p7830_p1)
}
  0x9e   :  { %124 = dma.hbm_to_vmem [thread:$0]  %s10169_s8, 16, %s122_s27, [#allocation16]  }
  0x9f   :  { %s7905_s1 = smov [#allocation18]   ;;  %s7834_s5 = scalar_lea.hbm %s10170_s9, 16 }
  0xa0   :  { %s131_s20 = sshll.u32 %s7905_s1, 4  ;;  %p7835_p2 = scmp.ne.s32.totalorder %s10170_s9, %s7834_s5  ;;  %s132_s20 = int_to_ptr.vmem [resolvable:$true] %s131_s20 }
  0xa1   :  { %p7838_p3 = scmp.lt.u32.totalorder %s7834_s5, %s10170_s9 }
  0xa3   :  { %p7840_p4 = pnand %p7838_p3, %p7835_p2 }
  0xa5   :  { %7843 = shalt.err (!%p7840_p4)
}
  0xa6   :  { %s7844_s15 = scalar_lea.vmem %s132_s20, 16  ;;  %s7848_s8 = scalar_lea.vmem %s132_s20, 32 }
  0xa7   :  { %p7845_p5 = scmp.ne.s32.totalorder %s132_s20, %s7844_s15  ;;  %p7849_p6 = scmp.lt.s32.totalorder %s132_s20, %s132_s20 }
  0xa8   :  { %p7850_p7 = scmp.lt.s32.totalorder %s7848_s8, %s7844_s15 }
  0xaa   :  { %p7851_p8 = por %p7850_p7, %p7849_p6 }
  0xac   :  { %p7852_p9 = pnand %p7851_p8, %p7845_p5 }
  0xae   :  { %7855 = shalt.err (!%p7852_p9)
}
  0xaf   :  { %134 = dma.hbm_to_vmem [thread:$0]  %s10170_s9, 16, %s132_s20, [#allocation19]  }
  0xb0   :  { %7878 = dma.done.wait [#allocation4], 46208  }
  0xb1   :  { %7879 = vsyncadd [#allocation4], 4294921088 }
  0xb2   :  { %7880 = dma.done.wait [#allocation7], 8192  }
  0xb3   :  { %7881 = vsyncadd [#allocation7], 4294959104 }
  0xb4   :  { %7882 = dma.done.wait [#allocation10], 8192  }
  0xb5   :  { %7883 = vsyncadd [#allocation10], 4294959104 }
  0xb6   :  { %7884 = dma.done.wait [#allocation13], 32  }
  0xb7   :  { %7885 = vsyncadd [#allocation13], 4294967264 }
  0xb8   :  { %7886 = dma.done.wait [#allocation16], 32  }
  0xb9   :  { %7887 = vsyncadd [#allocation16], 4294967264 }
  0xba   :  { %7888 = dma.done.wait [#allocation19], 16  }
  0xbb   :  { %7889 = vsyncadd [#allocation19], 4294967280  ;;  %v7906_v1 = vmov 0   ;;  %v8108_v2 = vld [vmem:[#allocation3 + $0xa8] sm:$0xff]  ;;  %v190_v3 = vld [vmem:[#allocation3 + $0xb8] sm:$0xff]  ;;  %s7907_s9 = smov 32  }
  0xbc   :  { %2864 = vmatprep.subr.bf16.mxu0 %v7906_v1  ;;  %5843 = vmatprep.subr.bf16.mxu1 %v7906_v1  ;;  %v189_v4 = vld [vmem:[#allocation3 + $0xb0] sm:$0xff]  ;;  %v6062_v5 = vpack.i.bf16 %v190_v3, %v8108_v2  ;;  %v187_v6 = vld [vmem:[#allocation3 + $0xa0] sm:$0xff]  ;;  %v169_v10 = vld [vmem:[#allocation3 + $0x8] sm:$0xff]  ;;  %s7908_s4 = smov 96   ;;  %vm2094_vm0 = vcmask 261120   ;;  %vm2159_vm1 = vcmask 523264  }
  0xbd   :  { %v8111_v7 = vld [vmem:[#allocation3 + $0x10] sm:$0xff]  ;;  %v6052_v8 = vpack.i.bf16 %v189_v4, %v187_v6  ;;  %v172_v9 = vld [vmem:[#allocation3 + $0x20] sm:$0xff]  ;;  %v171_v11 = vld [vmem:[#allocation3 + $0x18] sm:$0xff]  ;;  %vm2224_vm2 = vcmask 785408  }
  0xbe   :  { %6063 = vrot.lane.b32.xlu1 %v6062_v5, %s7893_s28  ;;  %v6067_v12 = vpack.i.bf16 %v172_v9, %v8111_v7  ;;  %v6057_v13 = vpack.i.bf16 %v171_v11, %v169_v10  ;;  %v173_v14 = vld [vmem:[#allocation3 + $0x28] sm:$0xff]  ;;  %v191_v15 = vld [vmem:[#allocation3 + $0xc0] sm:$0xff]  ;;  %v175_v18 = vld [vmem:[#allocation3 + $0x38] sm:$0xff] }
  0xbf   :  { %6053 = vrot.lane.b32.xlu0 %v6052_v8, %s7907_s9  ;;  %v6077_v16 = vpack.i.bf16 %v173_v14, %v171_v11  ;;  %v6072_v17 = vpack.i.bf16 %v191_v15, %v189_v4  ;;  %v193_v19 = vld [vmem:[#allocation3 + $0xd0] sm:$0xff]  ;;  %v6087_v20 = vpack.i.bf16 %v175_v18, %v173_v14  ;;  %v176_v23 = vld [vmem:[#allocation3 + $0x40] sm:$0xff]  ;;  %v192_v24 = vld [vmem:[#allocation3 + $0xc8] sm:$0xff] }
  0xc0   :  { %v6082_v21 = vpack.i.bf16 %v193_v19, %v191_v15  ;;  %v174_v22 = vld [vmem:[#allocation3 + $0x30] sm:$0xff]  ;;  %v194_v25 = vld [vmem:[#allocation3 + $0xd8] sm:$0xff]  ;;  %v177_v28 = vld [vmem:[#allocation3 + $0x48] sm:$0xff] }
  0xc1   :  { %v6097_v26 = vpack.i.bf16 %v176_v23, %v174_v22  ;;  %v6092_v27 = vpack.i.bf16 %v194_v25, %v192_v24  ;;  %v195_v29 = vld [vmem:[#allocation3 + $0xe0] sm:$0xff]  ;;  %v7397_v30 = vld [vmem:[#allocation6] sm:$0xff]   ;;  %v6107_v31 = vpack.i.bf16 %v177_v28, %v175_v18  ;;  %v7398_v32 = vld [vmem:[#allocation6 + $0x8] sm:$0xff]  }
  0xc2   :  { %6068 = vrot.lane.b32.xlu1 %v6067_v12, %s7893_s28  ;;  %2865 = vmatpush1.bf16.msra.mxu0 %v7397_v30  ;;  %v6102_v33 = vpack.i.bf16 %v195_v29, %v193_v19  ;;  %v179_v34 = vld [vmem:[#allocation3 + $0x58] sm:$0xff]  ;;  %v197_v35 = vld [vmem:[#allocation3 + $0xf0] sm:$0xff]  ;;  %v180_v40 = vld [vmem:[#allocation3 + $0x60] sm:$0xff] }
  0xc3   :  { %6058 = vrot.lane.b32.xlu0 %v6057_v13, %s7907_s9  ;;  %2866 = vmatprep.subr.bf16.mxu0 %v7906_v1  ;;  %v6117_v36 = vpack.i.bf16 %v179_v34, %v177_v28  ;;  %v178_v37 = vld [vmem:[#allocation3 + $0x50] sm:$0xff]  ;;  %v7399_v38 = vld [vmem:[#allocation6 + $0x10] sm:$0xff]   ;;  %v6112_v39 = vpack.i.bf16 %v197_v35, %v195_v29  ;;  %v196_v41 = vld [vmem:[#allocation3 + $0xe8] sm:$0xff] }
  0xc4   :  { %5859 = vmatpush1.bf16.msra.mxu1 %v7397_v30  ;;  %v198_v42 = vld [vmem:[#allocation3 + $0xf8] sm:$0xff]  ;;  %v6127_v43 = vpack.i.bf16 %v180_v40, %v178_v37  ;;  %v7400_v44 = vld [vmem:[#allocation6 + $0x18] sm:$0xff]   ;;  %v181_v46 = vld [vmem:[#allocation3 + $0x68] sm:$0xff] }
  0xc5   :  { %5844 = vmatprep.subr.bf16.mxu1 %v7906_v1  ;;  %v6122_v45 = vpack.i.bf16 %v198_v42, %v196_v41  ;;  %v199_v47 = vld [vmem:[#allocation3 + $0x100] sm:$0xff]  ;;  %v6137_v48 = vpack.i.bf16 %v181_v46, %v179_v34  ;;  %v7401_v49 = vld [vmem:[#allocation6 + $0x20] sm:$0xff]   ;;  %v183_v51 = vld [vmem:[#allocation3 + $0x78] sm:$0xff] }
  0xc6   :  { %6078 = vrot.lane.b32.xlu1 %v6077_v16, %s7908_s4  ;;  %2867 = vmatpush1.bf16.msra.mxu0 %v7398_v32  ;;  %v6132_v50 = vpack.i.bf16 %v199_v47, %v197_v35  ;;  %v201_v52 = vld [vmem:[#allocation3 + $0x110] sm:$0xff]  ;;  %v6147_v53 = vpack.i.bf16 %v183_v51, %v181_v46  ;;  %v184_v57 = vld [vmem:[#allocation3 + $0x80] sm:$0xff]  ;;  %v200_v58 = vld [vmem:[#allocation3 + $0x108] sm:$0xff] }
  0xc7   :  { %6073 = vrot.lane.b32.xlu0 %v6072_v17, %s7908_s4  ;;  %2868 = vmatprep.subr.bf16.mxu0 %v7906_v1  ;;  %v182_v54 = vld [vmem:[#allocation3 + $0x70] sm:$0xff]  ;;  %v6142_v56 = vpack.i.bf16 %v201_v52, %v199_v47  ;;  %v202_v59 = vld [vmem:[#allocation3 + $0x118] sm:$0xff]  ;;  %v185_v63 = vld [vmem:[#allocation3 + $0x88] sm:$0xff] }
  0xc8   :  { %5860 = vmatpush1.bf16.msra.mxu1 %v7398_v32  ;;  %v7402_v55 = vld [vmem:[#allocation6 + $0x28] sm:$0xff]   ;;  %v6157_v60 = vpack.i.bf16 %v184_v57, %v182_v54  ;;  %v7403_v61 = vld [vmem:[#allocation6 + $0x30] sm:$0xff]   ;;  %v6152_v62 = vpack.i.bf16 %v202_v59, %v200_v58  ;;  %v203_v0 = vld [vmem:[#allocation3 + $0x120] sm:$0xff]  ;;  %v6167_v3 = vpack.i.bf16 %v185_v63, %v183_v51 }
  0xc9   :  { %5845 = vmatprep.subr.bf16.mxu1 %v7906_v1  ;;  %v7404_v4 = vld [vmem:[#allocation6 + $0x38] sm:$0xff]   ;;  %v6162_v5 = vpack.i.bf16 %v203_v0, %v201_v52  ;;  %v205_v6 = vld [vmem:[#allocation3 + $0x138] sm:$0xff]  ;;  %v207_v8 = vld [vmem:[#allocation3 + $0x148] sm:$0xff] }
  0xca   :  { %6088 = vrot.lane.b32.xlu1 %v6087_v20, %s7907_s9  ;;  %2869 = vmatpush1.bf16.msra.mxu0 %v7399_v38  ;;  %v223_v9 = vld [vmem:[#allocation3 + $0x1d0] sm:$0xff]  ;;  %v225_v10 = vld [vmem:[#allocation3 + $0x1e0] sm:$0xff]  ;;  %v6177_v11 = vpack.i.bf16 %v207_v8, %v205_v6  ;;  %v7405_v12 = vld [vmem:[#allocation6 + $0x40] sm:$0xff]  }
  0xcb   :  { %6083 = vrot.lane.b32.xlu0 %v6082_v21, %s7907_s9  ;;  %2870 = vmatprep.subr.bf16.mxu0 %v7906_v1  ;;  %v6172_v13 = vpack.i.bf16 %v225_v10, %v223_v9  ;;  %v206_v14 = vld [vmem:[#allocation3 + $0x140] sm:$0xff]  ;;  %v208_v15 = vld [vmem:[#allocation3 + $0x150] sm:$0xff]  ;;  %v224_v16 = vld [vmem:[#allocation3 + $0x1d8] sm:$0xff] }
  0xcc   :  { %5861 = vmatpush1.bf16.msra.mxu1 %v7399_v38  ;;  %v226_v17 = vld [vmem:[#allocation3 + $0x1e8] sm:$0xff]  ;;  %v6187_v18 = vpack.i.bf16 %v208_v15, %v206_v14  ;;  %v7406_v19 = vld [vmem:[#allocation6 + $0x48] sm:$0xff]   ;;  %v209_v21 = vld [vmem:[#allocation3 + $0x158] sm:$0xff] }
  0xcd   :  { %5846 = vmatprep.subr.bf16.mxu1 %v7906_v1  ;;  %v6182_v20 = vpack.i.bf16 %v226_v17, %v224_v16  ;;  %v227_v22 = vld [vmem:[#allocation3 + $0x1f0] sm:$0xff]  ;;  %v6197_v23 = vpack.i.bf16 %v209_v21, %v207_v8  ;;  %v7407_v24 = vld [vmem:[#allocation6 + $0x50] sm:$0xff]   ;;  %v7408_v29 = vld [vmem:[#allocation6 + $0x58] sm:$0xff]  }
  0xce   :  { %6098 = vrot.lane.b32.xlu1 %v6097_v26, %s7893_s28  ;;  %2871 = vmatpush1.bf16.msra.mxu0 %v7400_v44  ;;  %v6192_v25 = vpack.i.bf16 %v227_v22, %v225_v10  ;;  %v211_v26 = vld [vmem:[#allocation3 + $0x168] sm:$0xff]  ;;  %v212_v32 = vld [vmem:[#allocation3 + $0x170] sm:$0xff]  ;;  %v213_v35 = vld [vmem:[#allocation3 + $0x178] sm:$0xff] }
  0xcf   :  { %6093 = vrot.lane.b32.xlu0 %v6092_v27, %s7893_s28  ;;  %2872 = vmatprep.subr.bf16.mxu0 %v7906_v1  ;;  %v229_v27 = vld [vmem:[#allocation3 + $0x200] sm:$0xff]  ;;  %v6207_v28 = vpack.i.bf16 %v211_v26, %v209_v21  ;;  %v230_v34 = vld [vmem:[#allocation3 + $0x208] sm:$0xff]  ;;  %v6227_v41 = vpack.i.bf16 %v213_v35, %v211_v26  ;;  %v7410_v42 = vld [vmem:[#allocation6 + $0x68] sm:$0xff]  }
  0xd0   :  { %5862 = vmatpush1.bf16.msra.mxu1 %v7400_v44  ;;  %v6202_v30 = vpack.i.bf16 %v229_v27, %v227_v22  ;;  %v215_v40 = vld [vmem:[#allocation3 + $0x188] sm:$0xff]  ;;  %v233_v44 = vld [vmem:[#allocation3 + $0x220] sm:$0xff]  ;;  %v216_v47 = vld [vmem:[#allocation3 + $0x190] sm:$0xff] }
  0xd1   :  { %5847 = vmatprep.subr.bf16.mxu1 %v7906_v1  ;;  %v6237_v46 = vpack.i.bf16 %v215_v40, %v213_v35  ;;  %v234_v51 = vld [vmem:[#allocation3 + $0x228] sm:$0xff]  ;;  %v217_v52 = vld [vmem:[#allocation3 + $0x198] sm:$0xff]  ;;  %v220_v63 = vld [vmem:[#allocation3 + $0x1b0] sm:$0xff] }
  0xd2   :  { %6108 = vrot.lane.b32.xlu1 %v6107_v31, %s7908_s4  ;;  %2873 = vmatpush1.bf16.msra.mxu0 %v7401_v49  ;;  %v210_v31 = vld [vmem:[#allocation3 + $0x160] sm:$0xff]  ;;  %v219_v57 = vld [vmem:[#allocation3 + $0x1a8] sm:$0xff]  ;;  %v6257_v58 = vpack.i.bf16 %v217_v52, %v215_v40  ;;  %v221_v8 = vld [vmem:[#allocation3 + $0x1b8] sm:$0xff] }
  0xd3   :  { %6103 = vrot.lane.b32.xlu0 %v6102_v33, %s7908_s4  ;;  %2874 = vmatprep.subr.bf16.mxu0 %v7906_v1  ;;  %v228_v33 = vld [vmem:[#allocation3 + $0x1f8] sm:$0xff]  ;;  %v6217_v37 = vpack.i.bf16 %v212_v32, %v210_v31  ;;  %v239_v9 = vld [vmem:[#allocation3 + $0x250] sm:$0xff]  ;;  %v241_v10 = vld [vmem:[#allocation3 + $0x268] sm:$0xff] }
  0xd4   :  { %5863 = vmatpush1.bf16.msra.mxu1 %v7401_v49  ;;  %v6212_v38 = vpack.i.bf16 %v230_v34, %v228_v33  ;;  %v261_v15 = vld [vmem:[#allocation3 + $0x310] sm:$0xff]  ;;  %v244_v17 = vld [vmem:[#allocation3 + $0x280] sm:$0xff]  ;;  %v262_v21 = vld [vmem:[#allocation3 + $0x318] sm:$0xff] }
  0xd5   :  { %5848 = vmatprep.subr.bf16.mxu1 %v7906_v1  ;;  %v242_v16 = vld [vmem:[#allocation3 + $0x270] sm:$0xff]  ;;  %v245_v22 = vld [vmem:[#allocation3 + $0x288] sm:$0xff]  ;;  %v247_v26 = vld [vmem:[#allocation3 + $0x298] sm:$0xff] }
  0xd6   :  { %6118 = vrot.lane.b32.xlu1 %v6117_v36, %s7907_s9  ;;  %2875 = vmatpush1.bf16.msra.mxu0 %v7402_v55  ;;  %v7409_v36 = vld [vmem:[#allocation6 + $0x60] sm:$0xff]   ;;  %v6327_v31 = vpack.i.bf16 %v247_v26, %v245_v22  ;;  %v248_v32 = vld [vmem:[#allocation3 + $0x2a0] sm:$0xff]  ;;  %v266_v35 = vld [vmem:[#allocation3 + $0x338] sm:$0xff] }
  0xd7   :  { %6113 = vrot.lane.b32.xlu0 %v6112_v39, %s7907_s9  ;;  %2876 = vmatprep.subr.bf16.mxu0 %v7906_v1  ;;  %v231_v39 = vld [vmem:[#allocation3 + $0x210] sm:$0xff]  ;;  %v264_v34 = vld [vmem:[#allocation3 + $0x328] sm:$0xff] }
  0xd8   :  { %5864 = vmatpush1.bf16.msra.mxu1 %v7402_v55  ;;  %v6232_v49 = vpack.i.bf16 %v233_v44, %v231_v39 }
  0xd9   :  { %5849 = vmatprep.subr.bf16.mxu1 %v7906_v1 }
  0xda   :  { %6128 = vrot.lane.b32.xlu1 %v6127_v43, %s7893_s28  ;;  %2877 = vmatpush1.bf16.msra.mxu0 %v7403_v61  ;;  %v6222_v43 = vpack.i.bf16 %v231_v39, %v229_v27  ;;  %v267_v39 = vld [vmem:[#allocation3 + $0x340] sm:$0xff] }
  0xdb   :  { %6123 = vrot.lane.b32.xlu0 %v6122_v45, %s7893_s28  ;;  %2878 = vmatprep.subr.bf16.mxu0 %v7906_v1  ;;  %v214_v45 = vld [vmem:[#allocation3 + $0x180] sm:$0xff] }
  0xdc   :  { %5865 = vmatpush1.bf16.msra.mxu1 %v7403_v61  ;;  %v6247_v54 = vpack.i.bf16 %v216_v47, %v214_v45  ;;  %v6267_v61 = vpack.i.bf16 %v219_v57, %v217_v52  ;;  %v252_v47 = vld [vmem:[#allocation3 + $0x2c0] sm:$0xff] }
  0xdd   :  { %5850 = vmatprep.subr.bf16.mxu1 %v7906_v1 }
  0xde   :  { %6138 = vrot.lane.b32.xlu1 %v6137_v48, %s7908_s4  ;;  %2879 = vmatpush1.bf16.msra.mxu0 %v7404_v4  ;;  %v7411_v48 = vld [vmem:[#allocation6 + $0x70] sm:$0xff]  }
  0xdf   :  { %6133 = vrot.lane.b32.xlu0 %v6132_v50, %s7908_s4  ;;  %2880 = vmatprep.subr.bf16.mxu0 %v7906_v1  ;;  %v232_v50 = vld [vmem:[#allocation3 + $0x218] sm:$0xff] }
  0xe0   :  { %5866 = vmatpush1.bf16.msra.mxu1 %v7404_v4  ;;  %v6242_v55 = vpack.i.bf16 %v234_v51, %v232_v50  ;;  %v238_v4 = vld [vmem:[#allocation3 + $0x248] sm:$0xff]  ;;  %v168_v50 = vld [vmem:[#allocation3] sm:$0xff] }
  0xe1   :  { %5851 = vmatprep.subr.bf16.mxu1 %v7906_v1 }
  0xe2   :  { %6148 = vrot.lane.b32.xlu1 %v6147_v53, %s7907_s9  ;;  %2881 = vmatpush1.bf16.msra.mxu0 %v7405_v12  ;;  %v7412_v53 = vld [vmem:[#allocation6 + $0x78] sm:$0xff]  }
  0xe3   :  { %6143 = vrot.lane.b32.xlu0 %v6142_v56, %s7907_s9  ;;  %2882 = vmatprep.subr.bf16.mxu0 %v7906_v1  ;;  %v235_v56 = vld [vmem:[#allocation3 + $0x230] sm:$0xff] }
  0xe4   :  { %5867 = vmatpush1.bf16.msra.mxu1 %v7405_v12  ;;  %v6252_v59 = vpack.i.bf16 %v235_v56, %v233_v44  ;;  %v6287_v12 = vpack.i.bf16 %v221_v8, %v219_v57  ;;  %v8205_v44 = vld [vmem:[#allocation3 + $0x350] sm:$0xff] }
  0xe5   :  { %5852 = vmatprep.subr.bf16.mxu1 %v7906_v1  ;;  %v6352_v51 = vpack.i.bf16 %v8205_v44, %v267_v39 }
  0xe6   :  { %6158 = vrot.lane.b32.xlu1 %v6157_v60, %s7893_s28  ;;  %2883 = vmatpush1.bf16.msra.mxu0 %v7406_v19  ;;  %v237_v60 = vld [vmem:[#allocation3 + $0x240] sm:$0xff] }
  0xe7   :  { %6153 = vrot.lane.b32.xlu0 %v6152_v62, %s7893_s28  ;;  %2884 = vmatprep.subr.bf16.mxu0 %v7906_v1  ;;  %v218_v62 = vld [vmem:[#allocation3 + $0x1a0] sm:$0xff]  ;;  %v6262_v0 = vpack.i.bf16 %v237_v60, %v235_v56  ;;  %v6282_v14 = vpack.i.bf16 %v239_v9, %v237_v60  ;;  %v8211_v56 = vld [vmem:[#allocation3 + $0x2c8] sm:$0xff]  ;;  %v186_v60 = vld [vmem:[#allocation3 + $0x98] sm:$0xff] }
  0xe8   :  { %5868 = vmatpush1.bf16.msra.mxu1 %v7406_v19 }
  0xe9   :  { %5853 = vmatprep.subr.bf16.mxu1 %v7906_v1 }
  0xea   :  { %6168 = vrot.lane.b32.xlu1 %v6167_v3, %s7908_s4  ;;  %2885 = vmatpush1.bf16.msra.mxu0 %v7407_v24  ;;  %v236_v3 = vld [vmem:[#allocation3 + $0x238] sm:$0xff] }
  0xeb   :  { %6163 = vrot.lane.b32.xlu0 %v6162_v5, %s7908_s4  ;;  %2886 = vmatprep.subr.bf16.mxu0 %v7906_v1  ;;  %v6277_v5 = vpack.i.bf16 %v220_v63, %v218_v62  ;;  %v6272_v6 = vpack.i.bf16 %v238_v4, %v236_v3 }
  0xec   :  { %5869 = vmatpush1.bf16.msra.mxu1 %v7407_v24 }
  0xed   :  { %5854 = vmatprep.subr.bf16.mxu1 %v7906_v1 }
  0xee   :  { %6178 = vrot.lane.b32.xlu1 %v6177_v11, %s7907_s9  ;;  %2887 = vmatpush1.bf16.msra.mxu0 %v7408_v29  ;;  %v243_v11 = vld [vmem:[#allocation3 + $0x278] sm:$0xff] }
  0xef   :  { %6173 = vrot.lane.b32.xlu0 %v6172_v13, %s7907_s9  ;;  %2888 = vmatprep.subr.bf16.mxu0 %v7906_v1  ;;  %v259_v13 = vld [vmem:[#allocation3 + $0x300] sm:$0xff]  ;;  %v6317_v27 = vpack.i.bf16 %v245_v22, %v243_v11 }
  0xf0   :  { %5870 = vmatpush1.bf16.msra.mxu1 %v7408_v29  ;;  %v6292_v19 = vpack.i.bf16 %v261_v15, %v259_v13  ;;  %v265_v29 = vld [vmem:[#allocation3 + $0x330] sm:$0xff] }
  0xf1   :  { %5855 = vmatprep.subr.bf16.mxu1 %v7906_v1 }
  0xf2   :  { %6188 = vrot.lane.b32.xlu1 %v6187_v18, %s7893_s28  ;;  %2889 = vmatpush1.bf16.msra.mxu0 %v7409_v36  ;;  %v6297_v18 = vpack.i.bf16 %v243_v11, %v241_v10 }
  0xf3   :  { %6183 = vrot.lane.b32.xlu0 %v6182_v20, %s7893_s28  ;;  %2890 = vmatprep.subr.bf16.mxu0 %v7906_v1  ;;  %v260_v20 = vld [vmem:[#allocation3 + $0x308] sm:$0xff] }
  0xf4   :  { %5871 = vmatpush1.bf16.msra.mxu1 %v7409_v36  ;;  %v6302_v24 = vpack.i.bf16 %v262_v21, %v260_v20  ;;  %v249_v36 = vld [vmem:[#allocation3 + $0x2a8] sm:$0xff]  ;;  %v8230_v20 = vld [vmem:[#allocation3 + $0x2d8] sm:$0xff] }
  0xf5   :  { %5856 = vmatprep.subr.bf16.mxu1 %v7906_v1  ;;  %v6347_v40 = vpack.i.bf16 %v249_v36, %v247_v26 }
  0xf6   :  { %6198 = vrot.lane.b32.xlu1 %v6197_v23, %s7908_s4  ;;  %2891 = vmatpush1.bf16.msra.mxu0 %v7410_v42  ;;  %v6307_v23 = vpack.i.bf16 %v244_v17, %v242_v16 }
  0xf7   :  { %6193 = vrot.lane.b32.xlu0 %v6192_v25, %s7908_s4  ;;  %2892 = vmatprep.subr.bf16.mxu0 %v7906_v1  ;;  %v263_v25 = vld [vmem:[#allocation3 + $0x320] sm:$0xff] }
  0xf8   :  { %5872 = vmatpush1.bf16.msra.mxu1 %v7410_v42  ;;  %v6322_v33 = vpack.i.bf16 %v265_v29, %v263_v25  ;;  %v6342_v42 = vpack.i.bf16 %v267_v39, %v265_v29 }
  0xf9   :  { %5857 = vmatprep.subr.bf16.mxu1 %v7906_v1 }
  0xfa   :  { %6208 = vrot.lane.b32.xlu1 %v6207_v28, %s7907_s9  ;;  %2893 = vmatpush1.bf16.msra.mxu0 %v7411_v48  ;;  %v6312_v28 = vpack.i.bf16 %v263_v25, %v261_v15 }
  0xfb   :  { %6203 = vrot.lane.b32.xlu0 %v6202_v30, %s7907_s9  ;;  %2894 = vmatprep.subr.bf16.mxu0 %v7906_v1  ;;  %v246_v30 = vld [vmem:[#allocation3 + $0x290] sm:$0xff] }
  0xfc   :  { %5873 = vmatpush1.bf16.msra.mxu1 %v7411_v48 }
  0xfd   :  { %5858 = vmatprep.subr.bf16.mxu1 %v7906_v1 }
  0xfe   :  { %6218 = vrot.lane.b32.xlu1 %v6217_v37, %s7893_s28  ;;  %2895 = vmatpush1.bf16.msra.mxu0 %v7412_v53  ;;  %v6337_v37 = vpack.i.bf16 %v248_v32, %v246_v30  ;;  %v256_v32 = vld [vmem:[#allocation3 + $0x2e0] sm:$0xff] }
  0xff   :  { %6213 = vrot.lane.b32.xlu0 %v6212_v38, %s7893_s28  ;;  %3153 = vmatprep.subr.bf16.mxu0 %v7906_v1  ;;  %v6332_v38 = vpack.i.bf16 %v266_v35, %v264_v34  ;;  %v6387_v34 = vpack.i.bf16 %v8230_v20, %v8211_v56  ;;  %v272_v35 = vld [vmem:[#allocation3 + $0x368] sm:$0xff] }
 0x100   :  { %5874 = vmatpush1.bf16.msra.mxu1 %v7412_v53 }
 0x102   :  { %6228 = vrot.lane.b32.xlu1 %v6227_v41, %s7908_s4  ;;  %v8202_v41 = vld [vmem:[#allocation3 + $0x2b8] sm:$0xff] }
 0x103   :  { %6223 = vrot.lane.b32.xlu0 %v6222_v43, %s7908_s4  ;;  %v6357_v48 = vpack.i.bf16 %v8202_v41, %v249_v36  ;;  %v6377_v15 = vpack.i.bf16 %v8211_v56, %v8202_v41  ;;  %v257_v41 = vld [vmem:[#allocation3 + $0x2e8] sm:$0xff] }
 0x106   :  { %6238 = vrot.lane.b32.xlu1 %v6237_v46, %s7907_s9  ;;  %v250_v46 = vld [vmem:[#allocation3 + $0x2b0] sm:$0xff] }
 0x107   :  { %6233 = vrot.lane.b32.xlu0 %v6232_v49, %s7907_s9  ;;  %v268_v49 = vld [vmem:[#allocation3 + $0x348] sm:$0xff] }
 0x10a   :  { %6248 = vrot.lane.b32.xlu1 %v6247_v54, %s7893_s28 }
 0x10b   :  { %6243 = vrot.lane.b32.xlu0 %v6242_v55, %s7893_s28  ;;  %v270_v55 = vld [vmem:[#allocation3 + $0x358] sm:$0xff] }
 0x10e   :  { %6258 = vrot.lane.b32.xlu1 %v6257_v58, %s7908_s4  ;;  %v6367_v58 = vpack.i.bf16 %v252_v47, %v250_v46  ;;  %v7414_v46 = vld [vmem:[#allocation6 + $0x88] sm:$0xff]  }
 0x10f   :  { %6253 = vrot.lane.b32.xlu0 %v6252_v59, %s7908_s4  ;;  %v8213_v59 = vld [vmem:[#allocation3 + $0x360] sm:$0xff] }
 0x110   :  { %v6372_v16 = vpack.i.bf16 %v8213_v59, %v8205_v44 }
 0x112   :  { %6268 = vrot.lane.b32.xlu1 %v6267_v61, %s7907_s9 }
 0x113   :  { %6263 = vrot.lane.b32.xlu0 %v6262_v0, %s7907_s9 }
 0x116   :  { %6278 = vrot.lane.b32.xlu1 %v6277_v5, %s7893_s28  ;;  %v6362_v5 = vpack.i.bf16 %v270_v55, %v268_v49  ;;  %v7526_v55 = vld [vmem:[#allocation3 + $0x20] sm:$0xff] }
 0x117   :  { %6273 = vrot.lane.b32.xlu0 %v6272_v6, %s7893_s28 }
 0x11a   :  { %6288 = vrot.lane.b32.xlu1 %v6287_v12, %s7908_s4 }
 0x11b   :  { %6283 = vrot.lane.b32.xlu0 %v6282_v14, %s7908_s4 }
 0x11e   :  { %6298 = vrot.lane.b32.xlu1 %v6297_v18, %s7907_s9 }
 0x11f   :  { %6293 = vrot.lane.b32.xlu0 %v6292_v19, %s7907_s9 }
 0x122   :  { %6308 = vrot.lane.b32.xlu1 %v6307_v23, %s7893_s28 }
 0x123   :  { %6303 = vrot.lane.b32.xlu0 %v6302_v24, %s7893_s28 }
 0x126   :  { %6318 = vrot.lane.b32.xlu1 %v6317_v27, %s7908_s4 }
 0x127   :  { %6313 = vrot.lane.b32.xlu0 %v6312_v28, %s7908_s4  ;;  %v8239_v28 = vld [vmem:[#allocation3 + $0x370] sm:$0xff] }
 0x128   :  { %v6382_v36 = vpack.i.bf16 %v8239_v28, %v8213_v59 }
 0x12a   :  { %6328 = vrot.lane.b32.xlu1 %v6327_v31, %s7907_s9  ;;  %v254_v31 = vld [vmem:[#allocation3 + $0x2d0] sm:$0xff] }
 0x12b   :  { %6323 = vrot.lane.b32.xlu0 %v6322_v33, %s7907_s9  ;;  %v7413_v33 = vld [vmem:[#allocation6 + $0x80] sm:$0xff]   ;;  %v6397_v49 = vpack.i.bf16 %v256_v32, %v254_v31 }
 0x12c   :  { %v298_v32 = vld [vmem:[#allocation3 + $0x448] sm:$0xff] }
 0x12e   :  { %6338 = vrot.lane.b32.xlu1 %v6337_v37, %s7893_s28 }
 0x12f   :  { %6333 = vrot.lane.b32.xlu0 %v6332_v38, %s7893_s28 }
 0x130   :  { %v6064_v43 = vpop.permute.xlu1 %6063 }
 0x131   :  { %v6054_v45 = vpop.permute.xlu0 %6053  ;;  %v6066_v3 = vunpack.i.h.bf16 %v6064_v43  ;;  %v6065_v4 = vunpack.i.l.bf16 %v6064_v43 }
 0x132   :  { %6348 = vrot.lane.b32.xlu1 %v6347_v40, %s7908_s4  ;;  %v6056_v52 = vunpack.i.h.bf16 %v6054_v45  ;;  %v6055_v53 = vunpack.i.l.bf16 %v6054_v45  ;;  %v274_v40 = vld [vmem:[#allocation3 + $0x378] sm:$0xff]  ;;  %v275_v45 = vld [vmem:[#allocation3 + $0x380] sm:$0xff] }
 0x133   :  { %6343 = vrot.lane.b32.xlu0 %v6342_v42, %s7908_s4  ;;  %v6402_v59 = vpack.i.bf16 %v275_v45, %v8239_v28  ;;  %v7529_v45 = vld [vmem:[#allocation3 + $0x50] sm:$0xff] }
 0x134   :  { %v6069_v54 = vpop.permute.xlu1 %6068  ;;  %v2289_v10 = vsel %vm2094_vm0, %v186_v60, %v6055_v53  ;;  %v2290_v11 = vsel %vm2094_vm0, %v8108_v2, %v6056_v52  ;;  %v6392_v52 = vpack.i.bf16 %v274_v40, %v272_v35  ;;  %v7525_v53 = vld [vmem:[#allocation3 + $0x30] sm:$0xff]  ;;  %v7527_v60 = vld [vmem:[#allocation3 + $0xc8] sm:$0xff] }
 0x135   :  { %v6059_v57 = vpop.permute.xlu0 %6058  ;;  %v6071_v61 = vunpack.i.h.bf16 %v6069_v54  ;;  %v6070_v62 = vunpack.i.l.bf16 %v6069_v54  ;;  %v2353_v2 = vsel %vm2159_vm1, %v2289_v10, %v6065_v4  ;;  %v2354_v21 = vsel %vm2159_vm1, %v2290_v11, %v6066_v3 }
 0x136   :  { %v6061_v63 = vunpack.i.h.bf16 %v6059_v57  ;;  %v6060_v0 = vunpack.i.l.bf16 %v6059_v57  ;;  %6358 = vrot.lane.b32.xlu1 %v6357_v48, %s7907_s9 }
 0x137   :  { %6353 = vrot.lane.b32.xlu0 %v6352_v51, %s7907_s9 }
 0x138   :  { %v2096_v6 = vsel %vm2094_vm0, %v8111_v7, %v6061_v63  ;;  %v2095_v8 = vsel %vm2094_vm0, %v168_v50, %v6060_v0  ;;  %v6079_v9 = vpop.permute.xlu1 %6078 }
 0x139   :  { %v6081_v12 = vunpack.i.h.bf16 %v6079_v9  ;;  %v6080_v13 = vunpack.i.l.bf16 %v6079_v9  ;;  %v6074_v14 = vpop.permute.xlu0 %6073  ;;  %v2160_v7 = vsel %vm2159_vm1, %v2095_v8, %v6070_v62  ;;  %v2161_v19 = vsel %vm2159_vm1, %v2096_v6, %v6071_v61  ;;  %v7528_v62 = vld [vmem:[#allocation3 + $0xb8] sm:$0xff]  ;;  %v8256_v6 = vld [vmem:[#allocation3 + $0x3a8] sm:$0xff] }
 0x13a   :  { %v6076_v17 = vunpack.i.h.bf16 %v6074_v14  ;;  %v6075_v18 = vunpack.i.l.bf16 %v6074_v14  ;;  %6368 = vrot.lane.b32.xlu1 %v6367_v58, %s7893_s28  ;;  %v6407_v58 = vpack.i.bf16 %v257_v41, %v8230_v20  ;;  %v7415_v8 = vld [vmem:[#allocation6 + $0x90] sm:$0xff]  }
 0x13b   :  { %6363 = vrot.lane.b32.xlu0 %v6362_v5, %s7893_s28  ;;  %v2225_v22 = vsel %vm2224_vm2, %v2160_v7, %v6080_v13  ;;  %v2226_v23 = vsel %vm2224_vm2, %v2161_v19, %v6081_v12  ;;  %v277_v5 = vld [vmem:[#allocation3 + $0x398] sm:$0xff]  ;;  %v295_v13 = vld [vmem:[#allocation3 + $0x430] sm:$0xff] }
 0x13c   :  { %v6089_v24 = vpop.permute.xlu1 %6088  ;;  %v2417_v25 = vsel %vm2224_vm2, %v2353_v2, %v6075_v18  ;;  %v2418_v26 = vsel %vm2224_vm2, %v2354_v21, %v6076_v17  ;;  %v2529_v27 = vpack.c.bf16 %v2226_v23, %v2225_v22  ;;  %v8269_v2 = vld [vmem:[#allocation3 + $0x440] sm:$0xff] }
 0x13d   :  { %v6084_v29 = vpop.permute.xlu0 %6083  ;;  %v2530_v30 = vpack.c.bf16 %v2418_v26, %v2417_v25  ;;  %v6091_v37 = vunpack.i.h.bf16 %v6089_v24  ;;  %v6090_v38 = vunpack.i.l.bf16 %v6089_v24  ;;  %v278_v23 = vld [vmem:[#allocation3 + $0x3a0] sm:$0xff]  ;;  %v280_v24 = vld [vmem:[#allocation3 + $0x3b0] sm:$0xff]  ;;  %v6417_v26 = vpack.i.bf16 %v8256_v6, %v277_v5 }
 0x13e   :  { %6378 = vrot.lane.b32.xlu1 %v6377_v15, %s7908_s4  ;;  %v6086_v42 = vunpack.i.h.bf16 %v6084_v29  ;;  %v6085_v43 = vunpack.i.l.bf16 %v6084_v29  ;;  %v7416_v25 = vld [vmem:[#allocation6 + $0x98] sm:$0xff]   ;;  %v6412_v28 = vpack.i.bf16 %v8269_v2, %v295_v13  ;;  %v6427_v41 = vpack.i.bf16 %v280_v24, %v278_v23  ;;  %v8313_v23 = vld [vmem:[#allocation3 + $0x3d8] sm:$0xff] }
 0x13f   :  { %6373 = vrot.lane.b32.xlu0 %v6372_v16, %s7908_s4  ;;  %2896 = vmatprep.mubr.bf16.mxu0 %v2530_v30  ;;  %v2098_v54 = vsel %vm2094_vm0, %v7525_v53, %v6091_v37  ;;  %v2097_v56 = vsel %vm2094_vm0, %v7526_v55, %v6090_v38  ;;  %v8278_v37 = vld [vmem:[#allocation3 + $0x450] sm:$0xff]  ;;  %v7417_v38 = vld [vmem:[#allocation6 + $0xa0] sm:$0xff]  }
 0x140   :  { %2897 = vmatmul.mubr.bf16.vlgmr.msra.gmra.mrb[0].mxu0 %v2529_v27  ;;  %v6099_v39 = vpop.permute.xlu1 %6098  ;;  %v2292_v61 = vsel %vm2094_vm0, %v7527_v60, %v6086_v42  ;;  %v2291_v63 = vsel %vm2094_vm0, %v7528_v62, %v6085_v43  ;;  %v296_v27 = vld [vmem:[#allocation3 + $0x438] sm:$0xff] }
 0x141   :  { %v6094_v44 = vpop.permute.xlu0 %6093  ;;  %3154 = vmatpush1.bf16.msra.mxu0 %v7413_v33  ;;  %v6101_v47 = vunpack.i.h.bf16 %v6099_v39  ;;  %v6100_v48 = vunpack.i.l.bf16 %v6099_v39  ;;  %v8276_v33 = vld [vmem:[#allocation3 + $0x3b8] sm:$0xff] }
 0x142   :  { %6388 = vrot.lane.b32.xlu1 %v6387_v34, %s7907_s9  ;;  %3155 = vmatprep.subr.bf16.mxu0 %v7906_v1  ;;  %v6096_v50 = vunpack.i.h.bf16 %v6094_v44  ;;  %v6095_v51 = vunpack.i.l.bf16 %v6094_v44  ;;  %v6422_v44 = vpack.i.bf16 %v298_v32, %v296_v27  ;;  %v8315_v27 = vld [vmem:[#allocation3 + $0x470] sm:$0xff] }
 0x143   :  { %6383 = vrot.lane.b32.xlu0 %v6382_v36, %s7907_s9  ;;  %v2162_v11 = vsel %vm2159_vm1, %v2097_v56, %v6100_v48  ;;  %v2163_v12 = vsel %vm2159_vm1, %v2098_v54, %v6101_v47  ;;  %v7530_v47 = vld [vmem:[#allocation3 + $0x40] sm:$0xff]  ;;  %v7532_v54 = vld [vmem:[#allocation3 + $0xd8] sm:$0xff] }
 0x144   :  { %v6109_v57 = vpop.permute.xlu1 %6108  ;;  %v2355_v14 = vsel %vm2159_vm1, %v2291_v63, %v6095_v51  ;;  %v2356_v15 = vsel %vm2159_vm1, %v2292_v61, %v6096_v50  ;;  %v6437_v50 = vpack.i.bf16 %v8276_v33, %v8256_v6  ;;  %v6432_v51 = vpack.i.bf16 %v8278_v37, %v8269_v2 }
 0x145   :  { %v6111_v0 = vunpack.i.h.bf16 %v6109_v57  ;;  %v6110_v3 = vunpack.i.l.bf16 %v6109_v57  ;;  %v6104_v4 = vpop.permute.xlu0 %6103  ;;  %3156 = vmatpush1.bf16.msra.mxu0 %v7414_v46 }
 0x146   :  { %v6106_v9 = vunpack.i.h.bf16 %v6104_v4  ;;  %v6105_v10 = vunpack.i.l.bf16 %v6104_v4  ;;  %6398 = vrot.lane.b32.xlu1 %v6397_v49, %s7893_s28  ;;  %3157 = vmatprep.subr.bf16.mxu0 %v7906_v1 }
 0x147   :  { %6393 = vrot.lane.b32.xlu0 %v6392_v52, %s7893_s28  ;;  %v2227_v16 = vsel %vm2224_vm2, %v2162_v11, %v6110_v3  ;;  %v2228_v17 = vsel %vm2224_vm2, %v2163_v12, %v6111_v0  ;;  %v7531_v52 = vld [vmem:[#allocation3 + $0xe8] sm:$0xff]  ;;  %v8304_v12 = vld [vmem:[#allocation3 + $0x460] sm:$0xff] }
 0x148   :  { %v6119_v18 = vpop.permute.xlu1 %6118  ;;  %v2419_v7 = vsel %vm2224_vm2, %v2355_v14, %v6105_v10  ;;  %v2420_v19 = vsel %vm2224_vm2, %v2356_v15, %v6106_v9  ;;  %v2533_v20 = vpack.c.bf16 %v2228_v17, %v2227_v16  ;;  %v8294_v0 = vld [vmem:[#allocation3 + $0x3c8] sm:$0xff]  ;;  %v282_v15 = vld [vmem:[#allocation3 + $0x3c0] sm:$0xff]  ;;  %v284_v16 = vld [vmem:[#allocation3 + $0x3d0] sm:$0xff] }
 0x149   :  { %v6114_v21 = vpop.permute.xlu0 %6113  ;;  %v2534_v22 = vpack.c.bf16 %v2420_v19, %v2419_v7  ;;  %3158 = vmatpush1.bf16.msra.mxu0 %v7415_v8  ;;  %v6121_v29 = vunpack.i.h.bf16 %v6119_v18  ;;  %v6120_v30 = vunpack.i.l.bf16 %v6119_v18  ;;  %v7419_v17 = vld [vmem:[#allocation6 + $0xb0] sm:$0xff]   ;;  %v6447_v18 = vpack.i.bf16 %v8294_v0, %v8276_v33 }
 0x14a   :  { %6408 = vrot.lane.b32.xlu1 %v6407_v58, %s7908_s4  ;;  %3159 = vmatprep.subr.bf16.mxu0 %v7906_v1  ;;  %v6116_v34 = vunpack.i.h.bf16 %v6114_v21  ;;  %v6115_v35 = vunpack.i.l.bf16 %v6114_v21  ;;  %v300_v7 = vld [vmem:[#allocation3 + $0x458] sm:$0xff]  ;;  %v6442_v19 = vpack.i.bf16 %v8304_v12, %v8278_v37  ;;  %v7534_v37 = vld [vmem:[#allocation3 + $0x60] sm:$0xff] }
 0x14b   :  { %6403 = vrot.lane.b32.xlu0 %v6402_v59, %s7908_s4  ;;  %2904 = vmatprep.mubr.bf16.mxu0 %v2534_v22  ;;  %v2100_v46 = vsel %vm2094_vm0, %v7529_v45, %v6121_v29  ;;  %v2099_v48 = vsel %vm2094_vm0, %v7530_v47, %v6120_v30  ;;  %v7418_v59 = vld [vmem:[#allocation6 + $0xa8] sm:$0xff]   ;;  %v302_v22 = vld [vmem:[#allocation3 + $0x468] sm:$0xff] }
 0x14c   :  { %2905 = vmatmul.mubr.bf16.gmra.mrb[4].mxu0 %v2533_v20  ;;  %v6129_v31 = vpop.permute.xlu1 %6128  ;;  %v2294_v53 = vsel %vm2094_vm0, %v7531_v52, %v6116_v34  ;;  %v2293_v55 = vsel %vm2094_vm0, %v7532_v54, %v6115_v35  ;;  %v6452_v34 = vpack.i.bf16 %v302_v22, %v300_v7  ;;  %v7533_v35 = vld [vmem:[#allocation3 + $0x70] sm:$0xff]  ;;  %v8350_v7 = vld [vmem:[#allocation3 + $0x3f8] sm:$0xff] }
 0x14d   :  { %v6124_v36 = vpop.permute.xlu0 %6123  ;;  %3160 = vmatpush1.bf16.msra.mxu0 %v7416_v25  ;;  %v6131_v39 = vunpack.i.h.bf16 %v6129_v31  ;;  %v6130_v40 = vunpack.i.l.bf16 %v6129_v31  ;;  %v6457_v31 = vpack.i.bf16 %v284_v16, %v282_v15  ;;  %v306_v15 = vld [vmem:[#allocation3 + $0x488] sm:$0xff] }
 0x14e   :  { %6418 = vrot.lane.b32.xlu1 %v6417_v26, %s7907_s9  ;;  %3161 = vmatprep.subr.bf16.mxu0 %v7906_v1  ;;  %v6126_v42 = vunpack.i.h.bf16 %v6124_v36  ;;  %v6125_v43 = vunpack.i.l.bf16 %v6124_v36 }
 0x14f   :  { %6413 = vrot.lane.b32.xlu0 %v6412_v28, %s7907_s9  ;;  %v2164_v62 = vsel %vm2159_vm1, %v2099_v48, %v6130_v40  ;;  %v2165_v63 = vsel %vm2159_vm1, %v2100_v46, %v6131_v39  ;;  %v7420_v28 = vld [vmem:[#allocation6 + $0xb8] sm:$0xff]   ;;  %v6467_v40 = vpack.i.bf16 %v8313_v23, %v8294_v0 }
 0x150   :  { %v6139_v49 = vpop.permute.xlu1 %6138  ;;  %v2357_v3 = vsel %vm2159_vm1, %v2293_v55, %v6125_v43  ;;  %v2358_v4 = vsel %vm2159_vm1, %v2294_v53, %v6126_v42  ;;  %v7535_v42 = vld [vmem:[#allocation3 + $0x108] sm:$0xff] }
 0x151   :  { %v6141_v56 = vunpack.i.h.bf16 %v6139_v49  ;;  %v6140_v57 = vunpack.i.l.bf16 %v6139_v49  ;;  %v6134_v58 = vpop.permute.xlu0 %6133  ;;  %3162 = vmatpush1.bf16.msra.mxu0 %v7417_v38  ;;  %v8328_v49 = vld [vmem:[#allocation3 + $0x3e8] sm:$0xff] }
 0x152   :  { %v6136_v60 = vunpack.i.h.bf16 %v6134_v58  ;;  %v6135_v61 = vunpack.i.l.bf16 %v6134_v58  ;;  %6428 = vrot.lane.b32.xlu1 %v6427_v41, %s7893_s28  ;;  %3163 = vmatprep.subr.bf16.mxu0 %v7906_v1  ;;  %v6462_v41 = vpack.i.bf16 %v8315_v27, %v8304_v12 }
 0x153   :  { %6423 = vrot.lane.b32.xlu0 %v6422_v44, %s7893_s28  ;;  %v2229_v5 = vsel %vm2224_vm2, %v2164_v62, %v6140_v57  ;;  %v2230_v6 = vsel %vm2224_vm2, %v2165_v63, %v6141_v56  ;;  %v7536_v44 = vld [vmem:[#allocation3 + $0xf8] sm:$0xff]  ;;  %v8341_v63 = vld [vmem:[#allocation3 + $0x480] sm:$0xff] }
 0x154   :  { %v6149_v8 = vpop.permute.xlu1 %6148  ;;  %v2421_v9 = vsel %vm2224_vm2, %v2357_v3, %v6135_v61  ;;  %v2422_v10 = vsel %vm2224_vm2, %v2358_v4, %v6136_v60  ;;  %v2537_v11 = vpack.c.bf16 %v2230_v6, %v2229_v5  ;;  %v7422_v4 = vld [vmem:[#allocation6 + $0xc8] sm:$0xff]   ;;  %v6477_v5 = vpack.i.bf16 %v8328_v49, %v8313_v23 }
 0x155   :  { %v6144_v13 = vpop.permute.xlu0 %6143  ;;  %v2538_v14 = vpack.c.bf16 %v2422_v10, %v2421_v9  ;;  %3164 = vmatpush1.bf16.msra.mxu0 %v7418_v59  ;;  %v6151_v20 = vunpack.i.h.bf16 %v6149_v8  ;;  %v6150_v2 = vunpack.i.l.bf16 %v6149_v8  ;;  %v6472_v6 = vpack.i.bf16 %v8341_v63, %v8315_v27  ;;  %v286_v8 = vld [vmem:[#allocation3 + $0x3e0] sm:$0xff]  ;;  %v288_v9 = vld [vmem:[#allocation3 + $0x3f0] sm:$0xff] }
 0x156   :  { %6438 = vrot.lane.b32.xlu1 %v6437_v50, %s7908_s4  ;;  %3165 = vmatprep.subr.bf16.mxu0 %v7906_v1  ;;  %v6146_v24 = vunpack.i.h.bf16 %v6144_v13  ;;  %v6145_v25 = vunpack.i.l.bf16 %v6144_v13  ;;  %v7421_v50 = vld [vmem:[#allocation6 + $0xc0] sm:$0xff]   ;;  %v204_v10 = vld [vmem:[#allocation3 + $0x130] sm:$0xff]  ;;  %v6487_v23 = vpack.i.bf16 %v288_v9, %v286_v8  ;;  %v7537_v27 = vld [vmem:[#allocation3 + $0x140] sm:$0xff] }
 0x157   :  { %6433 = vrot.lane.b32.xlu0 %v6432_v51, %s7908_s4  ;;  %2912 = vmatprep.mubr.bf16.mxu0 %v2538_v14  ;;  %v2102_v36 = vsel %vm2094_vm0, %v7533_v35, %v6151_v20  ;;  %v2101_v38 = vsel %vm2094_vm0, %v7534_v37, %v6150_v2  ;;  %v304_v14 = vld [vmem:[#allocation3 + $0x478] sm:$0xff]  ;;  %v222_v2 = vld [vmem:[#allocation3 + $0x1c8] sm:$0xff]  ;;  %v311_v8 = vld [vmem:[#allocation3 + $0x4b0] sm:$0xff] }
 0x158   :  { %2913 = vmatmul.mubr.bf16.gmra.mrb[8].mxu0 %v2537_v11  ;;  %v6159_v21 = vpop.permute.xlu1 %6158  ;;  %v2296_v43 = vsel %vm2094_vm0, %v7535_v42, %v6146_v24  ;;  %v2295_v45 = vsel %vm2094_vm0, %v7536_v44, %v6145_v25  ;;  %v7423_v20 = vld [vmem:[#allocation6 + $0xd0] sm:$0xff]  }
 0x159   :  { %v6154_v26 = vpop.permute.xlu0 %6153  ;;  %3166 = vmatpush1.bf16.msra.mxu0 %v7419_v17  ;;  %v6161_v29 = vunpack.i.h.bf16 %v6159_v21  ;;  %v6160_v30 = vunpack.i.l.bf16 %v6159_v21  ;;  %v293_v9 = vld [vmem:[#allocation3 + $0x418] sm:$0xff] }
 0x15a   :  { %6448 = vrot.lane.b32.xlu1 %v6447_v18, %s7907_s9  ;;  %3167 = vmatprep.subr.bf16.mxu0 %v7906_v1  ;;  %v6156_v32 = vunpack.i.h.bf16 %v6154_v26  ;;  %v6155_v33 = vunpack.i.l.bf16 %v6154_v26  ;;  %v6482_v26 = vpack.i.bf16 %v306_v15, %v304_v14 }
 0x15b   :  { %6443 = vrot.lane.b32.xlu0 %v6442_v19, %s7907_s9  ;;  %v2166_v53 = vsel %vm2159_vm1, %v2101_v38, %v6160_v30  ;;  %v2167_v54 = vsel %vm2159_vm1, %v2102_v36, %v6161_v29  ;;  %v8352_v19 = vld [vmem:[#allocation3 + $0x490] sm:$0xff] }
 0x15c   :  { %v6169_v39 = vpop.permute.xlu1 %6168  ;;  %v2359_v55 = vsel %vm2159_vm1, %v2295_v45, %v6155_v33  ;;  %v2360_v56 = vsel %vm2159_vm1, %v2296_v43, %v6156_v32  ;;  %v6492_v32 = vpack.i.bf16 %v8352_v19, %v8341_v63  ;;  %v7538_v33 = vld [vmem:[#allocation3 + $0x1d8] sm:$0xff] }
 0x15d   :  { %v6171_v46 = vunpack.i.h.bf16 %v6169_v39  ;;  %v6170_v47 = vunpack.i.l.bf16 %v6169_v39  ;;  %v6164_v48 = vpop.permute.xlu0 %6163  ;;  %3168 = vmatpush1.bf16.msra.mxu0 %v7420_v28  ;;  %v7424_v39 = vld [vmem:[#allocation6 + $0xd8] sm:$0xff]  }
 0x15e   :  { %v6166_v51 = vunpack.i.h.bf16 %v6164_v48  ;;  %v6165_v52 = vunpack.i.l.bf16 %v6164_v48  ;;  %6458 = vrot.lane.b32.xlu1 %v6457_v31, %s7893_s28  ;;  %3169 = vmatprep.subr.bf16.mxu0 %v7906_v1  ;;  %v6497_v31 = vpack.i.bf16 %v8350_v7, %v8328_v49  ;;  %v8374_v48 = vld [vmem:[#allocation3 + $0x408] sm:$0xff] }
 0x15f   :  { %6453 = vrot.lane.b32.xlu0 %v6452_v34, %s7893_s28  ;;  %v2231_v57 = vsel %vm2224_vm2, %v2166_v53, %v6170_v47  ;;  %v2232_v58 = vsel %vm2224_vm2, %v2167_v54, %v6171_v46  ;;  %v8380_v53 = vld [vmem:[#allocation3 + $0x4a0] sm:$0xff] }
 0x160   :  { %v6179_v59 = vpop.permute.xlu1 %6178  ;;  %v2423_v60 = vsel %vm2224_vm2, %v2359_v55, %v6165_v52  ;;  %v2424_v61 = vsel %vm2224_vm2, %v2360_v56, %v6166_v51  ;;  %v2541_v62 = vpack.c.bf16 %v2232_v58, %v2231_v57  ;;  %v7425_v56 = vld [vmem:[#allocation6 + $0xe0] sm:$0xff]   ;;  %v6507_v57 = vpack.i.bf16 %v8374_v48, %v8350_v7  ;;  %v7540_v7 = vld [vmem:[#allocation3 + $0x150] sm:$0xff] }
 0x161   :  { %v6174_v0 = vpop.permute.xlu0 %6173  ;;  %v2542_v3 = vpack.c.bf16 %v2424_v61, %v2423_v60  ;;  %3170 = vmatpush1.bf16.msra.mxu0 %v7421_v50  ;;  %v6181_v11 = vunpack.i.h.bf16 %v6179_v59  ;;  %v6180_v12 = vunpack.i.l.bf16 %v6179_v59  ;;  %v6502_v58 = vpack.i.bf16 %v8380_v53, %v8352_v19  ;;  %v290_v59 = vld [vmem:[#allocation3 + $0x400] sm:$0xff]  ;;  %v292_v60 = vld [vmem:[#allocation3 + $0x410] sm:$0xff] }
 0x162   :  { %6468 = vrot.lane.b32.xlu1 %v6467_v40, %s7908_s4  ;;  %3171 = vmatprep.subr.bf16.mxu0 %v7906_v1  ;;  %v6176_v16 = vunpack.i.h.bf16 %v6174_v0  ;;  %v6175_v17 = vunpack.i.l.bf16 %v6174_v0  ;;  %v308_v0 = vld [vmem:[#allocation3 + $0x498] sm:$0xff] }
 0x163   :  { %6463 = vrot.lane.b32.xlu0 %v6462_v41, %s7908_s4  ;;  %2920 = vmatprep.mubr.bf16.mxu0 %v2542_v3  ;;  %v2104_v28 = vsel %vm2094_vm0, %v7537_v27, %v6181_v11  ;;  %v2103_v29 = vsel %vm2094_vm0, %v204_v10, %v6180_v12  ;;  %v310_v3 = vld [vmem:[#allocation3 + $0x4a8] sm:$0xff]  ;;  %v7426_v10 = vld [vmem:[#allocation6 + $0xe8] sm:$0xff]  }
 0x164   :  { %2921 = vmatmul.mubr.bf16.gmra.mrb[12].mxu0 %v2541_v62  ;;  %v6189_v13 = vpop.permute.xlu1 %6188  ;;  %v2298_v34 = vsel %vm2094_vm0, %v7538_v33, %v6176_v16  ;;  %v2297_v35 = vsel %vm2094_vm0, %v222_v2, %v6175_v17  ;;  %v6512_v16 = vpack.i.bf16 %v310_v3, %v308_v0  ;;  %v7539_v17 = vld [vmem:[#allocation3 + $0x160] sm:$0xff]  ;;  %v6522_v2 = vpack.i.bf16 %v311_v8, %v8380_v53 }
 0x165   :  { %v6184_v18 = vpop.permute.xlu0 %6183  ;;  %3172 = vmatpush1.bf16.msra.mxu0 %v7422_v4  ;;  %v6191_v21 = vunpack.i.h.bf16 %v6189_v13  ;;  %v6190_v22 = vunpack.i.l.bf16 %v6189_v13  ;;  %v6517_v13 = vpack.i.bf16 %v292_v60, %v290_v59  ;;  %v316_v53 = vld [vmem:[#allocation3 + $0x4e0] sm:$0xff]  ;;  %v334_v59 = vld [vmem:[#allocation3 + $0x578] sm:$0xff] }
 0x166   :  { %6478 = vrot.lane.b32.xlu1 %v6477_v5, %s7907_s9  ;;  %3173 = vmatprep.subr.bf16.mxu0 %v7906_v1  ;;  %v6186_v24 = vunpack.i.h.bf16 %v6184_v18  ;;  %v6185_v25 = vunpack.i.l.bf16 %v6184_v18 }
 0x167   :  { %6473 = vrot.lane.b32.xlu0 %v6472_v6, %s7907_s9  ;;  %v2168_v42 = vsel %vm2159_vm1, %v2103_v29, %v6190_v22  ;;  %v2169_v43 = vsel %vm2159_vm1, %v2104_v28, %v6191_v21  ;;  %v6527_v21 = vpack.i.bf16 %v293_v9, %v8374_v48  ;;  %v7541_v22 = vld [vmem:[#allocation3 + $0x1f8] sm:$0xff]  ;;  %v7428_v48 = vld [vmem:[#allocation6 + $0xf8] sm:$0xff]  }
 0x168   :  { %v6199_v30 = vpop.permute.xlu1 %6198  ;;  %v2361_v44 = vsel %vm2159_vm1, %v2297_v35, %v6185_v25  ;;  %v2362_v45 = vsel %vm2159_vm1, %v2298_v34, %v6186_v24  ;;  %v7542_v24 = vld [vmem:[#allocation3 + $0x1e8] sm:$0xff]  ;;  %v7427_v29 = vld [vmem:[#allocation6 + $0xf0] sm:$0xff]   ;;  %v7543_v9 = vld [vmem:[#allocation3 + $0x180] sm:$0xff] }
 0x169   :  { %v6201_v36 = vunpack.i.h.bf16 %v6199_v30  ;;  %v6200_v37 = vunpack.i.l.bf16 %v6199_v30  ;;  %v6194_v38 = vpop.permute.xlu0 %6193  ;;  %3174 = vmatpush1.bf16.msra.mxu0 %v7423_v20 }
 0x16a   :  { %v6196_v40 = vunpack.i.h.bf16 %v6194_v38  ;;  %v6195_v41 = vunpack.i.l.bf16 %v6194_v38  ;;  %6488 = vrot.lane.b32.xlu1 %v6487_v23, %s7893_s28  ;;  %3175 = vmatprep.subr.bf16.mxu0 %v7906_v1  ;;  %v8411_v38 = vld [vmem:[#allocation3 + $0x4d8] sm:$0xff] }
 0x16b   :  { %6483 = vrot.lane.b32.xlu0 %v6482_v26, %s7893_s28  ;;  %v2233_v46 = vsel %vm2224_vm2, %v2168_v42, %v6200_v37  ;;  %v2234_v47 = vsel %vm2224_vm2, %v2169_v43, %v6201_v36 }
 0x16c   :  { %v6209_v49 = vpop.permute.xlu1 %6208  ;;  %v2425_v50 = vsel %vm2224_vm2, %v2361_v44, %v6195_v41  ;;  %v2426_v51 = vsel %vm2224_vm2, %v2362_v45, %v6196_v40  ;;  %v8378_v52 = vpack.c.bf16 %v2234_v47, %v2233_v46  ;;  %v8417_v44 = vld [vmem:[#allocation3 + $0x570] sm:$0xff]  ;;  %v331_v45 = vld [vmem:[#allocation3 + $0x560] sm:$0xff] }
 0x16d   :  { %v6204_v54 = vpop.permute.xlu0 %6203  ;;  %v8382_v55 = vpack.c.bf16 %v2426_v51, %v2425_v50  ;;  %3176 = vmatpush1.bf16.msra.mxu0 %v7424_v39  ;;  %v6211_v61 = vunpack.i.h.bf16 %v6209_v49  ;;  %v6210_v62 = vunpack.i.l.bf16 %v6209_v49  ;;  %v313_v39 = vld [vmem:[#allocation3 + $0x4c8] sm:$0xff]  ;;  %v6532_v50 = vpack.i.bf16 %v8417_v44, %v331_v45  ;;  %v314_v51 = vld [vmem:[#allocation3 + $0x4d0] sm:$0xff] }
 0x16e   :  { %6498 = vrot.lane.b32.xlu1 %v6497_v31, %s7908_s4  ;;  %3177 = vmatprep.subr.bf16.mxu0 %v7906_v1  ;;  %v6206_v4 = vunpack.i.h.bf16 %v6204_v54  ;;  %v6205_v5 = vunpack.i.l.bf16 %v6204_v54  ;;  %v6537_v49 = vpack.i.bf16 %v8411_v38, %v313_v39  ;;  %v318_v39 = vld [vmem:[#allocation3 + $0x4f0] sm:$0xff]  ;;  %v336_v45 = vld [vmem:[#allocation3 + $0x588] sm:$0xff] }
 0x16f   :  { %6493 = vrot.lane.b32.xlu0 %v6492_v32, %s7908_s4  ;;  %2928 = vmatprep.mubr.bf16.mxu0 %v8382_v55  ;;  %v2106_v18 = vsel %vm2094_vm0, %v7539_v17, %v6211_v61  ;;  %v2105_v19 = vsel %vm2094_vm0, %v7540_v7, %v6210_v62 }
 0x170   :  { %2929 = vmatmul.mubr.bf16.gmra.mrb[16].mxu0 %v8378_v52  ;;  %v6219_v63 = vpop.permute.xlu1 %6218  ;;  %v2300_v23 = vsel %vm2094_vm0, %v7541_v22, %v6206_v4  ;;  %v2299_v25 = vsel %vm2094_vm0, %v7542_v24, %v6205_v5  ;;  %v6547_v4 = vpack.i.bf16 %v316_v53, %v314_v51  ;;  %v8464_v51 = vld [vmem:[#allocation3 + $0x5a0] sm:$0xff]  ;;  %v8466_v53 = vld [vmem:[#allocation3 + $0x508] sm:$0xff] }
 0x171   :  { %v6214_v6 = vpop.permute.xlu0 %6213  ;;  %3178 = vmatpush1.bf16.msra.mxu0 %v7425_v56  ;;  %v6221_v11 = vunpack.i.h.bf16 %v6219_v63  ;;  %v6220_v12 = vunpack.i.l.bf16 %v6219_v63  ;;  %v8428_v63 = vld [vmem:[#allocation3 + $0x580] sm:$0xff] }
 0x172   :  { %6508 = vrot.lane.b32.xlu1 %v6507_v57, %s7907_s9  ;;  %3179 = vmatprep.subr.bf16.mxu0 %v7906_v1  ;;  %v6216_v14 = vunpack.i.h.bf16 %v6214_v6  ;;  %v6215_v15 = vunpack.i.l.bf16 %v6214_v6 }
 0x173   :  { %6503 = vrot.lane.b32.xlu0 %v6502_v58, %s7907_s9  ;;  %v2170_v32 = vsel %vm2159_vm1, %v2105_v19, %v6220_v12  ;;  %v2171_v33 = vsel %vm2159_vm1, %v2106_v18, %v6221_v11  ;;  %v332_v58 = vld [vmem:[#allocation3 + $0x568] sm:$0xff]  ;;  %v7544_v11 = vld [vmem:[#allocation3 + $0x170] sm:$0xff] }
 0x174   :  { %v6229_v20 = vpop.permute.xlu1 %6228  ;;  %v2363_v34 = vsel %vm2159_vm1, %v2299_v25, %v6215_v15  ;;  %v2364_v35 = vsel %vm2159_vm1, %v2300_v23, %v6216_v14  ;;  %v6542_v8 = vpack.i.bf16 %v334_v59, %v332_v58  ;;  %v6552_v14 = vpack.i.bf16 %v8428_v63, %v8417_v44  ;;  %v7546_v18 = vld [vmem:[#allocation3 + $0x208] sm:$0xff] }
 0x175   :  { %v6231_v26 = vunpack.i.h.bf16 %v6229_v20  ;;  %v6230_v27 = vunpack.i.l.bf16 %v6229_v20  ;;  %v6224_v28 = vpop.permute.xlu0 %6223  ;;  %3180 = vmatpush1.bf16.msra.mxu0 %v7426_v10 }
 0x176   :  { %v6226_v30 = vunpack.i.h.bf16 %v6224_v28  ;;  %v6225_v31 = vunpack.i.l.bf16 %v6224_v28  ;;  %6518 = vrot.lane.b32.xlu1 %v6517_v13, %s7893_s28  ;;  %3181 = vmatprep.subr.bf16.mxu0 %v7906_v1 }
 0x177   :  { %6513 = vrot.lane.b32.xlu0 %v6512_v16, %s7893_s28  ;;  %v2235_v36 = vsel %vm2224_vm2, %v2170_v32, %v6230_v27  ;;  %v2236_v37 = vsel %vm2224_vm2, %v2171_v33, %v6231_v26  ;;  %v7545_v16 = vld [vmem:[#allocation3 + $0x218] sm:$0xff] }
 0x178   :  { %v6239_v40 = vpop.permute.xlu1 %6238  ;;  %v2427_v41 = vsel %vm2224_vm2, %v2363_v34, %v6225_v31  ;;  %v2428_v42 = vsel %vm2224_vm2, %v2364_v35, %v6226_v30  ;;  %v8415_v43 = vpack.c.bf16 %v2236_v37, %v2235_v36  ;;  %v8453_v34 = vld [vmem:[#allocation3 + $0x590] sm:$0xff] }
 0x179   :  { %v6234_v46 = vpop.permute.xlu0 %6233  ;;  %v8419_v47 = vpack.c.bf16 %v2428_v42, %v2427_v41  ;;  %3182 = vmatpush1.bf16.msra.mxu0 %v7427_v29  ;;  %v6241_v54 = vunpack.i.h.bf16 %v6239_v40  ;;  %v6240_v56 = vunpack.i.l.bf16 %v6239_v40  ;;  %v8447_v29 = vld [vmem:[#allocation3 + $0x4f8] sm:$0xff]  ;;  %v320_v40 = vld [vmem:[#allocation3 + $0x500] sm:$0xff] }
 0x17a   :  { %6528 = vrot.lane.b32.xlu1 %v6527_v21, %s7908_s4  ;;  %3183 = vmatprep.subr.bf16.mxu0 %v7906_v1  ;;  %v6236_v60 = vunpack.i.h.bf16 %v6234_v46  ;;  %v6235_v61 = vunpack.i.l.bf16 %v6234_v46  ;;  %v317_v1 = vld [vmem:[#allocation3 + $0x4e8] sm:$0xff]  ;;  %v338_v46 = vld [vmem:[#allocation3 + $0x598] sm:$0xff] }
 0x17b   :  { %2936 = vmatprep.mubr.bf16.mxu0 %v8419_v47  ;;  %6523 = vrot.lane.b32.xlu0 %v6522_v2, %s7908_s4  ;;  %v2108_v10 = vsel %vm2094_vm0, %v7543_v9, %v6241_v54  ;;  %v2107_v12 = vsel %vm2094_vm0, %v7544_v11, %v6240_v56  ;;  %v6557_v15 = vpack.i.bf16 %v317_v1, %v8411_v38 }
 0x17c   :  { %2937 = vmatmul.mubr.bf16.gmra.mrb[20].mxu0 %v8415_v43  ;;  %v6249_v57 = vpop.permute.xlu1 %6248  ;;  %v2302_v17 = vsel %vm2094_vm0, %v7545_v16, %v6236_v60  ;;  %v2301_v7 = vsel %vm2094_vm0, %v7546_v18, %v6235_v61  ;;  %v6567_v37 = vpack.i.bf16 %v8447_v29, %v317_v1  ;;  %v6562_v38 = vpack.i.bf16 %v8453_v34, %v8428_v63  ;;  %v7547_v61 = vld [vmem:[#allocation3 + $0x1a0] sm:$0xff]  ;;  %v7548_v63 = vld [vmem:[#allocation3 + $0x190] sm:$0xff] }
 0x17d   :  { %v6244_v62 = vpop.permute.xlu0 %6243  ;;  %3184 = vmatpush1.bf16.msra.mxu0 %v7428_v48  ;;  %v6251_v0 = vunpack.i.h.bf16 %v6249_v57  ;;  %v6250_v3 = vunpack.i.l.bf16 %v6249_v57  ;;  %v6577_v57 = vpack.i.bf16 %v320_v40, %v318_v39  ;;  %v6572_v60 = vpack.i.bf16 %v338_v46, %v336_v45  ;;  %v258_v45 = vld [vmem:[#allocation3 + $0x2f8] sm:$0xff] }
 0x17e   :  { %6538 = vrot.lane.b32.xlu1 %v6537_v49, %s7907_s9  ;;  %v6246_v5 = vunpack.i.h.bf16 %v6244_v62  ;;  %v6245_v6 = vunpack.i.l.bf16 %v6244_v62 }
 0x17f   :  { %6533 = vrot.lane.b32.xlu0 %v6532_v50, %s7907_s9  ;;  %v2172_v23 = vsel %vm2159_vm1, %v2107_v12, %v6250_v3  ;;  %v2173_v24 = vsel %vm2159_vm1, %v2108_v10, %v6251_v0  ;;  %v6582_v3 = vpack.i.bf16 %v8464_v51, %v8453_v34 }
 0x180   :  { %v6259_v13 = vpop.permute.xlu1 %6258  ;;  %v2365_v25 = vsel %vm2159_vm1, %v2301_v7, %v6245_v6  ;;  %v2366_v26 = vsel %vm2159_vm1, %v2302_v17, %v6246_v5  ;;  %v7549_v5 = vld [vmem:[#allocation3 + $0x238] sm:$0xff] }
 0x181   :  { %v6261_v19 = vunpack.i.h.bf16 %v6259_v13  ;;  %v6260_v20 = vunpack.i.l.bf16 %v6259_v13  ;;  %v6254_v2 = vpop.permute.xlu0 %6253 }
 0x182   :  { %v6256_v21 = vunpack.i.h.bf16 %v6254_v2  ;;  %v6255_v22 = vunpack.i.l.bf16 %v6254_v2  ;;  %6548 = vrot.lane.b32.xlu1 %v6547_v4, %s7893_s28  ;;  %v6587_v4 = vpack.i.bf16 %v8466_v53, %v8447_v29  ;;  %v322_v29 = vld [vmem:[#allocation3 + $0x510] sm:$0xff] }
 0x183   :  { %6543 = vrot.lane.b32.xlu0 %v6542_v8, %s7893_s28  ;;  %v2237_v27 = vsel %vm2224_vm2, %v2172_v23, %v6260_v20  ;;  %v2238_v28 = vsel %vm2224_vm2, %v2173_v24, %v6261_v19  ;;  %v7550_v8 = vld [vmem:[#allocation3 + $0x228] sm:$0xff]  ;;  %v8486_v20 = vld [vmem:[#allocation3 + $0x518] sm:$0xff]  ;;  %v8492_v24 = vld [vmem:[#allocation3 + $0x5b0] sm:$0xff] }
 0x184   :  { %v6269_v30 = vpop.permute.xlu1 %6268  ;;  %v2429_v31 = vsel %vm2224_vm2, %v2365_v25, %v6255_v22  ;;  %v2430_v32 = vsel %vm2224_vm2, %v2366_v26, %v6256_v21  ;;  %v8451_v33 = vpack.c.bf16 %v2238_v28, %v2237_v27  ;;  %v6597_v27 = vpack.i.bf16 %v8486_v20, %v8466_v53 }
 0x185   :  { %v6264_v35 = vpop.permute.xlu0 %6263  ;;  %v8455_v36 = vpack.c.bf16 %v2430_v32, %v2429_v31  ;;  %v6271_v41 = vunpack.i.h.bf16 %v6269_v30  ;;  %v6270_v42 = vunpack.i.l.bf16 %v6269_v30  ;;  %v6592_v28 = vpack.i.bf16 %v8492_v24, %v8464_v51  ;;  %v324_v30 = vld [vmem:[#allocation3 + $0x520] sm:$0xff] }
 0x186   :  { %6558 = vrot.lane.b32.xlu1 %v6557_v15, %s7908_s4  ;;  %v6266_v48 = vunpack.i.h.bf16 %v6264_v35  ;;  %v6265_v49 = vunpack.i.l.bf16 %v6264_v35  ;;  %v340_v35 = vld [vmem:[#allocation3 + $0x5a8] sm:$0xff] }
 0x187   :  { %2944 = vmatprep.mubr.bf16.mxu0 %v8455_v36  ;;  %6553 = vrot.lane.b32.xlu0 %v6552_v14, %s7908_s4  ;;  %v2110_v62 = vsel %vm2094_vm0, %v7547_v61, %v6271_v41  ;;  %v2109_v1 = vsel %vm2094_vm0, %v7548_v63, %v6270_v42  ;;  %v8504_v42 = vld [vmem:[#allocation3 + $0x5c0] sm:$0xff]  ;;  %v7552_v61 = vld [vmem:[#allocation3 + $0x308] sm:$0xff] }
 0x188   :  { %2945 = vmatmul.mubr.bf16.gmra.mrb[24].mxu0 %v8451_v33  ;;  %v6279_v44 = vpop.permute.xlu1 %6278  ;;  %v2304_v6 = vsel %vm2094_vm0, %v7549_v5, %v6266_v48  ;;  %v2303_v9 = vsel %vm2094_vm0, %v7550_v8, %v6265_v49  ;;  %v6607_v49 = vpack.i.bf16 %v324_v30, %v322_v29  ;;  %v346_v29 = vld [vmem:[#allocation3 + $0x5d8] sm:$0xff] }
 0x189   :  { %v6274_v50 = vpop.permute.xlu0 %6273  ;;  %v6281_v54 = vunpack.i.h.bf16 %v6279_v44  ;;  %v6280_v56 = vunpack.i.l.bf16 %v6279_v44  ;;  %v325_v44 = vld [vmem:[#allocation3 + $0x528] sm:$0xff] }
 0x18a   :  { %6568 = vrot.lane.b32.xlu1 %v6567_v37, %s7907_s9  ;;  %v6276_v58 = vunpack.i.h.bf16 %v6274_v50  ;;  %v6275_v59 = vunpack.i.l.bf16 %v6274_v50  ;;  %v342_v37 = vld [vmem:[#allocation3 + $0x5b8] sm:$0xff] }
 0x18b   :  { %6563 = vrot.lane.b32.xlu0 %v6562_v38, %s7907_s9  ;;  %v2174_v15 = vsel %vm2159_vm1, %v2109_v1, %v6280_v56  ;;  %v2175_v16 = vsel %vm2159_vm1, %v2110_v62, %v6281_v54  ;;  %v240_v38 = vld [vmem:[#allocation3 + $0x260] sm:$0xff]  ;;  %v6602_v53 = vpack.i.bf16 %v342_v37, %v340_v35  ;;  %v7551_v54 = vld [vmem:[#allocation3 + $0x270] sm:$0xff]  ;;  %v329_v35 = vld [vmem:[#allocation3 + $0x548] sm:$0xff] }
 0x18c   :  { %v6289_v0 = vpop.permute.xlu1 %6288  ;;  %v2367_v17 = vsel %vm2159_vm1, %v2303_v9, %v6275_v59  ;;  %v2368_v18 = vsel %vm2159_vm1, %v2304_v6, %v6276_v58  ;;  %v6612_v59 = vpack.i.bf16 %v8504_v42, %v8492_v24 }
 0x18d   :  { %v6291_v10 = vunpack.i.h.bf16 %v6289_v0  ;;  %v6290_v11 = vunpack.i.l.bf16 %v6289_v0  ;;  %v6284_v12 = vpop.permute.xlu0 %6283 }
 0x18e   :  { %v6286_v13 = vunpack.i.h.bf16 %v6284_v12  ;;  %v6285_v14 = vunpack.i.l.bf16 %v6284_v12  ;;  %6578 = vrot.lane.b32.xlu1 %v6577_v57, %s7893_s28 }
 0x18f   :  { %6573 = vrot.lane.b32.xlu0 %v6572_v60, %s7893_s28  ;;  %v2239_v7 = vsel %vm2224_vm2, %v2174_v15, %v6290_v11  ;;  %v2240_v19 = vsel %vm2224_vm2, %v2175_v16, %v6291_v10  ;;  %v6617_v60 = vpack.i.bf16 %v325_v44, %v8486_v20 }
 0x190   :  { %v6299_v2 = vpop.permute.xlu1 %6298  ;;  %v2431_v21 = vsel %vm2224_vm2, %v2367_v17, %v6285_v14  ;;  %v2432_v22 = vsel %vm2224_vm2, %v2368_v18, %v6286_v13  ;;  %v8490_v23 = vpack.c.bf16 %v2240_v19, %v2239_v7  ;;  %v8523_v13 = vld [vmem:[#allocation3 + $0x538] sm:$0xff]  ;;  %v8529_v18 = vld [vmem:[#allocation3 + $0x5d0] sm:$0xff] }
 0x191   :  { %v6294_v25 = vpop.permute.xlu0 %6293  ;;  %v8494_v26 = vpack.c.bf16 %v2432_v22, %v2431_v21  ;;  %v6301_v31 = vunpack.i.h.bf16 %v6299_v2  ;;  %v6300_v32 = vunpack.i.l.bf16 %v6299_v2  ;;  %v6627_v20 = vpack.i.bf16 %v8523_v13, %v325_v44  ;;  %v326_v21 = vld [vmem:[#allocation3 + $0x530] sm:$0xff]  ;;  %v328_v22 = vld [vmem:[#allocation3 + $0x540] sm:$0xff] }
 0x192   :  { %6588 = vrot.lane.b32.xlu1 %v6587_v4, %s7908_s4  ;;  %v6296_v39 = vunpack.i.h.bf16 %v6294_v25  ;;  %v6295_v40 = vunpack.i.l.bf16 %v6294_v25  ;;  %v6622_v2 = vpack.i.bf16 %v8529_v18, %v8504_v42  ;;  %v7553_v44 = vld [vmem:[#allocation3 + $0x290] sm:$0xff] }
 0x193   :  { %2952 = vmatprep.mubr.bf16.mxu0 %v8494_v26  ;;  %6583 = vrot.lane.b32.xlu0 %v6582_v3, %s7908_s4  ;;  %v2112_v56 = vsel %vm2094_vm0, %v7551_v54, %v6301_v31  ;;  %v2111_v57 = vsel %vm2094_vm0, %v240_v38, %v6300_v32 }
 0x194   :  { %2953 = vmatmul.mubr.bf16.gmra.mrb[28].mxu0 %v8490_v23  ;;  %v6309_v34 = vpop.permute.xlu1 %6308  ;;  %v2306_v62 = vsel %vm2094_vm0, %v7552_v61, %v6296_v39  ;;  %v2305_v63 = vsel %vm2094_vm0, %v258_v45, %v6295_v40  ;;  %v6637_v39 = vpack.i.bf16 %v328_v22, %v326_v21 }
 0x195   :  { %v6304_v41 = vpop.permute.xlu0 %6303  ;;  %v6311_v46 = vunpack.i.h.bf16 %v6309_v34  ;;  %v6310_v48 = vunpack.i.l.bf16 %v6309_v34  ;;  %v347_v34 = vld [vmem:[#allocation3 + $0x5e0] sm:$0xff] }
 0x196   :  { %6598 = vrot.lane.b32.xlu1 %v6597_v27, %s7907_s9  ;;  %v6306_v50 = vunpack.i.h.bf16 %v6304_v41  ;;  %v6305_v51 = vunpack.i.l.bf16 %v6304_v41 }
 0x197   :  { %6593 = vrot.lane.b32.xlu0 %v6592_v28, %s7907_s9  ;;  %v2176_v6 = vsel %vm2159_vm1, %v2111_v57, %v6310_v48  ;;  %v2177_v8 = vsel %vm2159_vm1, %v2112_v56, %v6311_v46  ;;  %v344_v28 = vld [vmem:[#allocation3 + $0x5c8] sm:$0xff]  ;;  %v7554_v46 = vld [vmem:[#allocation3 + $0x280] sm:$0xff]  ;;  %v7556_v56 = vld [vmem:[#allocation3 + $0x318] sm:$0xff] }
 0x198   :  { %v6319_v58 = vpop.permute.xlu1 %6318  ;;  %v2369_v9 = vsel %vm2159_vm1, %v2305_v63, %v6305_v51  ;;  %v2370_v10 = vsel %vm2159_vm1, %v2306_v62, %v6306_v50  ;;  %v6632_v42 = vpack.i.bf16 %v346_v29, %v344_v28  ;;  %v6642_v50 = vpack.i.bf16 %v347_v34, %v8529_v18 }
 0x199   :  { %v6321_v1 = vunpack.i.h.bf16 %v6319_v58  ;;  %v6320_v0 = vunpack.i.l.bf16 %v6319_v58  ;;  %v6314_v3 = vpop.permute.xlu0 %6313  ;;  %v6647_v51 = vpack.i.bf16 %v329_v35, %v8523_v13  ;;  %v367_v13 = vld [vmem:[#allocation3 + $0x690] sm:$0xff] }
 0x19a   :  { %v6316_v4 = vunpack.i.h.bf16 %v6314_v3  ;;  %v6315_v5 = vunpack.i.l.bf16 %v6314_v3  ;;  %6608 = vrot.lane.b32.xlu1 %v6607_v49, %s7893_s28 }
 0x19b   :  { %6603 = vrot.lane.b32.xlu0 %v6602_v53, %s7893_s28  ;;  %v2241_v11 = vsel %vm2224_vm2, %v2176_v6, %v6320_v0  ;;  %v2242_v12 = vsel %vm2224_vm2, %v2177_v8, %v6321_v1  ;;  %v7555_v53 = vld [vmem:[#allocation3 + $0x328] sm:$0xff]  ;;  %v349_v6 = vld [vmem:[#allocation3 + $0x5f8] sm:$0xff] }
 0x19c   :  { %v6329_v14 = vpop.permute.xlu1 %6328  ;;  %v2433_v15 = vsel %vm2224_vm2, %v2369_v9, %v6315_v5  ;;  %v2434_v16 = vsel %vm2224_vm2, %v2370_v10, %v6316_v4  ;;  %v8527_v17 = vpack.c.bf16 %v2242_v12, %v2241_v11  ;;  %v8556_v8 = vld [vmem:[#allocation3 + $0x608] sm:$0xff] }
 0x19d   :  { %v6324_v7 = vpop.permute.xlu0 %6323  ;;  %v8531_v19 = vpack.c.bf16 %v2434_v16, %v2433_v15  ;;  %v6331_v24 = vunpack.i.h.bf16 %v6329_v14  ;;  %v6330_v25 = vunpack.i.l.bf16 %v6329_v14  ;;  %v8562_v14 = vld [vmem:[#allocation3 + $0x6a0] sm:$0xff]  ;;  %v6657_v18 = vpack.i.bf16 %v8556_v8, %v349_v6 }
 0x19e   :  { %6618 = vrot.lane.b32.xlu1 %v6617_v60, %s7908_s4  ;;  %v6326_v30 = vunpack.i.h.bf16 %v6324_v7  ;;  %v6325_v31 = vunpack.i.l.bf16 %v6324_v7  ;;  %v6652_v7 = vpack.i.bf16 %v8562_v14, %v367_v13 }
 0x19f   :  { %2960 = vmatprep.mubr.bf16.mxu0 %v8531_v19  ;;  %6613 = vrot.lane.b32.xlu0 %v6612_v59, %s7908_s4  ;;  %v2114_v45 = vsel %vm2094_vm0, %v7553_v44, %v6331_v24  ;;  %v2113_v48 = vsel %vm2094_vm0, %v7554_v46, %v6330_v25  ;;  %v368_v25 = vld [vmem:[#allocation3 + $0x698] sm:$0xff]  ;;  %v7558_v44 = vld [vmem:[#allocation3 + $0x2a0] sm:$0xff] }
 0x1a0   :  { %2961 = vmatmul.mubr.bf16.gmra.mrb[32].mxu0 %v8527_v17  ;;  %v6339_v27 = vpop.permute.xlu1 %6338  ;;  %v2308_v54 = vsel %vm2094_vm0, %v7555_v53, %v6326_v30  ;;  %v2307_v57 = vsel %vm2094_vm0, %v7556_v56, %v6325_v31  ;;  %v8572_v31 = vld [vmem:[#allocation3 + $0x6b0] sm:$0xff]  ;;  %v7560_v53 = vld [vmem:[#allocation3 + $0x338] sm:$0xff] }
 0x1a1   :  { %v6334_v32 = vpop.permute.xlu0 %6333  ;;  %v6341_v37 = vunpack.i.h.bf16 %v6339_v27  ;;  %v6340_v38 = vunpack.i.l.bf16 %v6339_v27  ;;  %v370_v27 = vld [vmem:[#allocation3 + $0x6a8] sm:$0xff] }
 0x1a2   :  { %6628 = vrot.lane.b32.xlu1 %v6627_v20, %s7907_s9  ;;  %v6336_v40 = vunpack.i.h.bf16 %v6334_v32  ;;  %v6335_v41 = vunpack.i.l.bf16 %v6334_v32  ;;  %v350_v20 = vld [vmem:[#allocation3 + $0x600] sm:$0xff]  ;;  %v353_v32 = vld [vmem:[#allocation3 + $0x618] sm:$0xff] }
 0x1a3   :  { %6623 = vrot.lane.b32.xlu0 %v6622_v2, %s7907_s9  ;;  %v2178_v63 = vsel %vm2159_vm1, %v2113_v48, %v6340_v38  ;;  %v2179_v1 = vsel %vm2159_vm1, %v2114_v45, %v6341_v37  ;;  %v352_v2 = vld [vmem:[#allocation3 + $0x610] sm:$0xff]  ;;  %v6672_v48 = vpack.i.bf16 %v8572_v31, %v8562_v14 }
 0x1a4   :  { %v6349_v49 = vpop.permute.xlu1 %6348  ;;  %v2371_v0 = vsel %vm2159_vm1, %v2307_v57, %v6335_v41  ;;  %v2372_v3 = vsel %vm2159_vm1, %v2308_v54, %v6336_v40  ;;  %v6667_v37 = vpack.i.bf16 %v352_v2, %v350_v20  ;;  %v6662_v40 = vpack.i.bf16 %v370_v27, %v368_v25  ;;  %v7557_v41 = vld [vmem:[#allocation3 + $0x2b0] sm:$0xff] }
 0x1a5   :  { %v6351_v58 = vunpack.i.h.bf16 %v6349_v49  ;;  %v6350_v59 = vunpack.i.l.bf16 %v6349_v49  ;;  %v6344_v60 = vpop.permute.xlu0 %6343  ;;  %v6677_v49 = vpack.i.bf16 %v353_v32, %v8556_v8 }
 0x1a6   :  { %v6346_v61 = vunpack.i.h.bf16 %v6344_v60  ;;  %v6345_v62 = vunpack.i.l.bf16 %v6344_v60  ;;  %6638 = vrot.lane.b32.xlu1 %v6637_v39, %s7893_s28 }
 0x1a7   :  { %6633 = vrot.lane.b32.xlu0 %v6632_v42, %s7893_s28  ;;  %v2243_v4 = vsel %vm2224_vm2, %v2178_v63, %v6350_v59  ;;  %v2244_v5 = vsel %vm2224_vm2, %v2179_v1, %v6351_v58 }
 0x1a8   :  { %v6359_v9 = vpop.permute.xlu1 %6358  ;;  %v2435_v10 = vsel %vm2224_vm2, %v2371_v0, %v6345_v62  ;;  %v2436_v11 = vsel %vm2224_vm2, %v2372_v3, %v6346_v61  ;;  %v8560_v12 = vpack.c.bf16 %v2244_v5, %v2243_v4  ;;  %v8591_v4 = vld [vmem:[#allocation3 + $0x628] sm:$0xff] }
 0x1a9   :  { %v6354_v15 = vpop.permute.xlu0 %6353  ;;  %v8564_v16 = vpack.c.bf16 %v2436_v11, %v2435_v10  ;;  %v6361_v21 = vunpack.i.h.bf16 %v6359_v9  ;;  %v6360_v22 = vunpack.i.l.bf16 %v6359_v9  ;;  %v8597_v10 = vld [vmem:[#allocation3 + $0x6c0] sm:$0xff]  ;;  %v6687_v14 = vpack.i.bf16 %v8591_v4, %v353_v32 }
 0x1aa   :  { %6648 = vrot.lane.b32.xlu1 %v6647_v51, %s7908_s4  ;;  %v6356_v28 = vunpack.i.h.bf16 %v6354_v15  ;;  %v6355_v29 = vunpack.i.l.bf16 %v6354_v15  ;;  %v6682_v15 = vpack.i.bf16 %v8597_v10, %v8572_v31 }
 0x1ab   :  { %2968 = vmatprep.mubr.bf16.mxu0 %v8564_v16  ;;  %6643 = vrot.lane.b32.xlu0 %v6642_v50, %s7908_s4  ;;  %v2116_v42 = vsel %vm2094_vm0, %v7557_v41, %v6361_v21  ;;  %v2115_v45 = vsel %vm2094_vm0, %v7558_v44, %v6360_v22  ;;  %v7559_v50 = vld [vmem:[#allocation3 + $0x348] sm:$0xff]  ;;  %v372_v22 = vld [vmem:[#allocation3 + $0x6b8] sm:$0xff]  ;;  %v7562_v41 = vld [vmem:[#allocation3 + $0x2c0] sm:$0xff] }
 0x1ac   :  { %2969 = vmatmul.mubr.bf16.gmra.mrb[36].mxu0 %v8560_v12  ;;  %v6369_v24 = vpop.permute.xlu1 %6368  ;;  %v2310_v51 = vsel %vm2094_vm0, %v7559_v50, %v6356_v28  ;;  %v2309_v54 = vsel %vm2094_vm0, %v7560_v53, %v6355_v29  ;;  %v8608_v29 = vld [vmem:[#allocation3 + $0x6d0] sm:$0xff]  ;;  %v7564_v50 = vld [vmem:[#allocation3 + $0x358] sm:$0xff] }
 0x1ad   :  { %v6364_v30 = vpop.permute.xlu0 %6363  ;;  %v6371_v34 = vunpack.i.h.bf16 %v6369_v24  ;;  %v6370_v35 = vunpack.i.l.bf16 %v6369_v24  ;;  %v374_v24 = vld [vmem:[#allocation3 + $0x6c8] sm:$0xff] }
 0x1ae   :  { %6658 = vrot.lane.b32.xlu1 %v6657_v18, %s7907_s9  ;;  %v6366_v38 = vunpack.i.h.bf16 %v6364_v30  ;;  %v6365_v39 = vunpack.i.l.bf16 %v6364_v30  ;;  %v354_v18 = vld [vmem:[#allocation3 + $0x620] sm:$0xff]  ;;  %v8610_v30 = vld [vmem:[#allocation3 + $0x638] sm:$0xff] }
 0x1af   :  { %6653 = vrot.lane.b32.xlu0 %v6652_v7, %s7907_s9  ;;  %v2180_v61 = vsel %vm2159_vm1, %v2115_v45, %v6370_v35  ;;  %v2181_v62 = vsel %vm2159_vm1, %v2116_v42, %v6371_v34  ;;  %v356_v7 = vld [vmem:[#allocation3 + $0x630] sm:$0xff]  ;;  %v6702_v45 = vpack.i.bf16 %v8608_v29, %v8597_v10 }
 0x1b0   :  { %v6379_v46 = vpop.permute.xlu1 %6378  ;;  %v2373_v63 = vsel %vm2159_vm1, %v2309_v54, %v6365_v39  ;;  %v2374_v1 = vsel %vm2159_vm1, %v2310_v51, %v6366_v38  ;;  %v6697_v31 = vpack.i.bf16 %v356_v7, %v354_v18  ;;  %v6692_v38 = vpack.i.bf16 %v374_v24, %v372_v22  ;;  %v7561_v39 = vld [vmem:[#allocation3 + $0x2d0] sm:$0xff]  ;;  %v358_v18 = vld [vmem:[#allocation3 + $0x640] sm:$0xff]  ;;  %v376_v22 = vld [vmem:[#allocation3 + $0x6d8] sm:$0xff] }
 0x1b1   :  { %v6381_v56 = vunpack.i.h.bf16 %v6379_v46  ;;  %v6380_v57 = vunpack.i.l.bf16 %v6379_v46  ;;  %v6374_v58 = vpop.permute.xlu0 %6373  ;;  %v6707_v46 = vpack.i.bf16 %v8610_v30, %v8591_v4  ;;  %v360_v7 = vld [vmem:[#allocation3 + $0x650] sm:$0xff]  ;;  %v378_v24 = vld [vmem:[#allocation3 + $0x6e8] sm:$0xff] }
 0x1b2   :  { %v6376_v59 = vunpack.i.h.bf16 %v6374_v58  ;;  %v6375_v60 = vunpack.i.l.bf16 %v6374_v58  ;;  %6668 = vrot.lane.b32.xlu1 %v6667_v37, %s7893_s28 }
 0x1b3   :  { %6663 = vrot.lane.b32.xlu0 %v6662_v40, %s7893_s28  ;;  %v2245_v0 = vsel %vm2224_vm2, %v2180_v61, %v6380_v57  ;;  %v2246_v3 = vsel %vm2224_vm2, %v2181_v62, %v6381_v56 }
 0x1b4   :  { %v6389_v5 = vpop.permute.xlu1 %6388  ;;  %v2437_v6 = vsel %vm2224_vm2, %v2373_v63, %v6375_v60  ;;  %v2438_v8 = vsel %vm2224_vm2, %v2374_v1, %v6376_v59  ;;  %v8595_v9 = vpack.c.bf16 %v2246_v3, %v2245_v0  ;;  %v8630_v0 = vld [vmem:[#allocation3 + $0x648] sm:$0xff] }
 0x1b5   :  { %v6384_v11 = vpop.permute.xlu0 %6383  ;;  %v8599_v13 = vpack.c.bf16 %v2438_v8, %v2437_v6  ;;  %v6391_v20 = vunpack.i.h.bf16 %v6389_v5  ;;  %v6390_v2 = vunpack.i.l.bf16 %v6389_v5  ;;  %v8636_v8 = vld [vmem:[#allocation3 + $0x6e0] sm:$0xff] }
 0x1b6   :  { %6678 = vrot.lane.b32.xlu1 %v6677_v49, %s7908_s4  ;;  %v6386_v25 = vunpack.i.h.bf16 %v6384_v11  ;;  %v6385_v27 = vunpack.i.l.bf16 %v6384_v11 }
 0x1b7   :  { %2976 = vmatprep.mubr.bf16.mxu0 %v8599_v13  ;;  %6673 = vrot.lane.b32.xlu0 %v6672_v48, %s7908_s4  ;;  %v2118_v40 = vsel %vm2094_vm0, %v7561_v39, %v6391_v20  ;;  %v2117_v42 = vsel %vm2094_vm0, %v7562_v41, %v6390_v2  ;;  %v7563_v48 = vld [vmem:[#allocation3 + $0x368] sm:$0xff]  ;;  %v7565_v41 = vld [vmem:[#allocation3 + $0x3a0] sm:$0xff] }
 0x1b8   :  { %2977 = vmatmul.mubr.bf16.gmra.mrb[40].mxu0 %v8595_v9  ;;  %v6399_v21 = vpop.permute.xlu1 %6398  ;;  %v2312_v49 = vsel %vm2094_vm0, %v7563_v48, %v6386_v25  ;;  %v2311_v51 = vsel %vm2094_vm0, %v7564_v50, %v6385_v27  ;;  %v276_v25 = vld [vmem:[#allocation3 + $0x390] sm:$0xff] }
 0x1b9   :  { %v6394_v28 = vpop.permute.xlu0 %6393  ;;  %v6401_v32 = vunpack.i.h.bf16 %v6399_v21  ;;  %v6400_v34 = vunpack.i.l.bf16 %v6399_v21 }
 0x1ba   :  { %6688 = vrot.lane.b32.xlu1 %v6687_v14, %s7907_s9  ;;  %v6396_v35 = vunpack.i.h.bf16 %v6394_v28  ;;  %v6395_v37 = vunpack.i.l.bf16 %v6394_v28  ;;  %v6717_v14 = vpack.i.bf16 %v8630_v0, %v8610_v30 }
 0x1bb   :  { %6683 = vrot.lane.b32.xlu0 %v6682_v15, %s7907_s9  ;;  %v2182_v59 = vsel %vm2159_vm1, %v2117_v42, %v6400_v34  ;;  %v2183_v60 = vsel %vm2159_vm1, %v2118_v40, %v6401_v32  ;;  %v6712_v15 = vpack.i.bf16 %v8636_v8, %v8608_v29  ;;  %v8648_v32 = vld [vmem:[#allocation3 + $0x6f0] sm:$0xff]  ;;  %v361_v34 = vld [vmem:[#allocation3 + $0x658] sm:$0xff]  ;;  %v6727_v29 = vpack.i.bf16 %v360_v7, %v358_v18 }
 0x1bc   :  { %v6409_v44 = vpop.permute.xlu1 %6408  ;;  %v2375_v61 = vsel %vm2159_vm1, %v2311_v51, %v6395_v37  ;;  %v2376_v62 = vsel %vm2159_vm1, %v2312_v49, %v6396_v35  ;;  %v6722_v40 = vpack.i.bf16 %v378_v24, %v376_v22  ;;  %v6737_v48 = vpack.i.bf16 %v361_v34, %v8630_v0  ;;  %v7566_v49 = vld [vmem:[#allocation3 + $0x438] sm:$0xff]  ;;  %v8667_v0 = vld [vmem:[#allocation3 + $0x668] sm:$0xff] }
 0x1bd   :  { %v6411_v53 = vunpack.i.h.bf16 %v6409_v44  ;;  %v6410_v54 = vunpack.i.l.bf16 %v6409_v44  ;;  %v6404_v56 = vpop.permute.xlu0 %6403  ;;  %v6747_v18 = vpack.i.bf16 %v8667_v0, %v361_v34  ;;  %v383_v34 = vld [vmem:[#allocation3 + $0x710] sm:$0xff] }
 0x1be   :  { %v6406_v57 = vunpack.i.h.bf16 %v6404_v56  ;;  %v6405_v58 = vunpack.i.l.bf16 %v6404_v56  ;;  %6698 = vrot.lane.b32.xlu1 %v6697_v31, %s7893_s28  ;;  %v294_v31 = vld [vmem:[#allocation3 + $0x428] sm:$0xff] }
 0x1bf   :  { %6693 = vrot.lane.b32.xlu0 %v6692_v38, %s7893_s28  ;;  %v2247_v63 = vsel %vm2224_vm2, %v2182_v59, %v6410_v54  ;;  %v2248_v1 = vsel %vm2224_vm2, %v2183_v60, %v6411_v53 }
 0x1c0   :  { %v6419_v3 = vpop.permute.xlu1 %6418  ;;  %v2439_v4 = vsel %vm2224_vm2, %v2375_v61, %v6405_v58  ;;  %v2440_v5 = vsel %vm2224_vm2, %v2376_v62, %v6406_v57  ;;  %v8634_v6 = vpack.c.bf16 %v2248_v1, %v2247_v63 }
 0x1c1   :  { %v6414_v10 = vpop.permute.xlu0 %6413  ;;  %v8638_v11 = vpack.c.bf16 %v2440_v5, %v2439_v4  ;;  %v6421_v20 = vunpack.i.h.bf16 %v6419_v3  ;;  %v6420_v2 = vunpack.i.l.bf16 %v6419_v3 }
 0x1c2   :  { %6708 = vrot.lane.b32.xlu1 %v6707_v46, %s7908_s4  ;;  %v6416_v27 = vunpack.i.h.bf16 %v6414_v10  ;;  %v6415_v28 = vunpack.i.l.bf16 %v6414_v10  ;;  %v6732_v46 = vpack.i.bf16 %v8648_v32, %v8636_v8  ;;  %v8673_v10 = vld [vmem:[#allocation3 + $0x700] sm:$0xff] }
 0x1c3   :  { %2984 = vmatprep.mubr.bf16.mxu0 %v8638_v11  ;;  %6703 = vrot.lane.b32.xlu0 %v6702_v45, %s7908_s4  ;;  %v2120_v42 = vsel %vm2094_vm0, %v7565_v41, %v6421_v20  ;;  %v2119_v44 = vsel %vm2094_vm0, %v276_v25, %v6420_v2  ;;  %v6742_v7 = vpack.i.bf16 %v8673_v10, %v8648_v32  ;;  %v362_v20 = vld [vmem:[#allocation3 + $0x660] sm:$0xff]  ;;  %v364_v2 = vld [vmem:[#allocation3 + $0x670] sm:$0xff]  ;;  %v380_v25 = vld [vmem:[#allocation3 + $0x6f8] sm:$0xff] }
 0x1c4   :  { %2985 = vmatmul.mubr.bf16.gmra.mrb[44].mxu0 %v8634_v6  ;;  %v6429_v21 = vpop.permute.xlu1 %6428  ;;  %v2314_v50 = vsel %vm2094_vm0, %v7566_v49, %v6416_v27  ;;  %v2313_v51 = vsel %vm2094_vm0, %v294_v31, %v6415_v28  ;;  %v382_v27 = vld [vmem:[#allocation3 + $0x708] sm:$0xff]  ;;  %v7567_v41 = vld [vmem:[#allocation3 + $0x3c0] sm:$0xff] }
 0x1c5   :  { %v6424_v30 = vpop.permute.xlu0 %6423  ;;  %v6431_v35 = vunpack.i.h.bf16 %v6429_v21  ;;  %v6430_v37 = vunpack.i.l.bf16 %v6429_v21 }
 0x1c6   :  { %6718 = vrot.lane.b32.xlu1 %v6717_v14, %s7907_s9  ;;  %v6426_v38 = vunpack.i.h.bf16 %v6424_v30  ;;  %v6425_v39 = vunpack.i.l.bf16 %v6424_v30 }
 0x1c7   :  { %6713 = vrot.lane.b32.xlu0 %v6712_v15, %s7907_s9  ;;  %v2184_v59 = vsel %vm2159_vm1, %v2119_v44, %v6430_v37  ;;  %v2185_v60 = vsel %vm2159_vm1, %v2120_v42, %v6431_v35  ;;  %v365_v35 = vld [vmem:[#allocation3 + $0x678] sm:$0xff]  ;;  %v7568_v44 = vld [vmem:[#allocation3 + $0x3b0] sm:$0xff] }
 0x1c8   :  { %v6439_v45 = vpop.permute.xlu1 %6438  ;;  %v2377_v61 = vsel %vm2159_vm1, %v2313_v51, %v6425_v39  ;;  %v2378_v62 = vsel %vm2159_vm1, %v2314_v50, %v6426_v38  ;;  %v6757_v38 = vpack.i.bf16 %v364_v2, %v362_v20  ;;  %v6767_v49 = vpack.i.bf16 %v365_v35, %v8667_v0  ;;  %v7569_v50 = vld [vmem:[#allocation3 + $0x458] sm:$0xff]  ;;  %v403_v20 = vld [vmem:[#allocation3 + $0x7c0] sm:$0xff]  ;;  %v8706_v2 = vld [vmem:[#allocation3 + $0x7d0] sm:$0xff] }
 0x1c9   :  { %v6441_v53 = vunpack.i.h.bf16 %v6439_v45  ;;  %v6440_v54 = vunpack.i.l.bf16 %v6439_v45  ;;  %v6434_v56 = vpop.permute.xlu0 %6433  ;;  %v404_v35 = vld [vmem:[#allocation3 + $0x7c8] sm:$0xff] }
 0x1ca   :  { %v6436_v57 = vunpack.i.h.bf16 %v6434_v56  ;;  %v6435_v58 = vunpack.i.l.bf16 %v6434_v56  ;;  %6728 = vrot.lane.b32.xlu1 %v6727_v29, %s7893_s28 }
 0x1cb   :  { %6723 = vrot.lane.b32.xlu0 %v6722_v40, %s7893_s28  ;;  %v2249_v63 = vsel %vm2224_vm2, %v2184_v59, %v6440_v54  ;;  %v2250_v1 = vsel %vm2224_vm2, %v2185_v60, %v6441_v53  ;;  %v6752_v40 = vpack.i.bf16 %v382_v27, %v380_v25  ;;  %v7570_v53 = vld [vmem:[#allocation3 + $0x448] sm:$0xff]  ;;  %v6772_v25 = vpack.i.bf16 %v8706_v2, %v403_v20  ;;  %v386_v27 = vld [vmem:[#allocation3 + $0x730] sm:$0xff] }
 0x1cc   :  { %v6449_v3 = vpop.permute.xlu1 %6448  ;;  %v2441_v4 = vsel %vm2224_vm2, %v2377_v61, %v6435_v58  ;;  %v2442_v5 = vsel %vm2224_vm2, %v2378_v62, %v6436_v57  ;;  %v8671_v8 = vpack.c.bf16 %v2250_v1, %v2249_v63 }
 0x1cd   :  { %v6444_v14 = vpop.permute.xlu0 %6443  ;;  %v8675_v15 = vpack.c.bf16 %v2442_v5, %v2441_v4  ;;  %v6451_v21 = vunpack.i.h.bf16 %v6449_v3  ;;  %v6450_v22 = vunpack.i.l.bf16 %v6449_v3  ;;  %v385_v4 = vld [vmem:[#allocation3 + $0x728] sm:$0xff]  ;;  %v8700_v5 = vld [vmem:[#allocation3 + $0x738] sm:$0xff] }
 0x1ce   :  { %6738 = vrot.lane.b32.xlu1 %v6737_v48, %s7908_s4  ;;  %v6446_v28 = vunpack.i.h.bf16 %v6444_v14  ;;  %v6445_v30 = vunpack.i.l.bf16 %v6444_v14  ;;  %v6762_v48 = vpack.i.bf16 %v383_v34, %v8673_v10 }
 0x1cf   :  { %2992 = vmatprep.mubr.bf16.mxu0 %v8675_v15  ;;  %6733 = vrot.lane.b32.xlu0 %v6732_v46, %s7908_s4  ;;  %v2122_v42 = vsel %vm2094_vm0, %v7567_v41, %v6451_v21  ;;  %v2121_v45 = vsel %vm2094_vm0, %v7568_v44, %v6450_v22 }
 0x1d0   :  { %2993 = vmatmul.mubr.bf16.gmra.mrb[48].mxu0 %v8671_v8  ;;  %v6459_v24 = vpop.permute.xlu1 %6458  ;;  %v2316_v51 = vsel %vm2094_vm0, %v7569_v50, %v6446_v28  ;;  %v2315_v54 = vsel %vm2094_vm0, %v7570_v53, %v6445_v30  ;;  %v388_v28 = vld [vmem:[#allocation3 + $0x740] sm:$0xff] }
 0x1d1   :  { %v6454_v31 = vpop.permute.xlu0 %6453  ;;  %v6461_v37 = vunpack.i.h.bf16 %v6459_v24  ;;  %v6460_v29 = vunpack.i.l.bf16 %v6459_v24  ;;  %v6777_v24 = vpack.i.bf16 %v8700_v5, %v385_v4  ;;  %v6787_v44 = vpack.i.bf16 %v388_v28, %v386_v27  ;;  %v8744_v28 = vld [vmem:[#allocation3 + $0x7f0] sm:$0xff] }
 0x1d2   :  { %6748 = vrot.lane.b32.xlu1 %v6747_v18, %s7907_s9  ;;  %v6456_v32 = vunpack.i.h.bf16 %v6454_v31  ;;  %v6455_v39 = vunpack.i.l.bf16 %v6454_v31 }
 0x1d3   :  { %6743 = vrot.lane.b32.xlu0 %v6742_v7, %s7907_s9  ;;  %v2186_v61 = vsel %vm2159_vm1, %v2121_v45, %v6460_v29  ;;  %v2187_v62 = vsel %vm2159_vm1, %v2122_v42, %v6461_v37  ;;  %v406_v37 = vld [vmem:[#allocation3 + $0x7d8] sm:$0xff] }
 0x1d4   :  { %v6469_v46 = vpop.permute.xlu1 %6468  ;;  %v2379_v63 = vsel %vm2159_vm1, %v2315_v54, %v6455_v39  ;;  %v2380_v1 = vsel %vm2159_vm1, %v2316_v51, %v6456_v32  ;;  %v8716_v39 = vld [vmem:[#allocation3 + $0x7e0] sm:$0xff]  ;;  %v7572_v51 = vld [vmem:[#allocation3 + $0x3d0] sm:$0xff] }
 0x1d5   :  { %v6471_v56 = vunpack.i.h.bf16 %v6469_v46  ;;  %v6470_v57 = vunpack.i.l.bf16 %v6469_v46  ;;  %v6464_v58 = vpop.permute.xlu0 %6463 }
 0x1d6   :  { %v6466_v59 = vunpack.i.h.bf16 %v6464_v58  ;;  %v6465_v60 = vunpack.i.l.bf16 %v6464_v58  ;;  %6758 = vrot.lane.b32.xlu1 %v6757_v38, %s7893_s28  ;;  %v7573_v58 = vld [vmem:[#allocation3 + $0x478] sm:$0xff] }
 0x1d7   :  { %6753 = vrot.lane.b32.xlu0 %v6752_v40, %s7893_s28  ;;  %v2251_v0 = vsel %vm2224_vm2, %v2186_v61, %v6470_v57  ;;  %v2252_v3 = vsel %vm2224_vm2, %v2187_v62, %v6471_v56  ;;  %v8718_v40 = vld [vmem:[#allocation3 + $0x748] sm:$0xff]  ;;  %v6792_v56 = vpack.i.bf16 %v8716_v39, %v8706_v2  ;;  %v8738_v2 = vld [vmem:[#allocation3 + $0x758] sm:$0xff] }
 0x1d8   :  { %v6479_v10 = vpop.permute.xlu1 %6478  ;;  %v2443_v14 = vsel %vm2224_vm2, %v2379_v63, %v6465_v60  ;;  %v2444_v18 = vsel %vm2224_vm2, %v2380_v1, %v6466_v59  ;;  %v8704_v7 = vpack.c.bf16 %v2252_v3, %v2251_v0  ;;  %v6797_v57 = vpack.i.bf16 %v8718_v40, %v8700_v5  ;;  %v7574_v60 = vld [vmem:[#allocation3 + $0x468] sm:$0xff] }
 0x1d9   :  { %v6474_v21 = vpop.permute.xlu0 %6473  ;;  %v8708_v22 = vpack.c.bf16 %v2444_v18, %v2443_v14  ;;  %v6481_v30 = vunpack.i.h.bf16 %v6479_v10  ;;  %v6480_v31 = vunpack.i.l.bf16 %v6479_v10 }
 0x1da   :  { %6768 = vrot.lane.b32.xlu1 %v6767_v49, %s7908_s4  ;;  %v6476_v29 = vunpack.i.h.bf16 %v6474_v21  ;;  %v6475_v38 = vunpack.i.l.bf16 %v6474_v21  ;;  %v7571_v49 = vld [vmem:[#allocation3 + $0x3e0] sm:$0xff] }
 0x1db   :  { %3000 = vmatprep.mubr.bf16.mxu0 %v8708_v22  ;;  %6763 = vrot.lane.b32.xlu0 %v6762_v48, %s7908_s4  ;;  %v6782_v48 = vpack.i.bf16 %v406_v37, %v404_v35  ;;  %v2124_v50 = vsel %vm2094_vm0, %v7571_v49, %v6481_v30  ;;  %v2123_v53 = vsel %vm2094_vm0, %v7572_v51, %v6480_v31  ;;  %v390_v37 = vld [vmem:[#allocation3 + $0x750] sm:$0xff]  ;;  %v7575_v49 = vld [vmem:[#allocation3 + $0x400] sm:$0xff] }
 0x1dc   :  { %3001 = vmatmul.mubr.bf16.gmra.mrb[52].mxu0 %v8704_v7  ;;  %v6489_v34 = vpop.permute.xlu1 %6488  ;;  %v2318_v59 = vsel %vm2094_vm0, %v7573_v58, %v6476_v29  ;;  %v2317_v61 = vsel %vm2094_vm0, %v7574_v60, %v6475_v38  ;;  %v392_v29 = vld [vmem:[#allocation3 + $0x760] sm:$0xff]  ;;  %v7576_v51 = vld [vmem:[#allocation3 + $0x3f0] sm:$0xff]  ;;  %v7578_v60 = vld [vmem:[#allocation3 + $0x498] sm:$0xff] }
 0x1dd   :  { %v6484_v32 = vpop.permute.xlu0 %6483  ;;  %v6491_v41 = vunpack.i.h.bf16 %v6489_v34  ;;  %v6490_v42 = vunpack.i.l.bf16 %v6489_v34 }
 0x1de   :  { %6778 = vrot.lane.b32.xlu1 %v6777_v24, %s7907_s9  ;;  %v6486_v45 = vunpack.i.h.bf16 %v6484_v32  ;;  %v6485_v46 = vunpack.i.l.bf16 %v6484_v32 }
 0x1df   :  { %6773 = vrot.lane.b32.xlu0 %v6772_v25, %s7907_s9  ;;  %v2188_v4 = vsel %vm2159_vm1, %v2123_v53, %v6490_v42  ;;  %v2189_v10 = vsel %vm2159_vm1, %v2124_v50, %v6491_v41  ;;  %v6807_v41 = vpack.i.bf16 %v8738_v2, %v8718_v40  ;;  %v6802_v42 = vpack.i.bf16 %v8744_v28, %v8716_v39  ;;  %v7577_v39 = vld [vmem:[#allocation3 + $0x488] sm:$0xff] }
 0x1e0   :  { %v6499_v54 = vpop.permute.xlu1 %6498  ;;  %v2381_v5 = vsel %vm2159_vm1, %v2317_v61, %v6485_v46  ;;  %v2382_v14 = vsel %vm2159_vm1, %v2318_v59, %v6486_v45  ;;  %v408_v45 = vld [vmem:[#allocation3 + $0x7e8] sm:$0xff]  ;;  %v410_v46 = vld [vmem:[#allocation3 + $0x7f8] sm:$0xff] }
 0x1e1   :  { %v6501_v62 = vunpack.i.h.bf16 %v6499_v54  ;;  %v6500_v63 = vunpack.i.l.bf16 %v6499_v54  ;;  %v6494_v1 = vpop.permute.xlu0 %6493 }
 0x1e2   :  { %v6496_v0 = vunpack.i.h.bf16 %v6494_v1  ;;  %v6495_v3 = vunpack.i.l.bf16 %v6494_v1  ;;  %6788 = vrot.lane.b32.xlu1 %v6787_v44, %s7893_s28  ;;  %v411_v1 = vld [vmem:[#allocation3 + $0x800] sm:$0xff] }
 0x1e3   :  { %6783 = vrot.lane.b32.xlu0 %v6782_v48, %s7893_s28  ;;  %v2253_v18 = vsel %vm2224_vm2, %v2188_v4, %v6500_v63  ;;  %v2254_v20 = vsel %vm2224_vm2, %v2189_v10, %v6501_v62  ;;  %v6817_v48 = vpack.i.bf16 %v392_v29, %v390_v37  ;;  %v393_v62 = vld [vmem:[#allocation3 + $0x768] sm:$0xff]  ;;  %v8776_v29 = vld [vmem:[#allocation3 + $0x810] sm:$0xff] }
 0x1e4   :  { %v2445_v21 = vsel %vm2224_vm2, %v2381_v5, %v6495_v3  ;;  %v2446_v24 = vsel %vm2224_vm2, %v2382_v14, %v6496_v0  ;;  %v8742_v25 = vpack.c.bf16 %v2254_v20, %v2253_v18  ;;  %v6509_v27 = vpop.permute.xlu1 %6508 }
 0x1e5   :  { %v8746_v30 = vpack.c.bf16 %v2446_v24, %v2445_v21  ;;  %v6504_v31 = vpop.permute.xlu0 %6503  ;;  %v6511_v34 = vunpack.i.h.bf16 %v6509_v27  ;;  %v6510_v35 = vunpack.i.l.bf16 %v6509_v27  ;;  %v6827_v24 = vpack.i.bf16 %v393_v62, %v8738_v2 }
 0x1e6   :  { %v6506_v38 = vunpack.i.h.bf16 %v6504_v31  ;;  %v6505_v32 = vunpack.i.l.bf16 %v6504_v31  ;;  %6798 = vrot.lane.b32.xlu1 %v6797_v57, %s7908_s4  ;;  %v6822_v27 = vpack.i.bf16 %v411_v1, %v8744_v28  ;;  %v8771_v31 = vld [vmem:[#allocation3 + $0x778] sm:$0xff] }
 0x1e7   :  { %3008 = vmatprep.mubr.bf16.mxu0 %v8746_v30  ;;  %6793 = vrot.lane.b32.xlu0 %v6792_v56, %s7908_s4  ;;  %v2126_v50 = vsel %vm2094_vm0, %v7575_v49, %v6511_v34  ;;  %v2125_v40 = vsel %vm2094_vm0, %v7576_v51, %v6510_v35  ;;  %v312_v49 = vld [vmem:[#allocation3 + $0x4c0] sm:$0xff]  ;;  %v330_v51 = vld [vmem:[#allocation3 + $0x558] sm:$0xff] }
 0x1e8   :  { %3009 = vmatmul.mubr.bf16.gmra.mrb[56].mxu0 %v8742_v25  ;;  %v6519_v44 = vpop.permute.xlu1 %6518  ;;  %v2319_v59 = vsel %vm2094_vm0, %v7577_v39, %v6505_v32  ;;  %v2320_v61 = vsel %vm2094_vm0, %v7578_v60, %v6506_v38 }
 0x1e9   :  { %3185 = vmatprep.mubr.bf16.mxu0 %v8382_v55  ;;  %v6514_v53 = vpop.permute.xlu0 %6513  ;;  %v6521_v54 = vunpack.i.h.bf16 %v6519_v44  ;;  %v6520_v56 = vunpack.i.l.bf16 %v6519_v44  ;;  %v6812_v55 = vpack.i.bf16 %v410_v46, %v408_v45  ;;  %v394_v45 = vld [vmem:[#allocation3 + $0x770] sm:$0xff]  ;;  %v396_v46 = vld [vmem:[#allocation3 + $0x780] sm:$0xff] }
 0x1ea   :  { %v6516_v57 = vunpack.i.h.bf16 %v6514_v53  ;;  %v6515_v58 = vunpack.i.l.bf16 %v6514_v53  ;;  %6808 = vrot.lane.b32.xlu1 %v6807_v41, %s7907_s9  ;;  %v412_v53 = vld [vmem:[#allocation3 + $0x808] sm:$0xff] }
 0x1eb   :  { %6803 = vrot.lane.b32.xlu0 %v6802_v42, %s7907_s9  ;;  %v2190_v0 = vsel %vm2159_vm1, %v2125_v40, %v6520_v56  ;;  %v2191_v3 = vsel %vm2159_vm1, %v2126_v50, %v6521_v54  ;;  %v6837_v50 = vpack.i.bf16 %v8771_v31, %v393_v62  ;;  %v6832_v40 = vpack.i.bf16 %v8776_v29, %v411_v1  ;;  %v414_v54 = vld [vmem:[#allocation3 + $0x818] sm:$0xff] }
 0x1ec   :  { %v6529_v63 = vpop.permute.xlu1 %6528  ;;  %v2383_v14 = vsel %vm2159_vm1, %v2319_v59, %v6515_v58  ;;  %v2384_v18 = vsel %vm2159_vm1, %v2320_v61, %v6516_v57  ;;  %v6847_v56 = vpack.i.bf16 %v396_v46, %v394_v45  ;;  %v7579_v57 = vld [vmem:[#allocation3 + $0x4d0] sm:$0xff] }
 0x1ed   :  { %v6524_v4 = vpop.permute.xlu0 %6523  ;;  %v6531_v10 = vunpack.i.h.bf16 %v6529_v63  ;;  %v6530_v5 = vunpack.i.l.bf16 %v6529_v63 }
 0x1ee   :  { %v6526_v20 = vunpack.i.h.bf16 %v6524_v4  ;;  %v6525_v21 = vunpack.i.l.bf16 %v6524_v4  ;;  %6818 = vrot.lane.b32.xlu1 %v6817_v48, %s7893_s28  ;;  %v397_v4 = vld [vmem:[#allocation3 + $0x788] sm:$0xff] }
 0x1ef   :  { %6813 = vrot.lane.b32.xlu0 %v6812_v55, %s7893_s28  ;;  %v2255_v34 = vsel %vm2224_vm2, %v2190_v0, %v6530_v5  ;;  %v2256_v35 = vsel %vm2224_vm2, %v2191_v3, %v6531_v10  ;;  %v7580_v55 = vld [vmem:[#allocation3 + $0x568] sm:$0xff]  ;;  %v6842_v3 = vpack.i.bf16 %v414_v54, %v412_v53  ;;  %v415_v5 = vld [vmem:[#allocation3 + $0x820] sm:$0xff] }
 0x1f0   :  { %3186 = vmatmul.mubr.bf16.vlgmr.msra.gmra.mrb[0].mxu0 %v8378_v52  ;;  %v6539_v37 = vpop.permute.xlu1 %6538  ;;  %v2447_v38 = vsel %vm2224_vm2, %v2383_v14, %v6525_v21  ;;  %v2448_v32 = vsel %vm2224_vm2, %v2384_v18, %v6526_v20  ;;  %v8780_v2 = vpack.c.bf16 %v2256_v35, %v2255_v34 }
 0x1f1   :  { %3193 = vmatprep.mubr.bf16.mxu0 %v8419_v47  ;;  %v6534_v28 = vpop.permute.xlu0 %6533  ;;  %v6541_v41 = vunpack.i.h.bf16 %v6539_v37  ;;  %v6540_v42 = vunpack.i.l.bf16 %v6539_v37  ;;  %v8783_v44 = vpack.c.bf16 %v2448_v32, %v2447_v38  ;;  %v6852_v38 = vpack.i.bf16 %v415_v5, %v8776_v29  ;;  %v8807_v32 = vld [vmem:[#allocation3 + $0x798] sm:$0xff]  ;;  %v398_v29 = vld [vmem:[#allocation3 + $0x790] sm:$0xff] }
 0x1f2   :  { %v6536_v48 = vunpack.i.h.bf16 %v6534_v28  ;;  %v6535_v52 = vunpack.i.l.bf16 %v6534_v28  ;;  %6828 = vrot.lane.b32.xlu1 %v6827_v24, %s7908_s4  ;;  %v6867_v53 = vpack.i.bf16 %v8807_v32, %v397_v4 }
 0x1f3   :  { %6823 = vrot.lane.b32.xlu0 %v6822_v27, %s7908_s4  ;;  %3016 = vmatprep.mubr.bf16.mxu1 %v8783_v44  ;;  %v2128_v58 = vsel %vm2094_vm0, %v7579_v57, %v6541_v41  ;;  %v2127_v39 = vsel %vm2094_vm0, %v312_v49, %v6540_v42  ;;  %v8811_v42 = vld [vmem:[#allocation3 + $0x830] sm:$0xff]  ;;  %v416_v57 = vld [vmem:[#allocation3 + $0x828] sm:$0xff] }
 0x1f4   :  { %v6549_v47 = vpop.permute.xlu1 %6548  ;;  %3017 = vmatmul.mubr.bf16.vlgmr.msra.gmra.mrb[0].mxu1 %v8780_v2  ;;  %v2322_v62 = vsel %vm2094_vm0, %v7580_v55, %v6536_v48  ;;  %v2321_v63 = vsel %vm2094_vm0, %v330_v51, %v6535_v52  ;;  %v400_v51 = vld [vmem:[#allocation3 + $0x7a0] sm:$0xff]  ;;  %v6862_v54 = vpack.i.bf16 %v8811_v42, %v415_v5 }
 0x1f5   :  { %v6544_v59 = vpop.permute.xlu0 %6543  ;;  %v6551_v60 = vunpack.i.h.bf16 %v6549_v47  ;;  %v6550_v61 = vunpack.i.l.bf16 %v6549_v47 }
 0x1f6   :  { %v6546_v1 = vunpack.i.h.bf16 %v6544_v59  ;;  %v6545_v0 = vunpack.i.l.bf16 %v6544_v59  ;;  %6838 = vrot.lane.b32.xlu1 %v6837_v50, %s7907_s9  ;;  %v7581_v59 = vld [vmem:[#allocation3 + $0x4f0] sm:$0xff] }
 0x1f7   :  { %6833 = vrot.lane.b32.xlu0 %v6832_v40, %s7907_s9  ;;  %v2192_v14 = vsel %vm2159_vm1, %v2127_v39, %v6550_v61  ;;  %v2193_v18 = vsel %vm2159_vm1, %v2128_v58, %v6551_v60  ;;  %v418_v58 = vld [vmem:[#allocation3 + $0x838] sm:$0xff]  ;;  %v6877_v39 = vpack.i.bf16 %v400_v51, %v398_v29  ;;  %v7582_v61 = vld [vmem:[#allocation3 + $0x4e0] sm:$0xff]  ;;  %v439_v29 = vld [vmem:[#allocation3 + $0x8f0] sm:$0xff] }
 0x1f8   :  { %3194 = vmatmul.mubr.bf16.gmra.mrb[4].mxu0 %v8415_v43  ;;  %v6559_v10 = vpop.permute.xlu1 %6558  ;;  %v2385_v27 = vsel %vm2159_vm1, %v2321_v63, %v6545_v0  ;;  %v2386_v34 = vsel %vm2159_vm1, %v2322_v62, %v6546_v1  ;;  %v6857_v43 = vpack.i.bf16 %v397_v4, %v8771_v31  ;;  %v7583_v0 = vld [vmem:[#allocation3 + $0x588] sm:$0xff]  ;;  %v8846_v51 = vld [vmem:[#allocation3 + $0x900] sm:$0xff] }
 0x1f9   :  { %3201 = vmatprep.mubr.bf16.mxu0 %v8455_v36  ;;  %v6554_v20 = vpop.permute.xlu0 %6553  ;;  %v6561_v21 = vunpack.i.h.bf16 %v6559_v10  ;;  %v6560_v24 = vunpack.i.l.bf16 %v6559_v10 }
 0x1fa   :  { %v6556_v35 = vunpack.i.h.bf16 %v6554_v20  ;;  %v6555_v37 = vunpack.i.l.bf16 %v6554_v20  ;;  %6848 = vrot.lane.b32.xlu1 %v6847_v56, %s7893_s28  ;;  %v419_v20 = vld [vmem:[#allocation3 + $0x840] sm:$0xff] }
 0x1fb   :  { %6843 = vrot.lane.b32.xlu0 %v6842_v3, %s7893_s28  ;;  %v2257_v36 = vsel %vm2224_vm2, %v2192_v14, %v6560_v24  ;;  %v2258_v28 = vsel %vm2224_vm2, %v2193_v18, %v6561_v21  ;;  %v7584_v3 = vld [vmem:[#allocation3 + $0x578] sm:$0xff]  ;;  %v401_v14 = vld [vmem:[#allocation3 + $0x7a8] sm:$0xff] }
 0x1fc   :  { %v6569_v41 = vpop.permute.xlu1 %6568  ;;  %v2449_v45 = vsel %vm2224_vm2, %v2385_v27, %v6555_v37  ;;  %v2450_v46 = vsel %vm2224_vm2, %v2386_v34, %v6556_v35  ;;  %v8815_v48 = vpack.c.bf16 %v2258_v28, %v2257_v36  ;;  %v6887_v28 = vpack.i.bf16 %v401_v14, %v8807_v32  ;;  %v7588_v14 = vld [vmem:[#allocation3 + $0x598] sm:$0xff] }
 0x1fd   :  { %v6564_v31 = vpop.permute.xlu0 %6563  ;;  %v6571_v52 = vunpack.i.h.bf16 %v6569_v41  ;;  %v6570_v49 = vunpack.i.l.bf16 %v6569_v41  ;;  %v8817_v50 = vpack.c.bf16 %v2450_v46, %v2449_v45  ;;  %v6882_v41 = vpack.i.bf16 %v419_v20, %v8811_v42  ;;  %v421_v45 = vld [vmem:[#allocation3 + $0x858] sm:$0xff]  ;;  %v8841_v46 = vld [vmem:[#allocation3 + $0x868] sm:$0xff] }
 0x1fe   :  { %v6566_v40 = vunpack.i.h.bf16 %v6564_v31  ;;  %v6565_v47 = vunpack.i.l.bf16 %v6564_v31  ;;  %6858 = vrot.lane.b32.xlu1 %v6857_v43, %s7908_s4 }
 0x1ff   :  { %6853 = vrot.lane.b32.xlu0 %v6852_v38, %s7908_s4  ;;  %3024 = vmatprep.mubr.bf16.mxu1 %v8817_v50  ;;  %v2130_v60 = vsel %vm2094_vm0, %v7581_v59, %v6571_v52  ;;  %v2129_v55 = vsel %vm2094_vm0, %v7582_v61, %v6570_v49  ;;  %v6897_v59 = vpack.i.bf16 %v8841_v46, %v421_v45  ;;  %v440_v61 = vld [vmem:[#allocation3 + $0x8f8] sm:$0xff] }
 0x200   :  { %3202 = vmatmul.mubr.bf16.gmra.mrb[8].mxu0 %v8451_v33  ;;  %v6579_v56 = vpop.permute.xlu1 %6578  ;;  %3025 = vmatmul.mubr.bf16.gmra.mrb[4].mxu1 %v8815_v48  ;;  %v2324_v33 = vsel %vm2094_vm0, %v7583_v0, %v6566_v40  ;;  %v2323_v4 = vsel %vm2094_vm0, %v7584_v3, %v6565_v47  ;;  %v7586_v0 = vld [vmem:[#allocation3 + $0x500] sm:$0xff] }
 0x201   :  { %3209 = vmatprep.mubr.bf16.mxu0 %v8494_v26  ;;  %v6574_v62 = vpop.permute.xlu0 %6573  ;;  %v6581_v63 = vunpack.i.h.bf16 %v6579_v56  ;;  %v6580_v1 = vunpack.i.l.bf16 %v6579_v56  ;;  %v6872_v26 = vpack.i.bf16 %v418_v58, %v416_v57  ;;  %v422_v57 = vld [vmem:[#allocation3 + $0x860] sm:$0xff]  ;;  %v424_v58 = vld [vmem:[#allocation3 + $0x870] sm:$0xff] }
 0x202   :  { %v6576_v10 = vunpack.i.h.bf16 %v6574_v62  ;;  %v6575_v5 = vunpack.i.l.bf16 %v6574_v62  ;;  %6868 = vrot.lane.b32.xlu1 %v6867_v53, %s7907_s9  ;;  %v6907_v62 = vpack.i.bf16 %v424_v58, %v422_v57 }
 0x203   :  { %6863 = vrot.lane.b32.xlu0 %v6862_v54, %s7907_s9  ;;  %v2194_v21 = vsel %vm2159_vm1, %v2129_v55, %v6580_v1  ;;  %v2195_v24 = vsel %vm2159_vm1, %v2130_v60, %v6581_v63  ;;  %v6892_v60 = vpack.i.bf16 %v8846_v51, %v439_v29  ;;  %v442_v55 = vld [vmem:[#allocation3 + $0x908] sm:$0xff]  ;;  %v7585_v63 = vld [vmem:[#allocation3 + $0x510] sm:$0xff] }
 0x204   :  { %v6589_v18 = vpop.permute.xlu1 %6588  ;;  %v2387_v37 = vsel %vm2159_vm1, %v2323_v4, %v6575_v5  ;;  %v2388_v43 = vsel %vm2159_vm1, %v2324_v33, %v6576_v10  ;;  %v7587_v5 = vld [vmem:[#allocation3 + $0x5a8] sm:$0xff] }
 0x205   :  { %v6584_v27 = vpop.permute.xlu0 %6583  ;;  %v6591_v34 = vunpack.i.h.bf16 %v6589_v18  ;;  %v6590_v35 = vunpack.i.l.bf16 %v6589_v18  ;;  %v8877_v29 = vld [vmem:[#allocation3 + $0x888] sm:$0xff] }
 0x206   :  { %v6586_v38 = vunpack.i.h.bf16 %v6584_v27  ;;  %v6585_v36 = vunpack.i.l.bf16 %v6584_v27  ;;  %6878 = vrot.lane.b32.xlu1 %v6877_v39, %s7893_s28  ;;  %v425_v27 = vld [vmem:[#allocation3 + $0x878] sm:$0xff] }
 0x207   :  { %6873 = vrot.lane.b32.xlu0 %v6872_v26, %s7893_s28  ;;  %v2259_v31 = vsel %vm2224_vm2, %v2194_v21, %v6590_v35  ;;  %v2260_v52 = vsel %vm2224_vm2, %v2195_v24, %v6591_v34  ;;  %v6902_v24 = vpack.i.bf16 %v442_v55, %v440_v61  ;;  %v443_v35 = vld [vmem:[#allocation3 + $0x910] sm:$0xff]  ;;  %v6927_v61 = vpack.i.bf16 %v8877_v29, %v425_v27 }
 0x208   :  { %3210 = vmatmul.mubr.bf16.gmra.mrb[12].mxu0 %v8490_v23  ;;  %v6599_v49 = vpop.permute.xlu1 %6598  ;;  %v2451_v40 = vsel %vm2224_vm2, %v2387_v37, %v6585_v36  ;;  %v2452_v32 = vsel %vm2224_vm2, %v2388_v43, %v6586_v38  ;;  %v8850_v47 = vpack.c.bf16 %v2260_v52, %v2259_v31 }
 0x209   :  { %3217 = vmatprep.mubr.bf16.mxu0 %v8531_v19  ;;  %v6594_v42 = vpop.permute.xlu0 %6593  ;;  %v6601_v53 = vunpack.i.h.bf16 %v6599_v49  ;;  %v6600_v54 = vunpack.i.l.bf16 %v6599_v49  ;;  %v8853_v56 = vpack.c.bf16 %v2452_v32, %v2451_v40  ;;  %v6912_v49 = vpack.i.bf16 %v443_v35, %v8846_v51  ;;  %v426_v51 = vld [vmem:[#allocation3 + $0x880] sm:$0xff] }
 0x20a   :  { %v6596_v23 = vunpack.i.h.bf16 %v6594_v42  ;;  %v6595_v39 = vunpack.i.l.bf16 %v6594_v42  ;;  %6888 = vrot.lane.b32.xlu1 %v6887_v28, %s7908_s4  ;;  %v8881_v42 = vld [vmem:[#allocation3 + $0x920] sm:$0xff] }
 0x20b   :  { %6883 = vrot.lane.b32.xlu0 %v6882_v41, %s7908_s4  ;;  %3032 = vmatprep.mubr.bf16.mxu1 %v8853_v56  ;;  %v2132_v1 = vsel %vm2094_vm0, %v7585_v63, %v6601_v53  ;;  %v2131_v33 = vsel %vm2094_vm0, %v7586_v0, %v6600_v54  ;;  %v6922_v55 = vpack.i.bf16 %v8881_v42, %v443_v35  ;;  %v444_v63 = vld [vmem:[#allocation3 + $0x918] sm:$0xff] }
 0x20c   :  { %v6609_v19 = vpop.permute.xlu1 %6608  ;;  %3033 = vmatmul.mubr.bf16.gmra.mrb[8].mxu1 %v8850_v47  ;;  %v2326_v26 = vsel %vm2094_vm0, %v7587_v5, %v6596_v23  ;;  %v2325_v18 = vsel %vm2094_vm0, %v7588_v14, %v6595_v39 }
 0x20d   :  { %v6604_v3 = vpop.permute.xlu0 %6603  ;;  %v6611_v4 = vunpack.i.h.bf16 %v6609_v19  ;;  %v6610_v10 = vunpack.i.l.bf16 %v6609_v19 }
 0x20e   :  { %v6606_v20 = vunpack.i.h.bf16 %v6604_v3  ;;  %v6605_v21 = vunpack.i.l.bf16 %v6604_v3  ;;  %6898 = vrot.lane.b32.xlu1 %v6897_v59, %s7907_s9  ;;  %v428_v59 = vld [vmem:[#allocation3 + $0x890] sm:$0xff] }
 0x20f   :  { %6893 = vrot.lane.b32.xlu0 %v6892_v60, %s7907_s9  ;;  %v2196_v37 = vsel %vm2159_vm1, %v2131_v33, %v6610_v10  ;;  %v2197_v43 = vsel %vm2159_vm1, %v2132_v1, %v6611_v4  ;;  %v446_v1 = vld [vmem:[#allocation3 + $0x928] sm:$0xff]  ;;  %v6937_v0 = vpack.i.bf16 %v428_v59, %v426_v51  ;;  %v7589_v33 = vld [vmem:[#allocation3 + $0x530] sm:$0xff]  ;;  %v7590_v4 = vld [vmem:[#allocation3 + $0x520] sm:$0xff] }
 0x210   :  { %3218 = vmatmul.mubr.bf16.gmra.mrb[16].mxu0 %v8527_v17  ;;  %v6619_v34 = vpop.permute.xlu1 %6618  ;;  %v2389_v41 = vsel %vm2159_vm1, %v2325_v18, %v6605_v21  ;;  %v2390_v45 = vsel %vm2159_vm1, %v2326_v26, %v6606_v20  ;;  %v6917_v17 = vpack.i.bf16 %v425_v27, %v8841_v46  ;;  %v7591_v18 = vld [vmem:[#allocation3 + $0x5c8] sm:$0xff]  ;;  %v7592_v20 = vld [vmem:[#allocation3 + $0x5b8] sm:$0xff] }
 0x211   :  { %3225 = vmatprep.mubr.bf16.mxu0 %v8564_v16  ;;  %v6614_v38 = vpop.permute.xlu0 %6613  ;;  %v6621_v36 = vunpack.i.h.bf16 %v6619_v34  ;;  %v6620_v28 = vunpack.i.l.bf16 %v6619_v34  ;;  %v429_v34 = vld [vmem:[#allocation3 + $0x898] sm:$0xff] }
 0x212   :  { %v6616_v31 = vunpack.i.h.bf16 %v6614_v38  ;;  %v6615_v52 = vunpack.i.l.bf16 %v6614_v38  ;;  %6908 = vrot.lane.b32.xlu1 %v6907_v62, %s7893_s28 }
 0x213   :  { %6903 = vrot.lane.b32.xlu0 %v6902_v24, %s7893_s28  ;;  %v2261_v16 = vsel %vm2224_vm2, %v2196_v37, %v6620_v28  ;;  %v2262_v40 = vsel %vm2224_vm2, %v2197_v43, %v6621_v36  ;;  %v447_v37 = vld [vmem:[#allocation3 + $0x930] sm:$0xff] }
 0x214   :  { %v6629_v32 = vpop.permute.xlu1 %6628  ;;  %v2453_v53 = vsel %vm2224_vm2, %v2389_v41, %v6615_v52  ;;  %v2454_v54 = vsel %vm2224_vm2, %v2390_v45, %v6616_v31  ;;  %v8885_v57 = vpack.c.bf16 %v2262_v40, %v2261_v16  ;;  %v6942_v16 = vpack.i.bf16 %v447_v37, %v8881_v42  ;;  %v8911_v40 = vld [vmem:[#allocation3 + $0x8a8] sm:$0xff] }
 0x215   :  { %v6624_v46 = vpop.permute.xlu0 %6623  ;;  %v6631_v58 = vunpack.i.h.bf16 %v6629_v32  ;;  %v6630_v23 = vunpack.i.l.bf16 %v6629_v32  ;;  %v8887_v39 = vpack.c.bf16 %v2454_v54, %v2453_v53 }
 0x216   :  { %v6626_v60 = vunpack.i.h.bf16 %v6624_v46  ;;  %v6625_v19 = vunpack.i.l.bf16 %v6624_v46  ;;  %6918 = vrot.lane.b32.xlu1 %v6917_v17, %s7908_s4  ;;  %v8916_v46 = vld [vmem:[#allocation3 + $0x940] sm:$0xff] }
 0x217   :  { %6913 = vrot.lane.b32.xlu0 %v6912_v49, %s7908_s4  ;;  %3040 = vmatprep.mubr.bf16.mxu1 %v8887_v39  ;;  %v2134_v3 = vsel %vm2094_vm0, %v7589_v33, %v6631_v58  ;;  %v2133_v10 = vsel %vm2094_vm0, %v7590_v4, %v6630_v23  ;;  %v6947_v49 = vpack.i.bf16 %v429_v34, %v8877_v29  ;;  %v8932_v33 = vld [vmem:[#allocation3 + $0x938] sm:$0xff] }
 0x218   :  { %3226 = vmatmul.mubr.bf16.gmra.mrb[20].mxu0 %v8560_v12  ;;  %v6639_v62 = vpop.permute.xlu1 %6638  ;;  %3041 = vmatmul.mubr.bf16.gmra.mrb[12].mxu1 %v8885_v57  ;;  %v2328_v12 = vsel %vm2094_vm0, %v7591_v18, %v6626_v60  ;;  %v2327_v21 = vsel %vm2094_vm0, %v7592_v20, %v6625_v19  ;;  %v8925_v19 = vld [vmem:[#allocation3 + $0x8a0] sm:$0xff]  ;;  %v7594_v20 = vld [vmem:[#allocation3 + $0x698] sm:$0xff] }
 0x219   :  { %3233 = vmatprep.mubr.bf16.mxu0 %v8599_v13  ;;  %v6634_v5 = vpop.permute.xlu0 %6633  ;;  %v6641_v26 = vunpack.i.h.bf16 %v6639_v62  ;;  %v6640_v14 = vunpack.i.l.bf16 %v6639_v62  ;;  %v6932_v13 = vpack.i.bf16 %v446_v1, %v444_v63  ;;  %v348_v62 = vld [vmem:[#allocation3 + $0x5f0] sm:$0xff]  ;;  %v6957_v63 = vpack.i.bf16 %v8911_v40, %v429_v34  ;;  %v366_v1 = vld [vmem:[#allocation3 + $0x688] sm:$0xff] }
 0x21a   :  { %v6636_v24 = vunpack.i.h.bf16 %v6634_v5  ;;  %v6635_v27 = vunpack.i.l.bf16 %v6634_v5  ;;  %6928 = vrot.lane.b32.xlu1 %v6927_v61, %s7907_s9  ;;  %v432_v61 = vld [vmem:[#allocation3 + $0x8b0] sm:$0xff] }
 0x21b   :  { %6923 = vrot.lane.b32.xlu0 %v6922_v55, %s7907_s9  ;;  %v2198_v43 = vsel %vm2159_vm1, %v2133_v10, %v6640_v14  ;;  %v2199_v38 = vsel %vm2159_vm1, %v2134_v3, %v6641_v26  ;;  %v450_v3 = vld [vmem:[#allocation3 + $0x948] sm:$0xff]  ;;  %v6967_v4 = vpack.i.bf16 %v432_v61, %v8925_v19  ;;  %v7593_v10 = vld [vmem:[#allocation3 + $0x600] sm:$0xff] }
 0x21c   :  { %v6649_v35 = vpop.permute.xlu1 %6648  ;;  %v2391_v45 = vsel %vm2159_vm1, %v2327_v21, %v6635_v27  ;;  %v2392_v31 = vsel %vm2159_vm1, %v2328_v12, %v6636_v24  ;;  %v6962_v34 = vpack.i.bf16 %v450_v3, %v8932_v33  ;;  %v8973_v3 = vld [vmem:[#allocation3 + $0x958] sm:$0xff] }
 0x21d   :  { %v6644_v36 = vpop.permute.xlu0 %6643  ;;  %v6651_v28 = vunpack.i.h.bf16 %v6649_v35  ;;  %v6650_v41 = vunpack.i.l.bf16 %v6649_v35  ;;  %v433_v35 = vld [vmem:[#allocation3 + $0x8b8] sm:$0xff] }
 0x21e   :  { %v6646_v52 = vunpack.i.h.bf16 %v6644_v36  ;;  %v6645_v17 = vunpack.i.l.bf16 %v6644_v36  ;;  %6938 = vrot.lane.b32.xlu1 %v6937_v0, %s7893_s28 }
 0x21f   :  { %6933 = vrot.lane.b32.xlu0 %v6932_v13, %s7893_s28  ;;  %v2263_v32 = vsel %vm2224_vm2, %v2198_v43, %v6650_v41  ;;  %v2264_v53 = vsel %vm2224_vm2, %v2199_v38, %v6651_v28  ;;  %v451_v43 = vld [vmem:[#allocation3 + $0x950] sm:$0xff] }
 0x220   :  { %3234 = vmatmul.mubr.bf16.gmra.mrb[24].mxu0 %v8595_v9  ;;  %v6659_v54 = vpop.permute.xlu1 %6658  ;;  %v2455_v58 = vsel %vm2224_vm2, %v2391_v45, %v6645_v17  ;;  %v2456_v23 = vsel %vm2224_vm2, %v2392_v31, %v6646_v52  ;;  %v8920_v29 = vpack.c.bf16 %v2264_v53, %v2263_v32  ;;  %v8953_v32 = vld [vmem:[#allocation3 + $0x8c8] sm:$0xff] }
 0x221   :  { %3241 = vmatprep.mubr.bf16.mxu0 %v8638_v11  ;;  %v6654_v42 = vpop.permute.xlu0 %6653  ;;  %v6661_v51 = vunpack.i.h.bf16 %v6659_v54  ;;  %v6660_v59 = vunpack.i.l.bf16 %v6659_v54  ;;  %v8923_v60 = vpack.c.bf16 %v2456_v23, %v2455_v58  ;;  %v6952_v11 = vpack.i.bf16 %v8916_v46, %v447_v37  ;;  %v8957_v58 = vld [vmem:[#allocation3 + $0x960] sm:$0xff] }
 0x222   :  { %v6656_v9 = vunpack.i.h.bf16 %v6654_v42  ;;  %v6655_v55 = vunpack.i.l.bf16 %v6654_v42  ;;  %6948 = vrot.lane.b32.xlu1 %v6947_v49, %s7908_s4 }
 0x223   :  { %6943 = vrot.lane.b32.xlu0 %v6942_v16, %s7908_s4  ;;  %3048 = vmatprep.mubr.bf16.mxu1 %v8923_v60  ;;  %v2136_v5 = vsel %vm2094_vm0, %v7593_v10, %v6661_v51  ;;  %v2135_v26 = vsel %vm2094_vm0, %v348_v62, %v6660_v59  ;;  %v6972_v16 = vpack.i.bf16 %v451_v43, %v8916_v46  ;;  %v8965_v46 = vld [vmem:[#allocation3 + $0x8c0] sm:$0xff] }
 0x224   :  { %v6669_v0 = vpop.permute.xlu1 %6668  ;;  %3049 = vmatmul.mubr.bf16.gmra.mrb[16].mxu1 %v8920_v29  ;;  %v2330_v21 = vsel %vm2094_vm0, %v7594_v20, %v6656_v9  ;;  %v2329_v24 = vsel %vm2094_vm0, %v366_v1, %v6655_v55  ;;  %v436_v55 = vld [vmem:[#allocation3 + $0x8d0] sm:$0xff]  ;;  %v6987_v1 = vpack.i.bf16 %v8953_v32, %v433_v35 }
 0x225   :  { %v6664_v14 = vpop.permute.xlu0 %6663  ;;  %v6671_v18 = vunpack.i.h.bf16 %v6669_v0  ;;  %v6670_v12 = vunpack.i.l.bf16 %v6669_v0  ;;  %v6997_v10 = vpack.i.bf16 %v436_v55, %v8965_v46 }
 0x226   :  { %v6666_v27 = vunpack.i.h.bf16 %v6664_v14  ;;  %v6665_v13 = vunpack.i.l.bf16 %v6664_v14  ;;  %6958 = vrot.lane.b32.xlu1 %v6957_v63, %s7907_s9  ;;  %v7596_v14 = vld [vmem:[#allocation3 + $0x610] sm:$0xff] }
 0x227   :  { %6953 = vrot.lane.b32.xlu0 %v6952_v11, %s7907_s9  ;;  %v2200_v38 = vsel %vm2159_vm1, %v2135_v26, %v6670_v12  ;;  %v2201_v36 = vsel %vm2159_vm1, %v2136_v5, %v6671_v18  ;;  %v6982_v11 = vpack.i.bf16 %v8957_v58, %v451_v43  ;;  %v7595_v5 = vld [vmem:[#allocation3 + $0x620] sm:$0xff] }
 0x228   :  { %3242 = vmatmul.mubr.bf16.gmra.mrb[28].mxu0 %v8634_v6  ;;  %v6679_v37 = vpop.permute.xlu1 %6678  ;;  %v2393_v31 = vsel %vm2159_vm1, %v2329_v24, %v6665_v13  ;;  %v2394_v52 = vsel %vm2159_vm1, %v2330_v21, %v6666_v27  ;;  %v6977_v6 = vpack.i.bf16 %v433_v35, %v8911_v40  ;;  %v7598_v27 = vld [vmem:[#allocation3 + $0x6a8] sm:$0xff] }
 0x229   :  { %3249 = vmatprep.mubr.bf16.mxu0 %v8675_v15  ;;  %v6674_v28 = vpop.permute.xlu0 %6673  ;;  %v6681_v41 = vunpack.i.h.bf16 %v6679_v37  ;;  %v6680_v45 = vunpack.i.l.bf16 %v6679_v37  ;;  %v437_v37 = vld [vmem:[#allocation3 + $0x8d8] sm:$0xff] }
 0x22a   :  { %v6676_v17 = vunpack.i.h.bf16 %v6674_v28  ;;  %v6675_v49 = vunpack.i.l.bf16 %v6674_v28  ;;  %6968 = vrot.lane.b32.xlu1 %v6967_v4, %s7893_s28  ;;  %v454_v4 = vld [vmem:[#allocation3 + $0x968] sm:$0xff] }
 0x22b   :  { %6963 = vrot.lane.b32.xlu0 %v6962_v34, %s7893_s28  ;;  %v2265_v15 = vsel %vm2224_vm2, %v2200_v38, %v6680_v45  ;;  %v2266_v53 = vsel %vm2224_vm2, %v2201_v36, %v6681_v41  ;;  %v455_v38 = vld [vmem:[#allocation3 + $0x970] sm:$0xff] }
 0x22c   :  { %v6689_v54 = vpop.permute.xlu1 %6688  ;;  %v2457_v23 = vsel %vm2224_vm2, %v2393_v31, %v6675_v49  ;;  %v2458_v42 = vsel %vm2224_vm2, %v2394_v52, %v6676_v17  ;;  %v8961_v51 = vpack.c.bf16 %v2266_v53, %v2265_v15  ;;  %v7002_v15 = vpack.i.bf16 %v455_v38, %v8957_v58  ;;  %v457_v53 = vld [vmem:[#allocation3 + $0x988] sm:$0xff] }
 0x22d   :  { %v6684_v40 = vpop.permute.xlu0 %6683  ;;  %v6691_v59 = vunpack.i.h.bf16 %v6689_v54  ;;  %v6690_v61 = vunpack.i.l.bf16 %v6689_v54  ;;  %v8963_v9 = vpack.c.bf16 %v2458_v42, %v2457_v23  ;;  %v8993_v54 = vld [vmem:[#allocation3 + $0x998] sm:$0xff] }
 0x22e   :  { %v6686_v62 = vunpack.i.h.bf16 %v6684_v40  ;;  %v6685_v63 = vunpack.i.l.bf16 %v6684_v40  ;;  %6978 = vrot.lane.b32.xlu1 %v6977_v6, %s7908_s4 }
 0x22f   :  { %6973 = vrot.lane.b32.xlu0 %v6972_v16, %s7908_s4  ;;  %3056 = vmatprep.mubr.bf16.mxu1 %v8963_v9  ;;  %v2138_v26 = vsel %vm2094_vm0, %v7595_v5, %v6691_v59  ;;  %v2137_v18 = vsel %vm2094_vm0, %v7596_v14, %v6690_v61  ;;  %v7007_v16 = vpack.i.bf16 %v437_v37, %v8953_v32  ;;  %v475_v59 = vld [vmem:[#allocation3 + $0xa20] sm:$0xff]  ;;  %v8998_v61 = vld [vmem:[#allocation3 + $0xa30] sm:$0xff]  ;;  %v9014_v14 = vld [vmem:[#allocation3 + $0xa28] sm:$0xff] }
 0x230   :  { %3250 = vmatmul.mubr.bf16.gmra.mrb[32].mxu0 %v8671_v8  ;;  %v6699_v0 = vpop.permute.xlu1 %6698  ;;  %3057 = vmatmul.mubr.bf16.gmra.mrb[20].mxu1 %v8961_v51  ;;  %v7597_v8 = vld [vmem:[#allocation3 + $0x6b8] sm:$0xff]  ;;  %v2331_v13 = vsel %vm2094_vm0, %v7598_v27, %v6685_v63  ;;  %v7017_v5 = vpack.i.bf16 %v8993_v54, %v457_v53  ;;  %v7602_v37 = vld [vmem:[#allocation3 + $0x6c8] sm:$0xff] }
 0x231   :  { %3257 = vmatprep.mubr.bf16.mxu0 %v8708_v22  ;;  %v6694_v12 = vpop.permute.xlu0 %6693  ;;  %v6701_v20 = vunpack.i.h.bf16 %v6699_v0  ;;  %v6700_v21 = vunpack.i.l.bf16 %v6699_v0  ;;  %v2332_v24 = vsel %vm2094_vm0, %v7597_v8, %v6686_v62  ;;  %v6992_v22 = vpack.i.bf16 %v454_v4, %v8973_v3  ;;  %v9007_v0 = vld [vmem:[#allocation3 + $0x990] sm:$0xff] }
 0x232   :  { %v6696_v34 = vunpack.i.h.bf16 %v6694_v12  ;;  %v6695_v35 = vunpack.i.l.bf16 %v6694_v12  ;;  %6988 = vrot.lane.b32.xlu1 %v6987_v1, %s7907_s9  ;;  %v7600_v8 = vld [vmem:[#allocation3 + $0x630] sm:$0xff] }
 0x233   :  { %6983 = vrot.lane.b32.xlu0 %v6982_v11, %s7907_s9  ;;  %v2202_v36 = vsel %vm2159_vm1, %v2137_v18, %v6700_v21  ;;  %v2203_v28 = vsel %vm2159_vm1, %v2138_v26, %v6701_v20  ;;  %v7012_v26 = vpack.i.bf16 %v8998_v61, %v475_v59  ;;  %v9016_v18 = vld [vmem:[#allocation3 + $0xa38] sm:$0xff]  ;;  %v7599_v20 = vld [vmem:[#allocation3 + $0x640] sm:$0xff] }
 0x234   :  { %v6709_v43 = vpop.permute.xlu1 %6708  ;;  %v2395_v52 = vsel %vm2159_vm1, %v2331_v13, %v6695_v35  ;;  %v2396_v17 = vsel %vm2159_vm1, %v2332_v24, %v6696_v34  ;;  %v7601_v35 = vld [vmem:[#allocation3 + $0x6d8] sm:$0xff] }
 0x235   :  { %v6704_v41 = vpop.permute.xlu0 %6703  ;;  %v6711_v45 = vunpack.i.h.bf16 %v6709_v43  ;;  %v6710_v31 = vunpack.i.l.bf16 %v6709_v43  ;;  %v9038_v59 = vld [vmem:[#allocation3 + $0x9b8] sm:$0xff] }
 0x236   :  { %v6706_v49 = vunpack.i.h.bf16 %v6704_v41  ;;  %v6705_v6 = vunpack.i.l.bf16 %v6704_v41  ;;  %6998 = vrot.lane.b32.xlu1 %v6997_v10, %s7893_s28  ;;  %v461_v41 = vld [vmem:[#allocation3 + $0x9a8] sm:$0xff] }
 0x237   :  { %6993 = vrot.lane.b32.xlu0 %v6992_v22, %s7893_s28  ;;  %v2267_v23 = vsel %vm2224_vm2, %v2202_v36, %v6710_v31  ;;  %v2268_v42 = vsel %vm2224_vm2, %v2203_v28, %v6711_v45  ;;  %v7022_v28 = vpack.i.bf16 %v9016_v18, %v9014_v14  ;;  %v479_v31 = vld [vmem:[#allocation3 + $0xa40] sm:$0xff] }
 0x238   :  { %3258 = vmatmul.mubr.bf16.gmra.mrb[36].mxu0 %v8704_v7  ;;  %v6719_v40 = vpop.permute.xlu1 %6718  ;;  %v2459_v55 = vsel %vm2224_vm2, %v2395_v52, %v6705_v6  ;;  %v2460_v32 = vsel %vm2224_vm2, %v2396_v17, %v6706_v49  ;;  %v9002_v62 = vpack.c.bf16 %v2268_v42, %v2267_v23  ;;  %v460_v7 = vld [vmem:[#allocation3 + $0x9a0] sm:$0xff] }
 0x239   :  { %3265 = vmatprep.mubr.bf16.mxu0 %v8746_v30  ;;  %v6714_v58 = vpop.permute.xlu0 %6713  ;;  %v6721_v63 = vunpack.i.h.bf16 %v6719_v40  ;;  %v6720_v1 = vunpack.i.l.bf16 %v6719_v40  ;;  %v9005_v11 = vpack.c.bf16 %v2460_v32, %v2459_v55  ;;  %v7027_v12 = vpack.i.bf16 %v460_v7, %v9007_v0 }
 0x23a   :  { %v6716_v4 = vunpack.i.h.bf16 %v6714_v58  ;;  %v6715_v10 = vunpack.i.l.bf16 %v6714_v58  ;;  %7008 = vrot.lane.b32.xlu1 %v7007_v16, %s7908_s4  ;;  %v7032_v40 = vpack.i.bf16 %v479_v31, %v8998_v61  ;;  %v9042_v58 = vld [vmem:[#allocation3 + $0xa50] sm:$0xff] }
 0x23b   :  { %7003 = vrot.lane.b32.xlu0 %v7002_v15, %s7908_s4  ;;  %3064 = vmatprep.mubr.bf16.mxu1 %v9005_v11  ;;  %v2140_v21 = vsel %vm2094_vm0, %v7599_v20, %v6721_v63  ;;  %v2139_v24 = vsel %vm2094_vm0, %v7600_v8, %v6720_v1  ;;  %v9050_v61 = vld [vmem:[#allocation3 + $0x9b0] sm:$0xff]  ;;  %v7047_v20 = vpack.i.bf16 %v9038_v59, %v461_v41 }
 0x23c   :  { %v6729_v30 = vpop.permute.xlu1 %6728  ;;  %3065 = vmatmul.mubr.bf16.gmra.mrb[24].mxu1 %v9002_v62  ;;  %v2334_v22 = vsel %vm2094_vm0, %v7601_v35, %v6716_v4  ;;  %v2333_v43 = vsel %vm2094_vm0, %v7602_v37, %v6715_v10 }
 0x23d   :  { %v6724_v27 = vpop.permute.xlu0 %6723  ;;  %v6731_v13 = vunpack.i.h.bf16 %v6729_v30  ;;  %v6730_v34 = vunpack.i.l.bf16 %v6729_v30 }
 0x23e   :  { %v6726_v38 = vunpack.i.h.bf16 %v6724_v27  ;;  %v6725_v36 = vunpack.i.l.bf16 %v6724_v27  ;;  %7018 = vrot.lane.b32.xlu1 %v7017_v5, %s7907_s9  ;;  %v9060_v27 = vld [vmem:[#allocation3 + $0xa58] sm:$0xff] }
 0x23f   :  { %7013 = vrot.lane.b32.xlu0 %v7012_v26, %s7907_s9  ;;  %v2204_v52 = vsel %vm2159_vm1, %v2139_v24, %v6730_v34  ;;  %v2205_v17 = vsel %vm2159_vm1, %v2140_v21, %v6731_v13  ;;  %v464_v26 = vld [vmem:[#allocation3 + $0x9c0] sm:$0xff]  ;;  %v7042_v21 = vpack.i.bf16 %v9042_v58, %v479_v31  ;;  %v9058_v24 = vld [vmem:[#allocation3 + $0xa48] sm:$0xff] }
 0x240   :  { %3266 = vmatmul.mubr.bf16.gmra.mrb[40].mxu0 %v8742_v25  ;;  %v6739_v45 = vpop.permute.xlu1 %6738  ;;  %v2397_v15 = vsel %vm2159_vm1, %v2333_v43, %v6725_v36  ;;  %v2398_v53 = vsel %vm2159_vm1, %v2334_v22, %v6726_v38  ;;  %v7037_v25 = vpack.i.bf16 %v461_v41, %v8993_v54  ;;  %v7057_v13 = vpack.i.bf16 %v464_v26, %v9050_v61  ;;  %v7603_v34 = vld [vmem:[#allocation3 + $0x660] sm:$0xff]  ;;  %v7604_v22 = vld [vmem:[#allocation3 + $0x650] sm:$0xff]  ;;  %v7605_v36 = vld [vmem:[#allocation3 + $0x6f8] sm:$0xff] }
 0x241   :  { %3273 = vmatprep.mubr.bf16.mxu0 %v8783_v44  ;;  %v6734_v49 = vpop.permute.xlu0 %6733  ;;  %v6741_v6 = vunpack.i.h.bf16 %v6739_v45  ;;  %v6740_v16 = vunpack.i.l.bf16 %v6739_v45  ;;  %v7606_v41 = vld [vmem:[#allocation3 + $0x6e8] sm:$0xff]  ;;  %v9086_v26 = vld [vmem:[#allocation3 + $0xa70] sm:$0xff] }
 0x242   :  { %v6736_v23 = vunpack.i.h.bf16 %v6734_v49  ;;  %v6735_v42 = vunpack.i.l.bf16 %v6734_v49  ;;  %7028 = vrot.lane.b32.xlu1 %v7027_v12, %s7893_s28 }
 0x243   :  { %7023 = vrot.lane.b32.xlu0 %v7022_v28, %s7893_s28  ;;  %v2269_v44 = vsel %vm2224_vm2, %v2204_v52, %v6740_v16  ;;  %v2270_v55 = vsel %vm2224_vm2, %v2205_v17, %v6741_v6  ;;  %v465_v17 = vld [vmem:[#allocation3 + $0x9c8] sm:$0xff]  ;;  %v483_v6 = vld [vmem:[#allocation3 + $0xa60] sm:$0xff] }
 0x244   :  { %v6749_v32 = vpop.permute.xlu1 %6748  ;;  %v2461_v63 = vsel %vm2224_vm2, %v2397_v15, %v6735_v42  ;;  %v2462_v1 = vsel %vm2224_vm2, %v2398_v53, %v6736_v23  ;;  %v9046_v7 = vpack.c.bf16 %v2270_v55, %v2269_v44 }
 0x245   :  { %v6744_v54 = vpop.permute.xlu0 %6743  ;;  %v6751_v4 = vunpack.i.h.bf16 %v6749_v32  ;;  %v6750_v10 = vunpack.i.l.bf16 %v6749_v32  ;;  %v9048_v5 = vpack.c.bf16 %v2462_v1, %v2461_v63  ;;  %v7067_v32 = vpack.i.bf16 %v465_v17, %v9038_v59  ;;  %v9081_v1 = vld [vmem:[#allocation3 + $0x9d8] sm:$0xff] }
 0x246   :  { %v6746_v30 = vunpack.i.h.bf16 %v6744_v54  ;;  %v6745_v12 = vunpack.i.l.bf16 %v6744_v54  ;;  %7038 = vrot.lane.b32.xlu1 %v7037_v25, %s7908_s4  ;;  %v7062_v63 = vpack.i.bf16 %v483_v6, %v9042_v58 }
 0x247   :  { %7033 = vrot.lane.b32.xlu0 %v7032_v40, %s7908_s4  ;;  %3072 = vmatprep.mubr.bf16.mxu1 %v9048_v5  ;;  %v2142_v35 = vsel %vm2094_vm0, %v7603_v34, %v6751_v4  ;;  %v2141_v37 = vsel %vm2094_vm0, %v7604_v22, %v6750_v10  ;;  %v468_v34 = vld [vmem:[#allocation3 + $0x9e0] sm:$0xff] }
 0x248   :  { %3274 = vmatmul.mubr.bf16.gmra.mrb[44].mxu0 %v8780_v2  ;;  %v6759_v8 = vpop.permute.xlu1 %6758  ;;  %3073 = vmatmul.mubr.bf16.gmra.mrb[28].mxu1 %v9046_v7  ;;  %v2336_v28 = vsel %vm2094_vm0, %v7605_v36, %v6746_v30  ;;  %v2335_v45 = vsel %vm2094_vm0, %v7606_v41, %v6745_v12  ;;  %v384_v22 = vld [vmem:[#allocation3 + $0x720] sm:$0xff]  ;;  %v486_v36 = vld [vmem:[#allocation3 + $0xa78] sm:$0xff]  ;;  %v7607_v41 = vld [vmem:[#allocation3 + $0x730] sm:$0xff] }
 0x249   :  { %3281 = vmatprep.mubr.bf16.mxu0 %v8817_v50  ;;  %v6754_v43 = vpop.permute.xlu0 %6753  ;;  %v6761_v38 = vunpack.i.h.bf16 %v6759_v8  ;;  %v6760_v2 = vunpack.i.l.bf16 %v6759_v8  ;;  %v7052_v50 = vpack.i.bf16 %v9060_v27, %v9058_v24 }
 0x24a   :  { %v6756_v31 = vunpack.i.h.bf16 %v6754_v43  ;;  %v6755_v52 = vunpack.i.l.bf16 %v6754_v43  ;;  %7048 = vrot.lane.b32.xlu1 %v7047_v20, %s7907_s9  ;;  %v402_v43 = vld [vmem:[#allocation3 + $0x7b8] sm:$0xff] }
 0x24b   :  { %7043 = vrot.lane.b32.xlu0 %v7042_v21, %s7907_s9  ;;  %v2206_v16 = vsel %vm2159_vm1, %v2141_v37, %v6760_v2  ;;  %v2207_v15 = vsel %vm2159_vm1, %v2142_v35, %v6761_v38  ;;  %v7077_v37 = vpack.i.bf16 %v9081_v1, %v465_v17  ;;  %v9102_v2 = vld [vmem:[#allocation3 + $0xa68] sm:$0xff] }
 0x24c   :  { %v6769_v49 = vpop.permute.xlu1 %6768  ;;  %v2399_v25 = vsel %vm2159_vm1, %v2335_v45, %v6755_v52  ;;  %v2400_v40 = vsel %vm2159_vm1, %v2336_v28, %v6756_v31 }
 0x24d   :  { %v6764_v53 = vpop.permute.xlu0 %6763  ;;  %v6771_v23 = vunpack.i.h.bf16 %v6769_v49  ;;  %v6770_v42 = vunpack.i.l.bf16 %v6769_v49  ;;  %v7608_v49 = vld [vmem:[#allocation3 + $0x7c8] sm:$0xff] }
 0x24e   :  { %v6766_v44 = vunpack.i.h.bf16 %v6764_v53  ;;  %v6765_v55 = vunpack.i.l.bf16 %v6764_v53  ;;  %7058 = vrot.lane.b32.xlu1 %v7057_v13, %s7893_s28  ;;  %v9095_v13 = vld [vmem:[#allocation3 + $0x9d0] sm:$0xff] }
 0x24f   :  { %7053 = vrot.lane.b32.xlu0 %v7052_v50, %s7893_s28  ;;  %v2271_v54 = vsel %vm2224_vm2, %v2206_v16, %v6770_v42  ;;  %v2272_v4 = vsel %vm2224_vm2, %v2207_v15, %v6771_v23  ;;  %v7087_v28 = vpack.i.bf16 %v468_v34, %v9095_v13  ;;  %v7082_v23 = vpack.i.bf16 %v486_v36, %v9102_v2  ;;  %v469_v42 = vld [vmem:[#allocation3 + $0x9e8] sm:$0xff]  ;;  %v472_v36 = vld [vmem:[#allocation3 + $0xa00] sm:$0xff] }
 0x250   :  { %3282 = vmatmul.mubr.bf16.gmra.mrb[48].mxu0 %v8815_v48  ;;  %v6779_v10 = vpop.permute.xlu1 %6778  ;;  %v2463_v30 = vsel %vm2224_vm2, %v2399_v25, %v6765_v55  ;;  %v2464_v12 = vsel %vm2224_vm2, %v2400_v40, %v6766_v44  ;;  %v9090_v59 = vpack.c.bf16 %v2272_v4, %v2271_v54  ;;  %v487_v40 = vld [vmem:[#allocation3 + $0xa80] sm:$0xff] }
 0x251   :  { %3289 = vmatprep.mubr.bf16.mxu0 %v8853_v56  ;;  %v6774_v58 = vpop.permute.xlu0 %6773  ;;  %v6781_v20 = vunpack.i.h.bf16 %v6779_v10  ;;  %v6780_v21 = vunpack.i.l.bf16 %v6779_v10  ;;  %v9093_v8 = vpack.c.bf16 %v2464_v12, %v2463_v30  ;;  %v7072_v56 = vpack.i.bf16 %v9086_v26, %v483_v6 }
 0x252   :  { %v6776_v48 = vunpack.i.h.bf16 %v6774_v58  ;;  %v6775_v35 = vunpack.i.l.bf16 %v6774_v58  ;;  %7068 = vrot.lane.b32.xlu1 %v7067_v32, %s7908_s4  ;;  %v7092_v58 = vpack.i.bf16 %v487_v40, %v9086_v26  ;;  %v9135_v26 = vld [vmem:[#allocation3 + $0x9f0] sm:$0xff] }
 0x253   :  { %7063 = vrot.lane.b32.xlu0 %v7062_v63, %s7908_s4  ;;  %3080 = vmatprep.mubr.bf16.mxu1 %v9093_v8  ;;  %v2144_v45 = vsel %vm2094_vm0, %v7607_v41, %v6781_v20  ;;  %v2143_v31 = vsel %vm2094_vm0, %v384_v22, %v6780_v21  ;;  %v9123_v20 = vld [vmem:[#allocation3 + $0x9f8] sm:$0xff] }
 0x254   :  { %v6789_v38 = vpop.permute.xlu1 %6788  ;;  %3081 = vmatmul.mubr.bf16.gmra.mrb[32].mxu1 %v9090_v59  ;;  %v2338_v6 = vsel %vm2094_vm0, %v7608_v49, %v6776_v48  ;;  %v2337_v16 = vsel %vm2094_vm0, %v402_v43, %v6775_v35  ;;  %v9127_v48 = vld [vmem:[#allocation3 + $0xa90] sm:$0xff]  ;;  %v7117_v49 = vpack.i.bf16 %v472_v36, %v9135_v26 }
 0x255   :  { %v6784_v52 = vpop.permute.xlu0 %6783  ;;  %v6791_v50 = vunpack.i.h.bf16 %v6789_v38  ;;  %v6790_v17 = vunpack.i.l.bf16 %v6789_v38 }
 0x256   :  { %v6786_v15 = vunpack.i.h.bf16 %v6784_v52  ;;  %v6785_v53 = vunpack.i.l.bf16 %v6784_v52  ;;  %7078 = vrot.lane.b32.xlu1 %v7077_v37, %s7907_s9 }
 0x257   :  { %7073 = vrot.lane.b32.xlu0 %v7072_v56, %s7907_s9  ;;  %v2208_v44 = vsel %vm2159_vm1, %v2143_v31, %v6790_v17  ;;  %v2209_v55 = vsel %vm2159_vm1, %v2144_v45, %v6791_v50  ;;  %v7107_v45 = vpack.i.bf16 %v9123_v20, %v469_v42  ;;  %v7102_v31 = vpack.i.bf16 %v9127_v48, %v487_v40  ;;  %v9143_v50 = vld [vmem:[#allocation3 + $0xa88] sm:$0xff]  ;;  %v490_v17 = vld [vmem:[#allocation3 + $0xa98] sm:$0xff] }
 0x258   :  { %3290 = vmatmul.mubr.bf16.gmra.mrb[52].mxu0 %v8850_v47  ;;  %v6799_v25 = vpop.permute.xlu1 %6798  ;;  %v2401_v4 = vsel %vm2159_vm1, %v2337_v16, %v6785_v53  ;;  %v2402_v10 = vsel %vm2159_vm1, %v2338_v6, %v6786_v15  ;;  %v7097_v47 = vpack.i.bf16 %v469_v42, %v9081_v1  ;;  %v7609_v6 = vld [vmem:[#allocation3 + $0x750] sm:$0xff]  ;;  %v7610_v15 = vld [vmem:[#allocation3 + $0x740] sm:$0xff] }
 0x259   :  { %3297 = vmatprep.mubr.bf16.mxu0 %v8887_v39  ;;  %v6794_v32 = vpop.permute.xlu0 %6793  ;;  %v6801_v63 = vunpack.i.h.bf16 %v6799_v25  ;;  %v6800_v54 = vunpack.i.l.bf16 %v6799_v25 }
 0x25a   :  { %v6796_v30 = vunpack.i.h.bf16 %v6794_v32  ;;  %v6795_v12 = vunpack.i.l.bf16 %v6794_v32  ;;  %7088 = vrot.lane.b32.xlu1 %v7087_v28, %s7893_s28 }
 0x25b   :  { %7083 = vrot.lane.b32.xlu0 %v7082_v23, %s7893_s28  ;;  %v2273_v39 = vsel %vm2224_vm2, %v2208_v44, %v6800_v54  ;;  %v2274_v21 = vsel %vm2224_vm2, %v2209_v55, %v6801_v63  ;;  %v7612_v44 = vld [vmem:[#allocation3 + $0x7d8] sm:$0xff]  ;;  %v473_v54 = vld [vmem:[#allocation3 + $0xa08] sm:$0xff] }
 0x25c   :  { %v6809_v34 = vpop.permute.xlu1 %6808  ;;  %v2465_v35 = vsel %vm2224_vm2, %v2401_v4, %v6795_v12  ;;  %v2466_v22 = vsel %vm2224_vm2, %v2402_v10, %v6796_v30  ;;  %v9131_v37 = vpack.c.bf16 %v2274_v21, %v2273_v39  ;;  %v491_v10 = vld [vmem:[#allocation3 + $0xaa0] sm:$0xff] }
 0x25d   :  { %v6804_v1 = vpop.permute.xlu0 %6803  ;;  %v6811_v43 = vunpack.i.h.bf16 %v6809_v34  ;;  %v6810_v56 = vunpack.i.l.bf16 %v6809_v34  ;;  %v9133_v38 = vpack.c.bf16 %v2466_v22, %v2465_v35 }
 0x25e   :  { %v6806_v28 = vunpack.i.h.bf16 %v6804_v1  ;;  %v6805_v41 = vunpack.i.l.bf16 %v6804_v1  ;;  %7098 = vrot.lane.b32.xlu1 %v7097_v47, %s7908_s4  ;;  %v7127_v1 = vpack.i.bf16 %v473_v54, %v9123_v20 }
 0x25f   :  { %7093 = vrot.lane.b32.xlu0 %v7092_v58, %s7908_s4  ;;  %3088 = vmatprep.mubr.bf16.mxu1 %v9133_v38  ;;  %v2146_v16 = vsel %vm2094_vm0, %v7609_v6, %v6811_v43  ;;  %v2145_v53 = vsel %vm2094_vm0, %v7610_v15, %v6810_v56  ;;  %v7122_v43 = vpack.i.bf16 %v491_v10, %v9127_v48 }
 0x260   :  { %3298 = vmatmul.mubr.bf16.gmra.mrb[56].mxu0 %v8885_v57  ;;  %v6819_v52 = vpop.permute.xlu1 %6818  ;;  %3089 = vmatmul.mubr.bf16.gmra.mrb[36].mxu1 %v9131_v37  ;;  %v7611_v57 = vld [vmem:[#allocation3 + $0x7e8] sm:$0xff]  ;;  %v2339_v55 = vsel %vm2094_vm0, %v7612_v44, %v6805_v41  ;;  %v7616_v44 = vld [vmem:[#allocation3 + $0x7f8] sm:$0xff] }
 0x261   :  { %3305 = vmatprep.mubr.bf16.mxu0 %v8923_v60  ;;  %v6814_v23 = vpop.permute.xlu0 %6813  ;;  %v6821_v42 = vunpack.i.h.bf16 %v6819_v52  ;;  %v6820_v25 = vunpack.i.l.bf16 %v6819_v52  ;;  %v2340_v40 = vsel %vm2094_vm0, %v7611_v57, %v6806_v28  ;;  %v7112_v60 = vpack.i.bf16 %v490_v17, %v9143_v50  ;;  %v7615_v57 = vld [vmem:[#allocation3 + $0x808] sm:$0xff] }
 0x262   :  { %v6816_v32 = vunpack.i.h.bf16 %v6814_v23  ;;  %v6815_v63 = vunpack.i.l.bf16 %v6814_v23  ;;  %7108 = vrot.lane.b32.xlu1 %v7107_v45, %s7907_s9 }
 0x263   :  { %7103 = vrot.lane.b32.xlu0 %v7102_v31, %s7907_s9  ;;  %v2210_v30 = vsel %vm2159_vm1, %v2145_v53, %v6820_v25  ;;  %v2211_v12 = vsel %vm2159_vm1, %v2146_v16, %v6821_v42  ;;  %v7613_v16 = vld [vmem:[#allocation3 + $0x770] sm:$0xff] }
 0x264   :  { %v6829_v4 = vpop.permute.xlu1 %6828  ;;  %v2403_v21 = vsel %vm2159_vm1, %v2339_v55, %v6815_v63  ;;  %v2404_v34 = vsel %vm2159_vm1, %v2340_v40, %v6816_v32 }
 0x265   :  { %v6824_v47 = vpop.permute.xlu0 %6823  ;;  %v6831_v58 = vunpack.i.h.bf16 %v6829_v4  ;;  %v6830_v39 = vunpack.i.l.bf16 %v6829_v4 }
 0x266   :  { %v6826_v35 = vunpack.i.h.bf16 %v6824_v47  ;;  %v6825_v22 = vunpack.i.l.bf16 %v6824_v47  ;;  %7118 = vrot.lane.b32.xlu1 %v7117_v49, %s7893_s28 }
 0x267   :  { %7113 = vrot.lane.b32.xlu0 %v7112_v60, %s7893_s28  ;;  %v2275_v56 = vsel %vm2224_vm2, %v2210_v30, %v6830_v39  ;;  %v2276_v36 = vsel %vm2224_vm2, %v2211_v12, %v6831_v58 }
 0x268   :  { %3306 = vmatmul.mubr.bf16.gmra.mrb[60].mxu0 %v8920_v29  ;;  %v6839_v28 = vpop.permute.xlu1 %6838  ;;  %v2467_v41 = vsel %vm2224_vm2, %v2403_v21, %v6825_v22  ;;  %v2468_v45 = vsel %vm2224_vm2, %v2404_v34, %v6826_v35  ;;  %v9168_v31 = vpack.c.bf16 %v2276_v36, %v2275_v56 }
 0x269   :  { %3313 = vmatprep.mubr.bf16.mxu0 %v8963_v9  ;;  %v6834_v20 = vpop.permute.xlu0 %6833  ;;  %v6841_v52 = vunpack.i.h.bf16 %v6839_v28  ;;  %v6840_v17 = vunpack.i.l.bf16 %v6839_v28  ;;  %v9171_v49 = vpack.c.bf16 %v2468_v45, %v2467_v41  ;;  %v7614_v9 = vld [vmem:[#allocation3 + $0x760] sm:$0xff] }
 0x26a   :  { %v6836_v48 = vunpack.i.h.bf16 %v6834_v20  ;;  %v6835_v6 = vunpack.i.l.bf16 %v6834_v20  ;;  %7128 = vrot.lane.b32.xlu1 %v7127_v1, %s7908_s4 }
 0x26b   :  { %7123 = vrot.lane.b32.xlu0 %v7122_v43, %s7908_s4  ;;  %3096 = vmatprep.mubr.bf16.mxu1 %v9171_v49  ;;  %v2148_v15 = vsel %vm2094_vm0, %v7613_v16, %v6841_v52  ;;  %v2147_v53 = vsel %vm2094_vm0, %v7614_v9, %v6840_v17  ;;  %v7617_v52 = vld [vmem:[#allocation3 + $0x790] sm:$0xff]  ;;  %v7619_v9 = vld [vmem:[#allocation3 + $0x828] sm:$0xff] }
 0x26c   :  { %v6849_v29 = vpop.permute.xlu1 %6848  ;;  %3097 = vmatmul.mubr.bf16.gmra.mrb[40].mxu1 %v9168_v31  ;;  %v2342_v40 = vsel %vm2094_vm0, %v7615_v57, %v6836_v48  ;;  %v2341_v55 = vsel %vm2094_vm0, %v7616_v44, %v6835_v6  ;;  %v7618_v48 = vld [vmem:[#allocation3 + $0x780] sm:$0xff] }
 0x26d   :  { %v6844_v23 = vpop.permute.xlu0 %6843  ;;  %v6851_v42 = vunpack.i.h.bf16 %v6849_v29  ;;  %v6850_v25 = vunpack.i.l.bf16 %v6849_v29 }
 0x26e   :  { %v6846_v32 = vunpack.i.h.bf16 %v6844_v23  ;;  %v6845_v63 = vunpack.i.l.bf16 %v6844_v23  ;;  %v7620_v23 = vld [vmem:[#allocation3 + $0x818] sm:$0xff] }
 0x26f   :  { %v2212_v54 = vsel %vm2159_vm1, %v2147_v53, %v6850_v25  ;;  %v2213_v4 = vsel %vm2159_vm1, %v2148_v15, %v6851_v42 }
 0x270   :  { %3314 = vmatmul.mubr.bf16.gmra.mrb[64].mxu0 %v8961_v51  ;;  %v6859_v60 = vpop.permute.xlu1 %6858  ;;  %v2405_v47 = vsel %vm2159_vm1, %v2341_v55, %v6845_v63  ;;  %v2406_v58 = vsel %vm2159_vm1, %v2342_v40, %v6846_v32 }
 0x271   :  { %3321 = vmatprep.mubr.bf16.mxu0 %v9005_v11  ;;  %v6854_v10 = vpop.permute.xlu0 %6853  ;;  %v6861_v30 = vunpack.i.h.bf16 %v6859_v60  ;;  %v6860_v12 = vunpack.i.l.bf16 %v6859_v60 }
 0x272   :  { %v6856_v39 = vunpack.i.h.bf16 %v6854_v10  ;;  %v6855_v21 = vunpack.i.l.bf16 %v6854_v10 }
 0x273   :  { %v2277_v34 = vsel %vm2224_vm2, %v2212_v54, %v6860_v12  ;;  %v2278_v51 = vsel %vm2224_vm2, %v2213_v4, %v6861_v30 }
 0x274   :  { %v6869_v35 = vpop.permute.xlu1 %6868  ;;  %v2469_v22 = vsel %vm2224_vm2, %v2405_v47, %v6855_v21  ;;  %v2470_v1 = vsel %vm2224_vm2, %v2406_v58, %v6856_v39  ;;  %v9191_v43 = vpack.c.bf16 %v2278_v51, %v2277_v34 }
 0x275   :  { %v6864_v11 = vpop.permute.xlu0 %6863  ;;  %v6871_v56 = vunpack.i.h.bf16 %v6869_v35  ;;  %v6870_v36 = vunpack.i.l.bf16 %v6869_v35  ;;  %v9193_v28 = vpack.c.bf16 %v2470_v1, %v2469_v22 }
 0x276   :  { %v6866_v41 = vunpack.i.h.bf16 %v6864_v11  ;;  %v6865_v45 = vunpack.i.l.bf16 %v6864_v11  ;;  %v420_v11 = vld [vmem:[#allocation3 + $0x850] sm:$0xff] }
 0x277   :  { %3104 = vmatprep.mubr.bf16.mxu1 %v9193_v28  ;;  %v2150_v17 = vsel %vm2094_vm0, %v7617_v52, %v6871_v56  ;;  %v2149_v6 = vsel %vm2094_vm0, %v7618_v48, %v6870_v36  ;;  %v438_v56 = vld [vmem:[#allocation3 + $0x8e8] sm:$0xff]  ;;  %v7621_v36 = vld [vmem:[#allocation3 + $0x860] sm:$0xff] }
 0x278   :  { %3322 = vmatmul.mubr.bf16.gmra.mrb[68].mxu0 %v9002_v62  ;;  %v6879_v20 = vpop.permute.xlu1 %6878  ;;  %3105 = vmatmul.mubr.bf16.gmra.mrb[44].mxu1 %v9191_v43  ;;  %v2344_v53 = vsel %vm2094_vm0, %v7619_v9, %v6866_v41  ;;  %v2343_v62 = vsel %vm2094_vm0, %v7620_v23, %v6865_v45 }
 0x279   :  { %3329 = vmatprep.mubr.bf16.mxu0 %v9048_v5  ;;  %v6874_v29 = vpop.permute.xlu0 %6873  ;;  %v6881_v16 = vunpack.i.h.bf16 %v6879_v20  ;;  %v6880_v15 = vunpack.i.l.bf16 %v6879_v20 }
 0x27a   :  { %v6876_v42 = vunpack.i.h.bf16 %v6874_v29  ;;  %v6875_v25 = vunpack.i.l.bf16 %v6874_v29 }
 0x27b   :  { %v2214_v5 = vsel %vm2159_vm1, %v2149_v6, %v6880_v15  ;;  %v2215_v40 = vsel %vm2159_vm1, %v2150_v17, %v6881_v16  ;;  %v7622_v17 = vld [vmem:[#allocation3 + $0x8f8] sm:$0xff] }
 0x27c   :  { %v6889_v57 = vpop.permute.xlu1 %6888  ;;  %v2407_v63 = vsel %vm2159_vm1, %v2343_v62, %v6875_v25  ;;  %v2408_v60 = vsel %vm2159_vm1, %v2344_v53, %v6876_v42 }
 0x27d   :  { %v6884_v44 = vpop.permute.xlu0 %6883  ;;  %v6891_v55 = vunpack.i.h.bf16 %v6889_v57  ;;  %v6890_v32 = vunpack.i.l.bf16 %v6889_v57 }
 0x27e   :  { %v6886_v54 = vunpack.i.h.bf16 %v6884_v44  ;;  %v6885_v4 = vunpack.i.l.bf16 %v6884_v44 }
 0x27f   :  { %v2279_v10 = vsel %vm2224_vm2, %v2214_v5, %v6890_v32  ;;  %v2280_v30 = vsel %vm2224_vm2, %v2215_v40, %v6891_v55 }
 0x280   :  { %3330 = vmatmul.mubr.bf16.gmra.mrb[72].mxu0 %v9046_v7  ;;  %v6899_v12 = vpop.permute.xlu1 %6898  ;;  %v2471_v47 = vsel %vm2224_vm2, %v2407_v63, %v6885_v4  ;;  %v2472_v58 = vsel %vm2224_vm2, %v2408_v60, %v6886_v54  ;;  %v9212_v39 = vpack.c.bf16 %v2280_v30, %v2279_v10 }
 0x281   :  { %3337 = vmatprep.mubr.bf16.mxu0 %v9093_v8  ;;  %v6894_v21 = vpop.permute.xlu0 %6893  ;;  %v6901_v34 = vunpack.i.h.bf16 %v6899_v12  ;;  %v6900_v51 = vunpack.i.l.bf16 %v6899_v12  ;;  %v9215_v35 = vpack.c.bf16 %v2472_v58, %v2471_v47  ;;  %v7623_v58 = vld [vmem:[#allocation3 + $0x880] sm:$0xff] }
 0x282   :  { %v6896_v22 = vunpack.i.h.bf16 %v6894_v21  ;;  %v6895_v1 = vunpack.i.l.bf16 %v6894_v21 }
 0x283   :  { %3112 = vmatprep.mubr.bf16.mxu1 %v9215_v35  ;;  %v2152_v41 = vsel %vm2094_vm0, %v7621_v36, %v6901_v34  ;;  %v2151_v45 = vsel %vm2094_vm0, %v420_v11, %v6900_v51  ;;  %v7624_v34 = vld [vmem:[#allocation3 + $0x870] sm:$0xff]  ;;  %v7626_v36 = vld [vmem:[#allocation3 + $0x908] sm:$0xff] }
 0x284   :  { %v6909_v7 = vpop.permute.xlu1 %6908  ;;  %3113 = vmatmul.mubr.bf16.gmra.mrb[48].mxu1 %v9212_v39  ;;  %v2346_v48 = vsel %vm2094_vm0, %v7622_v17, %v6896_v22  ;;  %v2345_v6 = vsel %vm2094_vm0, %v438_v56, %v6895_v1  ;;  %v7625_v56 = vld [vmem:[#allocation3 + $0x918] sm:$0xff] }
 0x285   :  { %v6904_v8 = vpop.permute.xlu0 %6903  ;;  %v6911_v20 = vunpack.i.h.bf16 %v6909_v7  ;;  %v6910_v52 = vunpack.i.l.bf16 %v6909_v7 }
 0x286   :  { %v6906_v29 = vunpack.i.h.bf16 %v6904_v8  ;;  %v6905_v16 = vunpack.i.l.bf16 %v6904_v8 }
 0x287   :  { %v2216_v9 = vsel %vm2159_vm1, %v2151_v45, %v6910_v52  ;;  %v2217_v53 = vsel %vm2159_vm1, %v2152_v41, %v6911_v20 }
 0x288   :  { %3338 = vmatmul.mubr.bf16.gmra.mrb[76].mxu0 %v9090_v59  ;;  %v6919_v15 = vpop.permute.xlu1 %6918  ;;  %v2409_v25 = vsel %vm2159_vm1, %v2345_v6, %v6905_v16  ;;  %v2410_v57 = vsel %vm2159_vm1, %v2346_v48, %v6906_v29 }
 0x289   :  { %3345 = vmatprep.mubr.bf16.mxu0 %v9133_v38  ;;  %v6914_v23 = vpop.permute.xlu0 %6913  ;;  %v6921_v62 = vunpack.i.h.bf16 %v6919_v15  ;;  %v6920_v42 = vunpack.i.l.bf16 %v6919_v15 }
 0x28a   :  { %v6916_v5 = vunpack.i.h.bf16 %v6914_v23  ;;  %v6915_v40 = vunpack.i.l.bf16 %v6914_v23 }
 0x28b   :  { %v2281_v44 = vsel %vm2224_vm2, %v2216_v9, %v6920_v42  ;;  %v2282_v59 = vsel %vm2224_vm2, %v2217_v53, %v6921_v62 }
 0x28c   :  { %v6929_v55 = vpop.permute.xlu1 %6928  ;;  %v2473_v32 = vsel %vm2224_vm2, %v2409_v25, %v6915_v40  ;;  %v2474_v63 = vsel %vm2224_vm2, %v2410_v57, %v6916_v5  ;;  %v9233_v60 = vpack.c.bf16 %v2282_v59, %v2281_v44 }
 0x28d   :  { %v6924_v38 = vpop.permute.xlu0 %6923  ;;  %v6931_v54 = vunpack.i.h.bf16 %v6929_v55  ;;  %v6930_v4 = vunpack.i.l.bf16 %v6929_v55  ;;  %v9235_v10 = vpack.c.bf16 %v2474_v63, %v2473_v32  ;;  %v7627_v63 = vld [vmem:[#allocation3 + $0x890] sm:$0xff] }
 0x28e   :  { %v6926_v30 = vunpack.i.h.bf16 %v6924_v38  ;;  %v6925_v12 = vunpack.i.l.bf16 %v6924_v38 }
 0x28f   :  { %3120 = vmatprep.mubr.bf16.mxu1 %v9235_v10  ;;  %v2154_v21 = vsel %vm2094_vm0, %v7623_v58, %v6931_v54  ;;  %v2153_v51 = vsel %vm2094_vm0, %v7624_v34, %v6930_v4 }
 0x290   :  { %3346 = vmatmul.mubr.bf16.gmra.mrb[80].mxu0 %v9131_v37  ;;  %v6939_v47 = vpop.permute.xlu1 %6938  ;;  %3121 = vmatmul.mubr.bf16.gmra.mrb[52].mxu1 %v9233_v60  ;;  %v2348_v7 = vsel %vm2094_vm0, %v7625_v56, %v6926_v30  ;;  %v2347_v37 = vsel %vm2094_vm0, %v7626_v36, %v6925_v12  ;;  %v7628_v12 = vld [vmem:[#allocation3 + $0x928] sm:$0xff] }
 0x291   :  { %3353 = vmatprep.mubr.bf16.mxu0 %v9171_v49  ;;  %v6934_v22 = vpop.permute.xlu0 %6933  ;;  %v6941_v1 = vunpack.i.h.bf16 %v6939_v47  ;;  %v6940_v11 = vunpack.i.l.bf16 %v6939_v47 }
 0x292   :  { %v6936_v41 = vunpack.i.h.bf16 %v6934_v22  ;;  %v6935_v45 = vunpack.i.l.bf16 %v6934_v22 }
 0x293   :  { %v2218_v49 = vsel %vm2159_vm1, %v2153_v51, %v6940_v11  ;;  %v2219_v20 = vsel %vm2159_vm1, %v2154_v21, %v6941_v1 }
 0x294   :  { %v6949_v8 = vpop.permute.xlu1 %6948  ;;  %v2411_v6 = vsel %vm2159_vm1, %v2347_v37, %v6935_v45  ;;  %v2412_v29 = vsel %vm2159_vm1, %v2348_v7, %v6936_v41 }
 0x295   :  { %v6944_v52 = vpop.permute.xlu0 %6943  ;;  %v6951_v17 = vunpack.i.h.bf16 %v6949_v8  ;;  %v6950_v48 = vunpack.i.l.bf16 %v6949_v8 }
 0x296   :  { %v6946_v16 = vunpack.i.h.bf16 %v6944_v52  ;;  %v6945_v15 = vunpack.i.l.bf16 %v6944_v52 }
 0x297   :  { %v2283_v9 = vsel %vm2224_vm2, %v2218_v49, %v6950_v48  ;;  %v2284_v53 = vsel %vm2224_vm2, %v2219_v20, %v6951_v17 }
 0x298   :  { %3354 = vmatmul.mubr.bf16.gmra.mrb[84].mxu0 %v9168_v31  ;;  %v6959_v23 = vpop.permute.xlu1 %6958  ;;  %v2475_v62 = vsel %vm2224_vm2, %v2411_v6, %v6945_v15  ;;  %v2476_v42 = vsel %vm2224_vm2, %v2412_v29, %v6946_v16  ;;  %v9254_v25 = vpack.c.bf16 %v2284_v53, %v2283_v9  ;;  %v7629_v15 = vld [vmem:[#allocation3 + $0x8b0] sm:$0xff] }
 0x299   :  { %3361 = vmatprep.mubr.bf16.mxu0 %v9193_v28  ;;  %v6954_v57 = vpop.permute.xlu0 %6953  ;;  %v6961_v5 = vunpack.i.h.bf16 %v6959_v23  ;;  %v6960_v40 = vunpack.i.l.bf16 %v6959_v23  ;;  %v9257_v44 = vpack.c.bf16 %v2476_v42, %v2475_v62 }
 0x29a   :  { %v6956_v59 = vunpack.i.h.bf16 %v6954_v57  ;;  %v6955_v55 = vunpack.i.l.bf16 %v6954_v57  ;;  %v7630_v57 = vld [vmem:[#allocation3 + $0x948] sm:$0xff] }
 0x29b   :  { %3128 = vmatprep.mubr.bf16.mxu1 %v9257_v44  ;;  %v2156_v31 = vsel %vm2094_vm0, %v8925_v19, %v6961_v5  ;;  %v2155_v38 = vsel %vm2094_vm0, %v7627_v63, %v6960_v40 }
 0x29c   :  { %v6969_v32 = vpop.permute.xlu1 %6968  ;;  %3129 = vmatmul.mubr.bf16.gmra.mrb[56].mxu1 %v9254_v25  ;;  %v2350_v30 = vsel %vm2094_vm0, %v8932_v33, %v6956_v59  ;;  %v2349_v47 = vsel %vm2094_vm0, %v7628_v12, %v6955_v55 }
 0x29d   :  { %v6964_v54 = vpop.permute.xlu0 %6963  ;;  %v6971_v28 = vunpack.i.h.bf16 %v6969_v32  ;;  %v6970_v4 = vunpack.i.l.bf16 %v6969_v32 }
 0x29e   :  { %v6966_v58 = vunpack.i.h.bf16 %v6964_v54  ;;  %v6965_v21 = vunpack.i.l.bf16 %v6964_v54 }
 0x29f   :  { %v2220_v34 = vsel %vm2159_vm1, %v2155_v38, %v6970_v4  ;;  %v2221_v19 = vsel %vm2159_vm1, %v2156_v31, %v6971_v28 }
 0x2a0   :  { %3362 = vmatmul.mubr.bf16.gmra.mrb[88].mxu0 %v9191_v43  ;;  %v6979_v51 = vpop.permute.xlu1 %6978  ;;  %v2413_v22 = vsel %vm2159_vm1, %v2349_v47, %v6965_v21  ;;  %v2414_v1 = vsel %vm2159_vm1, %v2350_v30, %v6966_v58 }
 0x2a1   :  { %3369 = vmatprep.mubr.bf16.mxu0 %v9215_v35  ;;  %v6974_v11 = vpop.permute.xlu0 %6973  ;;  %v6981_v33 = vunpack.i.h.bf16 %v6979_v51  ;;  %v6980_v56 = vunpack.i.l.bf16 %v6979_v51 }
 0x2a2   :  { %v6976_v7 = vunpack.i.h.bf16 %v6974_v11  ;;  %v6975_v36 = vunpack.i.l.bf16 %v6974_v11  ;;  %v474_v11 = vld [vmem:[#allocation3 + $0xa18] sm:$0xff] }
 0x2a3   :  { %v2285_v37 = vsel %vm2224_vm2, %v2220_v34, %v6980_v56  ;;  %v2286_v43 = vsel %vm2224_vm2, %v2221_v19, %v6981_v33  ;;  %v7429_v56 = vld [vmem:[#allocation8 + $0x40] sm:$0xff]  }
 0x2a4   :  { %v6989_v41 = vpop.permute.xlu1 %6988  ;;  %v2477_v45 = vsel %vm2224_vm2, %v2413_v22, %v6975_v36  ;;  %v2478_v8 = vsel %vm2224_vm2, %v2414_v1, %v6976_v7  ;;  %v9277_v49 = vpack.c.bf16 %v2286_v43, %v2285_v37  ;;  %5615 = vmatprep.subr.bf16.mxu1 %v7429_v56 }
 0x2a5   :  { %v6984_v20 = vpop.permute.xlu0 %6983  ;;  %v6991_v52 = vunpack.i.h.bf16 %v6989_v41  ;;  %v6990_v17 = vunpack.i.l.bf16 %v6989_v41  ;;  %v2590_v35 = vpack.c.bf16 %v2478_v8, %v2477_v45 }
 0x2a6   :  { %v6986_v48 = vunpack.i.h.bf16 %v6984_v20  ;;  %v6985_v6 = vunpack.i.l.bf16 %v6984_v20  ;;  %v456_v20 = vld [vmem:[#allocation3 + $0x980] sm:$0xff] }
 0x2a7   :  { %3136 = vmatprep.mubr.bf16.mxu1 %v2590_v35  ;;  %v2158_v16 = vsel %vm2094_vm0, %v8965_v46, %v6991_v52  ;;  %v2157_v9 = vsel %vm2094_vm0, %v7629_v15, %v6990_v17  ;;  %v7432_v15 = vld [vmem:[#allocation8 + $0x8] sm:$0xff]  }
 0x2a8   :  { %3370 = vmatmul.mubr.bf16.gmra.mrb[92].mxu0 %v9212_v39  ;;  %v6999_v29 = vpop.permute.xlu1 %6998  ;;  %3137 = vmatmul.mubr.bf16.gmra.mrb[60].mxu1 %v9277_v49  ;;  %v2352_v42 = vsel %vm2094_vm0, %v8973_v3, %v6986_v48  ;;  %v2351_v39 = vsel %vm2094_vm0, %v7630_v57, %v6985_v6 }
 0x2a9   :  { %3377 = vmatprep.mubr.bf16.mxu0 %v9235_v10  ;;  %v6994_v53 = vpop.permute.xlu0 %6993  ;;  %v7001_v23 = vunpack.i.h.bf16 %v6999_v29  ;;  %v7000_v62 = vunpack.i.l.bf16 %v6999_v29 }
 0x2aa   :  { %v6996_v5 = vunpack.i.h.bf16 %v6994_v53  ;;  %v6995_v40 = vunpack.i.l.bf16 %v6994_v53 }
 0x2ab   :  { %v2222_v59 = vsel %vm2159_vm1, %v2157_v9, %v7000_v62  ;;  %v2223_v10 = vsel %vm2159_vm1, %v2158_v16, %v7001_v23 }
 0x2ac   :  { %v7009_v55 = vpop.permute.xlu1 %7008  ;;  %v2415_v46 = vsel %vm2159_vm1, %v2351_v39, %v6995_v40  ;;  %v2416_v32 = vsel %vm2159_vm1, %v2352_v42, %v6996_v5  ;;  %v9314_v39 = vld [vmem:[#allocation12] ss:$0 sm:$0xff] }
 0x2ad   :  { %v7004_v31 = vpop.permute.xlu0 %7003  ;;  %v7011_v63 = vunpack.i.h.bf16 %v7009_v55  ;;  %v7010_v38 = vunpack.i.l.bf16 %v7009_v55 }
 0x2ae   :  { %v7006_v54 = vunpack.i.h.bf16 %v7004_v31  ;;  %v7005_v28 = vunpack.i.l.bf16 %v7004_v31 }
 0x2af   :  { %v2287_v3 = vsel %vm2224_vm2, %v2222_v59, %v7010_v38  ;;  %v2288_v4 = vsel %vm2224_vm2, %v2223_v10, %v7011_v63  ;;  %v7434_v38 = vld [vmem:[#allocation8 + $0x10] sm:$0xff]  }
 0x2b0   :  { %3378 = vmatmul.mubr.bf16.gmra.mrb[96].mxu0 %v9233_v60  ;;  %v7019_v30 = vpop.permute.xlu1 %7018  ;;  %v2479_v12 = vsel %vm2224_vm2, %v2415_v46, %v7005_v28  ;;  %v2480_v47 = vsel %vm2224_vm2, %v2416_v32, %v7006_v54  ;;  %v9297_v58 = vpack.c.bf16 %v2288_v4, %v2287_v3 }
 0x2b1   :  { %3385 = vmatprep.mubr.bf16.mxu0 %v9257_v44  ;;  %v7014_v21 = vpop.permute.xlu0 %7013  ;;  %v2592_v34 = vpack.c.bf16 %v2480_v47, %v2479_v12  ;;  %v7430_v44 = vld [vmem:[#allocation8] sm:$0xff]   ;;  %v7021_v41 = vunpack.i.h.bf16 %v7019_v30  ;;  %v7020_v45 = vunpack.i.l.bf16 %v7019_v30  ;;  %v7631_v47 = vld [vmem:[#allocation3 + $0x9a0] sm:$0xff] }
 0x2b2   :  { %v7016_v22 = vunpack.i.h.bf16 %v7014_v21  ;;  %v7015_v1 = vunpack.i.l.bf16 %v7014_v21  ;;  %5616 = vmatpush3.bf16.msra.mxu1 %v7430_v44 }
 0x2b3   :  { %3144 = vmatprep.mubr.bf16.mxu1 %v2592_v34  ;;  %v2481_v9 = vsel %vm2094_vm0, %v456_v20, %v7020_v45 }
 0x2b4   :  { %v7029_v19 = vpop.permute.xlu1 %7028  ;;  %3145 = vmatmul.mubr.bf16.gmra.mrb[64].mxu1 %v9297_v58  ;;  %v2506_v37 = vsel %vm2094_vm0, %v9014_v14, %v7016_v22  ;;  %v2505_v43 = vsel %vm2094_vm0, %v474_v11, %v7015_v1  ;;  %v2482_v14 = vsel %vm2094_vm0, %v9007_v0, %v7021_v41 }
 0x2b5   :  { %v7024_v51 = vpop.permute.xlu0 %7023  ;;  %v7031_v29 = vunpack.i.h.bf16 %v7029_v19  ;;  %v7030_v16 = vunpack.i.l.bf16 %v7029_v19 }
 0x2b6   :  { %v7026_v7 = vunpack.i.h.bf16 %v7024_v51  ;;  %v7025_v36 = vunpack.i.l.bf16 %v7024_v51 }
 0x2b7   :  { %v2489_v55 = vsel %vm2159_vm1, %v2481_v9, %v7030_v16  ;;  %v2490_v46 = vsel %vm2159_vm1, %v2482_v14, %v7031_v29 }
 0x2b8   :  { %3386 = vmatmul.mubr.bf16.gmra.mrb[100].mxu0 %v9254_v25  ;;  %v9302_v60 = vpop.permute.xlu1 %7038  ;;  %v2513_v48 = vsel %vm2159_vm1, %v2505_v43, %v7025_v36  ;;  %v2514_v6 = vsel %vm2159_vm1, %v2506_v37, %v7026_v7  ;;  %v7436_v43 = vld [vmem:[#allocation8 + $0x18] sm:$0xff]  }
 0x2b9   :  { %3393 = vmatprep.mubr.bf16.mxu0 %v2590_v35  ;;  %v7034_v33 = vpop.permute.xlu0 %7033  ;;  %v7431_v35 = vld [vmem:[#allocation8 + $0x48] sm:$0xff]   ;;  %v7041_v42 = vunpack.i.h.bf16 %v9302_v60  ;;  %v7040_v40 = vunpack.i.l.bf16 %v9302_v60 }
 0x2ba   :  { %v7036_v52 = vunpack.i.h.bf16 %v7034_v33  ;;  %v7035_v17 = vunpack.i.l.bf16 %v7034_v33  ;;  %5617 = vmatprep.subr.bf16.mxu1 %v7431_v35  ;;  %v7435_v33 = vld [vmem:[#allocation8 + $0x58] sm:$0xff]  }
 0x2bb   :  { %5618 = vmatpush3.bf16.msra.mxu1 %v7432_v15  ;;  %v9333_v11 = vsel %vm2224_vm2, %v2490_v46, %v7041_v42  ;;  %v7438_v42 = vld [vmem:[#allocation8 + $0x20] sm:$0xff]  }
 0x2bc   :  { %v7049_v8 = vpop.permute.xlu1 %7048  ;;  %v2521_v0 = vsel %vm2224_vm2, %v2513_v48, %v7035_v17  ;;  %v2522_v10 = vsel %vm2224_vm2, %v2514_v6, %v7036_v52 }
 0x2bd   :  { %v7044_v25 = vpop.permute.xlu0 %7043  ;;  %v7050_v57 = vunpack.i.l.bf16 %v7049_v8  ;;  %v7051_v59 = vunpack.i.h.bf16 %v7049_v8  ;;  %v2594_v22 = vpack.c.bf16 %v2522_v10, %v2521_v0 }
 0x2be   :  { %v7046_v53 = vunpack.i.h.bf16 %v7044_v25  ;;  %v7045_v23 = vunpack.i.l.bf16 %v7044_v25 }
 0x2bf   :  { %v2483_v21 = vsel %vm2094_vm0, %v7631_v47, %v7050_v57  ;;  %v7440_v47 = vld [vmem:[#allocation8 + $0x28] sm:$0xff]  }
 0x2c0   :  { %3394 = vmatmul.mubr.bf16.gmra.mrb[104].mxu0 %v9277_v49  ;;  %v7059_v62 = vpop.permute.xlu1 %7058  ;;  %v7433_v49 = vld [vmem:[#allocation8 + $0x50] sm:$0xff]   ;;  %v2508_v54 = vsel %vm2094_vm0, %v9058_v24, %v7046_v53  ;;  %v2507_v28 = vsel %vm2094_vm0, %v9016_v18, %v7045_v23  ;;  %v2484_v24 = vsel %vm2094_vm0, %v9050_v61, %v7051_v59  ;;  %v9330_v18 = vsel %vm2224_vm2, %v2489_v55, %v7040_v40 }
 0x2c1   :  { %3401 = vmatprep.mubr.bf16.mxu0 %v2592_v34  ;;  %v7054_v5 = vpop.permute.xlu0 %7053  ;;  %v7060_v30 = vunpack.i.l.bf16 %v7059_v62  ;;  %5619 = vmatprep.subr.bf16.mxu1 %v7433_v49  ;;  %v7061_v19 = vunpack.i.h.bf16 %v7059_v62  ;;  %v2593_v23 = vpack.c.bf16 %v9333_v11, %v9330_v18 }
 0x2c2   :  { %v7056_v31 = vunpack.i.h.bf16 %v7054_v5  ;;  %v7055_v63 = vunpack.i.l.bf16 %v7054_v5  ;;  %5620 = vmatpush3.bf16.msra.mxu1 %v7434_v38 }
 0x2c3   :  { %v3187_v32 = vpop.f32.mrb[0].mxu0  ;;  %v2491_v45 = vsel %vm2159_vm1, %v2483_v21, %v7060_v30  ;;  %5621 = vmatprep.subr.bf16.mxu1 %v7435_v33  ;;  %v2492_v52 = vsel %vm2159_vm1, %v2484_v24, %v7061_v19  ;;  %v7632_v30 = vld [vmem:[#allocation3 + $0x9c0] sm:$0xff] }
 0x2c4   :  { %v5875_v3 = vadd.f32 %v9314_v39, %v3187_v32  ;;  %v3189_v4 = vpop.f32.mrb[1].mxu0  ;;  %v7069_v12 = vpop.permute.xlu1 %7068  ;;  %v2515_v56 = vsel %vm2159_vm1, %v2507_v28, %v7055_v63  ;;  %v2516_v7 = vsel %vm2159_vm1, %v2508_v54, %v7056_v31 }
 0x2c5   :  { %v3190_v34 = vpop.f32.mrb[2].mxu0  ;;  %v7064_v51 = vpop.permute.xlu0 %7063  ;;  %v7070_v44 = vunpack.i.l.bf16 %v7069_v12  ;;  %v7071_v8 = vunpack.i.h.bf16 %v7069_v12 }
 0x2c6   :  { %v3192_v1 = vpop.f32.mrb[3].mxu0  ;;  %v7066_v60 = vunpack.i.h.bf16 %v7064_v51  ;;  %v7065_v36 = vunpack.i.l.bf16 %v7064_v51  ;;  %v3506_v41 = vmul.f32 0.2, %v5875_v3  ;;  %v9340_v61 = vadd.f32 %v9314_v39, %v3190_v34  ;;  %5622 = vmatpush3.bf16.msra.mxu1 %v7436_v43 }
 0x2c7   :  { %v9337_v37 = vpop.f32.mrb[0].mxu1  ;;  %vm3442_vm3 = vcmp.ge.f32.partialorder %v5875_v3, 0.0  ;;  %v9352_v62 = vsel %vm2224_vm2, %v2491_v45, %v7070_v44  ;;  %v9358_v0 = vsel %vm2224_vm2, %v2492_v52, %v7071_v8  ;;  %v7442_v8 = vld [vmem:[#allocation8 + $0x30] sm:$0xff]  }
 0x2c8   :  { %3402 = vmatmul.mubr.bf16.gmra.mrb[108].mxu0 %v9297_v58  ;;  %v7079_v20 = vpop.permute.xlu1 %7078  ;;  %v3020_v25 = vpop.f32.mrb[1].mxu1  ;;  %v2523_v16 = vsel %vm2224_vm2, %v2515_v56, %v7065_v36  ;;  %v2524_v15 = vsel %vm2224_vm2, %v2516_v7, %v7066_v60  ;;  %v7437_v58 = vld [vmem:[#allocation8 + $0x60] sm:$0xff]   ;;  %v3570_v57 = vsel %vm3442_vm3, %v5875_v3, %v3506_v41  ;;  %vm3443_vm4 = vcmp.ge.f32.partialorder %v9340_v61, 0.0  ;;  %v7439_v3 = vld [vmem:[#allocation8 + $0x68] sm:$0xff]   ;;  %v7441_v7 = vld [vmem:[#allocation8 + $0x70] sm:$0xff]  }
 0x2c9   :  { %v7074_v17 = vpop.permute.xlu0 %7073  ;;  %3409 = vmatprep.mubr.bf16.mxu0 %v2594_v22  ;;  %v9345_v35 = vpop.f32.mrb[2].mxu1  ;;  %v7081_v9 = vunpack.i.h.bf16 %v7079_v20  ;;  %v7080_v53 = vunpack.i.l.bf16 %v7079_v20  ;;  %5623 = vmatprep.subr.bf16.mxu1 %v7437_v58  ;;  %v2596_v31 = vpack.c.bf16 %v2524_v15, %v2523_v16  ;;  %v3507_v4 = vmul.f32 0.2, %v9340_v61 }
 0x2ca   :  { %v7076_v48 = vunpack.i.h.bf16 %v7074_v17  ;;  %v7075_v6 = vunpack.i.l.bf16 %v7074_v17  ;;  %v3023_v29 = vpop.f32.mrb[3].mxu1  ;;  %5624 = vmatpush3.bf16.msra.mxu1 %v7438_v42  ;;  %v2595_v41 = vpack.c.bf16 %v9358_v0, %v9352_v62 }
 0x2cb   :  { %v3195_v14 = vpop.f32.mrb[4].mxu0  ;;  %5625 = vmatprep.subr.bf16.mxu1 %v7439_v3  ;;  %v9382_v43 = vsel %vm3443_vm4, %v9340_v61, %v3507_v4 }
 0x2cc   :  { %v5877_v5 = vadd.f32 %v9314_v39, %v3195_v14  ;;  %v3197_v40 = vpop.f32.mrb[5].mxu0  ;;  %v7089_v59 = vpop.permute.xlu1 %7088  ;;  %v2510_v10 = vsel %vm2094_vm0, %v9102_v2, %v7076_v48  ;;  %v2509_v49 = vsel %vm2094_vm0, %v9060_v27, %v7075_v6  ;;  %v2486_v2 = vsel %vm2094_vm0, %v9095_v13, %v7081_v9 }
 0x2cd   :  { %v3198_v55 = vpop.f32.mrb[6].mxu0  ;;  %v7084_v46 = vpop.permute.xlu0 %7083  ;;  %v7090_v32 = vunpack.i.l.bf16 %v7089_v59  ;;  %v2485_v27 = vsel %vm2094_vm0, %v7632_v30, %v7080_v53  ;;  %v7091_v19 = vunpack.i.h.bf16 %v7089_v59 }
 0x2ce   :  { %vm3444_vm5 = vcmp.ge.f32.partialorder %v5877_v5, 0.0  ;;  %v3508_v63 = vmul.f32 0.2, %v5877_v5  ;;  %v5878_v38 = vadd.f32 %v9314_v39, %v3198_v55  ;;  %v3200_v54 = vpop.f32.mrb[7].mxu0  ;;  %v7086_v28 = vunpack.i.h.bf16 %v7084_v46  ;;  %5626 = vmatpush3.bf16.msra.mxu1 %v7440_v47 }
 0x2cf   :  { %v7085_v12 = vunpack.i.l.bf16 %v7084_v46  ;;  %v2493_v18 = vsel %vm2159_vm1, %v2485_v27, %v7090_v32  ;;  %v2494_v20 = vsel %vm2159_vm1, %v2486_v2, %v7091_v19  ;;  %5627 = vmatprep.subr.bf16.mxu1 %v7441_v7 }
 0x2d0   :  { %v9369_v21 = vsel %vm3444_vm5, %v5877_v5, %v3508_v63  ;;  %vm3445_vm6 = vcmp.ge.f32.partialorder %v5878_v38, 0.0  ;;  %v3509_v34 = vmul.f32 0.2, %v5878_v38  ;;  %3410 = vmatmul.mubr.bf16.gmra.mrb[112].mxu0 %v2593_v23  ;;  %v7099_v51 = vpop.permute.xlu1 %7098  ;;  %v2518_v1 = vsel %vm2159_vm1, %v2510_v10, %v7086_v28  ;;  %v7633_v28 = vld [vmem:[#allocation3 + $0xa78] sm:$0xff] }
 0x2d1   :  { %v7132_v22 = vpack.i.bf16 %v9369_v21, %v3570_v57  ;;  %v2517_v24 = vsel %vm2159_vm1, %v2509_v49, %v7085_v12  ;;  %v7094_v13 = vpop.permute.xlu0 %7093  ;;  %v7100_v60 = vunpack.i.l.bf16 %v7099_v51  ;;  %3417 = vmatprep.mubr.bf16.mxu0 %v2596_v31  ;;  %v7101_v44 = vunpack.i.h.bf16 %v7099_v51  ;;  %v7443_v57 = vld [vmem:[#allocation8 + $0x78] sm:$0xff]  }
 0x2d2   :  { %v7096_v11 = vunpack.i.h.bf16 %v7094_v13  ;;  %v7095_v33 = vunpack.i.l.bf16 %v7094_v13  ;;  %v9376_v56 = vsel %vm3445_vm6, %v5878_v38, %v3509_v34  ;;  %5628 = vmatpush3.bf16.msra.mxu1 %v7442_v8  ;;  %v7444_v49 = vld [vmem:[#allocation8 + $0x38] sm:$0xff]   ;;  %v7909_v38 = vmov 0.0  }
 0x2d3   :  { %v3203_v36 = vpop.f32.mrb[8].mxu0  ;;  %7133 = vrot.lane.b32.xlu0 %v7132_v22, %s7907_s9  ;;  %v9386_v45 = vpop.f32.mrb[4].mxu1  ;;  %v7137_v61 = vpack.i.bf16 %v9376_v56, %v9382_v43  ;;  %v9395_v14 = vsel %vm2224_vm2, %v2493_v18, %v7100_v60  ;;  %v2502_v10 = vsel %vm2224_vm2, %v2494_v20, %v7101_v44  ;;  %5629 = vmatprep.subr.bf16.mxu1 %v7443_v57 }
 0x2d4   :  { %v5879_v25 = vadd.f32 %v9314_v39, %v3203_v36  ;;  %v3205_v52 = vpop.f32.mrb[9].mxu0  ;;  %v7109_v17 = vpop.permute.xlu1 %7108  ;;  %v2525_v48 = vsel %vm2224_vm2, %v2517_v24, %v7095_v33  ;;  %v2526_v6 = vsel %vm2224_vm2, %v2518_v1, %v7096_v11  ;;  %v2597_v1 = vpack.c.bf16 %v2502_v10, %v9395_v14 }
 0x2d5   :  { %v3206_v29 = vpop.f32.mrb[10].mxu0  ;;  %v7104_v16 = vpop.permute.xlu0 %7103  ;;  %v7111_v15 = vunpack.i.h.bf16 %v7109_v17  ;;  %v2598_v58 = vpack.c.bf16 %v2526_v6, %v2525_v48  ;;  %v7110_v59 = vunpack.i.l.bf16 %v7109_v17 }
 0x2d6   :  { %vm3446_vm7 = vcmp.ge.f32.partialorder %v5879_v25, 0.0  ;;  %v3510_v9 = vmul.f32 0.2, %v5879_v25  ;;  %v5880_v53 = vadd.f32 %v9314_v39, %v3206_v29  ;;  %v3208_v23 = vpop.f32.mrb[11].mxu0  ;;  %v7106_v62 = vunpack.i.h.bf16 %v7104_v16  ;;  %v3028_v42 = vpop.f32.mrb[5].mxu1  ;;  %5630 = vmatpush3.bf16.msra.mxu1 %v7444_v49 }
 0x2d7   :  { %7138 = vrot.lane.b32.xlu0 %v7137_v61, %s7893_s28  ;;  %v7105_v5 = vunpack.i.l.bf16 %v7104_v16  ;;  %v2488_v40 = vsel %vm2094_vm0, %v9135_v26, %v7111_v15  ;;  %v9401_v0 = vpop.f32.mrb[6].mxu1 }
 0x2d8   :  { %v3574_v55 = vsel %vm3446_vm7, %v5879_v25, %v3510_v9  ;;  %vm3447_vm8 = vcmp.ge.f32.partialorder %v5880_v53, 0.0  ;;  %v3511_v46 = vmul.f32 0.2, %v5880_v53  ;;  %3418 = vmatmul.mubr.bf16.gmra.mrb[116].mxu0 %v2595_v41  ;;  %v2512_v32 = vsel %vm2094_vm0, %v9143_v50, %v7106_v62  ;;  %v7119_v31 = vpop.permute.xlu1 %7118  ;;  %v3031_v63 = vpop.f32.mrb[7].mxu1  ;;  %v7634_v50 = vld [vmem:[#allocation3 + $0x9e0] sm:$0xff] }
 0x2d9   :  { %v7142_v54 = vpack.i.bf16 %v3574_v55, %v7909_v38  ;;  %v7147_v26 = vpack.i.bf16 %v3574_v55, %v9369_v21  ;;  %v2511_v3 = vsel %vm2094_vm0, %v7633_v28, %v7105_v5  ;;  %v7114_v4 = vpop.permute.xlu0 %7113  ;;  %v7121_v2 = vunpack.i.h.bf16 %v7119_v31  ;;  %3425 = vmatprep.mubr.bf16.mxu0 %v2598_v58 }
 0x2da   :  { %v7116_v30 = vunpack.i.h.bf16 %v7114_v4  ;;  %v7115_v27 = vunpack.i.l.bf16 %v7114_v4  ;;  %v7120_v12 = vunpack.i.l.bf16 %v7119_v31  ;;  %v9409_v47 = vsel %vm3447_vm8, %v5880_v53, %v3511_v46 }
 0x2db   :  { %v2487_v34 = vsel %vm2094_vm0, %v7634_v50, %v7110_v59  ;;  %v3211_v19 = vpop.f32.mrb[12].mxu0  ;;  %7143 = vrot.lane.b32.xlu1 %v7142_v54, %s7907_s9  ;;  %7148 = vrot.lane.b32.xlu0 %v7147_v26, %s7908_s4  ;;  %v2496_v22 = vsel %vm2159_vm1, %v2488_v40, %v7121_v2  ;;  %v7152_v24 = vpack.i.bf16 %v9409_v47, %v7909_v38 }
 0x2dc   :  { %v5881_v21 = vadd.f32 %v9314_v39, %v3211_v19  ;;  %v3213_v51 = vpop.f32.mrb[13].mxu0  ;;  %v7129_v13 = vpop.permute.xlu1 %7128  ;;  %v2519_v60 = vsel %vm2159_vm1, %v2511_v3, %v7115_v27  ;;  %v2520_v18 = vsel %vm2159_vm1, %v2512_v32, %v7116_v30  ;;  %v2495_v41 = vsel %vm2159_vm1, %v2487_v34, %v7120_v12 }
 0x2dd   :  { %v3214_v11 = vpop.f32.mrb[14].mxu0  ;;  %v7124_v33 = vpop.permute.xlu0 %7123  ;;  %v7131_v7 = vunpack.i.h.bf16 %v7129_v13  ;;  %v7130_v36 = vunpack.i.l.bf16 %v7129_v13 }
 0x2de   :  { %vm3448_vm9 = vcmp.ge.f32.partialorder %v5881_v21, 0.0  ;;  %v3512_v44 = vmul.f32 0.2, %v5881_v21  ;;  %v3216_v8 = vpop.f32.mrb[15].mxu0  ;;  %v7126_v20 = vunpack.i.h.bf16 %v7124_v33  ;;  %v7125_v25 = vunpack.i.l.bf16 %v7124_v33 }
 0x2df   :  { %7153 = vrot.lane.b32.xlu1 %v7152_v24, %s7893_s28  ;;  %v9422_v52 = vpop.f32.mrb[8].mxu1  ;;  %v2503_v16 = vsel %vm2224_vm2, %v2495_v41, %v7130_v36  ;;  %v2504_v15 = vsel %vm2224_vm2, %v2496_v22, %v7131_v7 }
 0x2e0   :  { %v9424_v17 = vsel %vm3448_vm9, %v5881_v21, %v3512_v44  ;;  %3426 = vmatmul.mubr.bf16.gmra.mrb[120].mxu0 %v2597_v1  ;;  %v2528_v48 = vsel %vm2224_vm2, %v2520_v18, %v7126_v20  ;;  %v3036_v6 = vpop.f32.mrb[9].mxu1  ;;  %v2527_v61 = vsel %vm2224_vm2, %v2519_v60, %v7125_v25  ;;  %v2599_v62 = vpack.c.bf16 %v2504_v15, %v2503_v16 }
 0x2e1   :  { %v7157_v29 = vpack.i.bf16 %v9424_v17, %v7909_v38  ;;  %v9431_v58 = vpop.f32.mrb[10].mxu1  ;;  %v2600_v14 = vpack.c.bf16 %v2528_v48, %v2527_v61  ;;  %v5882_v1 = vadd.f32 %v9314_v39, %v3214_v11 }
 0x2e2   :  { %v3039_v9 = vpop.f32.mrb[11].mxu1 }
 0x2e3   :  { %v3219_v53 = vpop.f32.mrb[16].mxu0  ;;  %7158 = vrot.lane.b32.xlu1 %v7157_v29, %s7908_s4  ;;  %3433 = vmatprep.mubr.bf16.mxu0 %v2600_v14  ;;  %v3513_v36 = vmul.f32 0.2, %v5882_v1  ;;  %vm3449_vm13 = vcmp.ge.f32.partialorder %v5882_v1, 0.0 }
 0x2e4   :  { %v3221_v23 = vpop.f32.mrb[17].mxu0  ;;  %v5883_v11 = vadd.f32 %v9314_v39, %v3219_v53 }
 0x2e5   :  { %v3222_v42 = vpop.f32.mrb[18].mxu0  ;;  %v3577_v16 = vsel %vm3449_vm13, %v5882_v1, %v3513_v36 }
 0x2e6   :  { %v3224_v57 = vpop.f32.mrb[19].mxu0  ;;  %v3514_v14 = vmul.f32 0.2, %v5883_v11  ;;  %vm3450_vm15 = vcmp.ge.f32.partialorder %v5883_v11, 0.0 }
 0x2e8   :  { %3434 = vmatmul.mubr.bf16.gmra.mrb[124].mxu0 %v2599_v62  ;;  %v5884_v62 = vadd.f32 %v9314_v39, %v3222_v42 }
 0x2ea   :  { %vm3451_vm5 = vcmp.ge.f32.partialorder %v5884_v62, 0.0 }
 0x2eb   :  { %v3227_v5 = vpop.f32.mrb[20].mxu0  ;;  %v9434_v40 = vpop.f32.mrb[12].mxu1 }
 0x2ec   :  { %v3229_v59 = vpop.f32.mrb[21].mxu0  ;;  %v3044_v10 = vpop.f32.mrb[13].mxu1  ;;  %v5885_v31 = vadd.f32 %v9314_v39, %v3227_v5 }
 0x2ed   :  { %v9436_v49 = vpop.f32.mrb[22].mxu0  ;;  %v9438_v55 = vpop.f32.mrb[14].mxu1 }
 0x2ee   :  { %v3232_v46 = vpop.f32.mrb[23].mxu0  ;;  %v3047_v32 = vpop.f32.mrb[15].mxu1  ;;  %v3516_v38 = vmul.f32 0.2, %v5885_v31  ;;  %vm3452_vm10 = vcmp.ge.f32.partialorder %v5885_v31, 0.0 }
 0x2ef   :  { %v3578_v46 = vsel %vm3450_vm15, %v5883_v11, %v3514_v14 }
 0x2f0   :  { %v9446_v30 = vsel %vm3452_vm10, %v5885_v31, %v3516_v38  ;;  %v3515_v31 = vmul.f32 0.2, %v5884_v62 }
 0x2f3   :  { %v3235_v63 = vpop.f32.mrb[24].mxu0 }
 0x2f4   :  { %v5887_v54 = vadd.f32 %v9314_v39, %v3235_v63  ;;  %v3237_v26 = vpop.f32.mrb[25].mxu0 }
 0x2f5   :  { %v9442_v28 = vpop.f32.mrb[26].mxu0 }
 0x2f6   :  { %vm3454_vm11 = vcmp.ge.f32.partialorder %v5887_v54, 0.0  ;;  %v3518_v3 = vmul.f32 0.2, %v5887_v54  ;;  %v3240_v4 = vpop.f32.mrb[27].mxu0 }
 0x2f7   :  { %v9444_v2 = vpop.f32.mrb[16].mxu1 }
 0x2f8   :  { %v9448_v27 = vsel %vm3454_vm11, %v5887_v54, %v3518_v3  ;;  %v3052_v12 = vpop.f32.mrb[17].mxu1 }
 0x2f9   :  { %v7162_v50 = vpack.i.bf16 %v9448_v27, %v9446_v30  ;;  %v9452_v34 = vpop.f32.mrb[18].mxu1  ;;  %v5886_v12 = vadd.f32 %v9314_v39, %v9436_v49 }
 0x2fa   :  { %v3055_v19 = vpop.f32.mrb[19].mxu1 }
 0x2fb   :  { %v9454_v21 = vpop.f32.mrb[28].mxu0  ;;  %7163 = vrot.lane.b32.xlu1 %v7162_v50, %s7908_s4  ;;  %v3517_v36 = vmul.f32 0.2, %v5886_v12  ;;  %vm3453_vm8 = vcmp.ge.f32.partialorder %v5886_v12, 0.0 }
 0x2fc   :  { %v3245_v51 = vpop.f32.mrb[29].mxu0  ;;  %v5889_v49 = vadd.f32 %v9314_v39, %v9454_v21 }
 0x2fd   :  { %v9457_v22 = vpop.f32.mrb[30].mxu0 }
 0x2fe   :  { %v3248_v24 = vpop.f32.mrb[31].mxu0  ;;  %vm3456_vm9 = vcmp.ge.f32.partialorder %v5889_v49, 0.0 }
 0x2ff   :  { %v9486_v24 = vsel %vm3451_vm5, %v5884_v62, %v3515_v31 }
 0x303   :  { %v3251_v13 = vpop.f32.mrb[32].mxu0  ;;  %v9460_v60 = vpop.f32.mrb[20].mxu1 }
 0x304   :  { %v5891_v18 = vadd.f32 %v9314_v39, %v3251_v13  ;;  %v3253_v33 = vpop.f32.mrb[33].mxu0  ;;  %v3060_v7 = vpop.f32.mrb[21].mxu1 }
 0x305   :  { %v3254_v44 = vpop.f32.mrb[34].mxu0  ;;  %v9463_v41 = vpop.f32.mrb[22].mxu1 }
 0x306   :  { %vm3458_vm12 = vcmp.ge.f32.partialorder %v5891_v18, 0.0  ;;  %v3522_v8 = vmul.f32 0.2, %v5891_v18  ;;  %v5892_v20 = vadd.f32 %v9314_v39, %v3254_v44  ;;  %v3256_v25 = vpop.f32.mrb[35].mxu0  ;;  %v3063_v48 = vpop.f32.mrb[23].mxu1 }
 0x308   :  { %v3586_v6 = vsel %vm3458_vm12, %v5891_v18, %v3522_v8  ;;  %vm3459_vm14 = vcmp.ge.f32.partialorder %v5892_v20, 0.0  ;;  %v3523_v29 = vmul.f32 0.2, %v5892_v20 }
 0x309   :  { %v7167_v61 = vpack.i.bf16 %v3586_v6, %v9424_v17 }
 0x30a   :  { %v9468_v15 = vsel %vm3459_vm14, %v5892_v20, %v3523_v29  ;;  %v3520_v29 = vmul.f32 0.2, %v5889_v49 }
 0x30b   :  { %v3259_v9 = vpop.f32.mrb[36].mxu0  ;;  %7168 = vrot.lane.b32.xlu0 %v7167_v61, %s7907_s9  ;;  %v7172_v23 = vpack.i.bf16 %v9468_v15, %v3577_v16  ;;  %v9502_v16 = vsel %vm3453_vm8, %v5886_v12, %v3517_v36 }
 0x30c   :  { %v5893_v57 = vadd.f32 %v9314_v39, %v3259_v9  ;;  %v3261_v53 = vpop.f32.mrb[37].mxu0 }
 0x30d   :  { %v3262_v5 = vpop.f32.mrb[38].mxu0  ;;  %7173 = vrot.lane.b32.xlu1 %v7172_v23, %s7893_s28 }
 0x30e   :  { %vm3460_vm3 = vcmp.ge.f32.partialorder %v5893_v57, 0.0  ;;  %v3524_v17 = vmul.f32 0.2, %v5893_v57  ;;  %v5894_v59 = vadd.f32 %v9314_v39, %v3262_v5  ;;  %v3264_v10 = vpop.f32.mrb[39].mxu0 }
 0x30f   :  { %v9476_v32 = vpop.f32.mrb[24].mxu1 }
 0x310   :  { %v3588_v63 = vsel %vm3460_vm3, %v5893_v57, %v3524_v17  ;;  %vm3461_vm4 = vcmp.ge.f32.partialorder %v5894_v59, 0.0  ;;  %v3525_v38 = vmul.f32 0.2, %v5894_v59  ;;  %v3068_v54 = vpop.f32.mrb[25].mxu1  ;;  %v5888_v17 = vadd.f32 %v9314_v39, %v9442_v28 }
 0x311   :  { %v7177_v42 = vpack.i.bf16 %v3578_v46, %v3588_v63  ;;  %v9478_v26 = vpop.f32.mrb[26].mxu1 }
 0x312   :  { %v9480_v3 = vsel %vm3461_vm4, %v5894_v59, %v3525_v38  ;;  %v3071_v4 = vpop.f32.mrb[27].mxu1  ;;  %v9512_v59 = vsel %vm3456_vm9, %v5889_v49, %v3520_v29  ;;  %v3519_v54 = vmul.f32 0.2, %v5888_v17  ;;  %vm3455_vm12 = vcmp.ge.f32.partialorder %v5888_v17, 0.0 }
 0x313   :  { %v3267_v50 = vpop.f32.mrb[40].mxu0  ;;  %7178 = vrot.lane.b32.xlu0 %v7177_v42, %s7907_s9  ;;  %v7182_v13 = vpack.i.bf16 %v9486_v24, %v9480_v3 }
 0x314   :  { %v5895_v19 = vadd.f32 %v9314_v39, %v3267_v50  ;;  %v3269_v51 = vpop.f32.mrb[41].mxu0 }
 0x315   :  { %v3270_v1 = vpop.f32.mrb[42].mxu0 }
 0x316   :  { %vm3462_vm6 = vcmp.ge.f32.partialorder %v5895_v19, 0.0  ;;  %v3526_v18 = vmul.f32 0.2, %v5895_v19  ;;  %v5896_v33 = vadd.f32 %v9314_v39, %v3270_v1  ;;  %v3272_v7 = vpop.f32.mrb[43].mxu0 }
 0x317   :  { %7183 = vrot.lane.b32.xlu0 %v7182_v13, %s7893_s28 }
 0x318   :  { %v3590_v44 = vsel %vm3462_vm6, %v5895_v19, %v3526_v18  ;;  %vm3463_vm7 = vcmp.ge.f32.partialorder %v5896_v33, 0.0  ;;  %v3527_v8 = vmul.f32 0.2, %v5896_v33  ;;  %v9522_v19 = vsel %vm3455_vm12, %v5888_v17, %v3519_v54 }
 0x319   :  { %v7192_v20 = vpack.i.bf16 %v3590_v44, %v3588_v63  ;;  %v7187_v25 = vpack.i.bf16 %v3590_v44, %v9446_v30 }
 0x31a   :  { %v9495_v48 = vsel %vm3463_vm7, %v5896_v33, %v3527_v8 }
 0x31b   :  { %v3275_v11 = vpop.f32.mrb[44].mxu0  ;;  %7188 = vrot.lane.b32.xlu1 %v7187_v25, %s7907_s9  ;;  %7193 = vrot.lane.b32.xlu0 %v7192_v20, %s7908_s4  ;;  %v9499_v6 = vpop.f32.mrb[28].mxu1  ;;  %v7197_v30 = vpack.i.bf16 %v9495_v48, %v9502_v16 }
 0x31c   :  { %v5897_v61 = vadd.f32 %v9314_v39, %v3275_v11  ;;  %v3277_v21 = vpop.f32.mrb[45].mxu0  ;;  %v3076_v14 = vpop.f32.mrb[29].mxu1 }
 0x31d   :  { %v3278_v9 = vpop.f32.mrb[46].mxu0  ;;  %v9506_v23 = vpop.f32.mrb[30].mxu1 }
 0x31e   :  { %vm3464_vm10 = vcmp.ge.f32.partialorder %v5897_v61, 0.0  ;;  %v3528_v62 = vmul.f32 0.2, %v5897_v61  ;;  %v5898_v57 = vadd.f32 %v9314_v39, %v3278_v9  ;;  %v3280_v53 = vpop.f32.mrb[47].mxu0  ;;  %v3079_v5 = vpop.f32.mrb[31].mxu1 }
 0x31f   :  { %7198 = vrot.lane.b32.xlu1 %v7197_v30, %s7893_s28  ;;  %v3019_v5 = vadd.f32 %v9314_v39, %v9337_v37  ;;  %v3027_v37 = vadd.f32 %v9314_v39, %v9386_v45 }
 0x320   :  { %v3592_v10 = vsel %vm3464_vm10, %v5897_v61, %v3528_v62  ;;  %v3529_v63 = vmul.f32 0.2, %v5898_v57  ;;  %vm3465_vm11 = vcmp.ge.f32.partialorder %v5898_v57, 0.0 }
 0x321   :  { %v7207_v46 = vpack.i.bf16 %v9512_v59, %v3592_v10  ;;  %v7202_v31 = vpack.i.bf16 %v9448_v27, %v3592_v10  ;;  %v3022_v10 = vadd.f32 %v9314_v39, %v9345_v35  ;;  %v3030_v35 = vadd.f32 %v9314_v39, %v9401_v0 }
 0x322   :  { %v3593_v50 = vsel %vm3465_vm11, %v5898_v57, %v3529_v63 }
 0x323   :  { %v3283_v38 = vpop.f32.mrb[48].mxu0  ;;  %7203 = vrot.lane.b32.xlu0 %v7202_v31, %s7907_s9  ;;  %v7212_v27 = vpack.i.bf16 %v9522_v19, %v3593_v50 }
 0x324   :  { %v3285_v42 = vpop.f32.mrb[49].mxu0 }
 0x325   :  { %v9517_v4 = vpop.f32.mrb[50].mxu0 }
 0x326   :  { %v3288_v12 = vpop.f32.mrb[51].mxu0  ;;  %v5900_v0 = vadd.f32 %v9314_v39, %v9517_v4  ;;  %v3038_v4 = vadd.f32 %v9314_v39, %v9431_v58 }
 0x327   :  { %7208 = vrot.lane.b32.xlu0 %v7207_v46, %s7908_s4  ;;  %v9520_v28 = vpop.f32.mrb[32].mxu1 }
 0x328   :  { %v3084_v51 = vpop.f32.mrb[33].mxu1  ;;  %vm3467_vm8 = vcmp.ge.f32.partialorder %v5900_v0, 0.0 }
 0x329   :  { %v9525_v1 = vpop.f32.mrb[34].mxu1 }
 0x32a   :  { %v3087_v13 = vpop.f32.mrb[35].mxu1 }
 0x32b   :  { %v3291_v18 = vpop.f32.mrb[52].mxu0  ;;  %7213 = vrot.lane.b32.xlu0 %v7212_v27, %s7893_s28 }
 0x32c   :  { %v3293_v33 = vpop.f32.mrb[53].mxu0  ;;  %v5901_v49 = vadd.f32 %v9314_v39, %v3291_v18  ;;  %v5890_v18 = vadd.f32 %v9314_v39, %v9457_v22 }
 0x32d   :  { %v9528_v7 = vpop.f32.mrb[54].mxu0 }
 0x32e   :  { %v3296_v36 = vpop.f32.mrb[55].mxu0  ;;  %v3532_v20 = vmul.f32 0.2, %v5901_v49  ;;  %vm3468_vm13 = vcmp.ge.f32.partialorder %v5901_v49, 0.0  ;;  %vm3457_vm4 = vcmp.ge.f32.partialorder %v5890_v18, 0.0 }
 0x330   :  { %v9538_v62 = vsel %vm3468_vm13, %v5901_v49, %v3532_v20  ;;  %v5899_v49 = vadd.f32 %v9314_v39, %v3283_v38  ;;  %v3035_v38 = vadd.f32 %v9314_v39, %v9422_v52 }
 0x332   :  { %vm3466_vm5 = vcmp.ge.f32.partialorder %v5899_v49, 0.0 }
 0x333   :  { %v3299_v44 = vpop.f32.mrb[56].mxu0  ;;  %v9531_v8 = vpop.f32.mrb[36].mxu1 }
 0x334   :  { %v5903_v25 = vadd.f32 %v9314_v39, %v3299_v44  ;;  %v3301_v11 = vpop.f32.mrb[57].mxu0  ;;  %v3092_v29 = vpop.f32.mrb[37].mxu1 }
 0x335   :  { %v9534_v61 = vpop.f32.mrb[58].mxu0  ;;  %v9536_v21 = vpop.f32.mrb[38].mxu1 }
 0x336   :  { %vm3470_vm14 = vcmp.ge.f32.partialorder %v5903_v25, 0.0  ;;  %v3534_v14 = vmul.f32 0.2, %v5903_v25  ;;  %v3304_v9 = vpop.f32.mrb[59].mxu0  ;;  %v3095_v30 = vpop.f32.mrb[39].mxu1 }
 0x337   :  { %v3530_v30 = vmul.f32 0.2, %v5899_v49 }
 0x338   :  { %v9540_v57 = vsel %vm3470_vm14, %v5903_v25, %v3534_v14  ;;  %v3521_v14 = vmul.f32 0.2, %v5890_v18 }
 0x339   :  { %v7217_v53 = vpack.i.bf16 %v9540_v57, %v9538_v62 }
 0x33b   :  { %v3307_v17 = vpop.f32.mrb[60].mxu0  ;;  %7218 = vrot.lane.b32.xlu0 %v7217_v53, %s7908_s4 }
 0x33c   :  { %v9549_v46 = vadd.f32 %v3307_v17, %v3019_v5  ;;  %v3309_v31 = vpop.f32.mrb[61].mxu0 }
 0x33d   :  { %v3310_v63 = vpop.f32.mrb[62].mxu0 }
 0x33e   :  { %v9551_v54 = vadd.f32 %v3310_v63, %v3022_v10  ;;  %v3312_v42 = vpop.f32.mrb[63].mxu0  ;;  %vm3472_vm12 = vcmp.ge.f32.partialorder %v9549_v46, 0.0 }
 0x33f   :  { %v9553_v12 = vpop.f32.mrb[40].mxu1 }
 0x340   :  { %v3100_v50 = vpop.f32.mrb[41].mxu1 }
 0x341   :  { %v9555_v51 = vpop.f32.mrb[42].mxu1 }
 0x342   :  { %v3103_v27 = vpop.f32.mrb[43].mxu1 }
 0x343   :  { %v3315_v13 = vpop.f32.mrb[64].mxu0  ;;  %v3585_v27 = vsel %vm3457_vm4, %v5890_v18, %v3521_v14 }
 0x344   :  { %v3316_v33 = vadd.f32 %v3315_v13, %v3027_v37  ;;  %v3317_v36 = vpop.f32.mrb[65].mxu0  ;;  %v3594_v13 = vsel %vm3466_vm5, %v5899_v49, %v3530_v30 }
 0x345   :  { %v3318_v44 = vpop.f32.mrb[66].mxu0  ;;  %v7134_v20 = vpop.permute.xlu0 %7133 }
 0x346   :  { %vm3474_vm15 = vcmp.ge.f32.partialorder %v3316_v33, 0.0  ;;  %v3538_v25 = vmul.f32 0.2, %v3316_v33  ;;  %v3319_v11 = vadd.f32 %v3318_v44, %v3030_v35  ;;  %v3320_v29 = vpop.f32.mrb[67].mxu0  ;;  %v7135_v5 = vunpack.i.l.bf16 %v7134_v20 }
 0x347   :  { %v7136_v10 = vunpack.i.h.bf16 %v7134_v20  ;;  %v3531_v35 = vmul.f32 0.2, %v5900_v0 }
 0x348   :  { %v3602_v45 = vsel %vm3474_vm15, %v3316_v33, %v3538_v25  ;;  %vm3475_vm3 = vcmp.ge.f32.partialorder %v3319_v11, 0.0  ;;  %v3539_v9 = vmul.f32 0.2, %v3319_v11  ;;  %v4011_v20 = vsel %vm2094_vm0, 0.0, %v7135_v5 }
 0x349   :  { %v7222_v22 = vpack.i.bf16 %v3602_v45, %v9512_v59  ;;  %v7139_v53 = vpop.permute.xlu0 %7138  ;;  %v4012_v45 = vsel %vm2094_vm0, %v9382_v43, %v7136_v10 }
 0x34a   :  { %v9569_v17 = vsel %vm3475_vm3, %v3319_v11, %v3539_v9  ;;  %v7140_v31 = vunpack.i.l.bf16 %v7139_v53  ;;  %v7141_v50 = vunpack.i.h.bf16 %v7139_v53 }
 0x34b   :  { %v3323_v63 = vpop.f32.mrb[68].mxu0  ;;  %7223 = vrot.lane.b32.xlu1 %v7222_v22, %s7907_s9  ;;  %v9572_v42 = vpop.f32.mrb[44].mxu1  ;;  %v7227_v44 = vpack.i.bf16 %v9569_v17, %v3585_v27 }
 0x34c   :  { %v3324_v59 = vadd.f32 %v3323_v63, %v3035_v38  ;;  %v3325_v37 = vpop.f32.mrb[69].mxu0  ;;  %v3108_v52 = vpop.f32.mrb[45].mxu1  ;;  %v4027_v18 = vsel %vm2159_vm1, %v4011_v20, %v7140_v31  ;;  %v4028_v30 = vsel %vm2159_vm1, %v4012_v45, %v7141_v50  ;;  %v3043_v31 = vadd.f32 %v9314_v39, %v9434_v40 }
 0x34d   :  { %v3326_v33 = vpop.f32.mrb[70].mxu0  ;;  %v9577_v36 = vpop.permute.xlu1 %7143  ;;  %v5902_v50 = vadd.f32 %v9314_v39, %v9528_v7  ;;  %v3046_v52 = vadd.f32 %v9314_v39, %v9438_v55  ;;  %v9604_v40 = vsel %vm3467_vm8, %v5900_v0, %v3531_v35 }
 0x34e   :  { %vm3476_vm6 = vcmp.ge.f32.partialorder %v3324_v59, 0.0  ;;  %v3540_v25 = vmul.f32 0.2, %v3324_v59  ;;  %v3327_v11 = vadd.f32 %v3326_v33, %v3038_v4  ;;  %v7149_v29 = vpop.permute.xlu0 %7148  ;;  %v3328_v58 = vpop.f32.mrb[71].mxu0 }
 0x34f   :  { %v7151_v14 = vunpack.i.h.bf16 %v7149_v29  ;;  %v7150_v49 = vunpack.i.l.bf16 %v7149_v29  ;;  %7228 = vrot.lane.b32.xlu1 %v7227_v44, %s7893_s28  ;;  %v9585_v9 = vpop.f32.mrb[46].mxu1  ;;  %v3533_v45 = vmul.f32 0.2, %v5902_v50  ;;  %vm3469_vm11 = vcmp.ge.f32.partialorder %v5902_v50, 0.0 }
 0x350   :  { %v3604_v22 = vsel %vm3476_vm6, %v3324_v59, %v3540_v25  ;;  %vm3477_vm7 = vcmp.ge.f32.partialorder %v3327_v11, 0.0  ;;  %v3541_v53 = vmul.f32 0.2, %v3327_v11  ;;  %v3111_v38 = vpop.f32.mrb[47].mxu1  ;;  %v7145_v59 = vunpack.i.l.bf16 %v9577_v36 }
 0x351   :  { %v7232_v5 = vpack.i.bf16 %v3594_v13, %v3604_v22  ;;  %v9588_v63 = vpop.permute.xlu1 %7153  ;;  %v4043_v43 = vsel %vm2224_vm2, %v4027_v18, %v7150_v49  ;;  %v4044_v10 = vsel %vm2224_vm2, %v4028_v30, %v7151_v14  ;;  %vm3473_vm6 = vcmp.ge.f32.partialorder %v9551_v54, 0.0 }
 0x352   :  { %v4072_v4 = vpack.c.bf16 %v4044_v10, %v4043_v43  ;;  %v9594_v37 = vsel %vm3477_vm7, %v3327_v11, %v3541_v53  ;;  %v7155_v13 = vunpack.i.l.bf16 %v9588_v63  ;;  %v3972_v55 = vsel %vm2094_vm0, 0.0, %v7145_v59 }
 0x353   :  { %v3331_v27 = vpop.f32.mrb[72].mxu0  ;;  %7233 = vrot.lane.b32.xlu1 %v7232_v5, %s7907_s9  ;;  %v7237_v7 = vpack.i.bf16 %v9604_v40, %v9594_v37  ;;  %v3051_v10 = vadd.f32 %v9314_v39, %v9444_v2  ;;  %v9636_v2 = vsel %vm3469_vm11, %v5902_v50, %v3533_v45 }
 0x354   :  { %v3332_v33 = vadd.f32 %v3331_v27, %v3043_v31  ;;  %4383 = vmatprep.mubr.bf16.mxu1 %v4072_v4  ;;  %v3333_v44 = vpop.f32.mrb[73].mxu0  ;;  %v3985_v35 = vsel %vm2159_vm1, %v3972_v55, %v7155_v13  ;;  %v3059_v55 = vadd.f32 %v9314_v39, %v9460_v60 }
 0x355   :  { %v3334_v20 = vpop.f32.mrb[74].mxu0  ;;  %v9606_v25 = vpop.permute.xlu1 %7158 }
 0x356   :  { %vm3478_vm9 = vcmp.ge.f32.partialorder %v3332_v33, 0.0  ;;  %v3542_v11 = vmul.f32 0.2, %v3332_v33  ;;  %v3335_v29 = vadd.f32 %v3334_v20, %v3046_v52  ;;  %v3336_v58 = vpop.f32.mrb[75].mxu0  ;;  %v9612_v18 = vunpack.i.l.bf16 %v9606_v25 }
 0x357   :  { %7238 = vrot.lane.b32.xlu1 %v7237_v7, %s7893_s28  ;;  %v9615_v0 = vpop.f32.mrb[48].mxu1 }
 0x358   :  { %v3606_v14 = vsel %vm3478_vm9, %v3332_v33, %v3542_v11  ;;  %vm3479_vm10 = vcmp.ge.f32.partialorder %v3335_v29, 0.0  ;;  %v3543_v49 = vmul.f32 0.2, %v3335_v29  ;;  %v3116_v30 = vpop.f32.mrb[49].mxu1  ;;  %v3998_v5 = vsel %vm2224_vm2, %v3985_v35, %v9612_v18 }
 0x359   :  { %v7247_v53 = vpack.i.bf16 %v3606_v14, %v3604_v22  ;;  %v7242_v38 = vpack.i.bf16 %v3606_v14, %v9538_v62  ;;  %v9621_v43 = vpop.f32.mrb[50].mxu1  ;;  %v9625_v31 = vpack.c.bf16 %v3998_v5, %v3998_v5  ;;  %v3054_v62 = vadd.f32 %v9314_v39, %v9452_v34  ;;  %v9654_v30 = vld [vmem:[#allocation12] ss:$0 sm:$0xff] }
 0x35a   :  { %v9627_v4 = vsel %vm3479_vm10, %v3335_v29, %v3543_v49  ;;  %v3119_v59 = vpop.f32.mrb[51].mxu1  ;;  %v3536_v22 = vmul.f32 0.2, %v9549_v46  ;;  %v5904_v34 = vadd.f32 %v9314_v39, %v9534_v61  ;;  %v3062_v61 = vadd.f32 %v9654_v30, %v9463_v41  ;;  %v7445_v5 = vld [vmem:[#allocation8 + $0xc0] sm:$0xff]  }
 0x35b   :  { %v3339_v27 = vpop.f32.mrb[76].mxu0  ;;  %7248 = vrot.lane.b32.xlu1 %v7247_v53, %s7908_s4  ;;  %7243 = vrot.lane.b32.xlu0 %v7242_v38, %s7907_s9  ;;  %v7252_v44 = vpack.i.bf16 %v9627_v4, %v9636_v2 }
 0x35c   :  { %v3340_v52 = vadd.f32 %v3339_v27, %v3051_v10  ;;  %4384 = vmatmul.mubr.bf16.vlgmr.msra.gmra.mrb[68].mxu1 %v9625_v31  ;;  %v3341_v13 = vpop.f32.mrb[77].mxu0  ;;  %v9645_v29 = vsel %vm3472_vm12, %v9549_v46, %v3536_v22  ;;  %v3535_v46 = vmul.f32 0.2, %v5904_v34  ;;  %v7446_v10 = vld [vmem:[#allocation8 + $0x80] sm:$0xff]   ;;  %vm3471_vm15 = vcmp.ge.f32.partialorder %v5904_v34, 0.0  ;;  %5679 = vmatprep.subr.bf16.mxu1 %v7445_v5 }
 0x35d   :  { %v3342_v33 = vpop.f32.mrb[78].mxu0  ;;  %5680 = vmatpush3.bf16.msra.mxu1 %v7446_v10  ;;  %v3067_v13 = vadd.f32 %v9654_v30, %v9476_v32 }
 0x35e   :  { %vm3480_vm13 = vcmp.ge.f32.partialorder %v3340_v52, 0.0  ;;  %v3544_v20 = vmul.f32 0.2, %v3340_v52  ;;  %v3343_v7 = vadd.f32 %v3342_v33, %v3054_v62  ;;  %v3344_v11 = vpop.f32.mrb[79].mxu0  ;;  %v9666_v41 = vsel %vm3471_vm15, %v5904_v34, %v3535_v46  ;;  %v7448_v34 = vld [vmem:[#allocation8 + $0x88] sm:$0xff]  }
 0x35f   :  { %7253 = vrot.lane.b32.xlu0 %v7252_v44, %s7893_s28  ;;  %v3070_v44 = vadd.f32 %v9654_v30, %v9478_v26  ;;  %v3075_v26 = vadd.f32 %v9654_v30, %v9499_v6 }
 0x360   :  { %v3608_v50 = vsel %vm3480_vm13, %v3340_v52, %v3544_v20  ;;  %v3545_v35 = vmul.f32 0.2, %v3343_v7  ;;  %vm3481_vm14 = vcmp.ge.f32.partialorder %v3343_v7, 0.0 }
 0x361   :  { %v7262_v58 = vpack.i.bf16 %v9645_v29, %v3608_v50  ;;  %v7257_v45 = vpack.i.bf16 %v9540_v57, %v3608_v50 }
 0x362   :  { %v3609_v62 = vsel %vm3481_vm14, %v3343_v7, %v3545_v35  ;;  %v7449_v35 = vld [vmem:[#allocation8 + $0xd0] sm:$0xff]  }
 0x363   :  { %v3347_v14 = vpop.f32.mrb[80].mxu0  ;;  %7258 = vrot.lane.b32.xlu1 %v7257_v45, %s7907_s9  ;;  %v9652_v49 = vpop.f32.mrb[52].mxu1  ;;  %v7267_v52 = vpack.i.bf16 %v9666_v41, %v3609_v62  ;;  %v7447_v45 = vld [vmem:[#allocation8 + $0xc8] sm:$0xff]  }
 0x364   :  { %v9658_v53 = vadd.f32 %v3347_v14, %v3059_v55  ;;  %v3349_v38 = vpop.f32.mrb[81].mxu0  ;;  %v3124_v57 = vpop.f32.mrb[53].mxu1  ;;  %5681 = vmatprep.subr.bf16.mxu1 %v7447_v45 }
 0x365   :  { %v3350_v39 = vpop.f32.mrb[82].mxu0  ;;  %v9660_v60 = vpop.f32.mrb[54].mxu1  ;;  %5682 = vmatpush3.bf16.msra.mxu1 %v7448_v34  ;;  %v3078_v57 = vadd.f32 %v9654_v30, %v9506_v23  ;;  %v3083_v23 = vadd.f32 %v9654_v30, %v9520_v28  ;;  %v7156_v28 = vunpack.i.h.bf16 %v9588_v63  ;;  %v3091_v63 = vadd.f32 %v9654_v30, %v9531_v8 }
 0x366   :  { %v9662_v59 = vadd.f32 %v3350_v39, %v3062_v61  ;;  %v3352_v27 = vpop.f32.mrb[83].mxu0  ;;  %v3127_v22 = vpop.f32.mrb[55].mxu1  ;;  %v7450_v61 = vld [vmem:[#allocation8 + $0x90] sm:$0xff]   ;;  %5683 = vmatprep.subr.bf16.mxu1 %v7449_v35  ;;  %v7146_v35 = vunpack.i.h.bf16 %v9577_v36  ;;  %vm3482_vm8 = vcmp.ge.f32.partialorder %v9658_v53, 0.0 }
 0x367   :  { %7263 = vrot.lane.b32.xlu1 %v7262_v58, %s7908_s4 }
 0x368   :  { %vm3483_vm11 = vcmp.ge.f32.partialorder %v9662_v59, 0.0 }
 0x369   :  { %5684 = vmatpush3.bf16.msra.mxu1 %v7450_v61 }
 0x36b   :  { %v3355_v33 = vpop.f32.mrb[84].mxu0  ;;  %7268 = vrot.lane.b32.xlu1 %v7267_v52, %s7893_s28 }
 0x36c   :  { %v3356_v20 = vadd.f32 %v3355_v33, %v3067_v13  ;;  %v3357_v7 = vpop.f32.mrb[85].mxu0 }
 0x36d   :  { %v3358_v11 = vpop.f32.mrb[86].mxu0 }
 0x36e   :  { %v9674_v50 = vadd.f32 %v3358_v11, %v3070_v44  ;;  %v3360_v58 = vpop.f32.mrb[87].mxu0  ;;  %v3548_v5 = vmul.f32 0.2, %v3356_v20  ;;  %vm3484_vm3 = vcmp.ge.f32.partialorder %v3356_v20, 0.0  ;;  %v9694_v44 = vpop.permute.xlu1 %7163 }
 0x36f   :  { %v9676_v55 = vpop.f32.mrb[56].mxu1  ;;  %v3086_v58 = vadd.f32 %v9654_v30, %v9525_v1 }
 0x370   :  { %v3132_v14 = vpop.f32.mrb[57].mxu1  ;;  %v9686_v13 = vsel %vm3484_vm3, %v3356_v20, %v3548_v5  ;;  %vm3485_vm14 = vcmp.ge.f32.partialorder %v9674_v50, 0.0 }
 0x371   :  { %v9678_v32 = vpop.f32.mrb[58].mxu1 }
 0x372   :  { %v3135_v46 = vpop.f32.mrb[59].mxu1 }
 0x373   :  { %v3363_v38 = vpop.f32.mrb[88].mxu0 }
 0x374   :  { %v3364_v10 = vadd.f32 %v3363_v38, %v3075_v26  ;;  %v3365_v39 = vpop.f32.mrb[89].mxu0 }
 0x375   :  { %v3366_v27 = vpop.f32.mrb[90].mxu0 }
 0x376   :  { %vm3486_vm4 = vcmp.ge.f32.partialorder %v3364_v10, 0.0  ;;  %v3550_v62 = vmul.f32 0.2, %v3364_v10  ;;  %v9684_v22 = vadd.f32 %v3366_v27, %v3078_v57  ;;  %v3368_v52 = vpop.f32.mrb[91].mxu0  ;;  %v7161_v57 = vunpack.i.h.bf16 %v9606_v25 }
 0x377   :  { %v4013_v27 = vsel %vm2094_vm0, %v9376_v56, %v7146_v35 }
 0x378   :  { %v9688_v6 = vsel %vm3486_vm4, %v3364_v10, %v3550_v62  ;;  %v4029_v62 = vsel %vm2159_vm1, %v4013_v27, %v7156_v28  ;;  %vm3487_vm3 = vcmp.ge.f32.partialorder %v9684_v22, 0.0 }
 0x379   :  { %v7272_v33 = vpack.i.bf16 %v9688_v6, %v9686_v13  ;;  %v4045_v25 = vsel %vm2224_vm2, %v4029_v62, %v7161_v57  ;;  %v3537_v57 = vmul.f32 0.2, %v9551_v54 }
 0x37b   :  { %v3371_v7 = vpop.f32.mrb[92].mxu0  ;;  %7273 = vrot.lane.b32.xlu1 %v7272_v33, %s7908_s4  ;;  %v9697_v11 = vpop.f32.mrb[60].mxu1 }
 0x37c   :  { %v9701_v20 = vadd.f32 %v3371_v7, %v3083_v23  ;;  %v3373_v45 = vpop.f32.mrb[93].mxu0  ;;  %v3140_v34 = vpop.f32.mrb[61].mxu1  ;;  %v3094_v7 = vadd.f32 %v9654_v30, %v9536_v21 }
 0x37d   :  { %v3374_v14 = vpop.f32.mrb[94].mxu0  ;;  %v7169_v61 = vpop.permute.xlu0 %7168  ;;  %v7452_v34 = vld [vmem:[#allocation8 + $0x98] sm:$0xff]  }
 0x37e   :  { %v9705_v26 = vadd.f32 %v3374_v14, %v3086_v58  ;;  %v3376_v46 = vpop.f32.mrb[95].mxu0  ;;  %v9707_v38 = vpop.f32.mrb[62].mxu1  ;;  %v7170_v5 = vunpack.i.l.bf16 %v7169_v61  ;;  %v7171_v14 = vunpack.i.h.bf16 %v7169_v61  ;;  %vm3488_vm15 = vcmp.ge.f32.partialorder %v9701_v20, 0.0 }
 0x37f   :  { %v7174_v10 = vpop.permute.xlu1 %7173  ;;  %v3143_v1 = vpop.f32.mrb[63].mxu1 }
 0x380   :  { %v7175_v39 = vunpack.i.l.bf16 %v7174_v10  ;;  %v4014_v36 = vsel %vm2094_vm0, %v9409_v47, %v7170_v5  ;;  %v7451_v47 = vld [vmem:[#allocation8 + $0xd8] sm:$0xff]   ;;  %v3546_v1 = vmul.f32 0.2, %v9658_v53 }
 0x381   :  { %5685 = vmatprep.subr.bf16.mxu1 %v7451_v47 }
 0x382   :  { %v4030_v52 = vsel %vm2159_vm1, %v4014_v36, %v7175_v39  ;;  %5686 = vmatpush3.bf16.msra.mxu1 %v7452_v34  ;;  %v7176_v36 = vunpack.i.h.bf16 %v7174_v10  ;;  %v3610_v10 = vsel %vm3482_vm8, %v9658_v53, %v3546_v1 }
 0x383   :  { %v3379_v33 = vpop.f32.mrb[96].mxu0  ;;  %v4046_v23 = vsel %vm2224_vm2, %v4030_v52, %v9612_v18 }
 0x384   :  { %v3380_v56 = vadd.f32 %v3379_v33, %v3091_v63  ;;  %v3381_v58 = vpop.f32.mrb[97].mxu0  ;;  %v4075_v45 = vpack.c.bf16 %v4046_v23, %v4045_v25  ;;  %v3099_v33 = vadd.f32 %v9654_v30, %v9553_v12  ;;  %v4015_v25 = vsel %vm2094_vm0, 0.0, %v7171_v14  ;;  %v7453_v14 = vld [vmem:[#allocation8 + $0xe0] sm:$0xff]  }
 0x385   :  { %v3382_v35 = vpop.f32.mrb[98].mxu0  ;;  %v9723_v8 = vpop.permute.xlu0 %7178  ;;  %v3102_v58 = vadd.f32 %v9654_v30, %v9555_v51  ;;  %v3107_v12 = vadd.f32 %v9654_v30, %v9572_v42  ;;  %v4031_v51 = vsel %vm2159_vm1, %v4015_v25, %v7176_v36  ;;  %5687 = vmatprep.subr.bf16.mxu1 %v7453_v14 }
 0x386   :  { %vm3490_vm5 = vcmp.ge.f32.partialorder %v3380_v56, 0.0  ;;  %v3554_v28 = vmul.f32 0.2, %v3380_v56  ;;  %v3383_v46 = vadd.f32 %v3382_v35, %v3094_v7  ;;  %v3384_v5 = vpop.f32.mrb[99].mxu0  ;;  %4391 = vmatprep.mubr.bf16.mxu1 %v4075_v45  ;;  %v7180_v23 = vunpack.i.l.bf16 %v9723_v8 }
 0x387   :  { %4392 = vmatmul.mubr.bf16.gmra.mrb[72].mxu1 %v9625_v31  ;;  %v9728_v21 = vpop.f32.mrb[64].mxu1  ;;  %v7181_v5 = vunpack.i.h.bf16 %v9723_v8 }
 0x388   :  { %v3618_v39 = vsel %vm3490_vm5, %v3380_v56, %v3554_v28  ;;  %vm3491_vm7 = vcmp.ge.f32.partialorder %v3383_v46, 0.0  ;;  %v3555_v27 = vmul.f32 0.2, %v3383_v46  ;;  %v3148_v61 = vpop.f32.mrb[65].mxu1  ;;  %v7454_v28 = vld [vmem:[#allocation8 + $0xa0] sm:$0xff]   ;;  %v4016_v42 = vsel %vm2094_vm0, %v9468_v15, %v7180_v23 }
 0x389   :  { %v7277_v63 = vpack.i.bf16 %v3618_v39, %v9645_v29  ;;  %v7184_v62 = vpop.permute.xlu0 %7183  ;;  %v9733_v52 = vpop.f32.mrb[66].mxu1  ;;  %v3601_v29 = vsel %vm3473_vm6, %v9551_v54, %v3537_v57  ;;  %5688 = vmatpush3.bf16.msra.mxu1 %v7454_v28  ;;  %vm3489_vm6 = vcmp.ge.f32.partialorder %v9705_v26, 0.0 }
 0x38a   :  { %v9739_v7 = vsel %vm3491_vm7, %v3383_v46, %v3555_v27  ;;  %v3151_v56 = vpop.f32.mrb[67].mxu1  ;;  %v7185_v47 = vunpack.i.l.bf16 %v7184_v62  ;;  %v3547_v46 = vmul.f32 0.2, %v9662_v59 }
 0x38b   :  { %v3387_v45 = vpop.f32.mrb[100].mxu0  ;;  %7278 = vrot.lane.b32.xlu0 %v7277_v63, %s7907_s9  ;;  %v7282_v54 = vpack.i.bf16 %v9739_v7, %v3601_v29  ;;  %v7186_v63 = vunpack.i.h.bf16 %v7184_v62  ;;  %v3973_v29 = vsel %vm2094_vm0, 0.0, %v7181_v5  ;;  %v7165_v5 = vunpack.i.l.bf16 %v9694_v44 }
 0x38c   :  { %v3388_v34 = vadd.f32 %v3387_v45, %v3099_v33  ;;  %v3389_v35 = vpop.f32.mrb[101].mxu0  ;;  %v4032_v8 = vsel %vm2159_vm1, %v4016_v42, %v7185_v47  ;;  %v3110_v47 = vadd.f32 %v9654_v30, %v9585_v9  ;;  %v9785_v9 = vsel %vm3483_vm11, %v9662_v59, %v3547_v46 }
 0x38d   :  { %v3390_v39 = vpop.f32.mrb[102].mxu0  ;;  %v9753_v27 = vpop.permute.xlu1 %7188  ;;  %v3549_v46 = vmul.f32 0.2, %v9674_v50 }
 0x38e   :  { %vm3492_vm9 = vcmp.ge.f32.partialorder %v3388_v34, 0.0  ;;  %v3556_v53 = vmul.f32 0.2, %v3388_v34  ;;  %v3391_v57 = vadd.f32 %v3390_v39, %v3102_v58  ;;  %v7194_v1 = vpop.permute.xlu0 %7193  ;;  %v3392_v61 = vpop.f32.mrb[103].mxu0  ;;  %v7190_v33 = vunpack.i.l.bf16 %v9753_v27 }
 0x38f   :  { %v7196_v36 = vunpack.i.h.bf16 %v7194_v1  ;;  %v7195_v25 = vunpack.i.l.bf16 %v7194_v1  ;;  %7283 = vrot.lane.b32.xlu0 %v7282_v54, %s7893_s28  ;;  %v7456_v1 = vld [vmem:[#allocation8 + $0xa8] sm:$0xff]  }
 0x390   :  { %v3620_v56 = vsel %vm3492_vm9, %v3388_v34, %v3556_v53  ;;  %vm3493_vm10 = vcmp.ge.f32.partialorder %v3391_v57, 0.0  ;;  %v3557_v45 = vmul.f32 0.2, %v3391_v57  ;;  %v7166_v34 = vunpack.i.h.bf16 %v9694_v44 }
 0x391   :  { %v7287_v15 = vpack.i.bf16 %v3610_v10, %v3620_v56  ;;  %v9762_v23 = vpop.permute.xlu1 %7198  ;;  %v4047_v58 = vsel %vm2224_vm2, %v4031_v51, %v7195_v25  ;;  %v4048_v62 = vsel %vm2224_vm2, %v4032_v8, %v7196_v36  ;;  %v3986_v10 = vsel %vm2159_vm1, %v3973_v29, %v7186_v63 }
 0x392   :  { %v7200_v35 = vunpack.i.l.bf16 %v9762_v23  ;;  %v9768_v14 = vpack.c.bf16 %v4048_v62, %v4047_v58  ;;  %v9770_v28 = vsel %vm3493_vm10, %v3391_v57, %v3557_v45  ;;  %v3974_v51 = vsel %vm2094_vm0, %v9486_v24, %v7190_v33  ;;  %v7455_v57 = vld [vmem:[#allocation8 + $0xe8] sm:$0xff]  }
 0x393   :  { %v3395_v39 = vpop.f32.mrb[104].mxu0  ;;  %7288 = vrot.lane.b32.xlu0 %v7287_v15, %s7907_s9  ;;  %v7292_v63 = vpack.i.bf16 %v9785_v9, %v9770_v28  ;;  %v3999_v25 = vsel %vm2224_vm2, %v3986_v10, %v7165_v5  ;;  %5689 = vmatprep.subr.bf16.mxu1 %v7455_v57  ;;  %v3115_v29 = vadd.f32 %v9654_v30, %v9615_v0  ;;  %v7191_v10 = vunpack.i.h.bf16 %v9753_v27  ;;  %v7458_v5 = vld [vmem:[#allocation8 + $0xb0] sm:$0xff]  }
 0x394   :  { %v3987_v54 = vsel %vm2159_vm1, %v3974_v51, %v7200_v35  ;;  %v3396_v42 = vadd.f32 %v3395_v39, %v3107_v12  ;;  %4399 = vmatprep.mubr.bf16.mxu1 %v9768_v14  ;;  %v3397_v53 = vpop.f32.mrb[105].mxu0  ;;  %5690 = vmatpush3.bf16.msra.mxu1 %v7456_v1  ;;  %v9817_v39 = vsel %vm3485_vm14, %v9674_v50, %v3549_v46 }
 0x395   :  { %v3398_v61 = vpop.f32.mrb[106].mxu0  ;;  %v9787_v24 = vpop.permute.xlu0 %7203  ;;  %v4000_v44 = vsel %vm2224_vm2, %v3987_v54, %v7166_v34  ;;  %v3552_v34 = vmul.f32 0.2, %v9701_v20  ;;  %v3123_v27 = vadd.f32 %v9654_v30, %v9652_v49  ;;  %v7201_v54 = vunpack.i.h.bf16 %v9762_v23 }
 0x396   :  { %vm3494_vm12 = vcmp.ge.f32.partialorder %v3396_v42, 0.0  ;;  %v3558_v12 = vmul.f32 0.2, %v3396_v42  ;;  %v3399_v33 = vadd.f32 %v3398_v61, %v3110_v47  ;;  %v3400_v36 = vpop.f32.mrb[107].mxu0  ;;  %v9794_v59 = vpack.c.bf16 %v4000_v44, %v3999_v25 }
 0x397   :  { %7293 = vrot.lane.b32.xlu0 %v7292_v63, %s7893_s28  ;;  %v3118_v47 = vadd.f32 %v9654_v30, %v9621_v43  ;;  %v7457_v43 = vld [vmem:[#allocation8 + $0xf0] sm:$0xff]   ;;  %v3551_v44 = vmul.f32 0.2, %v9684_v22  ;;  %v4017_v49 = vsel %vm2094_vm0, %v9480_v3, %v7191_v10 }
 0x398   :  { %v3622_v8 = vsel %vm3494_vm12, %v3396_v42, %v3558_v12  ;;  %vm3495_vm13 = vcmp.ge.f32.partialorder %v3399_v33, 0.0  ;;  %v3559_v45 = vmul.f32 0.2, %v3399_v33  ;;  %4400 = vmatmul.mubr.bf16.gmra.mrb[76].mxu1 %v9794_v59  ;;  %5691 = vmatprep.subr.bf16.mxu1 %v7457_v43  ;;  %v3616_v12 = vsel %vm3488_vm15, %v9701_v20, %v3552_v34 }
 0x399   :  { %v7302_v15 = vpack.i.bf16 %v3622_v8, %v3620_v56  ;;  %v7297_v58 = vpack.i.bf16 %v3622_v8, %v9686_v13  ;;  %v9800_v62 = vpop.permute.xlu0 %7208  ;;  %v7205_v13 = vunpack.i.l.bf16 %v9787_v24  ;;  %5692 = vmatpush3.bf16.msra.mxu1 %v7458_v5  ;;  %v4033_v46 = vsel %vm2159_vm1, %v4017_v49, %v7201_v54 }
 0x39a   :  { %v9804_v35 = vsel %vm3495_vm13, %v3399_v33, %v3559_v45  ;;  %v7210_v1 = vunpack.i.l.bf16 %v9800_v62  ;;  %v3126_v34 = vadd.f32 %v9654_v30, %v9660_v60  ;;  %v3131_v60 = vadd.f32 %v9654_v30, %v9676_v55 }
 0x39b   :  { %v3403_v51 = vpop.f32.mrb[108].mxu0  ;;  %7298 = vrot.lane.b32.xlu1 %v7297_v58, %s7907_s9  ;;  %7303 = vrot.lane.b32.xlu0 %v7302_v15, %s7908_s4  ;;  %v7307_v57 = vpack.i.bf16 %v9804_v35, %v9817_v39  ;;  %v4018_v33 = vsel %vm2094_vm0, %v9495_v48, %v7205_v13  ;;  %v3553_v15 = vmul.f32 0.2, %v9705_v26  ;;  %v9855_v13 = vsel %vm3487_vm3, %v9684_v22, %v3551_v44 }
 0x39c   :  { %v3404_v56 = vadd.f32 %v3403_v51, %v3115_v29  ;;  %v3405_v0 = vpop.f32.mrb[109].mxu0  ;;  %v4049_v58 = vsel %vm2224_vm2, %v4033_v46, %v7210_v1 }
 0x39d   :  { %v3406_v42 = vpop.f32.mrb[110].mxu0  ;;  %v9823_v53 = vpop.permute.xlu0 %7213  ;;  %v3617_v54 = vsel %vm3489_vm6, %v9705_v26, %v3553_v15 }
 0x39e   :  { %vm3496_vm4 = vcmp.ge.f32.partialorder %v3404_v56, 0.0  ;;  %v3560_v50 = vmul.f32 0.2, %v3404_v56  ;;  %v3407_v61 = vadd.f32 %v3406_v42, %v3118_v47  ;;  %v3408_v63 = vpop.f32.mrb[111].mxu0  ;;  %v7215_v23 = vunpack.i.l.bf16 %v9823_v53 }
 0x39f   :  { %7308 = vrot.lane.b32.xlu1 %v7307_v57, %s7893_s28 }
 0x3a0   :  { %v3624_v36 = vsel %vm3496_vm4, %v3404_v56, %v3560_v50  ;;  %vm3497_vm5 = vcmp.ge.f32.partialorder %v3407_v61, 0.0  ;;  %v3561_v25 = vmul.f32 0.2, %v3407_v61  ;;  %v4034_v3 = vsel %vm2159_vm1, %v4018_v33, %v7215_v23  ;;  %v7460_v56 = vld [vmem:[#allocation8 + $0xb8] sm:$0xff]  }
 0x3a1   :  { %v7312_v8 = vpack.i.bf16 %v9688_v6, %v3624_v36  ;;  %v7322_v45 = vpack.i.bf16 %v3616_v12, %v3624_v36  ;;  %v4050_v20 = vsel %vm2224_vm2, %v4034_v3, %v9612_v18  ;;  %v7459_v6 = vld [vmem:[#allocation8 + $0xf8] sm:$0xff]   ;;  %v3139_v36 = vadd.f32 %v9654_v30, %v9697_v11 }
 0x3a2   :  { %v3625_v29 = vsel %vm3497_vm5, %v3407_v61, %v3561_v25  ;;  %v9847_v48 = vpack.c.bf16 %v4050_v20, %v4049_v58  ;;  %5693 = vmatprep.subr.bf16.mxu1 %v7459_v6  ;;  %v3142_v3 = vadd.f32 %v9654_v30, %v9707_v38  ;;  %v3150_v38 = vadd.f32 %v9654_v30, %v9733_v52 }
 0x3a3   :  { %v3411_v47 = vpop.f32.mrb[112].mxu0  ;;  %3671 = vrot.lane.b32.xlu1 %v3616_v12, %s7907_s9  ;;  %7313 = vrot.lane.b32.xlu0 %v7312_v8, %s7907_s9  ;;  %v7317_v43 = vpack.i.bf16 %v9855_v13, %v3625_v29 }
 0x3a4   :  { %v3412_v10 = vadd.f32 %v3411_v47, %v3123_v27  ;;  %v3413_v51 = vpop.f32.mrb[113].mxu0  ;;  %4407 = vmatprep.mubr.bf16.mxu1 %v9847_v48  ;;  %5694 = vmatpush3.bf16.msra.mxu1 %v7460_v56  ;;  %v3134_v27 = vadd.f32 %v9654_v30, %v9678_v32 }
 0x3a5   :  { %v3414_v0 = vpop.f32.mrb[114].mxu0 }
 0x3a6   :  { %v3415_v5 = vadd.f32 %v3414_v0, %v3126_v34  ;;  %v3416_v42 = vpop.f32.mrb[115].mxu0  ;;  %v3562_v57 = vmul.f32 0.2, %v3412_v10  ;;  %vm3498_vm7 = vcmp.ge.f32.partialorder %v3412_v10, 0.0  ;;  %v3147_v34 = vadd.f32 %v9654_v30, %v9728_v21 }
 0x3a7   :  { %3722 = vrot.lane.b32.xlu1 %v3617_v54, %s7893_s28  ;;  %7318 = vrot.lane.b32.xlu0 %v7317_v43, %s7893_s28  ;;  %v7206_v0 = vunpack.i.h.bf16 %v9787_v24  ;;  %v7216_v43 = vunpack.i.h.bf16 %v9823_v53 }
 0x3a8   :  { %v3563_v61 = vmul.f32 0.2, %v3415_v5  ;;  %vm3499_vm9 = vcmp.ge.f32.partialorder %v3415_v5, 0.0  ;;  %v3626_v23 = vsel %vm3498_vm7, %v3412_v10, %v3562_v57 }
 0x3a9   :  { %v3975_v30 = vsel %vm2094_vm0, %v9502_v16, %v7206_v0 }
 0x3aa   :  { %v9869_v32 = vsel %vm3499_vm9, %v3415_v5, %v3563_v61  ;;  %v3988_v24 = vsel %vm2159_vm1, %v3975_v30, %v7216_v43 }
 0x3ab   :  { %v3419_v22 = vpop.f32.mrb[116].mxu0  ;;  %7323 = vrot.lane.b32.xlu0 %v7322_v45, %s7908_s4 }
 0x3ac   :  { %v3420_v1 = vadd.f32 %v3419_v22, %v3131_v60  ;;  %v3421_v50 = vpop.f32.mrb[117].mxu0 }
 0x3ad   :  { %v3422_v26 = vpop.f32.mrb[118].mxu0 }
 0x3ae   :  { %vm3500_vm8 = vcmp.ge.f32.partialorder %v3420_v1, 0.0  ;;  %v3564_v63 = vmul.f32 0.2, %v3420_v1  ;;  %v3423_v44 = vadd.f32 %v3422_v26, %v3134_v27  ;;  %v3424_v49 = vpop.f32.mrb[119].mxu0 }
 0x3b0   :  { %v3628_v12 = vsel %vm3500_vm8, %v3420_v1, %v3564_v63  ;;  %vm3501_vm10 = vcmp.ge.f32.partialorder %v3423_v44, 0.0  ;;  %v3565_v55 = vmul.f32 0.2, %v3423_v44  ;;  %v7211_v63 = vunpack.i.h.bf16 %v9800_v62 }
 0x3b1   :  { %v7327_v33 = vpack.i.bf16 %v3628_v12, %v3626_v23 }
 0x3b2   :  { %v9871_v25 = vsel %vm3501_vm10, %v3423_v44, %v3565_v55 }
 0x3b3   :  { %v3427_v46 = vpop.f32.mrb[120].mxu0  ;;  %7328 = vrot.lane.b32.xlu1 %v7327_v33, %s7907_s9  ;;  %v7332_v8 = vpack.i.bf16 %v9871_v25, %v9869_v32 }
 0x3b4   :  { %v3428_v45 = vadd.f32 %v3427_v46, %v3139_v36  ;;  %v3429_v15 = vpop.f32.mrb[121].mxu0 }
 0x3b5   :  { %v3430_v58 = vpop.f32.mrb[122].mxu0  ;;  %7333 = vrot.lane.b32.xlu0 %v7332_v8, %s7893_s28 }
 0x3b6   :  { %vm3502_vm11 = vcmp.ge.f32.partialorder %v3428_v45, 0.0  ;;  %v3566_v11 = vmul.f32 0.2, %v3428_v45  ;;  %v3431_v20 = vadd.f32 %v3430_v58, %v3142_v3  ;;  %v3432_v29 = vpop.f32.mrb[123].mxu0 }
 0x3b8   :  { %v3630_v47 = vsel %vm3502_vm11, %v3428_v45, %v3566_v11  ;;  %v3567_v42 = vmul.f32 0.2, %v3431_v20  ;;  %vm3503_vm13 = vcmp.ge.f32.partialorder %v3431_v20, 0.0 }
 0x3b9   :  { %v7337_v6 = vpack.i.bf16 %v3630_v47, %v3628_v12  ;;  %v4001_v12 = vsel %vm2224_vm2, %v3988_v24, %v7211_v63 }
 0x3ba   :  { %v9889_v26 = vsel %vm3503_vm13, %v3431_v20, %v3567_v42 }
 0x3bb   :  { %v3435_v10 = vpop.f32.mrb[124].mxu0  ;;  %7338 = vrot.lane.b32.xlu1 %v7337_v6, %s7908_s4 }
 0x3bc   :  { %v3436_v51 = vadd.f32 %v3435_v10, %v3147_v34  ;;  %v3437_v56 = vpop.f32.mrb[125].mxu0 }
 0x3bd   :  { %v3438_v5 = vpop.f32.mrb[126].mxu0  ;;  %v7224_v54 = vpop.permute.xlu1 %7223 }
 0x3be   :  { %vm3504_vm12 = vcmp.ge.f32.partialorder %v3436_v51, 0.0  ;;  %v3568_v60 = vmul.f32 0.2, %v3436_v51  ;;  %v3439_v22 = vadd.f32 %v3438_v5, %v3150_v38  ;;  %v3440_v27 = vpop.f32.mrb[127].mxu0  ;;  %v7225_v21 = vunpack.i.l.bf16 %v7224_v54 }
 0x3bf   :  { %v7226_v62 = vunpack.i.h.bf16 %v7224_v54 }
 0x3c0   :  { %v3632_v57 = vsel %vm3504_vm12, %v3436_v51, %v3568_v60  ;;  %vm3505_vm14 = vcmp.ge.f32.partialorder %v3439_v22, 0.0  ;;  %v3569_v1 = vmul.f32 0.2, %v3439_v22  ;;  %v3976_v44 = vsel %vm2094_vm0, %v9522_v19, %v7225_v21  ;;  %v7219_v19 = vpop.permute.xlu0 %7218 }
 0x3c1   :  { %v7342_v52 = vpack.i.bf16 %v3632_v57, %v3630_v47  ;;  %v7229_v50 = vpop.permute.xlu1 %7228  ;;  %v4019_v45 = vsel %vm2094_vm0, 0.0, %v7226_v62  ;;  %v7221_v42 = vunpack.i.h.bf16 %v7219_v19  ;;  %v7220_v60 = vunpack.i.l.bf16 %v7219_v19 }
 0x3c2   :  { %v7230_v53 = vunpack.i.l.bf16 %v7229_v50  ;;  %v3633_v61 = vsel %vm3505_vm14, %v3439_v22, %v3569_v1  ;;  %v7231_v8 = vunpack.i.h.bf16 %v7229_v50 }
 0x3c3   :  { %7343 = vrot.lane.b32.xlu0 %v7342_v52, %s7907_s9  ;;  %v7347_v49 = vpack.i.bf16 %v3633_v61, %v9889_v26 }
 0x3c4   :  { %v3989_v23 = vsel %vm2159_vm1, %v3976_v44, %v7230_v53  ;;  %v4035_v34 = vsel %vm2159_vm1, %v4019_v45, %v7231_v8 }
 0x3c5   :  { %7348 = vrot.lane.b32.xlu1 %v7347_v49, %s7893_s28  ;;  %v7234_v16 = vpop.permute.xlu1 %7233  ;;  %v4002_v55 = vsel %vm2224_vm2, %v3989_v23, %v9612_v18 }
 0x3c6   :  { %v9901_v33 = vpack.c.bf16 %v4002_v55, %v4001_v12  ;;  %v7235_v46 = vunpack.i.l.bf16 %v7234_v16  ;;  %v7236_v15 = vunpack.i.h.bf16 %v7234_v16 }
 0x3c7   :  { %3967 = vrot.lane.b32.xlu0 %v3632_v57, %s7908_s4 }
 0x3c8   :  { %4408 = vmatmul.mubr.bf16.gmra.mrb[80].mxu1 %v9901_v33  ;;  %v4020_v20 = vsel %vm2094_vm0, %v9569_v17, %v7235_v46  ;;  %v3977_v0 = vsel %vm2094_vm0, 0.0, %v7236_v15 }
 0x3c9   :  { %v7239_v36 = vpop.permute.xlu1 %7238 }
 0x3ca   :  { %v7240_v3 = vunpack.i.l.bf16 %v7239_v36  ;;  %v7241_v29 = vunpack.i.h.bf16 %v7239_v36 }
 0x3cc   :  { %v4036_v10 = vsel %vm2159_vm1, %v4020_v20, %v7240_v3  ;;  %v3990_v54 = vsel %vm2159_vm1, %v3977_v0, %v7241_v29 }
 0x3cd   :  { %v7249_v58 = vpop.permute.xlu1 %7248  ;;  %v7244_v11 = vpop.permute.xlu0 %7243  ;;  %v4003_v57 = vsel %vm2224_vm2, %v3990_v54, %v7220_v60 }
 0x3ce   :  { %v7251_v47 = vunpack.i.h.bf16 %v7249_v58  ;;  %v7250_v6 = vunpack.i.l.bf16 %v7249_v58  ;;  %v7245_v38 = vunpack.i.l.bf16 %v7244_v11  ;;  %v7246_v50 = vunpack.i.h.bf16 %v7244_v11 }
 0x3d0   :  { %v4051_v51 = vsel %vm2224_vm2, %v4035_v34, %v7250_v6  ;;  %v4052_v56 = vsel %vm2224_vm2, %v4036_v10, %v7251_v47  ;;  %v3978_v22 = vsel %vm2094_vm0, %v9604_v40, %v7245_v38  ;;  %v4021_v44 = vsel %vm2094_vm0, %v9594_v37, %v7246_v50 }
 0x3d1   :  { %v7254_v43 = vpop.permute.xlu0 %7253  ;;  %v9913_v5 = vpack.c.bf16 %v4052_v56, %v4051_v51 }
 0x3d2   :  { %v7255_v17 = vunpack.i.l.bf16 %v7254_v43  ;;  %v7256_v53 = vunpack.i.h.bf16 %v7254_v43 }
 0x3d3   :  { %4415 = vmatprep.mubr.bf16.mxu1 %v9913_v5 }
 0x3d4   :  { %v3991_v27 = vsel %vm2159_vm1, %v3978_v22, %v7255_v17  ;;  %v4037_v23 = vsel %vm2159_vm1, %v4021_v44, %v7256_v53 }
 0x3d5   :  { %v7259_v21 = vpop.permute.xlu1 %7258  ;;  %v4004_v1 = vsel %vm2224_vm2, %v3991_v27, %v7221_v42 }
 0x3d6   :  { %v9922_v30 = vpack.c.bf16 %v4004_v1, %v4003_v57  ;;  %v7260_v24 = vunpack.i.l.bf16 %v7259_v21  ;;  %v7261_v62 = vunpack.i.h.bf16 %v7259_v21 }
 0x3d8   :  { %4416 = vmatmul.mubr.bf16.gmra.mrb[84].mxu1 %v9922_v30  ;;  %v4022_v49 = vsel %vm2094_vm0, %v9627_v4, %v7260_v24  ;;  %v3979_v4 = vsel %vm2094_vm0, %v9636_v2, %v7261_v62 }
 0x3d9   :  { %v7264_v52 = vpop.permute.xlu1 %7263 }
 0x3da   :  { %v7265_v61 = vunpack.i.l.bf16 %v7264_v52  ;;  %v7266_v15 = vunpack.i.h.bf16 %v7264_v52 }
 0x3dc   :  { %v4053_v12 = vsel %vm2224_vm2, %v4037_v23, %v7265_v61 }
 0x3dd   :  { %v7269_v63 = vpop.permute.xlu1 %7268 }
 0x3de   :  { %v7270_v40 = vunpack.i.l.bf16 %v7269_v63  ;;  %v7271_v46 = vunpack.i.h.bf16 %v7269_v63 }
 0x3e0   :  { %v4038_v16 = vsel %vm2159_vm1, %v4022_v49, %v7270_v40  ;;  %v3992_v3 = vsel %vm2159_vm1, %v3979_v4, %v7271_v46 }
 0x3e1   :  { %v4054_v55 = vsel %vm2224_vm2, %v4038_v16, %v9612_v18  ;;  %v4005_v29 = vsel %vm2224_vm2, %v3992_v3, %v7266_v15 }
 0x3e2   :  { %v9934_v19 = vpack.c.bf16 %v4054_v55, %v4053_v12 }
 0x3e4   :  { %4423 = vmatprep.mubr.bf16.mxu1 %v9934_v19 }
 0x3ed   :  { %v7274_v2 = vpop.permute.xlu1 %7273 }
 0x3ee   :  { %v7275_v40 = vunpack.i.l.bf16 %v7274_v2 }
 0x3fd   :  { %v7279_v36 = vpop.permute.xlu0 %7278 }
 0x3fe   :  { %v7280_v37 = vunpack.i.l.bf16 %v7279_v36  ;;  %v7281_v34 = vunpack.i.h.bf16 %v7279_v36 }
 0x400   :  { %v3980_v58 = vsel %vm2094_vm0, %v9666_v41, %v7280_v37  ;;  %v4023_v41 = vsel %vm2094_vm0, 0.0, %v7281_v34 }
 0x401   :  { %v7284_v8 = vpop.permute.xlu0 %7283 }
 0x402   :  { %v7285_v45 = vunpack.i.l.bf16 %v7284_v8  ;;  %v7286_v51 = vunpack.i.h.bf16 %v7284_v8 }
 0x404   :  { %v3993_v11 = vsel %vm2159_vm1, %v3980_v58, %v7285_v45  ;;  %v4039_v27 = vsel %vm2159_vm1, %v4023_v41, %v7286_v51 }
 0x405   :  { %v7289_v20 = vpop.permute.xlu0 %7288  ;;  %v4006_v47 = vsel %vm2224_vm2, %v3993_v11, %v9612_v18 }
 0x406   :  { %v9946_v6 = vpack.c.bf16 %v4006_v47, %v4005_v29  ;;  %v7290_v38 = vunpack.i.l.bf16 %v7289_v20  ;;  %v7291_v0 = vunpack.i.h.bf16 %v7289_v20 }
 0x408   :  { %4424 = vmatmul.mubr.bf16.gmra.mrb[88].mxu1 %v9946_v6  ;;  %v4024_v17 = vsel %vm2094_vm0, %v9739_v7, %v7290_v38  ;;  %v3981_v50 = vsel %vm2094_vm0, 0.0, %v7291_v0  ;;  %v7276_v7 = vunpack.i.h.bf16 %v7274_v2 }
 0x409   :  { %v7294_v10 = vpop.permute.xlu0 %7293 }
 0x40a   :  { %v7295_v56 = vunpack.i.l.bf16 %v7294_v10  ;;  %v7296_v42 = vunpack.i.h.bf16 %v7294_v10 }
 0x40c   :  { %v4040_v21 = vsel %vm2159_vm1, %v4024_v17, %v7295_v56  ;;  %v3994_v61 = vsel %vm2159_vm1, %v3981_v50, %v7296_v42 }
 0x40d   :  { %v7299_v43 = vpop.permute.xlu1 %7298  ;;  %v7304_v54 = vpop.permute.xlu0 %7303  ;;  %v4007_v12 = vsel %vm2224_vm2, %v3994_v61, %v7275_v40 }
 0x40e   :  { %v7306_v60 = vunpack.i.h.bf16 %v7304_v54  ;;  %v7305_v22 = vunpack.i.l.bf16 %v7304_v54  ;;  %v7300_v57 = vunpack.i.l.bf16 %v7299_v43  ;;  %v7301_v37 = vunpack.i.h.bf16 %v7299_v43 }
 0x410   :  { %v4055_v1 = vsel %vm2224_vm2, %v4039_v27, %v7305_v22  ;;  %v4056_v52 = vsel %vm2224_vm2, %v4040_v21, %v7306_v60  ;;  %v3982_v44 = vsel %vm2094_vm0, %v9785_v9, %v7300_v57  ;;  %v4025_v47 = vsel %vm2094_vm0, %v9770_v28, %v7301_v37 }
 0x411   :  { %v7309_v24 = vpop.permute.xlu1 %7308  ;;  %v4083_v53 = vpack.c.bf16 %v4056_v52, %v4055_v1 }
 0x412   :  { %v7310_v63 = vunpack.i.l.bf16 %v7309_v24  ;;  %v7311_v45 = vunpack.i.h.bf16 %v7309_v24 }
 0x413   :  { %4431 = vmatprep.mubr.bf16.mxu1 %v4083_v53 }
 0x414   :  { %v3995_v49 = vsel %vm2159_vm1, %v3982_v44, %v7310_v63  ;;  %v4041_v38 = vsel %vm2159_vm1, %v4025_v47, %v7311_v45 }
 0x415   :  { %v3672_v23 = vpop.permute.xlu1 %3671  ;;  %v7314_v16 = vpop.permute.xlu0 %7313  ;;  %v4008_v55 = vsel %vm2224_vm2, %v3995_v49, %v7276_v7 }
 0x416   :  { %v4082_v62 = vpack.c.bf16 %v4008_v55, %v4007_v12  ;;  %v7315_v36 = vunpack.i.l.bf16 %v7314_v16  ;;  %v7316_v4 = vunpack.i.h.bf16 %v7314_v16  ;;  %v3984_v9 = vsel %vm2094_vm0, %v9855_v13, %v3672_v23 }
 0x418   :  { %4432 = vmatmul.mubr.bf16.gmra.mrb[92].mxu1 %v4082_v62  ;;  %v4026_v58 = vsel %vm2094_vm0, %v9804_v35, %v7315_v36  ;;  %v3983_v2 = vsel %vm2094_vm0, %v9817_v39, %v7316_v4 }
 0x419   :  { %v7319_v46 = vpop.permute.xlu0 %7318  ;;  %v3723_v8 = vpop.permute.xlu1 %3722 }
 0x41a   :  { %v7320_v3 = vunpack.i.l.bf16 %v7319_v46  ;;  %v7321_v15 = vunpack.i.h.bf16 %v7319_v46  ;;  %v3997_v11 = vsel %vm2159_vm1, %v3984_v9, %v3723_v8 }
 0x41b   :  { %v4010_v35 = vsel %vm2224_vm2, %v3997_v11, %v9612_v18 }
 0x41c   :  { %v4042_v20 = vsel %vm2159_vm1, %v4026_v58, %v7320_v3  ;;  %v3996_v13 = vsel %vm2159_vm1, %v3983_v2, %v7321_v15 }
 0x41d   :  { %v7324_v29 = vpop.permute.xlu0 %7323  ;;  %v4058_v56 = vsel %vm2224_vm2, %v4042_v20, %v9612_v18 }
 0x41e   :  { %v7326_v34 = vunpack.i.h.bf16 %v7324_v29  ;;  %v7325_v10 = vunpack.i.l.bf16 %v7324_v29 }
 0x420   :  { %v4057_v51 = vsel %vm2224_vm2, %v4041_v38, %v7325_v10  ;;  %v4009_v41 = vsel %vm2224_vm2, %v3996_v13, %v7326_v34 }
 0x421   :  { %v4085_v28 = vpack.c.bf16 %v4058_v56, %v4057_v51  ;;  %v4084_v0 = vpack.c.bf16 %v4010_v35, %v4009_v41 }
 0x423   :  { %4439 = vmatprep.mubr.bf16.mxu1 %v4085_v28 }
 0x424   :  { %4440 = vmatmul.mubr.bf16.gmra.mrb[96].mxu1 %v4084_v0 }
 0x425   :  { %4480 = vmatprep.mubr.bf16.mxu1 %v9768_v14  ;;  %v7329_v14 = vpop.permute.xlu1 %7328 }
 0x426   :  { %v7330_v22 = vunpack.i.l.bf16 %v7329_v14 }
 0x42c   :  { %4481 = vmatmul.mubr.bf16.vlgmr.msra.gmra.mrb[100].mxu1 %v9794_v59  ;;  %v7334_v59 = vpop.permute.xlu0 %7333 }
 0x42d   :  { %4488 = vmatprep.mubr.bf16.mxu1 %v9847_v48  ;;  %v7331_v48 = vunpack.i.h.bf16 %v7329_v14  ;;  %v7339_v27 = vpop.permute.xlu1 %7338  ;;  %v7336_v21 = vunpack.i.h.bf16 %v7334_v59  ;;  %v7335_v57 = vunpack.i.l.bf16 %v7334_v59  ;;  %v7467_v14 = vld [vmem:[#allocation9 + $0x58] sm:$0xff]  }
 0x42e   :  { %v7468_v59 = vld [vmem:[#allocation9 + $0x18] sm:$0xff]  }
 0x42f   :  { %v5631_v39 = vpop.f32.mrb[68].mxu1 }
 0x430   :  { %v5632_v43 = vpop.f32.mrb[69].mxu1 }
 0x431   :  { %v9984_v54 = vadd.f32 %v5632_v43, %v5631_v39  ;;  %v5634_v17 = vpop.f32.mrb[70].mxu1  ;;  %v7463_v39 = vld [vmem:[#allocation9 + $0x48] sm:$0xff]  }
 0x432   :  { %v5635_v42 = vpop.f32.mrb[71].mxu1  ;;  %v7464_v43 = vld [vmem:[#allocation9 + $0x8] sm:$0xff]  }
 0x433   :  { %v9986_v60 = vadd.f32 %v5635_v42, %v5634_v17  ;;  %v7465_v17 = vld [vmem:[#allocation9 + $0x50] sm:$0xff]  }
 0x434   :  { %4489 = vmatmul.mubr.bf16.gmra.mrb[104].mxu1 %v9901_v33  ;;  %v4060_v33 = vsel %vm2094_vm0, %v9869_v32, %v7331_v48  ;;  %v7466_v42 = vld [vmem:[#allocation9 + $0x10] sm:$0xff]   ;;  %v7469_v48 = vld [vmem:[#allocation9 + $0x60] sm:$0xff]  }
 0x435   :  { %4496 = vmatprep.mubr.bf16.mxu1 %v9913_v5  ;;  %v7344_v1 = vpop.permute.xlu0 %7343  ;;  %v4059_v5 = vsel %vm2094_vm0, 0.0, %v7330_v22  ;;  %v4064_v24 = vsel %vm2159_vm1, %v4060_v33, %v7336_v21  ;;  %v7470_v22 = vld [vmem:[#allocation9 + $0x20] sm:$0xff]   ;;  %v7472_v21 = vld [vmem:[#allocation9 + $0x28] sm:$0xff]  }
 0x436   :  { %v7345_v52 = vunpack.i.l.bf16 %v7344_v1 }
 0x437   :  { %v7349_v50 = vpop.permute.xlu1 %7348 }
 0x438   :  { %v7351_v7 = vunpack.i.h.bf16 %v7349_v50  ;;  %v7350_v32 = vunpack.i.l.bf16 %v7349_v50  ;;  %v4061_v44 = vsel %vm2094_vm0, %v9871_v25, %v7345_v52 }
 0x439   :  { %v3968_v12 = vpop.permute.xlu0 %3967 }
 0x43a   :  { %v4065_v55 = vsel %vm2159_vm1, %v4061_v44, %v7350_v32 }
 0x43c   :  { %4497 = vmatmul.mubr.bf16.gmra.mrb[108].mxu1 %v9922_v30  ;;  %v7341_v30 = vunpack.i.h.bf16 %v7339_v27 }
 0x43d   :  { %4504 = vmatprep.mubr.bf16.mxu1 %v9934_v19  ;;  %v7340_v19 = vunpack.i.l.bf16 %v7339_v27  ;;  %v7471_v27 = vld [vmem:[#allocation9 + $0x68] sm:$0xff]  }
 0x43e   :  { %v4068_v63 = vsel %vm2224_vm2, %v4064_v24, %v7341_v30 }
 0x444   :  { %4505 = vmatmul.mubr.bf16.gmra.mrb[112].mxu1 %v9946_v6  ;;  %v7346_v6 = vunpack.i.h.bf16 %v7344_v1 }
 0x445   :  { %4512 = vmatprep.mubr.bf16.mxu1 %v4083_v53  ;;  %v4063_v53 = vsel %vm2159_vm1, %v4059_v5, %v7335_v57 }
 0x446   :  { %v4067_v61 = vsel %vm2224_vm2, %v4063_v53, %v7340_v19  ;;  %v4062_v40 = vsel %vm2094_vm0, %v9889_v26, %v7346_v6  ;;  %v4069_v26 = vsel %vm2224_vm2, %v4065_v55, %v3968_v12 }
 0x447   :  { %v4086_v23 = vpack.c.bf16 %v4068_v63, %v4067_v61 }
 0x44c   :  { %4513 = vmatmul.mubr.bf16.gmra.mrb[116].mxu1 %v4082_v62  ;;  %v4066_v62 = vsel %vm2159_vm1, %v4062_v40, %v7351_v7 }
 0x44d   :  { %4520 = vmatprep.mubr.bf16.mxu1 %v4085_v28  ;;  %v4070_v25 = vsel %vm2224_vm2, %v4066_v62, %v9612_v18  ;;  %v7461_v28 = vld [vmem:[#allocation9 + $0x40] sm:$0xff]  }
 0x44e   :  { %v4087_v8 = vpack.c.bf16 %v4070_v25, %v4069_v26  ;;  %5743 = vmatprep.subr.bf16.mxu1 %v7461_v28 }
 0x454   :  { %4521 = vmatmul.mubr.bf16.gmra.mrb[120].mxu1 %v4084_v0  ;;  %v7462_v0 = vld [vmem:[#allocation9] sm:$0xff]  }
 0x455   :  { %4528 = vmatprep.mubr.bf16.mxu1 %v9625_v31  ;;  %5744 = vmatpush3.bf16.msra.mxu1 %v7462_v0 }
 0x456   :  { %5745 = vmatprep.subr.bf16.mxu1 %v7463_v39 }
 0x459   :  { %5746 = vmatpush3.bf16.msra.mxu1 %v7464_v43 }
 0x45a   :  { %v5637_v49 = vpop.f32.mrb[72].mxu1  ;;  %5747 = vmatprep.subr.bf16.mxu1 %v7465_v17 }
 0x45b   :  { %v5638_v16 = vpop.f32.mrb[73].mxu1 }
 0x45c   :  { %v10007_v36 = vadd.f32 %v5638_v16, %v5637_v49  ;;  %v5640_v46 = vpop.f32.mrb[74].mxu1  ;;  %4529 = vmatmul.mubr.bf16.gmra.mrb[124].mxu1 %v4086_v23  ;;  %v10039_v23 = vld [vmem:[#allocation14] ss:$0 sm:$0xff] }
 0x45d   :  { %v5641_v37 = vpop.f32.mrb[75].mxu1  ;;  %4536 = vmatprep.mubr.bf16.mxu1 %v9625_v31  ;;  %5748 = vmatpush3.bf16.msra.mxu1 %v7466_v42  ;;  %v4386_v55 = vadd.f32 %v9984_v54, %v10039_v23  ;;  %v4389_v26 = vadd.f32 %v9986_v60, %v10039_v23 }
 0x45e   :  { %v10010_v4 = vadd.f32 %v5641_v37, %v5640_v46  ;;  %5749 = vmatprep.subr.bf16.mxu1 %v7467_v14 }
 0x460   :  { %v4397_v60 = vadd.f32 %v10010_v4, %v10039_v23 }
 0x461   :  { %5750 = vmatpush3.bf16.msra.mxu1 %v7468_v59 }
 0x462   :  { %5751 = vmatprep.subr.bf16.mxu1 %v7469_v48 }
 0x464   :  { %4537 = vmatmul.mubr.bf16.gmra.mrb[128].mxu1 %v4087_v8 }
 0x465   :  { %5752 = vmatpush3.bf16.msra.mxu1 %v7470_v22 }
 0x466   :  { %5753 = vmatprep.subr.bf16.mxu1 %v7471_v27 }
 0x469   :  { %5754 = vmatpush3.bf16.msra.mxu1 %v7472_v21 }
 0x46b   :  { %v5643_v3 = vpop.f32.mrb[76].mxu1 }
 0x46c   :  { %v5644_v45 = vpop.f32.mrb[77].mxu1 }
 0x46d   :  { %v10015_v15 = vadd.f32 %v5644_v45, %v5643_v3  ;;  %v5646_v9 = vpop.f32.mrb[78].mxu1  ;;  %v7473_v45 = vld [vmem:[#allocation9 + $0x70] sm:$0xff]  }
 0x46e   :  { %v5647_v58 = vpop.f32.mrb[79].mxu1  ;;  %5755 = vmatprep.subr.bf16.mxu1 %v7473_v45 }
 0x46f   :  { %v10017_v11 = vadd.f32 %v5647_v58, %v5646_v9  ;;  %v7474_v9 = vld [vmem:[#allocation9 + $0x30] sm:$0xff]   ;;  %v4402_v4 = vadd.f32 %v10015_v15, %v10039_v23 }
 0x470   :  { %5756 = vmatpush3.bf16.msra.mxu1 %v7474_v9 }
 0x49b   :  { %v5649_v20 = vpop.f32.mrb[80].mxu1 }
 0x49c   :  { %v5650_v29 = vpop.f32.mrb[81].mxu1 }
 0x49d   :  { %v10019_v47 = vadd.f32 %v5650_v29, %v5649_v20  ;;  %v5652_v2 = vpop.f32.mrb[82].mxu1  ;;  %v4394_v29 = vadd.f32 %v10007_v36, %v10039_v23 }
 0x49e   :  { %v5653_v34 = vpop.f32.mrb[83].mxu1 }
 0x49f   :  { %v10021_v10 = vadd.f32 %v5653_v34, %v5652_v2  ;;  %v7475_v34 = vld [vmem:[#allocation9 + $0x78] sm:$0xff]  }
 0x4a0   :  { %5757 = vmatprep.subr.bf16.mxu1 %v7475_v34 }
 0x4ab   :  { %v5655_v38 = vpop.f32.mrb[84].mxu1 }
 0x4ac   :  { %v5656_v13 = vpop.f32.mrb[85].mxu1 }
 0x4ad   :  { %v10023_v35 = vadd.f32 %v5656_v13, %v5655_v38  ;;  %v5658_v51 = vpop.f32.mrb[86].mxu1  ;;  %v7476_v13 = vld [vmem:[#allocation9 + $0x38] sm:$0xff]  }
 0x4ae   :  { %v5659_v56 = vpop.f32.mrb[87].mxu1  ;;  %5758 = vmatpush3.bf16.msra.mxu1 %v7476_v13 }
 0x4af   :  { %v10025_v41 = vadd.f32 %v5659_v56, %v5658_v51 }
 0x4db   :  { %v5661_v57 = vpop.f32.mrb[88].mxu1 }
 0x4dc   :  { %v5662_v1 = vpop.f32.mrb[89].mxu1 }
 0x4dd   :  { %v10027_v33 = vadd.f32 %v5662_v1, %v5661_v57  ;;  %v5664_v5 = vpop.f32.mrb[90].mxu1 }
 0x4de   :  { %v5665_v30 = vpop.f32.mrb[91].mxu1 }
 0x4df   :  { %v10029_v19 = vadd.f32 %v5665_v30, %v5664_v5  ;;  %v4405_v30 = vadd.f32 %v10017_v11, %v10039_v23  ;;  %v4413_v11 = vadd.f32 %v10021_v10, %v10039_v23  ;;  %v4418_v10 = vadd.f32 %v10023_v35, %v10039_v23 }
 0x4eb   :  { %v5667_v6 = vpop.f32.mrb[92].mxu1 }
 0x4ec   :  { %v5668_v52 = vpop.f32.mrb[93].mxu1 }
 0x4ed   :  { %v10031_v50 = vadd.f32 %v5668_v52, %v5667_v6  ;;  %v5670_v24 = vpop.f32.mrb[94].mxu1 }
 0x4ee   :  { %v5671_v53 = vpop.f32.mrb[95].mxu1 }
 0x4ef   :  { %v10033_v61 = vadd.f32 %v5671_v53, %v5670_v24 }
 0x4f7   :  { %v5673_v63 = vpop.f32.mrb[96].mxu1 }
 0x4f8   :  { %v5674_v7 = vpop.f32.mrb[97].mxu1 }
 0x4f9   :  { %v10035_v32 = vadd.f32 %v5674_v7, %v5673_v63  ;;  %v5676_v40 = vpop.f32.mrb[98].mxu1  ;;  %v4410_v63 = vadd.f32 %v10019_v47, %v10039_v23 }
 0x4fa   :  { %v5677_v44 = vpop.f32.mrb[99].mxu1 }
 0x4fb   :  { %v10037_v49 = vadd.f32 %v5677_v44, %v5676_v40 }
 0x4ff   :  { %v5695_v16 = vpop.f32.mrb[100].mxu1 }
 0x500   :  { %v5696_v12 = vpop.f32.mrb[101].mxu1 }
 0x501   :  { %v5697_v62 = vadd.f32 %v5696_v12, %v5695_v16  ;;  %v5698_v46 = vpop.f32.mrb[102].mxu1  ;;  %v7477_v12 = vld [vmem:[#allocation9 + $0xc0] sm:$0xff]  }
 0x502   :  { %v5699_v37 = vpop.f32.mrb[103].mxu1  ;;  %5771 = vmatprep.subr.bf16.mxu1 %v7477_v12  ;;  %v4442_v12 = vadd.f32 %v10035_v32, %v10039_v23 }
 0x503   :  { %v4483_v25 = vadd.f32 %v5697_v62, %v4386_v55  ;;  %v5700_v8 = vadd.f32 %v5699_v37, %v5698_v46 }
 0x505   :  { %v4486_v3 = vadd.f32 %v5700_v8, %v4389_v26  ;;  %v4561_v51 = vmul.f32 0.2, %v4483_v25  ;;  %vm4545_vm15 = vcmp.ge.f32.partialorder %v4483_v25, 0.0 }
 0x507   :  { %v5701_v58 = vpop.f32.mrb[104].mxu1  ;;  %v4562_v0 = vmul.f32 0.2, %v4486_v3  ;;  %vm4546_vm4 = vcmp.ge.f32.partialorder %v4486_v3, 0.0  ;;  %v4577_v36 = vsel %vm4545_vm15, %v4483_v25, %v4561_v51 }
 0x508   :  { %v5702_v20 = vpop.f32.mrb[105].mxu1 }
 0x509   :  { %v5703_v2 = vadd.f32 %v5702_v20, %v5701_v58  ;;  %v5704_v54 = vpop.f32.mrb[106].mxu1  ;;  %v10051_v21 = vsel %vm4546_vm4, %v4486_v3, %v4562_v0 }
 0x50a   :  { %v5705_v38 = vpop.f32.mrb[107].mxu1 }
 0x50b   :  { %v4491_v56 = vadd.f32 %v5703_v2, %v4394_v29  ;;  %v5706_v28 = vadd.f32 %v5705_v38, %v5704_v54  ;;  %v4421_v54 = vadd.f32 %v10025_v41, %v10039_v23  ;;  %v4429_v41 = vadd.f32 %v10029_v19, %v10039_v23 }
 0x50c   :  { %v4434_v19 = vadd.f32 %v10031_v50, %v10039_v23 }
 0x50d   :  { %vm4547_vm3 = vcmp.ge.f32.partialorder %v4491_v56, 0.0  ;;  %v4563_v39 = vmul.f32 0.2, %v4491_v56  ;;  %v4494_v43 = vadd.f32 %v5706_v28, %v4397_v60  ;;  %v4426_v28 = vadd.f32 %v10027_v33, %v10039_v23 }
 0x50f   :  { %v4579_v17 = vsel %vm4547_vm3, %v4491_v56, %v4563_v39  ;;  %vm4548_vm5 = vcmp.ge.f32.partialorder %v4494_v43, 0.0  ;;  %v4564_v42 = vmul.f32 0.2, %v4494_v43  ;;  %v5707_v14 = vpop.f32.mrb[108].mxu1 }
 0x510   :  { %v5708_v59 = vpop.f32.mrb[109].mxu1  ;;  %v7352_v48 = vpack.i.bf16 %v4579_v17, %v4577_v36 }
 0x511   :  { %v5709_v22 = vadd.f32 %v5708_v59, %v5707_v14  ;;  %v5710_v27 = vpop.f32.mrb[110].mxu1  ;;  %v4580_v57 = vsel %vm4548_vm5, %v4494_v43, %v4564_v42 }
 0x512   :  { %v5711_v1 = vpop.f32.mrb[111].mxu1  ;;  %7353 = vrot.lane.b32.xlu1 %v7352_v48, %s7907_s9  ;;  %v7357_v5 = vpack.i.bf16 %v4580_v57, %v10051_v21 }
 0x513   :  { %v4499_v6 = vadd.f32 %v5709_v22, %v4402_v4  ;;  %v5712_v52 = vadd.f32 %v5711_v1, %v5710_v27 }
 0x514   :  { %7358 = vrot.lane.b32.xlu0 %v7357_v5, %s7893_s28 }
 0x515   :  { %v4502_v24 = vadd.f32 %v5712_v52, %v4405_v30  ;;  %v4565_v44 = vmul.f32 0.2, %v4499_v6  ;;  %vm4549_vm6 = vcmp.ge.f32.partialorder %v4499_v6, 0.0 }
 0x516   :  { %4644 = vrot.lane.b32.xlu1 %v4579_v17, %s7908_s4 }
 0x517   :  { %v5713_v15 = vpop.f32.mrb[112].mxu1  ;;  %v4581_v26 = vsel %vm4549_vm6, %v4499_v6, %v4565_v44  ;;  %v4566_v25 = vmul.f32 0.2, %v4502_v24  ;;  %vm4550_vm9 = vcmp.ge.f32.partialorder %v4502_v24, 0.0 }
 0x518   :  { %v5714_v53 = vpop.f32.mrb[113].mxu1 }
 0x519   :  { %v5715_v7 = vadd.f32 %v5714_v53, %v5713_v15  ;;  %v5716_v40 = vpop.f32.mrb[114].mxu1  ;;  %v10071_v13 = vsel %vm4550_vm9, %v4502_v24, %v4566_v25  ;;  %v4437_v15 = vadd.f32 %v10033_v61, %v10039_v23  ;;  %v4445_v61 = vadd.f32 %v10037_v49, %v10039_v23 }
 0x51a   :  { %v5717_v16 = vpop.f32.mrb[115].mxu1 }
 0x51b   :  { %v4507_v55 = vadd.f32 %v5715_v7, %v4410_v63  ;;  %v5718_v62 = vadd.f32 %v5717_v16, %v5716_v40 }
 0x51d   :  { %vm4551_vm7 = vcmp.ge.f32.partialorder %v4507_v55, 0.0  ;;  %v4567_v46 = vmul.f32 0.2, %v4507_v55  ;;  %v4510_v37 = vadd.f32 %v5718_v62, %v4413_v11 }
 0x51f   :  { %v10063_v8 = vsel %vm4551_vm7, %v4507_v55, %v4567_v46  ;;  %vm4552_vm8 = vcmp.ge.f32.partialorder %v4510_v37, 0.0  ;;  %v4568_v47 = vmul.f32 0.2, %v4510_v37  ;;  %v5719_v3 = vpop.f32.mrb[116].mxu1 }
 0x520   :  { %v5720_v45 = vpop.f32.mrb[117].mxu1  ;;  %v7362_v9 = vpack.i.bf16 %v10063_v8, %v4581_v26 }
 0x521   :  { %v5721_v58 = vadd.f32 %v5720_v45, %v5719_v3  ;;  %v5722_v20 = vpop.f32.mrb[118].mxu1  ;;  %v4584_v29 = vsel %vm4552_vm8, %v4510_v37, %v4568_v47 }
 0x522   :  { %v5723_v2 = vpop.f32.mrb[119].mxu1  ;;  %7363 = vrot.lane.b32.xlu1 %v7362_v9, %s7907_s9  ;;  %v7367_v60 = vpack.i.bf16 %v4584_v29, %v10071_v13 }
 0x523   :  { %v4515_v34 = vadd.f32 %v5721_v58, %v4418_v10  ;;  %v5724_v38 = vadd.f32 %v5723_v2, %v5722_v20 }
 0x525   :  { %v4518_v51 = vadd.f32 %v5724_v38, %v4421_v54  ;;  %v4569_v43 = vmul.f32 0.2, %v4515_v34  ;;  %vm4553_vm10 = vcmp.ge.f32.partialorder %v4515_v34, 0.0 }
 0x526   :  { %7368 = vrot.lane.b32.xlu1 %v7367_v60, %s7893_s28 }
 0x527   :  { %v5725_v56 = vpop.f32.mrb[120].mxu1  ;;  %v4585_v48 = vsel %vm4553_vm10, %v4515_v34, %v4569_v43  ;;  %v4570_v4 = vmul.f32 0.2, %v4518_v51  ;;  %vm4554_vm13 = vcmp.ge.f32.partialorder %v4518_v51, 0.0  ;;  %v7478_v43 = vld [vmem:[#allocation9 + $0x80] sm:$0xff]  }
 0x528   :  { %v5726_v35 = vpop.f32.mrb[121].mxu1 }
 0x529   :  { %v5727_v0 = vadd.f32 %v5726_v35, %v5725_v56  ;;  %v5728_v39 = vpop.f32.mrb[122].mxu1  ;;  %v10085_v7 = vsel %vm4554_vm13, %v4518_v51, %v4570_v4  ;;  %v7487_v4 = vld [vmem:[#allocation9 + $0xe8] sm:$0xff]  }
 0x52a   :  { %v5729_v36 = vpop.f32.mrb[123].mxu1 }
 0x52b   :  { %v4523_v17 = vadd.f32 %v5727_v0, %v4426_v28  ;;  %v5730_v42 = vadd.f32 %v5729_v36, %v5728_v39  ;;  %v7479_v36 = vld [vmem:[#allocation9 + $0xc8] sm:$0xff]  }
 0x52d   :  { %vm4555_vm11 = vcmp.ge.f32.partialorder %v4523_v17, 0.0  ;;  %v4571_v14 = vmul.f32 0.2, %v4523_v17  ;;  %v4526_v59 = vadd.f32 %v5730_v42, %v4429_v41  ;;  %v7481_v41 = vld [vmem:[#allocation9 + $0xd0] sm:$0xff]   ;;  %v7483_v42 = vld [vmem:[#allocation9 + $0xd8] sm:$0xff]  }
 0x52f   :  { %v4587_v22 = vsel %vm4555_vm11, %v4523_v17, %v4571_v14  ;;  %vm4556_vm12 = vcmp.ge.f32.partialorder %v4526_v59, 0.0  ;;  %v4572_v27 = vmul.f32 0.2, %v4526_v59  ;;  %v5731_v57 = vpop.f32.mrb[124].mxu1  ;;  %v7482_v17 = vld [vmem:[#allocation9 + $0x90] sm:$0xff]   ;;  %v7484_v14 = vld [vmem:[#allocation9 + $0x98] sm:$0xff]  }
 0x530   :  { %v5732_v33 = vpop.f32.mrb[125].mxu1  ;;  %v7372_v1 = vpack.i.bf16 %v4587_v22, %v4585_v48  ;;  %v7382_v5 = vpack.i.bf16 %v10063_v8, %v4587_v22  ;;  %v7486_v48 = vld [vmem:[#allocation9 + $0xa0] sm:$0xff]  }
 0x531   :  { %v5733_v30 = vadd.f32 %v5732_v33, %v5731_v57  ;;  %v5734_v6 = vpop.f32.mrb[126].mxu1  ;;  %v4588_v52 = vsel %vm4556_vm12, %v4526_v59, %v4572_v27  ;;  %v7485_v59 = vld [vmem:[#allocation9 + $0xe0] sm:$0xff]   ;;  %v7488_v27 = vld [vmem:[#allocation9 + $0xa8] sm:$0xff]   ;;  %v7489_v57 = vld [vmem:[#allocation9 + $0xf0] sm:$0xff]  }
 0x532   :  { %v5735_v24 = vpop.f32.mrb[127].mxu1  ;;  %7373 = vrot.lane.b32.xlu0 %v7372_v1, %s7907_s9  ;;  %v7377_v40 = vpack.i.bf16 %v4588_v52, %v10085_v7  ;;  %v7490_v33 = vld [vmem:[#allocation9 + $0xb0] sm:$0xff]   ;;  %v7492_v52 = vld [vmem:[#allocation9 + $0xb8] sm:$0xff]  }
 0x533   :  { %v4531_v53 = vadd.f32 %v5733_v30, %v4434_v19  ;;  %v5736_v63 = vadd.f32 %v5735_v24, %v5734_v6 }
 0x535   :  { %v4534_v44 = vadd.f32 %v5736_v63, %v4437_v15  ;;  %v4573_v46 = vmul.f32 0.2, %v4531_v53  ;;  %vm4557_vm14 = vcmp.ge.f32.partialorder %v4531_v53, 0.0 }
 0x536   :  { %7378 = vrot.lane.b32.xlu0 %v7377_v40, %s7893_s28 }
 0x537   :  { %v5737_v16 = vpop.f32.mrb[128].mxu1  ;;  %v4574_v25 = vmul.f32 0.2, %v4534_v44  ;;  %vm4558_vm3 = vcmp.ge.f32.partialorder %v4534_v44, 0.0  ;;  %v4589_v3 = vsel %vm4557_vm14, %v4531_v53, %v4573_v46 }
 0x538   :  { %v5738_v50 = vpop.f32.mrb[129].mxu1 }
 0x539   :  { %v5739_v11 = vadd.f32 %v5738_v50, %v5737_v16  ;;  %v5740_v55 = vpop.f32.mrb[130].mxu1  ;;  %v10094_v10 = vsel %vm4558_vm3, %v4534_v44, %v4574_v25 }
 0x53a   :  { %v5741_v62 = vpop.f32.mrb[131].mxu1  ;;  %7383 = vrot.lane.b32.xlu0 %v7382_v5, %s7908_s4  ;;  %v7491_v5 = vld [vmem:[#allocation9 + $0xf8] sm:$0xff]  }
 0x53b   :  { %v4539_v37 = vadd.f32 %v5739_v11, %v4442_v12  ;;  %v5742_v26 = vadd.f32 %v5741_v62, %v5740_v55 }
 0x53d   :  { %vm4559_vm15 = vcmp.ge.f32.partialorder %v4539_v37, 0.0  ;;  %v4575_v8 = vmul.f32 0.2, %v4539_v37  ;;  %v4542_v47 = vadd.f32 %v5742_v26, %v4445_v61 }
 0x53f   :  { %v4591_v45 = vsel %vm4559_vm15, %v4539_v37, %v4575_v8  ;;  %vm4560_vm4 = vcmp.ge.f32.partialorder %v4542_v47, 0.0  ;;  %v4576_v32 = vmul.f32 0.2, %v4542_v47 }
 0x540   :  { %v7387_v9 = vpack.i.bf16 %v4591_v45, %v4589_v3 }
 0x541   :  { %v4592_v58 = vsel %vm4560_vm4, %v4542_v47, %v4576_v32 }
 0x542   :  { %7388 = vrot.lane.b32.xlu1 %v7387_v9, %s7907_s9  ;;  %v7392_v49 = vpack.i.bf16 %v4592_v58, %v10094_v10 }
 0x544   :  { %7393 = vrot.lane.b32.xlu0 %v7392_v49, %s7893_s28 }
 0x546   :  { %4666 = vrot.lane.b32.xlu1 %v4591_v45, %s7908_s4 }
 0x584   :  { %v7354_v23 = vpop.permute.xlu1 %7353 }
 0x585   :  { %v7356_v20 = vunpack.i.h.bf16 %v7354_v23  ;;  %v7355_v29 = vunpack.i.l.bf16 %v7354_v23 }
 0x586   :  { %v7359_v2 = vpop.permute.xlu0 %7358 }
 0x587   :  { %v4676_v54 = vsel %vm2094_vm0, %v10051_v21, %v7356_v20  ;;  %v4675_v34 = vsel %vm2094_vm0, 0.0, %v7355_v29  ;;  %v7361_v38 = vunpack.i.h.bf16 %v7359_v2  ;;  %v7360_v60 = vunpack.i.l.bf16 %v7359_v2  ;;  %v7480_v21 = vld [vmem:[#allocation9 + $0x88] sm:$0xff]  }
 0x588   :  { %v4645_v51 = vpop.permute.xlu1 %4644 }
 0x589   :  { %v4679_v56 = vsel %vm2159_vm1, %v4675_v34, %v7360_v60  ;;  %v4680_v35 = vsel %vm2159_vm1, %v4676_v54, %v7361_v38 }
 0x58a   :  { %v4683_v28 = vsel %vm2224_vm2, %v4679_v56, %v4645_v51  ;;  %v4684_v0 = vsel %vm2224_vm2, %v4680_v35, %v9612_v18 }
 0x58b   :  { %v4693_v39 = vpack.c.bf16 %v4684_v0, %v4683_v28  ;;  %v7493_v28 = vld [vmem:[#allocation11 + $0x40] sm:$0xff]  }
 0x58c   :  { %v7494_v0 = vld [vmem:[#allocation11] sm:$0xff]  }
 0x58d   :  { %4992 = vmatprep.mubr.bf16.mxu1 %v4693_v39  ;;  %v7496_v39 = vld [vmem:[#allocation11 + $0x8] sm:$0xff]  }
 0x58e   :  { %4993 = vmatmul.mubr.bf16.vlgmr.msra.gmra.mrb[132].mxu1 %v9625_v31 }
 0x58f   :  { %5772 = vmatpush3.bf16.msra.mxu1 %v7478_v43  ;;  %v7497_v43 = vld [vmem:[#allocation11 + $0x50] sm:$0xff]  }
 0x590   :  { %5773 = vmatprep.subr.bf16.mxu1 %v7479_v36  ;;  %v7498_v36 = vld [vmem:[#allocation11 + $0x10] sm:$0xff]  }
 0x593   :  { %5774 = vmatpush3.bf16.msra.mxu1 %v7480_v21  ;;  %v7499_v21 = vld [vmem:[#allocation11 + $0x58] sm:$0xff]  }
 0x594   :  { %5775 = vmatprep.subr.bf16.mxu1 %v7481_v41  ;;  %v7364_v22 = vpop.permute.xlu1 %7363  ;;  %v7500_v41 = vld [vmem:[#allocation11 + $0x18] sm:$0xff]  }
 0x595   :  { %v7366_v30 = vunpack.i.h.bf16 %v7364_v22  ;;  %v7365_v53 = vunpack.i.l.bf16 %v7364_v22 }
 0x597   :  { %5776 = vmatpush3.bf16.msra.mxu1 %v7482_v17  ;;  %v4670_v50 = vsel %vm2094_vm0, %v10071_v13, %v7366_v30  ;;  %v4669_v61 = vsel %vm2094_vm0, 0.0, %v7365_v53  ;;  %v7501_v17 = vld [vmem:[#allocation11 + $0x60] sm:$0xff]   ;;  %v7507_v53 = vld [vmem:[#allocation11 + $0x78] sm:$0xff]  }
 0x598   :  { %5777 = vmatprep.subr.bf16.mxu1 %v7483_v42  ;;  %v7369_v19 = vpop.permute.xlu1 %7368  ;;  %v7502_v42 = vld [vmem:[#allocation11 + $0x20] sm:$0xff]  }
 0x599   :  { %v7371_v24 = vunpack.i.h.bf16 %v7369_v19  ;;  %v7370_v44 = vunpack.i.l.bf16 %v7369_v19 }
 0x59b   :  { %5778 = vmatpush3.bf16.msra.mxu1 %v7484_v14  ;;  %v4672_v11 = vsel %vm2159_vm1, %v4670_v50, %v7371_v24  ;;  %v4671_v25 = vsel %vm2159_vm1, %v4669_v61, %v7370_v44  ;;  %v7503_v14 = vld [vmem:[#allocation11 + $0x68] sm:$0xff]   ;;  %v7509_v50 = vld [vmem:[#allocation11 + $0xc0] sm:$0xff]  }
 0x59c   :  { %5779 = vmatprep.subr.bf16.mxu1 %v7485_v59  ;;  %v4674_v3 = vsel %vm2224_vm2, %v4672_v11, %v9612_v18  ;;  %v7504_v59 = vld [vmem:[#allocation11 + $0x28] sm:$0xff]  }
 0x59f   :  { %5780 = vmatpush3.bf16.msra.mxu1 %v7486_v48  ;;  %v7505_v48 = vld [vmem:[#allocation11 + $0x70] sm:$0xff]  }
 0x5a0   :  { %5781 = vmatprep.subr.bf16.mxu1 %v7487_v4  ;;  %v7506_v4 = vld [vmem:[#allocation11 + $0x30] sm:$0xff]  }
 0x5a3   :  { %5782 = vmatpush3.bf16.msra.mxu1 %v7488_v27 }
 0x5a4   :  { %v7374_v1 = vpop.permute.xlu0 %7373  ;;  %5783 = vmatprep.subr.bf16.mxu1 %v7489_v57 }
 0x5a5   :  { %v7376_v6 = vunpack.i.h.bf16 %v7374_v1  ;;  %v7375_v63 = vunpack.i.l.bf16 %v7374_v1 }
 0x5a7   :  { %5784 = vmatpush3.bf16.msra.mxu1 %v7490_v33  ;;  %v4678_v12 = vsel %vm2094_vm0, %v10085_v7, %v7376_v6  ;;  %v4677_v46 = vsel %vm2094_vm0, 0.0, %v7375_v63  ;;  %v7508_v63 = vld [vmem:[#allocation11 + $0x38] sm:$0xff]  }
 0x5a8   :  { %v7379_v15 = vpop.permute.xlu0 %7378  ;;  %5785 = vmatprep.subr.bf16.mxu1 %v7491_v5 }
 0x5a9   :  { %v7381_v40 = vunpack.i.h.bf16 %v7379_v15  ;;  %v7380_v16 = vunpack.i.l.bf16 %v7379_v15 }
 0x5ab   :  { %5786 = vmatpush3.bf16.msra.mxu1 %v7492_v52  ;;  %v4682_v55 = vsel %vm2159_vm1, %v4678_v12, %v7381_v40  ;;  %v4681_v8 = vsel %vm2159_vm1, %v4677_v46, %v7380_v16  ;;  %v5547_v40 = vld [vmem:[#allocation15] ss:$0 sm:$0xff] }
 0x5ac   :  { %v7384_v62 = vpop.permute.xlu0 %7383  ;;  %v4686_v7 = vsel %vm2224_vm2, %v4682_v55, %v9612_v18  ;;  %5799 = vmatprep.subr.bf16.mxu1 %v7493_v28 }
 0x5ad   :  { %v7386_v37 = vunpack.i.h.bf16 %v7384_v62  ;;  %v7385_v26 = vunpack.i.l.bf16 %v7384_v62 }
 0x5af   :  { %v4685_v13 = vsel %vm2224_vm2, %v4681_v8, %v7385_v26  ;;  %v4673_v47 = vsel %vm2224_vm2, %v4671_v25, %v7386_v37 }
 0x5b0   :  { %v4695_v45 = vpack.c.bf16 %v4686_v7, %v4685_v13  ;;  %v4694_v32 = vpack.c.bf16 %v4674_v3, %v4673_v47 }
 0x5b2   :  { %5000 = vmatprep.mubr.bf16.mxu1 %v4695_v45 }
 0x5b3   :  { %5001 = vmatmul.mubr.bf16.gmra.mrb[136].mxu1 %v4694_v32 }
 0x5b4   :  { %v7389_v9 = vpop.permute.xlu1 %7388  ;;  %5041 = vmatprep.mubr.bf16.mxu1 %v4695_v45 }
 0x5b5   :  { %v7391_v58 = vunpack.i.h.bf16 %v7389_v9  ;;  %v7390_v49 = vunpack.i.l.bf16 %v7389_v9 }
 0x5b6   :  { %v7394_v23 = vpop.permute.xlu0 %7393 }
 0x5b7   :  { %v7396_v20 = vunpack.i.h.bf16 %v7394_v23  ;;  %v7395_v29 = vunpack.i.l.bf16 %v7394_v23  ;;  %v4688_v2 = vsel %vm2094_vm0, %v10094_v10, %v7391_v58  ;;  %v4687_v54 = vsel %vm2094_vm0, 0.0, %v7390_v49  ;;  %v7495_v10 = vld [vmem:[#allocation11 + $0x48] sm:$0xff]  }
 0x5b8   :  { %v4667_v34 = vpop.permute.xlu1 %4666 }
 0x5b9   :  { %v4689_v38 = vsel %vm2159_vm1, %v4687_v54, %v7395_v29  ;;  %v4690_v60 = vsel %vm2159_vm1, %v4688_v2, %v7396_v20 }
 0x5ba   :  { %v4691_v51 = vsel %vm2224_vm2, %v4689_v38, %v4667_v34  ;;  %v4692_v56 = vsel %vm2224_vm2, %v4690_v60, %v9612_v18 }
 0x5bb   :  { %5042 = vmatmul.mubr.bf16.vlgmr.msra.gmra.mrb[140].mxu1 %v4694_v32  ;;  %v4696_v35 = vpack.c.bf16 %v4692_v56, %v4691_v51 }
 0x5bc   :  { %5049 = vmatprep.mubr.bf16.mxu1 %v9625_v31  ;;  %5800 = vmatpush3.bf16.msra.mxu1 %v7494_v0 }
 0x5bd   :  { %5801 = vmatprep.subr.bf16.mxu1 %v7495_v10  ;;  %v7510_v10 = vld [vmem:[#allocation11 + $0x80] sm:$0xff]  }
 0x5c0   :  { %5802 = vmatpush3.bf16.msra.mxu1 %v7496_v39  ;;  %v7511_v39 = vld [vmem:[#allocation11 + $0xc8] sm:$0xff]  }
 0x5c1   :  { %5803 = vmatprep.subr.bf16.mxu1 %v7497_v43  ;;  %v7512_v43 = vld [vmem:[#allocation11 + $0x88] sm:$0xff]  }
 0x5c3   :  { %5050 = vmatmul.mubr.bf16.gmra.mrb[144].mxu1 %v4696_v35 }
 0x5c4   :  { %5804 = vmatpush3.bf16.msra.mxu1 %v7498_v36  ;;  %v7513_v36 = vld [vmem:[#allocation11 + $0xd0] sm:$0xff]  }
 0x5c5   :  { %5805 = vmatprep.subr.bf16.mxu1 %v7499_v21  ;;  %v7514_v21 = vld [vmem:[#allocation11 + $0x90] sm:$0xff]  }
 0x5c8   :  { %5806 = vmatpush3.bf16.msra.mxu1 %v7500_v41  ;;  %v7515_v41 = vld [vmem:[#allocation11 + $0xd8] sm:$0xff]  }
 0x5c9   :  { %5807 = vmatprep.subr.bf16.mxu1 %v7501_v17  ;;  %v7516_v17 = vld [vmem:[#allocation11 + $0x98] sm:$0xff]  }
 0x5cc   :  { %5808 = vmatpush3.bf16.msra.mxu1 %v7502_v42  ;;  %v7517_v42 = vld [vmem:[#allocation11 + $0xe0] sm:$0xff]  }
 0x5cd   :  { %5809 = vmatprep.subr.bf16.mxu1 %v7503_v14  ;;  %v7518_v14 = vld [vmem:[#allocation11 + $0xa0] sm:$0xff]  }
 0x5d0   :  { %5810 = vmatpush3.bf16.msra.mxu1 %v7504_v59  ;;  %v7519_v59 = vld [vmem:[#allocation11 + $0xe8] sm:$0xff]  }
 0x5d1   :  { %5811 = vmatprep.subr.bf16.mxu1 %v7505_v48  ;;  %v7520_v48 = vld [vmem:[#allocation11 + $0xa8] sm:$0xff]  }
 0x5d4   :  { %5812 = vmatpush3.bf16.msra.mxu1 %v7506_v4 }
 0x5d5   :  { %5813 = vmatprep.subr.bf16.mxu1 %v7507_v53 }
 0x5d8   :  { %5814 = vmatpush3.bf16.msra.mxu1 %v7508_v63  ;;  %v5580_v63 = vld [vmem:[#allocation17] ss:$0 sm:$0xff] }
 0x5d9   :  { %5821 = vmatprep.subr.bf16.mxu1 %v7509_v50 }
 0x661   :  { %v5759_v22 = vpop.f32.mrb[132].mxu1 }
 0x662   :  { %v5760_v27 = vpop.f32.mrb[133].mxu1 }
 0x663   :  { %v5761_v57 = vadd.f32 %v5760_v27, %v5759_v22  ;;  %v5762_v33 = vpop.f32.mrb[134].mxu1 }
 0x664   :  { %v5763_v1 = vpop.f32.mrb[135].mxu1 }
 0x665   :  { %v5764_v5 = vadd.f32 %v5763_v1, %v5762_v33  ;;  %v4995_v12 = vadd.f32 %v5761_v57, %v5547_v40  ;;  %v7522_v57 = vld [vmem:[#allocation11 + $0xb0] sm:$0xff]   ;;  %v7523_v33 = vld [vmem:[#allocation11 + $0xf8] sm:$0xff]  }
 0x667   :  { %v4998_v61 = vadd.f32 %v5764_v5, %v5547_v40  ;;  %v7524_v5 = vld [vmem:[#allocation11 + $0xb8] sm:$0xff]  }
 0x686   :  { %v5765_v19 = vpop.f32.mrb[136].mxu1 }
 0x687   :  { %v5766_v30 = vpop.f32.mrb[137].mxu1 }
 0x688   :  { %v5767_v6 = vadd.f32 %v5766_v30, %v5765_v19  ;;  %v5768_v52 = vpop.f32.mrb[138].mxu1 }
 0x689   :  { %v5769_v24 = vpop.f32.mrb[139].mxu1 }
 0x68a   :  { %v5770_v15 = vadd.f32 %v5769_v24, %v5768_v52  ;;  %v5003_v3 = vadd.f32 %v5767_v6, %v5547_v40 }
 0x68c   :  { %v5006_v49 = vadd.f32 %v5770_v15, %v5547_v40 }
 0x68e   :  { %v5787_v44 = vpop.f32.mrb[140].mxu1 }
 0x68f   :  { %v5788_v16 = vpop.f32.mrb[141].mxu1 }
 0x690   :  { %v5789_v11 = vadd.f32 %v5788_v16, %v5787_v44  ;;  %v5790_v55 = vpop.f32.mrb[142].mxu1 }
 0x691   :  { %v5791_v62 = vpop.f32.mrb[143].mxu1 }
 0x692   :  { %v5044_v46 = vadd.f32 %v5789_v11, %v4995_v12  ;;  %v5792_v37 = vadd.f32 %v5791_v62, %v5790_v55 }
 0x694   :  { %v5062_v26 = vmul.f32 0.2, %v5044_v46  ;;  %v5047_v25 = vadd.f32 %v5792_v37, %v4998_v61  ;;  %vm5058_vm5 = vcmp.ge.f32.partialorder %v5044_v46, 0.0  ;;  %v5613_v61 = vld [vmem:[#allocation18] ss:$0 sm:$0xff] }
 0x696   :  { %v5793_v8 = vpop.f32.mrb[144].mxu1  ;;  %v5066_v13 = vsel %vm5058_vm5, %v5044_v46, %v5062_v26  ;;  %vm5059_vm6 = vcmp.ge.f32.partialorder %v5047_v25, 0.0  ;;  %v5063_v7 = vmul.f32 0.2, %v5047_v25  ;;  %v5614_v26 = vld [vmem:[#allocation2] ss:$0 sm:$0xff] }
 0x697   :  { %v5794_v47 = vpop.f32.mrb[145].mxu1  ;;  %5071 = vrot.lane.b32.xlu0 %v5066_v13, %s7907_s9 }
 0x698   :  { %v5795_v45 = vadd.f32 %v5794_v47, %v5793_v8  ;;  %v5796_v32 = vpop.f32.mrb[146].mxu1  ;;  %v5067_v9 = vsel %vm5059_vm6, %v5047_v25, %v5063_v7 }
 0x699   :  { %v5797_v58 = vpop.f32.mrb[147].mxu1  ;;  %5075 = vrot.lane.b32.xlu1 %v5067_v9, %s7893_s28 }
 0x69a   :  { %v5052_v23 = vadd.f32 %v5795_v45, %v5003_v3  ;;  %v5798_v20 = vadd.f32 %v5797_v58, %v5796_v32 }
 0x69c   :  { %v5064_v29 = vmul.f32 0.2, %v5052_v23  ;;  %v5055_v2 = vadd.f32 %v5798_v20, %v5006_v49  ;;  %vm5060_vm7 = vcmp.ge.f32.partialorder %v5052_v23, 0.0 }
 0x69e   :  { %v5068_v54 = vsel %vm5060_vm7, %v5052_v23, %v5064_v29  ;;  %vm5061_vm8 = vcmp.ge.f32.partialorder %v5055_v2, 0.0  ;;  %v5065_v34 = vmul.f32 0.2, %v5055_v2 }
 0x69f   :  { %5079 = vrot.lane.b32.xlu0 %v5068_v54, %s7907_s9 }
 0x6a0   :  { %v5069_v38 = vsel %vm5061_vm8, %v5055_v2, %v5065_v34 }
 0x6a1   :  { %5083 = vrot.lane.b32.xlu1 %v5069_v38, %s7893_s28  ;;  %s7910_s28 = smov [#allocation20]  }
 0x6a2   :  { %s5467_s29 = sshll.u32 %s7910_s28, 4  ;;  %s5468_s29 = int_to_ptr.vmem [resolvable:$true] %s5467_s29 }
 0x6a3   :  { %s7856_s26 = scalar_lea.vmem %s5468_s29, 128  ;;  %p7861_p11 = scmp.lt.s32.totalorder %s5468_s29, %s5468_s29 }
 0x6a4   :  { %p7857_p10 = scmp.ne.s32.totalorder %s5468_s29, %s7856_s26  ;;  %p7862_p12 = scmp.lt.s32.totalorder %s7856_s26, %s7856_s26 }
 0x6a6   :  { %p7863_p13 = por %p7862_p12, %p7861_p11 }
 0x6a8   :  { %p7864_p0 = pnand %p7863_p13, %p7857_p10 }
 0x709   :  { %v5072_v60 = vpop.permute.xlu0 %5071 }
 0x70a   :  { %v5086_v51 = vsel %vm2094_vm0, 0.0, %v5072_v60 }
 0x70b   :  { %v5076_v56 = vpop.permute.xlu1 %5075 }
 0x70c   :  { %v5087_v35 = vsel %vm2159_vm1, %v5086_v51, %v5076_v56 }
 0x70d   :  { %v5088_v28 = vsel %vm2224_vm2, %v5087_v35, %v9612_v18 }
 0x70e   :  { %v5092_v0 = vpack.c.bf16 %v5088_v28, %v5088_v28 }
 0x710   :  { %5389 = vmatprep.mubr.bf16.mxu1 %v5092_v0 }
 0x711   :  { %5390 = vmatmul.mubr.bf16.vlgmr.msra.gmra.mrb[148].mxu1 %v9625_v31  ;;  %v5080_v4 = vpop.permute.xlu0 %5079 }
 0x712   :  { %5822 = vmatpush3.bf16.msra.mxu1 %v7510_v10  ;;  %5429 = vmatprep.mubr.bf16.mxu1 %v9625_v31  ;;  %v7521_v31 = vld [vmem:[#allocation11 + $0xf0] sm:$0xff]   ;;  %v5089_v22 = vsel %vm2094_vm0, 0.0, %v5080_v4 }
 0x713   :  { %5823 = vmatprep.subr.bf16.mxu1 %v7511_v39  ;;  %v5084_v27 = vpop.permute.xlu1 %5083 }
 0x714   :  { %v5090_v1 = vsel %vm2159_vm1, %v5089_v22, %v5084_v27 }
 0x715   :  { %v5091_v19 = vsel %vm2224_vm2, %v5090_v1, %v9612_v18  ;;  %vm5459_vm2 = vcmask 7168  }
 0x716   :  { %5824 = vmatpush3.bf16.msra.mxu1 %v7512_v43  ;;  %v5093_v30 = vpack.c.bf16 %v5091_v19, %v5091_v19 }
 0x717   :  { %5825 = vmatprep.subr.bf16.mxu1 %v7513_v36 }
 0x71a   :  { %5826 = vmatpush3.bf16.msra.mxu1 %v7514_v21 }
 0x71b   :  { %5827 = vmatprep.subr.bf16.mxu1 %v7515_v41 }
 0x71e   :  { %5828 = vmatpush3.bf16.msra.mxu1 %v7516_v17 }
 0x71f   :  { %5829 = vmatprep.subr.bf16.mxu1 %v7517_v42 }
 0x722   :  { %5830 = vmatpush3.bf16.msra.mxu1 %v7518_v14 }
 0x723   :  { %5831 = vmatprep.subr.bf16.mxu1 %v7519_v59 }
 0x726   :  { %5832 = vmatpush3.bf16.msra.mxu1 %v7520_v48 }
 0x727   :  { %5833 = vmatprep.subr.bf16.mxu1 %v7521_v31 }
 0x72a   :  { %5834 = vmatpush3.bf16.msra.mxu1 %v7522_v57 }
 0x72b   :  { %5835 = vmatprep.subr.bf16.mxu1 %v7523_v33 }
 0x72e   :  { %5836 = vmatpush3.bf16.msra.mxu1 %v7524_v5 }
 0x731   :  { %5430 = vmatmul.mubr.bf16.vlgmr.msra.gmra.mrb[152].mxu1 %v5093_v30 }
 0x7e4   :  { %v5815_v6 = vpop.f32.mrb[148].mxu1 }
 0x7e5   :  { %v5816_v52 = vpop.f32.mrb[149].mxu1 }
 0x7e6   :  { %v5817_v24 = vadd.f32 %v5816_v52, %v5815_v6  ;;  %v5818_v15 = vpop.f32.mrb[150].mxu1 }
 0x7e7   :  { %v5819_v53 = vpop.f32.mrb[151].mxu1 }
 0x7e8   :  { %v5392_v16 = vadd.f32 %v5817_v24, %v5580_v63 }
 0x804   :  { %v5837_v40 = vpop.f32.mrb[152].mxu1 }
 0x805   :  { %v5838_v44 = vpop.f32.mrb[153].mxu1 }
 0x806   :  { %v5839_v50 = vadd.f32 %v5838_v44, %v5837_v40  ;;  %v5840_v12 = vpop.f32.mrb[154].mxu1 }
 0x807   :  { %v5841_v11 = vpop.f32.mrb[155].mxu1 }
 0x808   :  { %v5432_v55 = vadd.f32 %v5839_v50, %v5392_v16 }
 0x80a   :  { %v5438_v62 = vmul.f32 0.2, %v5432_v55  ;;  %vm5437_vm1 = vcmp.ge.f32.partialorder %v5432_v55, 0.0 }
 0x80c   :  { %v5439_v18 = vsel %vm5437_vm1, %v5432_v55, %v5438_v62 }
 0x80d   :  { %v5447_v46 = vmul.f32 %v5613_v61, %v5439_v18 }
 0x80f   :  { %v5448_v37 = vsel %vm2094_vm0, %v5447_v46, 0.0 }
 0x810   :  { %5449 = vadd.xlane.f32.xlu0 %v5448_v37 }
 0x89d   :  { %v5450_v25 = vpop.xlane.xlu0 %5449 }
 0x89e   :  { %v5458_v8 = vadd.f32 %v5614_v26, %v5450_v25 }
 0x8a0   :  { %5460 = vst.msk [vmem:[#allocation20] sm:$0xff] %vm5459_vm2, %v5458_v8 }
 0x8a1   :  { %7867 = shalt.err (!%p7864_p0)
}
 0x8a2   :  { %s7868_s18 = scalar_lea.hbm %s10172_s11, 128 }
 0x8a3   :  { %p7869_p1 = scmp.ne.s32.totalorder %s10172_s11, %s7868_s18  ;;  %p7872_p2 = scmp.lt.u32.totalorder %s7868_s18, %s10172_s11 }
 0x8a5   :  { %p7874_p3 = pnand %p7872_p2, %p7869_p1 }
 0x8a7   :  { %7877 = shalt.err (!%p7874_p3)
}
 0x8a8   :  { %5470 = dma.vmem_to_hbm [thread:$0]  %s5468_s29, 128, %s10172_s11, [#allocation5]  }
 0x8a9   :  { %7890 = dma.done.wait [#allocation5], 128  }
 0x8aa   :  { %7891 = vsyncadd [#allocation5], 4294967168 }
 0x8ab   :  { %5474 = vsyncpa [#allocation4], 1 }
 0x8ac   :  { %5475 = vsyncpa [#allocation7], 1 }
 0x8ad   :  { %5476 = vsyncpa [#allocation10], 1 }
 0x8ae   :  { %5477 = vsyncpa [#allocation13], 1 }
 0x8af   :  { %5478 = vsyncpa [#allocation16], 1 }
 0x8b0   :  { %5479 = vsyncpa [#allocation19], 1 }
 0x8b1   :  { %5480 = vsyncpa [#allocation5], 1 }

</bundles_post_ra>
